<compile_context>
chip_gen: v7x
topology: tpu7x:2x2x1
jax: 0.10.0
libtpu: 0.0.40
codegen_flags: <defaults>
</compile_context>

<pallas_src>
import functools
import math

import jax
import jax.numpy as jnp
from jax.experimental import pallas as pl
from jax.experimental.pallas import tpu as pltpu

# ----------------------- synthetic model hyper-params -----------------------
HIDDEN = 64
HEADS = 4
HEAD_DIM = HIDDEN // HEADS
FFN = 128
NLAYERS = 2
VOCAB = 128
MAXPOS = 64
NONCES = [126, 127]          # last vocab ids, like the torch module
MASK_ID = 3
LAYERS = [-1, -2]            # layers combined from firstLM hidden states
INIT_RANGE = 0.02
LN_EPS = 1e-5
RESCALE = False

PARAM_KEYS = ("wqkv", "bqkv", "wo", "bo", "ln1_g", "ln1_b",
              "ff1_w", "ff1_b", "ff2_w", "ff2_b", "ln2_g", "ln2_b")


# ----------------------------- in-kernel helpers ------------------------------
def _mm(a, b):
    # MXU matmul: bf16 operands, f32 accumulation.
    return jnp.dot(a.astype(jnp.bfloat16), b.astype(jnp.bfloat16),
                   preferred_element_type=jnp.float32)


def _mm_nt(a, b):
    # a @ b.T without materializing a transpose (contract dim 1 with dim 1).
    return jax.lax.dot_general(a.astype(jnp.bfloat16), b.astype(jnp.bfloat16),
                               (((1,), (1,)), ((), ())),
                               preferred_element_type=jnp.float32)


def _layernorm(x, g, b, eps=LN_EPS):
    mu = jnp.mean(x, axis=-1, keepdims=True)
    xc = x - mu
    var = jnp.mean(xc * xc, axis=-1, keepdims=True)
    return xc * jax.lax.rsqrt(var + eps) * g + b


def _gelu(y):
    # TODO(synk): torch reference uses erf-based GELU; tanh approximation used in-kernel.
    c = math.sqrt(2.0 / math.pi)
    return 0.5 * y * (1.0 + jnp.tanh(c * (y + 0.044715 * y * y * y)))


def _encoder_layer(x, valid, p, act):
    """Post-norm transformer encoder layer on one sequence. x: (S, H), valid: (1, S)."""
    S, H = x.shape
    scale = 1.0 / math.sqrt(HEAD_DIM)
    qkv = _mm(x, p["wqkv"]) + p["bqkv"]                     # (S, 3H) fused QKV
    attn = jnp.zeros((S, H), jnp.float32)
    for h in range(HEADS):
        lo = h * HEAD_DIM
        q = qkv[:, lo:lo + HEAD_DIM]
        k = qkv[:, H + lo:H + lo + HEAD_DIM]
        v = qkv[:, 2 * H + lo:2 * H + lo + HEAD_DIM]
        s = _mm_nt(q, k) * scale                            # (S, S)
        s = jnp.where(valid > 0.5, s, -1e30)
        s = s - jnp.max(s, axis=-1, keepdims=True)
        pr = jnp.exp(s)
        pr = jnp.where(valid > 0.5, pr, 0.0)                # robust to fully-masked rows
        denom = jnp.maximum(jnp.sum(pr, axis=-1, keepdims=True), 1e-20)
        pr = pr * pl.reciprocal(denom, approx=True)
        o = _mm(pr, v)                                      # (S, HEAD_DIM)
        # accumulate directly into the output projection (no head concat)
        attn = attn + _mm(o, p["wo"][lo:lo + HEAD_DIM, :])
    attn = attn + p["bo"]
    h1 = _layernorm(x + attn, p["ln1_g"], p["ln1_b"])
    f = _mm(h1, p["ff1_w"]) + p["ff1_b"]
    f = _gelu(f) if act == "gelu" else jnp.maximum(f, 0.0)
    f = _mm(f, p["ff2_w"]) + p["ff2_b"]
    return _layernorm(h1 + f, p["ln2_g"], p["ln2_b"])


def _layer_params(param_refs, l):
    return {k: param_refs[i][l] for i, k in enumerate(PARAM_KEYS)}


# ----------------------------- fused kernels ----------------------------------
def _first_lm_kernel(emb_ref, attn_ref, pos_ref, eln_g_ref, eln_b_ref, *rest, nlayers):
    """firstLM roberta: embedding LN + nlayers encoder layers + combine_layers([-1,-2])."""
    param_refs = rest[:len(PARAM_KEYS)]
    out_ref = rest[len(PARAM_KEYS)]
    valid = attn_ref[0]                                     # (1, S)
    x = _layernorm(emb_ref[0] + pos_ref[...], eln_g_ref[...], eln_b_ref[...])
    prev = x
    for l in range(nlayers):
        prev = x
        x = _encoder_layer(x, valid, _layer_params(param_refs, l), "gelu")
    # TODO(synk): combine_layers source not provided; mean over the selected hidden layers.
    out_ref[0] = 0.5 * (x + prev)


def _embgen_kernel(x_ref, attn_ref, *rest):
    """emb_gen: 1-layer batch_first TransformerEncoder (relu), output the CLS row."""
    param_refs = rest[:len(PARAM_KEYS)]
    out_ref = rest[len(PARAM_KEYS)]
    valid = attn_ref[0]
    y = _encoder_layer(x_ref[0], valid, _layer_params(param_refs, 0), "relu")
    out_ref[0] = y[0:1, :]


def _task_kernel(emb_ref, attn_ref, pos_ref, eln_g_ref, eln_b_ref, *rest, nlayers):
    """secondLM roberta + RobertaLMHead (tied to new_w) + fused per-token cross entropy."""
    param_refs = rest[:len(PARAM_KEYS)]
    (dw_ref, db_ref, hg_ref, hb_ref, bias_ref, new_w_ref, onehot_ref,
     logits_ref, ce_ref) = rest[len(PARAM_KEYS):]
    valid = attn_ref[0]
    x = _layernorm(emb_ref[0] + pos_ref[...], eln_g_ref[...], eln_b_ref[...])
    for l in range(nlayers):
        x = _encoder_layer(x, valid, _layer_params(param_refs, l), "gelu")
    # calc_second_lmhead: dense -> gelu -> layer_norm -> F.linear(x, new_w, bias)
    h = _gelu(_mm(x, dw_ref[...]) + db_ref[...])
    h = _layernorm(h, hg_ref[...], hb_ref[...])
    logits = _mm_nt(h, new_w_ref[0]) + bias_ref[...]        # (S, V), contracts new_w dim 1
    logits_ref[0] = logits
    # fused per-token cross entropy (masking / means done on tiny arrays outside)
    m = jnp.max(logits, axis=-1, keepdims=True)
    lse = m + jnp.log(jnp.sum(jnp.exp(logits - m), axis=-1, keepdims=True))
    picked = jnp.sum(logits * onehot_ref[0], axis=-1, keepdims=True)
    ce_ref[0] = lse - picked


# ----------------------------- pallas_call wrappers ---------------------------
def _const_spec(arr):
    nd = arr.ndim
    return pl.BlockSpec(arr.shape, lambda *i: (0,) * nd)


def _parallel():
    return pltpu.CompilerParams(dimension_semantics=("parallel",))


def first_lm_combined(stacked, eln_g, eln_b, pos_emb, inputs_embeds, attn_valid):
    B, S, H = inputs_embeds.shape
    attn3 = attn_valid.reshape(B, 1, S).astype(jnp.float32)
    pos = pos_emb[:S]
    plist = [stacked[k] for k in PARAM_KEYS]
    in_specs = ([pl.BlockSpec((1, S, H), lambda i: (i, 0, 0)),
                 pl.BlockSpec((1, 1, S), lambda i: (i, 0, 0)),
                 _const_spec(pos), _const_spec(eln_g), _const_spec(eln_b)]
                + [_const_spec(p) for p in plist])
    return pl.pallas_call(
        functools.partial(_first_lm_kernel, nlayers=NLAYERS),
        out_shape=jax.ShapeDtypeStruct((B, S, H), jnp.float32),
        grid=(B,),
        in_specs=in_specs,
        out_specs=pl.BlockSpec((1, S, H), lambda i: (i, 0, 0)),
        compiler_params=_parallel(),
    )(inputs_embeds.astype(jnp.float32), attn3, pos, eln_g, eln_b, *plist)


def embgen_cls(embgen_stacked, x, attn_valid):
    B, S1, H = x.shape
    attn3 = attn_valid.reshape(B, 1, S1).astype(jnp.float32)
    plist = [embgen_stacked[k] for k in PARAM_KEYS]
    out = pl.pallas_call(
        _embgen_kernel,
        out_shape=jax.ShapeDtypeStruct((B, 1, H), jnp.float32),
        grid=(B,),
        in_specs=([pl.BlockSpec((1, S1, H), lambda i: (i, 0, 0)),
                   pl.BlockSpec((1, 1, S1), lambda i: (i, 0, 0))]
                  + [_const_spec(p) for p in plist]),
        out_specs=pl.BlockSpec((1, 1, H), lambda i: (i, 0, 0)),
        compiler_params=_parallel(),
    )(x.astype(jnp.float32), attn3, *plist)
    return out[:, 0, :]                                     # (B, H)


def task_lm_head_ce(second_stacked, second, head, input_embeds, attn_valid, new_w, onehot):
    B, S, H = input_embeds.shape
    V = new_w.shape[1]
    attn3 = attn_valid.reshape(B, 1, S).astype(jnp.float32)
    pos = second["pos_emb"][:S]
    plist = [second_stacked[k] for k in PARAM_KEYS]
    hlist = [head["dense_w"], head["dense_b"], head["ln_g"], head["ln_b"], head["bias"]]
    logits, ce = pl.pallas_call(
        functools.partial(_task_kernel, nlayers=NLAYERS),
        out_shape=(jax.ShapeDtypeStruct((B, S, V), jnp.float32),
                   jax.ShapeDtypeStruct((B, S, 1), jnp.float32)),
        grid=(B,),
        in_specs=([pl.BlockSpec((1, S, H), lambda i: (i, 0, 0)),
                   pl.BlockSpec((1, 1, S), lambda i: (i, 0, 0)),
                   _const_spec(pos),
                   _const_spec(second["emb_ln_g"]), _const_spec(second["emb_ln_b"])]
                  + [_const_spec(p) for p in plist]
                  + [_const_spec(h) for h in hlist]
                  + [pl.BlockSpec((1, V, H), lambda i: (i, 0, 0)),
                     pl.BlockSpec((1, S, V), lambda i: (i, 0, 0))]),
        out_specs=(pl.BlockSpec((1, S, V), lambda i: (i, 0, 0)),
                   pl.BlockSpec((1, S, 1), lambda i: (i, 0, 0))),
        compiler_params=_parallel(),
    )(input_embeds.astype(jnp.float32), attn3, pos,
      second["emb_ln_g"], second["emb_ln_b"], *plist, *hlist, new_w, onehot)
    return logits, ce[..., 0]


# ----------------------------- parameter init ----------------------------------
def _normal(key, shape, std=INIT_RANGE):
    return (std * jax.random.normal(key, shape)).astype(jnp.float32)


def init_layer_params(key, hidden, ffn):
    ks = jax.random.split(key, 4)
    return dict(
        wqkv=_normal(ks[0], (hidden, 3 * hidden)),
        bqkv=jnp.zeros((1, 3 * hidden), jnp.float32),
        wo=_normal(ks[1], (hidden, hidden)),
        bo=jnp.zeros((1, hidden), jnp.float32),
        ln1_g=jnp.ones((1, hidden), jnp.float32),
        ln1_b=jnp.zeros((1, hidden), jnp.float32),
        ff1_w=_normal(ks[2], (hidden, ffn)),
        ff1_b=jnp.zeros((1, ffn), jnp.float32),
        ff2_w=_normal(ks[3], (ffn, hidden)),
        ff2_b=jnp.zeros((1, hidden), jnp.float32),
        ln2_g=jnp.ones((1, hidden), jnp.float32),
        ln2_b=jnp.zeros((1, hidden), jnp.float32),
    )


def stack_layers(layers):
    return {k: jnp.stack([l[k] for l in layers], axis=0) for k in PARAM_KEYS}


def init_lm_params(key, vocab, hidden, nlayers, ffn, maxpos, n_nonces):
    ks = jax.random.split(key, 2 + nlayers)
    word = _normal(ks[0], (vocab, hidden))
    # MorphMemoryModel.__init__: nonce rows <- mean of the non-nonce embedding rows
    m = jnp.mean(word[: vocab - n_nonces], axis=0)
    word = word.at[vocab - n_nonces:].set(m)
    return dict(
        word_emb=word,
        pos_emb=_normal(ks[1], (maxpos, hidden)),
        emb_ln_g=jnp.ones((1, hidden), jnp.float32),
        emb_ln_b=jnp.zeros((1, hidden), jnp.float32),
        layers=[init_layer_params(ks[2 + i], hidden, ffn) for i in range(nlayers)],
    )


def init_lm_head(key, hidden, vocab):
    return dict(
        dense_w=_normal(key, (hidden, hidden)),
        dense_b=jnp.zeros((1, hidden), jnp.float32),
        ln_g=jnp.ones((1, hidden), jnp.float32),
        ln_b=jnp.zeros((1, hidden), jnp.float32),
        bias=jnp.zeros((1, vocab), jnp.float32),
    )


# ----------------------------- full forward -------------------------------------
def model_forward(params, task_ids, task_attn, task_labels, ctx_ids, ctx_attn):
    first, second, head = params["first"], params["second"], params["lm_head"]
    nonce_arr = params["nonces"]
    b_task, k_task, l_task = task_ids.shape
    _, k_ctx, l_ctx = ctx_ids.shape
    task_ids_f = task_ids.reshape(b_task, l_task)          # k_task == 1
    task_attn_f = task_attn.reshape(b_task, l_task)
    task_labels_f = task_labels.reshape(b_task, l_task)

    # ---------------- context path: firstLM + emb_gen, batched over all contexts ---------
    hits = ctx_ids[..., None] == nonce_arr[None, None, None, :]     # (b, k, l, n_nonce)
    is_nonce = jnp.any(hits, axis=-1)
    mlm_ids = jnp.where(is_nonce, MASK_ID, ctx_ids).reshape(b_task * k_ctx, l_ctx)
    ctx_attn_f = ctx_attn.reshape(b_task * k_ctx, l_ctx)

    first_embeds = first["word_emb"][mlm_ids]                        # (B1, l_ctx, H)
    combined = first_lm_combined(params["first_stack"], first["emb_ln_g"],
                                 first["emb_ln_b"], first["pos_emb"],
                                 first_embeds, ctx_attn_f)
    # self.dropout(0.2): eval-mode identity

    B1 = b_task * k_ctx
    cls = jnp.broadcast_to(params["cls_token"][None, :, :], (B1, 1, HIDDEN))
    embg_in = jnp.concatenate([cls, combined], axis=1)               # (B1, l_ctx+1, H)
    embg_attn = jnp.concatenate(
        [jnp.ones((B1, 1), jnp.float32), ctx_attn_f.astype(jnp.float32)], axis=1)
    nonce_embeds = embgen_cls(params["embgen_stack"], embg_in, embg_attn)   # (B1, H)

    # OnlineProtoNet with mean aggregation, one memory per example
    mem = jnp.mean(nonce_embeds.reshape(b_task, k_ctx, HIDDEN), axis=1)     # (b, H)
    if RESCALE:
        # TODO(synk): OnlineProtoNet.retrieve(normalize=True) source not provided;
        # rescale to the mean embedding norm of secondLM.
        mem = mem / (jnp.linalg.norm(mem, axis=-1, keepdims=True) + 1e-12) \
            * params["mean_norm"]

    # nonce id present in each example's contexts (falls back to NONCES[0] if absent)
    present = jnp.any(hits, axis=(1, 2))                             # (b, n_nonce)
    new_token = nonce_arr[jnp.argmax(present, axis=-1)]              # (b,)

    # get_new_weights_new: w * ~mask + scattered memory row (per example)
    w = second["word_emb"]
    row_mask = jnp.arange(VOCAB)[None, :] == new_token[:, None]      # (b, V)
    new_w = jnp.where(row_mask[:, :, None], mem[:, None, :], w[None, :, :])  # (b, V, H)

    # ---------------- task path: secondLM roberta + LM head + CE, batched over examples --
    input_embeds = jax.vmap(lambda wi, ids: wi[ids])(new_w, task_ids_f)      # (b, l, H)
    safe_labels = jnp.where(task_labels_f == -100, 0, task_labels_f)
    onehot = jax.nn.one_hot(safe_labels, VOCAB, dtype=jnp.float32)
    logits, per_tok = task_lm_head_ce(params["second_stack"], second, head,
                                      input_embeds, task_attn_f, new_w, onehot)

    valid = (task_labels_f != -100).astype(jnp.float32)
    lm_loss = jnp.sum(per_tok * valid, axis=-1) / jnp.maximum(jnp.sum(valid, axis=-1), 1.0)

    # TODO(synk): get_new_token_loss_labels source not provided; masked mean CE over
    # positions whose label is one of the nonce (new) tokens.
    is_new = jnp.any(task_labels_f[..., None] == nonce_arr[None, None, :], axis=-1)
    new_mask = valid * is_new.astype(jnp.float32)
    new_tok_loss = jnp.sum(per_tok * new_mask, axis=-1) / jnp.maximum(
        jnp.sum(new_mask, axis=-1), 1.0)

    return dict(loss=jnp.mean(lm_loss),
                logits=logits,
                new_token_loss=jnp.mean(new_tok_loss))


# ---------------------------------- main -----------------------------------------
if __name__ == "__main__":
    key = jax.random.PRNGKey(0)
    k_first, k_second, k_head, k_emb, k_cls, k_data = jax.random.split(key, 6)

    first = init_lm_params(k_first, VOCAB, HIDDEN, NLAYERS, FFN, MAXPOS, len(NONCES))
    second = init_lm_params(k_second, VOCAB, HIDDEN, NLAYERS, FFN, MAXPOS, len(NONCES))
    lm_head = init_lm_head(k_head, HIDDEN, VOCAB)
    emb_gen = init_layer_params(k_emb, HIDDEN, FFN)   # _init_weights: N(0,0.02), zero bias
    cls_token = _normal(k_cls, (1, HIDDEN))

    norms = jnp.linalg.norm(second["word_emb"][: VOCAB - len(NONCES)], axis=1)
    params = dict(first=first, second=second, lm_head=lm_head,
                  first_stack=stack_layers(first["layers"]),
                  second_stack=stack_layers(second["layers"]),
                  embgen_stack=stack_layers([emb_gen]),
                  cls_token=cls_token,
                  nonces=jnp.array(NONCES, jnp.int32),
                  mean_norm=jnp.mean(norms), std_norm=jnp.std(norms))

    # deterministic synthetic batch
    b_task, l_task = 2, 16
    k_ctx, l_ctx = 2, 16
    kd = jax.random.split(k_data, 2)

    task_ids = jax.random.randint(kd[0], (b_task, 1, l_task), 4, VOCAB - len(NONCES))
    task_ids = task_ids.at[0, 0, 6].set(NONCES[0]).at[1, 0, 6].set(NONCES[1])
    task_ids = task_ids.at[:, :, 0].set(0)
    task_attn = jnp.ones((b_task, 1, l_task), jnp.int32).at[:, :, -2:].set(0)
    task_labels = jnp.full((b_task, 1, l_task), -100, jnp.int32)
    task_labels = task_labels.at[0, 0, 5].set(17).at[0, 0, 6].set(NONCES[0])
    task_labels = task_labels.at[1, 0, 5].set(23).at[1, 0, 6].set(NONCES[1])

    ctx_ids = jax.random.randint(kd[1], (b_task, k_ctx, l_ctx), 4, VOCAB - len(NONCES))
    ctx_ids = ctx_ids.at[0, :, 3].set(NONCES[0]).at[1, :, 3].set(NONCES[1])
    ctx_attn = jnp.ones((b_task, k_ctx, l_ctx), jnp.int32).at[:, :, -3:].set(0)

    fwd = jax.jit(functools.partial(model_forward, params))
    out = fwd(task_ids, task_attn, task_labels, ctx_ids, ctx_attn)
    out = jax.tree_util.tree_map(lambda x: x.block_until_ready(), out)

    assert out["logits"].shape == (b_task, l_task, VOCAB)
    assert jnp.isfinite(out["loss"]) and jnp.isfinite(out["new_token_loss"])
    print("KERNEL_OK")
</pallas_src>

<mosaic_0001>
module attributes {stable_mosaic.version = 11 : i64} {
  func.func @_first_lm_kernel(%arg0: i32, %arg1: memref<1x16x64xf32, #tpu.memory_space<vmem>>, %arg2: memref<1x1x16xf32, #tpu.memory_space<vmem>>, %arg3: memref<16x64xf32, #tpu.memory_space<vmem>>, %arg4: memref<1x64xf32, #tpu.memory_space<vmem>>, %arg5: memref<1x64xf32, #tpu.memory_space<vmem>>, %arg6: memref<2x64x192xf32, #tpu.memory_space<vmem>>, %arg7: memref<2x1x192xf32, #tpu.memory_space<vmem>>, %arg8: memref<2x64x64xf32, #tpu.memory_space<vmem>>, %arg9: memref<2x1x64xf32, #tpu.memory_space<vmem>>, %arg10: memref<2x1x64xf32, #tpu.memory_space<vmem>>, %arg11: memref<2x1x64xf32, #tpu.memory_space<vmem>>, %arg12: memref<2x64x128xf32, #tpu.memory_space<vmem>>, %arg13: memref<2x1x128xf32, #tpu.memory_space<vmem>>, %arg14: memref<2x128x64xf32, #tpu.memory_space<vmem>>, %arg15: memref<2x1x64xf32, #tpu.memory_space<vmem>>, %arg16: memref<2x1x64xf32, #tpu.memory_space<vmem>>, %arg17: memref<2x1x64xf32, #tpu.memory_space<vmem>>, %arg18: memref<1x16x64xf32, #tpu.memory_space<vmem>>) attributes {dimension_semantics = [#tpu.dimension_semantics<parallel>], iteration_bounds = array<i64: 4>, scalar_prefetch = 0 : i64, scratch_operands = 0 : i64, tpu.core_type = #tpu.core_type<tc>, window_params = [{transform_indices = @transform_0, window_bounds = array<i64: 1, 16, 64>}, {transform_indices = @transform_1, window_bounds = array<i64: 1, 1, 16>}, {pipeline_mode = #tpu.pipeline_mode<synchronous>, transform_indices = @transform_2, window_bounds = array<i64: 16, 64>}, {pipeline_mode = #tpu.pipeline_mode<synchronous>, transform_indices = @transform_3, window_bounds = array<i64: 1, 64>}, {pipeline_mode = #tpu.pipeline_mode<synchronous>, transform_indices = @transform_4, window_bounds = array<i64: 1, 64>}, {pipeline_mode = #tpu.pipeline_mode<synchronous>, transform_indices = @transform_5, window_bounds = array<i64: 2, 64, 192>}, {pipeline_mode = #tpu.pipeline_mode<synchronous>, transform_indices = @transform_6, window_bounds = array<i64: 2, 1, 192>}, {pipeline_mode = #tpu.pipeline_mode<synchronous>, transform_indices = @transform_7, window_bounds = array<i64: 2, 64, 64>}, {pipeline_mode = #tpu.pipeline_mode<synchronous>, transform_indices = @transform_8, window_bounds = array<i64: 2, 1, 64>}, {pipeline_mode = #tpu.pipeline_mode<synchronous>, transform_indices = @transform_9, window_bounds = array<i64: 2, 1, 64>}, {pipeline_mode = #tpu.pipeline_mode<synchronous>, transform_indices = @transform_10, window_bounds = array<i64: 2, 1, 64>}, {pipeline_mode = #tpu.pipeline_mode<synchronous>, transform_indices = @transform_11, window_bounds = array<i64: 2, 64, 128>}, {pipeline_mode = #tpu.pipeline_mode<synchronous>, transform_indices = @transform_12, window_bounds = array<i64: 2, 1, 128>}, {pipeline_mode = #tpu.pipeline_mode<synchronous>, transform_indices = @transform_13, window_bounds = array<i64: 2, 128, 64>}, {pipeline_mode = #tpu.pipeline_mode<synchronous>, transform_indices = @transform_14, window_bounds = array<i64: 2, 1, 64>}, {pipeline_mode = #tpu.pipeline_mode<synchronous>, transform_indices = @transform_15, window_bounds = array<i64: 2, 1, 64>}, {pipeline_mode = #tpu.pipeline_mode<synchronous>, transform_indices = @transform_16, window_bounds = array<i64: 2, 1, 64>}, {transform_indices = @transform_17, window_bounds = array<i64: 1, 16, 64>}]} {
    %c0 = arith.constant 0 : index
    %c0_0 = arith.constant 0 : index
    %c0_1 = arith.constant 0 : index
    %0 = vector.load %arg2[%c0, %c0_0, %c0_1] : memref<1x1x16xf32, #tpu.memory_space<vmem>>, vector<1x1x16xf32>
    %1 = vector.shape_cast %0 : vector<1x1x16xf32> to vector<1x16xf32>
    %c0_2 = arith.constant 0 : index
    %c0_3 = arith.constant 0 : index
    %c0_4 = arith.constant 0 : index
    %2 = vector.load %arg1[%c0_2, %c0_3, %c0_4] : memref<1x16x64xf32, #tpu.memory_space<vmem>>, vector<1x16x64xf32>
    %3 = vector.shape_cast %2 : vector<1x16x64xf32> to vector<16x64xf32>
    %c0_5 = arith.constant 0 : index
    %c0_6 = arith.constant 0 : index
    %4 = vector.load %arg3[%c0_5, %c0_6] : memref<16x64xf32, #tpu.memory_space<vmem>>, vector<16x64xf32>
    %5 = arith.addf %3, %4 : vector<16x64xf32>
    %c0_7 = arith.constant 0 : index
    %c0_8 = arith.constant 0 : index
    %6 = vector.load %arg4[%c0_7, %c0_8] : memref<1x64xf32, #tpu.memory_space<vmem>>, vector<1x64xf32>
    %c0_9 = arith.constant 0 : index
    %c0_10 = arith.constant 0 : index
    %7 = vector.load %arg5[%c0_9, %c0_10] : memref<1x64xf32, #tpu.memory_space<vmem>>, vector<1x64xf32>
    %cst = arith.constant dense<0.000000e+00> : vector<16xf32>
    %8 = vector.multi_reduction <add>, %5, %cst [1] : vector<16x64xf32> to vector<16xf32>
    %9 = vector.shape_cast %8 : vector<16xf32> to vector<16x1xf32>
    %cst_11 = arith.constant 6.400000e+01 : f32
    %10 = vector.broadcast %cst_11 : f32 to vector<16x1xf32>
    %11 = arith.divf %9, %10 : vector<16x1xf32>
    %12 = vector.broadcast %11 : vector<16x1xf32> to vector<16x64xf32>
    %13 = arith.subf %5, %12 : vector<16x64xf32>
    %14 = arith.mulf %13, %13 : vector<16x64xf32>
    %cst_12 = arith.constant dense<0.000000e+00> : vector<16xf32>
    %15 = vector.multi_reduction <add>, %14, %cst_12 [1] : vector<16x64xf32> to vector<16xf32>
    %16 = vector.shape_cast %15 : vector<16xf32> to vector<16x1xf32>
    %cst_13 = arith.constant 6.400000e+01 : f32
    %17 = vector.broadcast %cst_13 : f32 to vector<16x1xf32>
    %18 = arith.divf %16, %17 : vector<16x1xf32>
    %cst_14 = arith.constant 9.99999974E-6 : f32
    %19 = vector.broadcast %cst_14 : f32 to vector<16x1xf32>
    %20 = arith.addf %18, %19 : vector<16x1xf32>
    %21 = math.rsqrt %20 : vector<16x1xf32>
    %22 = vector.broadcast %21 : vector<16x1xf32> to vector<16x64xf32>
    %23 = arith.mulf %13, %22 : vector<16x64xf32>
    %24 = vector.broadcast %6 : vector<1x64xf32> to vector<16x64xf32>
    %25 = arith.mulf %23, %24 : vector<16x64xf32>
    %26 = vector.broadcast %7 : vector<1x64xf32> to vector<16x64xf32>
    %27 = arith.addf %25, %26 : vector<16x64xf32>
    %c0_15 = arith.constant 0 : index
    %c0_16 = arith.constant 0 : index
    %c0_17 = arith.constant 0 : index
    %28 = vector.load %arg6[%c0_15, %c0_16, %c0_17] : memref<2x64x192xf32, #tpu.memory_space<vmem>>, vector<1x64x192xf32>
    %29 = vector.shape_cast %28 : vector<1x64x192xf32> to vector<64x192xf32>
    %c0_18 = arith.constant 0 : index
    %c0_19 = arith.constant 0 : index
    %c0_20 = arith.constant 0 : index
    %30 = vector.load %arg7[%c0_18, %c0_19, %c0_20] : memref<2x1x192xf32, #tpu.memory_space<vmem>>, vector<1x1x192xf32>
    %31 = vector.shape_cast %30 : vector<1x1x192xf32> to vector<1x192xf32>
    %c0_21 = arith.constant 0 : index
    %c0_22 = arith.constant 0 : index
    %c0_23 = arith.constant 0 : index
    %32 = vector.load %arg8[%c0_21, %c0_22, %c0_23] : memref<2x64x64xf32, #tpu.memory_space<vmem>>, vector<1x64x64xf32>
    %33 = vector.shape_cast %32 : vector<1x64x64xf32> to vector<64x64xf32>
    %c0_24 = arith.constant 0 : index
    %c0_25 = arith.constant 0 : index
    %c0_26 = arith.constant 0 : index
    %34 = vector.load %arg9[%c0_24, %c0_25, %c0_26] : memref<2x1x64xf32, #tpu.memory_space<vmem>>, vector<1x1x64xf32>
    %35 = vector.shape_cast %34 : vector<1x1x64xf32> to vector<1x64xf32>
    %c0_27 = arith.constant 0 : index
    %c0_28 = arith.constant 0 : index
    %c0_29 = arith.constant 0 : index
    %36 = vector.load %arg10[%c0_27, %c0_28, %c0_29] : memref<2x1x64xf32, #tpu.memory_space<vmem>>, vector<1x1x64xf32>
    %37 = vector.shape_cast %36 : vector<1x1x64xf32> to vector<1x64xf32>
    %c0_30 = arith.constant 0 : index
    %c0_31 = arith.constant 0 : index
    %c0_32 = arith.constant 0 : index
    %38 = vector.load %arg11[%c0_30, %c0_31, %c0_32] : memref<2x1x64xf32, #tpu.memory_space<vmem>>, vector<1x1x64xf32>
    %39 = vector.shape_cast %38 : vector<1x1x64xf32> to vector<1x64xf32>
    %c0_33 = arith.constant 0 : index
    %c0_34 = arith.constant 0 : index
    %c0_35 = arith.constant 0 : index
    %40 = vector.load %arg12[%c0_33, %c0_34, %c0_35] : memref<2x64x128xf32, #tpu.memory_space<vmem>>, vector<1x64x128xf32>
    %41 = vector.shape_cast %40 : vector<1x64x128xf32> to vector<64x128xf32>
    %c0_36 = arith.constant 0 : index
    %c0_37 = arith.constant 0 : index
    %c0_38 = arith.constant 0 : index
    %42 = vector.load %arg13[%c0_36, %c0_37, %c0_38] : memref<2x1x128xf32, #tpu.memory_space<vmem>>, vector<1x1x128xf32>
    %43 = vector.shape_cast %42 : vector<1x1x128xf32> to vector<1x128xf32>
    %c0_39 = arith.constant 0 : index
    %c0_40 = arith.constant 0 : index
    %c0_41 = arith.constant 0 : index
    %44 = vector.load %arg14[%c0_39, %c0_40, %c0_41] : memref<2x128x64xf32, #tpu.memory_space<vmem>>, vector<1x128x64xf32>
    %45 = vector.shape_cast %44 : vector<1x128x64xf32> to vector<128x64xf32>
    %c0_42 = arith.constant 0 : index
    %c0_43 = arith.constant 0 : index
    %c0_44 = arith.constant 0 : index
    %46 = vector.load %arg15[%c0_42, %c0_43, %c0_44] : memref<2x1x64xf32, #tpu.memory_space<vmem>>, vector<1x1x64xf32>
    %47 = vector.shape_cast %46 : vector<1x1x64xf32> to vector<1x64xf32>
    %c0_45 = arith.constant 0 : index
    %c0_46 = arith.constant 0 : index
    %c0_47 = arith.constant 0 : index
    %48 = vector.load %arg16[%c0_45, %c0_46, %c0_47] : memref<2x1x64xf32, #tpu.memory_space<vmem>>, vector<1x1x64xf32>
    %49 = vector.shape_cast %48 : vector<1x1x64xf32> to vector<1x64xf32>
    %c0_48 = arith.constant 0 : index
    %c0_49 = arith.constant 0 : index
    %c0_50 = arith.constant 0 : index
    %50 = vector.load %arg17[%c0_48, %c0_49, %c0_50] : memref<2x1x64xf32, #tpu.memory_space<vmem>>, vector<1x1x64xf32>
    %51 = vector.shape_cast %50 : vector<1x1x64xf32> to vector<1x64xf32>
    %52 = arith.truncf %27 : vector<16x64xf32> to vector<16x64xbf16>
    %53 = arith.truncf %29 : vector<64x192xf32> to vector<64x192xbf16>
    %cst_51 = arith.constant dense<0.000000e+00> : vector<16x192xf32>
    %54 = tpu.matmul %52, %53, %cst_51 {dimension_numbers = #tpu.dot_dimension_numbers<[1], [0], [0], [1], [0, 0, 1, 1], [], []>} : vector<16x64xbf16>, vector<64x192xbf16>, vector<16x192xf32> -> vector<16x192xf32>
    %55 = vector.broadcast %31 : vector<1x192xf32> to vector<16x192xf32>
    %56 = arith.addf %54, %55 : vector<16x192xf32>
    %cst_52 = arith.constant 0.000000e+00 : f32
    %57 = vector.broadcast %cst_52 : f32 to vector<16x64xf32>
    %58 = vector.extract_strided_slice %56 {offsets = [0, 0], sizes = [16, 16], strides = [1, 1]} : vector<16x192xf32> to vector<16x16xf32>
    %59 = vector.extract_strided_slice %56 {offsets = [0, 64], sizes = [16, 16], strides = [1, 1]} : vector<16x192xf32> to vector<16x16xf32>
    %60 = vector.extract_strided_slice %56 {offsets = [0, 128], sizes = [16, 16], strides = [1, 1]} : vector<16x192xf32> to vector<16x16xf32>
    %61 = arith.truncf %58 : vector<16x16xf32> to vector<16x16xbf16>
    %62 = arith.truncf %59 : vector<16x16xf32> to vector<16x16xbf16>
    %cst_53 = arith.constant dense<0.000000e+00> : vector<16x16xf32>
    %63 = tpu.matmul %61, %62, %cst_53 {dimension_numbers = #tpu.dot_dimension_numbers<[1], [1], [0], [0], [0, 0, 1, 0], [], []>} : vector<16x16xbf16>, vector<16x16xbf16>, vector<16x16xf32> -> vector<16x16xf32>
    %cst_54 = arith.constant 2.500000e-01 : f32
    %64 = vector.broadcast %cst_54 : f32 to vector<16x16xf32>
    %65 = arith.mulf %63, %64 : vector<16x16xf32>
    %cst_55 = arith.constant 5.000000e-01 : f32
    %66 = vector.broadcast %cst_55 : f32 to vector<1x16xf32>
    %67 = arith.cmpf ogt, %1, %66 : vector<1x16xf32>
    %cst_56 = arith.constant -1.000000e+30 : f32
    %68 = vector.shape_cast %67 : vector<1x16xi1> to vector<1x16xi1>
    %69 = vector.broadcast %68 : vector<1x16xi1> to vector<16x16xi1>
    %70 = vector.broadcast %cst_56 : f32 to vector<16x16xf32>
    %71 = arith.select %69, %65, %70 : vector<16x16xi1>, vector<16x16xf32>
    %cst_57 = arith.constant dense<0xFF800000> : vector<16xf32>
    %72 = vector.multi_reduction <maximumf>, %71, %cst_57 [1] : vector<16x16xf32> to vector<16xf32>
    %73 = vector.shape_cast %72 : vector<16xf32> to vector<16x1xf32>
    %74 = vector.broadcast %73 : vector<16x1xf32> to vector<16x16xf32>
    %75 = arith.subf %71, %74 : vector<16x16xf32>
    %76 = math.exp %75 : vector<16x16xf32>
    %cst_58 = arith.constant 5.000000e-01 : f32
    %77 = vector.broadcast %cst_58 : f32 to vector<1x16xf32>
    %78 = arith.cmpf ogt, %1, %77 : vector<1x16xf32>
    %cst_59 = arith.constant 0.000000e+00 : f32
    %79 = vector.shape_cast %78 : vector<1x16xi1> to vector<1x16xi1>
    %80 = vector.broadcast %79 : vector<1x16xi1> to vector<16x16xi1>
    %81 = vector.broadcast %cst_59 : f32 to vector<16x16xf32>
    %82 = arith.select %80, %76, %81 : vector<16x16xi1>, vector<16x16xf32>
    %cst_60 = arith.constant dense<0.000000e+00> : vector<16xf32>
    %83 = vector.multi_reduction <add>, %82, %cst_60 [1] : vector<16x16xf32> to vector<16xf32>
    %84 = vector.shape_cast %83 : vector<16xf32> to vector<16x1xf32>
    %cst_61 = arith.constant 9.99999968E-21 : f32
    %85 = vector.broadcast %cst_61 : f32 to vector<16x1xf32>
    %86 = arith.maximumf %84, %85 : vector<16x1xf32>
    %87 = tpu.reciprocal %86 {approx = true} : vector<16x1xf32> -> vector<16x1xf32>
    %88 = vector.broadcast %87 : vector<16x1xf32> to vector<16x16xf32>
    %89 = arith.mulf %82, %88 : vector<16x16xf32>
    %90 = arith.truncf %89 : vector<16x16xf32> to vector<16x16xbf16>
    %91 = arith.truncf %60 : vector<16x16xf32> to vector<16x16xbf16>
    %cst_62 = arith.constant dense<0.000000e+00> : vector<16x16xf32>
    %92 = tpu.matmul %90, %91, %cst_62 {dimension_numbers = #tpu.dot_dimension_numbers<[1], [0], [0], [1], [0, 0, 1, 1], [], []>} : vector<16x16xbf16>, vector<16x16xbf16>, vector<16x16xf32> -> vector<16x16xf32>
    %93 = vector.extract_strided_slice %33 {offsets = [0, 0], sizes = [16, 64], strides = [1, 1]} : vector<64x64xf32> to vector<16x64xf32>
    %94 = arith.truncf %92 : vector<16x16xf32> to vector<16x16xbf16>
    %95 = arith.truncf %93 : vector<16x64xf32> to vector<16x64xbf16>
    %cst_63 = arith.constant dense<0.000000e+00> : vector<16x64xf32>
    %96 = tpu.matmul %94, %95, %cst_63 {dimension_numbers = #tpu.dot_dimension_numbers<[1], [0], [0], [1], [0, 0, 1, 1], [], []>} : vector<16x16xbf16>, vector<16x64xbf16>, vector<16x64xf32> -> vector<16x64xf32>
    %97 = arith.addf %57, %96 : vector<16x64xf32>
    %98 = vector.extract_strided_slice %56 {offsets = [0, 16], sizes = [16, 16], strides = [1, 1]} : vector<16x192xf32> to vector<16x16xf32>
    %99 = vector.extract_strided_slice %56 {offsets = [0, 80], sizes = [16, 16], strides = [1, 1]} : vector<16x192xf32> to vector<16x16xf32>
    %100 = vector.extract_strided_slice %56 {offsets = [0, 144], sizes = [16, 16], strides = [1, 1]} : vector<16x192xf32> to vector<16x16xf32>
    %101 = arith.truncf %98 : vector<16x16xf32> to vector<16x16xbf16>
    %102 = arith.truncf %99 : vector<16x16xf32> to vector<16x16xbf16>
    %cst_64 = arith.constant dense<0.000000e+00> : vector<16x16xf32>
    %103 = tpu.matmul %101, %102, %cst_64 {dimension_numbers = #tpu.dot_dimension_numbers<[1], [1], [0], [0], [0, 0, 1, 0], [], []>} : vector<16x16xbf16>, vector<16x16xbf16>, vector<16x16xf32> -> vector<16x16xf32>
    %cst_65 = arith.constant 2.500000e-01 : f32
    %104 = vector.broadcast %cst_65 : f32 to vector<16x16xf32>
    %105 = arith.mulf %103, %104 : vector<16x16xf32>
    %cst_66 = arith.constant 5.000000e-01 : f32
    %106 = vector.broadcast %cst_66 : f32 to vector<1x16xf32>
    %107 = arith.cmpf ogt, %1, %106 : vector<1x16xf32>
    %cst_67 = arith.constant -1.000000e+30 : f32
    %108 = vector.shape_cast %107 : vector<1x16xi1> to vector<1x16xi1>
    %109 = vector.broadcast %108 : vector<1x16xi1> to vector<16x16xi1>
    %110 = vector.broadcast %cst_67 : f32 to vector<16x16xf32>
    %111 = arith.select %109, %105, %110 : vector<16x16xi1>, vector<16x16xf32>
    %cst_68 = arith.constant dense<0xFF800000> : vector<16xf32>
    %112 = vector.multi_reduction <maximumf>, %111, %cst_68 [1] : vector<16x16xf32> to vector<16xf32>
    %113 = vector.shape_cast %112 : vector<16xf32> to vector<16x1xf32>
    %114 = vector.broadcast %113 : vector<16x1xf32> to vector<16x16xf32>
    %115 = arith.subf %111, %114 : vector<16x16xf32>
    %116 = math.exp %115 : vector<16x16xf32>
    %cst_69 = arith.constant 5.000000e-01 : f32
    %117 = vector.broadcast %cst_69 : f32 to vector<1x16xf32>
    %118 = arith.cmpf ogt, %1, %117 : vector<1x16xf32>
    %cst_70 = arith.constant 0.000000e+00 : f32
    %119 = vector.shape_cast %118 : vector<1x16xi1> to vector<1x16xi1>
    %120 = vector.broadcast %119 : vector<1x16xi1> to vector<16x16xi1>
    %121 = vector.broadcast %cst_70 : f32 to vector<16x16xf32>
    %122 = arith.select %120, %116, %121 : vector<16x16xi1>, vector<16x16xf32>
    %cst_71 = arith.constant dense<0.000000e+00> : vector<16xf32>
    %123 = vector.multi_reduction <add>, %122, %cst_71 [1] : vector<16x16xf32> to vector<16xf32>
    %124 = vector.shape_cast %123 : vector<16xf32> to vector<16x1xf32>
    %cst_72 = arith.constant 9.99999968E-21 : f32
    %125 = vector.broadcast %cst_72 : f32 to vector<16x1xf32>
    %126 = arith.maximumf %124, %125 : vector<16x1xf32>
    %127 = tpu.reciprocal %126 {approx = true} : vector<16x1xf32> -> vector<16x1xf32>
    %128 = vector.broadcast %127 : vector<16x1xf32> to vector<16x16xf32>
    %129 = arith.mulf %122, %128 : vector<16x16xf32>
    %130 = arith.truncf %129 : vector<16x16xf32> to vector<16x16xbf16>
    %131 = arith.truncf %100 : vector<16x16xf32> to vector<16x16xbf16>
    %cst_73 = arith.constant dense<0.000000e+00> : vector<16x16xf32>
    %132 = tpu.matmul %130, %131, %cst_73 {dimension_numbers = #tpu.dot_dimension_numbers<[1], [0], [0], [1], [0, 0, 1, 1], [], []>} : vector<16x16xbf16>, vector<16x16xbf16>, vector<16x16xf32> -> vector<16x16xf32>
    %133 = vector.extract_strided_slice %33 {offsets = [16, 0], sizes = [16, 64], strides = [1, 1]} : vector<64x64xf32> to vector<16x64xf32>
    %134 = arith.truncf %132 : vector<16x16xf32> to vector<16x16xbf16>
    %135 = arith.truncf %133 : vector<16x64xf32> to vector<16x64xbf16>
    %cst_74 = arith.constant dense<0.000000e+00> : vector<16x64xf32>
    %136 = tpu.matmul %134, %135, %cst_74 {dimension_numbers = #tpu.dot_dimension_numbers<[1], [0], [0], [1], [0, 0, 1, 1], [], []>} : vector<16x16xbf16>, vector<16x64xbf16>, vector<16x64xf32> -> vector<16x64xf32>
    %137 = arith.addf %97, %136 : vector<16x64xf32>
    %138 = vector.extract_strided_slice %56 {offsets = [0, 32], sizes = [16, 16], strides = [1, 1]} : vector<16x192xf32> to vector<16x16xf32>
    %139 = vector.extract_strided_slice %56 {offsets = [0, 96], sizes = [16, 16], strides = [1, 1]} : vector<16x192xf32> to vector<16x16xf32>
    %140 = vector.extract_strided_slice %56 {offsets = [0, 160], sizes = [16, 16], strides = [1, 1]} : vector<16x192xf32> to vector<16x16xf32>
    %141 = arith.truncf %138 : vector<16x16xf32> to vector<16x16xbf16>
    %142 = arith.truncf %139 : vector<16x16xf32> to vector<16x16xbf16>
    %cst_75 = arith.constant dense<0.000000e+00> : vector<16x16xf32>
    %143 = tpu.matmul %141, %142, %cst_75 {dimension_numbers = #tpu.dot_dimension_numbers<[1], [1], [0], [0], [0, 0, 1, 0], [], []>} : vector<16x16xbf16>, vector<16x16xbf16>, vector<16x16xf32> -> vector<16x16xf32>
    %cst_76 = arith.constant 2.500000e-01 : f32
    %144 = vector.broadcast %cst_76 : f32 to vector<16x16xf32>
    %145 = arith.mulf %143, %144 : vector<16x16xf32>
    %cst_77 = arith.constant 5.000000e-01 : f32
    %146 = vector.broadcast %cst_77 : f32 to vector<1x16xf32>
    %147 = arith.cmpf ogt, %1, %146 : vector<1x16xf32>
    %cst_78 = arith.constant -1.000000e+30 : f32
    %148 = vector.shape_cast %147 : vector<1x16xi1> to vector<1x16xi1>
    %149 = vector.broadcast %148 : vector<1x16xi1> to vector<16x16xi1>
    %150 = vector.broadcast %cst_78 : f32 to vector<16x16xf32>
    %151 = arith.select %149, %145, %150 : vector<16x16xi1>, vector<16x16xf32>
    %cst_79 = arith.constant dense<0xFF800000> : vector<16xf32>
    %152 = vector.multi_reduction <maximumf>, %151, %cst_79 [1] : vector<16x16xf32> to vector<16xf32>
    %153 = vector.shape_cast %152 : vector<16xf32> to vector<16x1xf32>
    %154 = vector.broadcast %153 : vector<16x1xf32> to vector<16x16xf32>
    %155 = arith.subf %151, %154 : vector<16x16xf32>
    %156 = math.exp %155 : vector<16x16xf32>
    %cst_80 = arith.constant 5.000000e-01 : f32
    %157 = vector.broadcast %cst_80 : f32 to vector<1x16xf32>
    %158 = arith.cmpf ogt, %1, %157 : vector<1x16xf32>
    %cst_81 = arith.constant 0.000000e+00 : f32
    %159 = vector.shape_cast %158 : vector<1x16xi1> to vector<1x16xi1>
    %160 = vector.broadcast %159 : vector<1x16xi1> to vector<16x16xi1>
    %161 = vector.broadcast %cst_81 : f32 to vector<16x16xf32>
    %162 = arith.select %160, %156, %161 : vector<16x16xi1>, vector<16x16xf32>
    %cst_82 = arith.constant dense<0.000000e+00> : vector<16xf32>
    %163 = vector.multi_reduction <add>, %162, %cst_82 [1] : vector<16x16xf32> to vector<16xf32>
    %164 = vector.shape_cast %163 : vector<16xf32> to vector<16x1xf32>
    %cst_83 = arith.constant 9.99999968E-21 : f32
    %165 = vector.broadcast %cst_83 : f32 to vector<16x1xf32>
    %166 = arith.maximumf %164, %165 : vector<16x1xf32>
    %167 = tpu.reciprocal %166 {approx = true} : vector<16x1xf32> -> vector<16x1xf32>
    %168 = vector.broadcast %167 : vector<16x1xf32> to vector<16x16xf32>
    %169 = arith.mulf %162, %168 : vector<16x16xf32>
    %170 = arith.truncf %169 : vector<16x16xf32> to vector<16x16xbf16>
    %171 = arith.truncf %140 : vector<16x16xf32> to vector<16x16xbf16>
    %cst_84 = arith.constant dense<0.000000e+00> : vector<16x16xf32>
    %172 = tpu.matmul %170, %171, %cst_84 {dimension_numbers = #tpu.dot_dimension_numbers<[1], [0], [0], [1], [0, 0, 1, 1], [], []>} : vector<16x16xbf16>, vector<16x16xbf16>, vector<16x16xf32> -> vector<16x16xf32>
    %173 = vector.extract_strided_slice %33 {offsets = [32, 0], sizes = [16, 64], strides = [1, 1]} : vector<64x64xf32> to vector<16x64xf32>
    %174 = arith.truncf %172 : vector<16x16xf32> to vector<16x16xbf16>
    %175 = arith.truncf %173 : vector<16x64xf32> to vector<16x64xbf16>
    %cst_85 = arith.constant dense<0.000000e+00> : vector<16x64xf32>
    %176 = tpu.matmul %174, %175, %cst_85 {dimension_numbers = #tpu.dot_dimension_numbers<[1], [0], [0], [1], [0, 0, 1, 1], [], []>} : vector<16x16xbf16>, vector<16x64xbf16>, vector<16x64xf32> -> vector<16x64xf32>
    %177 = arith.addf %137, %176 : vector<16x64xf32>
    %178 = vector.extract_strided_slice %56 {offsets = [0, 48], sizes = [16, 16], strides = [1, 1]} : vector<16x192xf32> to vector<16x16xf32>
    %179 = vector.extract_strided_slice %56 {offsets = [0, 112], sizes = [16, 16], strides = [1, 1]} : vector<16x192xf32> to vector<16x16xf32>
    %180 = vector.extract_strided_slice %56 {offsets = [0, 176], sizes = [16, 16], strides = [1, 1]} : vector<16x192xf32> to vector<16x16xf32>
    %181 = arith.truncf %178 : vector<16x16xf32> to vector<16x16xbf16>
    %182 = arith.truncf %179 : vector<16x16xf32> to vector<16x16xbf16>
    %cst_86 = arith.constant dense<0.000000e+00> : vector<16x16xf32>
    %183 = tpu.matmul %181, %182, %cst_86 {dimension_numbers = #tpu.dot_dimension_numbers<[1], [1], [0], [0], [0, 0, 1, 0], [], []>} : vector<16x16xbf16>, vector<16x16xbf16>, vector<16x16xf32> -> vector<16x16xf32>
    %cst_87 = arith.constant 2.500000e-01 : f32
    %184 = vector.broadcast %cst_87 : f32 to vector<16x16xf32>
    %185 = arith.mulf %183, %184 : vector<16x16xf32>
    %cst_88 = arith.constant 5.000000e-01 : f32
    %186 = vector.broadcast %cst_88 : f32 to vector<1x16xf32>
    %187 = arith.cmpf ogt, %1, %186 : vector<1x16xf32>
    %cst_89 = arith.constant -1.000000e+30 : f32
    %188 = vector.shape_cast %187 : vector<1x16xi1> to vector<1x16xi1>
    %189 = vector.broadcast %188 : vector<1x16xi1> to vector<16x16xi1>
    %190 = vector.broadcast %cst_89 : f32 to vector<16x16xf32>
    %191 = arith.select %189, %185, %190 : vector<16x16xi1>, vector<16x16xf32>
    %cst_90 = arith.constant dense<0xFF800000> : vector<16xf32>
    %192 = vector.multi_reduction <maximumf>, %191, %cst_90 [1] : vector<16x16xf32> to vector<16xf32>
    %193 = vector.shape_cast %192 : vector<16xf32> to vector<16x1xf32>
    %194 = vector.broadcast %193 : vector<16x1xf32> to vector<16x16xf32>
    %195 = arith.subf %191, %194 : vector<16x16xf32>
    %196 = math.exp %195 : vector<16x16xf32>
    %cst_91 = arith.constant 5.000000e-01 : f32
    %197 = vector.broadcast %cst_91 : f32 to vector<1x16xf32>
    %198 = arith.cmpf ogt, %1, %197 : vector<1x16xf32>
    %cst_92 = arith.constant 0.000000e+00 : f32
    %199 = vector.shape_cast %198 : vector<1x16xi1> to vector<1x16xi1>
    %200 = vector.broadcast %199 : vector<1x16xi1> to vector<16x16xi1>
    %201 = vector.broadcast %cst_92 : f32 to vector<16x16xf32>
    %202 = arith.select %200, %196, %201 : vector<16x16xi1>, vector<16x16xf32>
    %cst_93 = arith.constant dense<0.000000e+00> : vector<16xf32>
    %203 = vector.multi_reduction <add>, %202, %cst_93 [1] : vector<16x16xf32> to vector<16xf32>
    %204 = vector.shape_cast %203 : vector<16xf32> to vector<16x1xf32>
    %cst_94 = arith.constant 9.99999968E-21 : f32
    %205 = vector.broadcast %cst_94 : f32 to vector<16x1xf32>
    %206 = arith.maximumf %204, %205 : vector<16x1xf32>
    %207 = tpu.reciprocal %206 {approx = true} : vector<16x1xf32> -> vector<16x1xf32>
    %208 = vector.broadcast %207 : vector<16x1xf32> to vector<16x16xf32>
    %209 = arith.mulf %202, %208 : vector<16x16xf32>
    %210 = arith.truncf %209 : vector<16x16xf32> to vector<16x16xbf16>
    %211 = arith.truncf %180 : vector<16x16xf32> to vector<16x16xbf16>
    %cst_95 = arith.constant dense<0.000000e+00> : vector<16x16xf32>
    %212 = tpu.matmul %210, %211, %cst_95 {dimension_numbers = #tpu.dot_dimension_numbers<[1], [0], [0], [1], [0, 0, 1, 1], [], []>} : vector<16x16xbf16>, vector<16x16xbf16>, vector<16x16xf32> -> vector<16x16xf32>
    %213 = vector.extract_strided_slice %33 {offsets = [48, 0], sizes = [16, 64], strides = [1, 1]} : vector<64x64xf32> to vector<16x64xf32>
    %214 = arith.truncf %212 : vector<16x16xf32> to vector<16x16xbf16>
    %215 = arith.truncf %213 : vector<16x64xf32> to vector<16x64xbf16>
    %cst_96 = arith.constant dense<0.000000e+00> : vector<16x64xf32>
    %216 = tpu.matmul %214, %215, %cst_96 {dimension_numbers = #tpu.dot_dimension_numbers<[1], [0], [0], [1], [0, 0, 1, 1], [], []>} : vector<16x16xbf16>, vector<16x64xbf16>, vector<16x64xf32> -> vector<16x64xf32>
    %217 = arith.addf %177, %216 : vector<16x64xf32>
    %218 = vector.broadcast %35 : vector<1x64xf32> to vector<16x64xf32>
    %219 = arith.addf %217, %218 : vector<16x64xf32>
    %220 = arith.addf %27, %219 : vector<16x64xf32>
    %cst_97 = arith.constant dense<0.000000e+00> : vector<16xf32>
    %221 = vector.multi_reduction <add>, %220, %cst_97 [1] : vector<16x64xf32> to vector<16xf32>
    %222 = vector.shape_cast %221 : vector<16xf32> to vector<16x1xf32>
    %cst_98 = arith.constant 6.400000e+01 : f32
    %223 = vector.broadcast %cst_98 : f32 to vector<16x1xf32>
    %224 = arith.divf %222, %223 : vector<16x1xf32>
    %225 = vector.broadcast %224 : vector<16x1xf32> to vector<16x64xf32>
    %226 = arith.subf %220, %225 : vector<16x64xf32>
    %227 = arith.mulf %226, %226 : vector<16x64xf32>
    %cst_99 = arith.constant dense<0.000000e+00> : vector<16xf32>
    %228 = vector.multi_reduction <add>, %227, %cst_99 [1] : vector<16x64xf32> to vector<16xf32>
    %229 = vector.shape_cast %228 : vector<16xf32> to vector<16x1xf32>
    %cst_100 = arith.constant 6.400000e+01 : f32
    %230 = vector.broadcast %cst_100 : f32 to vector<16x1xf32>
    %231 = arith.divf %229, %230 : vector<16x1xf32>
    %cst_101 = arith.constant 9.99999974E-6 : f32
    %232 = vector.broadcast %cst_101 : f32 to vector<16x1xf32>
    %233 = arith.addf %231, %232 : vector<16x1xf32>
    %234 = math.rsqrt %233 : vector<16x1xf32>
    %235 = vector.broadcast %234 : vector<16x1xf32> to vector<16x64xf32>
    %236 = arith.mulf %226, %235 : vector<16x64xf32>
    %237 = vector.broadcast %37 : vector<1x64xf32> to vector<16x64xf32>
    %238 = arith.mulf %236, %237 : vector<16x64xf32>
    %239 = vector.broadcast %39 : vector<1x64xf32> to vector<16x64xf32>
    %240 = arith.addf %238, %239 : vector<16x64xf32>
    %241 = arith.truncf %240 : vector<16x64xf32> to vector<16x64xbf16>
    %242 = arith.truncf %41 : vector<64x128xf32> to vector<64x128xbf16>
    %cst_102 = arith.constant dense<0.000000e+00> : vector<16x128xf32>
    %243 = tpu.matmul %241, %242, %cst_102 {dimension_numbers = #tpu.dot_dimension_numbers<[1], [0], [0], [1], [0, 0, 1, 1], [], []>} : vector<16x64xbf16>, vector<64x128xbf16>, vector<16x128xf32> -> vector<16x128xf32>
    %244 = vector.broadcast %43 : vector<1x128xf32> to vector<16x128xf32>
    %245 = arith.addf %243, %244 : vector<16x128xf32>
    %cst_103 = arith.constant 5.000000e-01 : f32
    %246 = vector.broadcast %cst_103 : f32 to vector<16x128xf32>
    %247 = arith.mulf %246, %245 : vector<16x128xf32>
    %cst_104 = arith.constant 4.471500e-02 : f32
    %248 = vector.broadcast %cst_104 : f32 to vector<16x128xf32>
    %249 = arith.mulf %248, %245 : vector<16x128xf32>
    %250 = arith.mulf %249, %245 : vector<16x128xf32>
    %251 = arith.mulf %250, %245 : vector<16x128xf32>
    %252 = arith.addf %245, %251 : vector<16x128xf32>
    %cst_105 = arith.constant 0.797884583 : f32
    %253 = vector.broadcast %cst_105 : f32 to vector<16x128xf32>
    %254 = arith.mulf %253, %252 : vector<16x128xf32>
    %255 = math.tanh %254 : vector<16x128xf32>
    %cst_106 = arith.constant 1.000000e+00 : f32
    %256 = vector.broadcast %cst_106 : f32 to vector<16x128xf32>
    %257 = arith.addf %256, %255 : vector<16x128xf32>
    %258 = arith.mulf %247, %257 : vector<16x128xf32>
    %259 = arith.truncf %258 : vector<16x128xf32> to vector<16x128xbf16>
    %260 = arith.truncf %45 : vector<128x64xf32> to vector<128x64xbf16>
    %cst_107 = arith.constant dense<0.000000e+00> : vector<16x64xf32>
    %261 = tpu.matmul %259, %260, %cst_107 {dimension_numbers = #tpu.dot_dimension_numbers<[1], [0], [0], [1], [0, 0, 1, 1], [], []>} : vector<16x128xbf16>, vector<128x64xbf16>, vector<16x64xf32> -> vector<16x64xf32>
    %262 = vector.broadcast %47 : vector<1x64xf32> to vector<16x64xf32>
    %263 = arith.addf %261, %262 : vector<16x64xf32>
    %264 = arith.addf %240, %263 : vector<16x64xf32>
    %cst_108 = arith.constant dense<0.000000e+00> : vector<16xf32>
    %265 = vector.multi_reduction <add>, %264, %cst_108 [1] : vector<16x64xf32> to vector<16xf32>
    %266 = vector.shape_cast %265 : vector<16xf32> to vector<16x1xf32>
    %cst_109 = arith.constant 6.400000e+01 : f32
    %267 = vector.broadcast %cst_109 : f32 to vector<16x1xf32>
    %268 = arith.divf %266, %267 : vector<16x1xf32>
    %269 = vector.broadcast %268 : vector<16x1xf32> to vector<16x64xf32>
    %270 = arith.subf %264, %269 : vector<16x64xf32>
    %271 = arith.mulf %270, %270 : vector<16x64xf32>
    %cst_110 = arith.constant dense<0.000000e+00> : vector<16xf32>
    %272 = vector.multi_reduction <add>, %271, %cst_110 [1] : vector<16x64xf32> to vector<16xf32>
    %273 = vector.shape_cast %272 : vector<16xf32> to vector<16x1xf32>
    %cst_111 = arith.constant 6.400000e+01 : f32
    %274 = vector.broadcast %cst_111 : f32 to vector<16x1xf32>
    %275 = arith.divf %273, %274 : vector<16x1xf32>
    %cst_112 = arith.constant 9.99999974E-6 : f32
    %276 = vector.broadcast %cst_112 : f32 to vector<16x1xf32>
    %277 = arith.addf %275, %276 : vector<16x1xf32>
    %278 = math.rsqrt %277 : vector<16x1xf32>
    %279 = vector.broadcast %278 : vector<16x1xf32> to vector<16x64xf32>
    %280 = arith.mulf %270, %279 : vector<16x64xf32>
    %281 = vector.broadcast %49 : vector<1x64xf32> to vector<16x64xf32>
    %282 = arith.mulf %280, %281 : vector<16x64xf32>
    %283 = vector.broadcast %51 : vector<1x64xf32> to vector<16x64xf32>
    %284 = arith.addf %282, %283 : vector<16x64xf32>
    %c1 = arith.constant 1 : index
    %c0_113 = arith.constant 0 : index
    %c0_114 = arith.constant 0 : index
    %285 = vector.load %arg6[%c1, %c0_113, %c0_114] : memref<2x64x192xf32, #tpu.memory_space<vmem>>, vector<1x64x192xf32>
    %286 = vector.shape_cast %285 : vector<1x64x192xf32> to vector<64x192xf32>
    %c1_115 = arith.constant 1 : index
    %c0_116 = arith.constant 0 : index
    %c0_117 = arith.constant 0 : index
    %287 = vector.load %arg7[%c1_115, %c0_116, %c0_117] : memref<2x1x192xf32, #tpu.memory_space<vmem>>, vector<1x1x192xf32>
    %288 = vector.shape_cast %287 : vector<1x1x192xf32> to vector<1x192xf32>
    %c1_118 = arith.constant 1 : index
    %c0_119 = arith.constant 0 : index
    %c0_120 = arith.constant 0 : index
    %289 = vector.load %arg8[%c1_118, %c0_119, %c0_120] : memref<2x64x64xf32, #tpu.memory_space<vmem>>, vector<1x64x64xf32>
    %290 = vector.shape_cast %289 : vector<1x64x64xf32> to vector<64x64xf32>
    %c1_121 = arith.constant 1 : index
    %c0_122 = arith.constant 0 : index
    %c0_123 = arith.constant 0 : index
    %291 = vector.load %arg9[%c1_121, %c0_122, %c0_123] : memref<2x1x64xf32, #tpu.memory_space<vmem>>, vector<1x1x64xf32>
    %292 = vector.shape_cast %291 : vector<1x1x64xf32> to vector<1x64xf32>
    %c1_124 = arith.constant 1 : index
    %c0_125 = arith.constant 0 : index
    %c0_126 = arith.constant 0 : index
    %293 = vector.load %arg10[%c1_124, %c0_125, %c0_126] : memref<2x1x64xf32, #tpu.memory_space<vmem>>, vector<1x1x64xf32>
    %294 = vector.shape_cast %293 : vector<1x1x64xf32> to vector<1x64xf32>
    %c1_127 = arith.constant 1 : index
    %c0_128 = arith.constant 0 : index
    %c0_129 = arith.constant 0 : index
    %295 = vector.load %arg11[%c1_127, %c0_128, %c0_129] : memref<2x1x64xf32, #tpu.memory_space<vmem>>, vector<1x1x64xf32>
    %296 = vector.shape_cast %295 : vector<1x1x64xf32> to vector<1x64xf32>
    %c1_130 = arith.constant 1 : index
    %c0_131 = arith.constant 0 : index
    %c0_132 = arith.constant 0 : index
    %297 = vector.load %arg12[%c1_130, %c0_131, %c0_132] : memref<2x64x128xf32, #tpu.memory_space<vmem>>, vector<1x64x128xf32>
    %298 = vector.shape_cast %297 : vector<1x64x128xf32> to vector<64x128xf32>
    %c1_133 = arith.constant 1 : index
    %c0_134 = arith.constant 0 : index
    %c0_135 = arith.constant 0 : index
    %299 = vector.load %arg13[%c1_133, %c0_134, %c0_135] : memref<2x1x128xf32, #tpu.memory_space<vmem>>, vector<1x1x128xf32>
    %300 = vector.shape_cast %299 : vector<1x1x128xf32> to vector<1x128xf32>
    %c1_136 = arith.constant 1 : index
    %c0_137 = arith.constant 0 : index
    %c0_138 = arith.constant 0 : index
    %301 = vector.load %arg14[%c1_136, %c0_137, %c0_138] : memref<2x128x64xf32, #tpu.memory_space<vmem>>, vector<1x128x64xf32>
    %302 = vector.shape_cast %301 : vector<1x128x64xf32> to vector<128x64xf32>
    %c1_139 = arith.constant 1 : index
    %c0_140 = arith.constant 0 : index
    %c0_141 = arith.constant 0 : index
    %303 = vector.load %arg15[%c1_139, %c0_140, %c0_141] : memref<2x1x64xf32, #tpu.memory_space<vmem>>, vector<1x1x64xf32>
    %304 = vector.shape_cast %303 : vector<1x1x64xf32> to vector<1x64xf32>
    %c1_142 = arith.constant 1 : index
    %c0_143 = arith.constant 0 : index
    %c0_144 = arith.constant 0 : index
    %305 = vector.load %arg16[%c1_142, %c0_143, %c0_144] : memref<2x1x64xf32, #tpu.memory_space<vmem>>, vector<1x1x64xf32>
    %306 = vector.shape_cast %305 : vector<1x1x64xf32> to vector<1x64xf32>
    %c1_145 = arith.constant 1 : index
    %c0_146 = arith.constant 0 : index
    %c0_147 = arith.constant 0 : index
    %307 = vector.load %arg17[%c1_145, %c0_146, %c0_147] : memref<2x1x64xf32, #tpu.memory_space<vmem>>, vector<1x1x64xf32>
    %308 = vector.shape_cast %307 : vector<1x1x64xf32> to vector<1x64xf32>
    %309 = arith.truncf %284 : vector<16x64xf32> to vector<16x64xbf16>
    %310 = arith.truncf %286 : vector<64x192xf32> to vector<64x192xbf16>
    %cst_148 = arith.constant dense<0.000000e+00> : vector<16x192xf32>
    %311 = tpu.matmul %309, %310, %cst_148 {dimension_numbers = #tpu.dot_dimension_numbers<[1], [0], [0], [1], [0, 0, 1, 1], [], []>} : vector<16x64xbf16>, vector<64x192xbf16>, vector<16x192xf32> -> vector<16x192xf32>
    %312 = vector.broadcast %288 : vector<1x192xf32> to vector<16x192xf32>
    %313 = arith.addf %311, %312 : vector<16x192xf32>
    %cst_149 = arith.constant 0.000000e+00 : f32
    %314 = vector.broadcast %cst_149 : f32 to vector<16x64xf32>
    %315 = vector.extract_strided_slice %313 {offsets = [0, 0], sizes = [16, 16], strides = [1, 1]} : vector<16x192xf32> to vector<16x16xf32>
    %316 = vector.extract_strided_slice %313 {offsets = [0, 64], sizes = [16, 16], strides = [1, 1]} : vector<16x192xf32> to vector<16x16xf32>
    %317 = vector.extract_strided_slice %313 {offsets = [0, 128], sizes = [16, 16], strides = [1, 1]} : vector<16x192xf32> to vector<16x16xf32>
    %318 = arith.truncf %315 : vector<16x16xf32> to vector<16x16xbf16>
    %319 = arith.truncf %316 : vector<16x16xf32> to vector<16x16xbf16>
    %cst_150 = arith.constant dense<0.000000e+00> : vector<16x16xf32>
    %320 = tpu.matmul %318, %319, %cst_150 {dimension_numbers = #tpu.dot_dimension_numbers<[1], [1], [0], [0], [0, 0, 1, 0], [], []>} : vector<16x16xbf16>, vector<16x16xbf16>, vector<16x16xf32> -> vector<16x16xf32>
    %cst_151 = arith.constant 2.500000e-01 : f32
    %321 = vector.broadcast %cst_151 : f32 to vector<16x16xf32>
    %322 = arith.mulf %320, %321 : vector<16x16xf32>
    %cst_152 = arith.constant 5.000000e-01 : f32
    %323 = vector.broadcast %cst_152 : f32 to vector<1x16xf32>
    %324 = arith.cmpf ogt, %1, %323 : vector<1x16xf32>
    %cst_153 = arith.constant -1.000000e+30 : f32
    %325 = vector.shape_cast %324 : vector<1x16xi1> to vector<1x16xi1>
    %326 = vector.broadcast %325 : vector<1x16xi1> to vector<16x16xi1>
    %327 = vector.broadcast %cst_153 : f32 to vector<16x16xf32>
    %328 = arith.select %326, %322, %327 : vector<16x16xi1>, vector<16x16xf32>
    %cst_154 = arith.constant dense<0xFF800000> : vector<16xf32>
    %329 = vector.multi_reduction <maximumf>, %328, %cst_154 [1] : vector<16x16xf32> to vector<16xf32>
    %330 = vector.shape_cast %329 : vector<16xf32> to vector<16x1xf32>
    %331 = vector.broadcast %330 : vector<16x1xf32> to vector<16x16xf32>
    %332 = arith.subf %328, %331 : vector<16x16xf32>
    %333 = math.exp %332 : vector<16x16xf32>
    %cst_155 = arith.constant 5.000000e-01 : f32
    %334 = vector.broadcast %cst_155 : f32 to vector<1x16xf32>
    %335 = arith.cmpf ogt, %1, %334 : vector<1x16xf32>
    %cst_156 = arith.constant 0.000000e+00 : f32
    %336 = vector.shape_cast %335 : vector<1x16xi1> to vector<1x16xi1>
    %337 = vector.broadcast %336 : vector<1x16xi1> to vector<16x16xi1>
    %338 = vector.broadcast %cst_156 : f32 to vector<16x16xf32>
    %339 = arith.select %337, %333, %338 : vector<16x16xi1>, vector<16x16xf32>
    %cst_157 = arith.constant dense<0.000000e+00> : vector<16xf32>
    %340 = vector.multi_reduction <add>, %339, %cst_157 [1] : vector<16x16xf32> to vector<16xf32>
    %341 = vector.shape_cast %340 : vector<16xf32> to vector<16x1xf32>
    %cst_158 = arith.constant 9.99999968E-21 : f32
    %342 = vector.broadcast %cst_158 : f32 to vector<16x1xf32>
    %343 = arith.maximumf %341, %342 : vector<16x1xf32>
    %344 = tpu.reciprocal %343 {approx = true} : vector<16x1xf32> -> vector<16x1xf32>
    %345 = vector.broadcast %344 : vector<16x1xf32> to vector<16x16xf32>
    %346 = arith.mulf %339, %345 : vector<16x16xf32>
    %347 = arith.truncf %346 : vector<16x16xf32> to vector<16x16xbf16>
    %348 = arith.truncf %317 : vector<16x16xf32> to vector<16x16xbf16>
    %cst_159 = arith.constant dense<0.000000e+00> : vector<16x16xf32>
    %349 = tpu.matmul %347, %348, %cst_159 {dimension_numbers = #tpu.dot_dimension_numbers<[1], [0], [0], [1], [0, 0, 1, 1], [], []>} : vector<16x16xbf16>, vector<16x16xbf16>, vector<16x16xf32> -> vector<16x16xf32>
    %350 = vector.extract_strided_slice %290 {offsets = [0, 0], sizes = [16, 64], strides = [1, 1]} : vector<64x64xf32> to vector<16x64xf32>
    %351 = arith.truncf %349 : vector<16x16xf32> to vector<16x16xbf16>
    %352 = arith.truncf %350 : vector<16x64xf32> to vector<16x64xbf16>
    %cst_160 = arith.constant dense<0.000000e+00> : vector<16x64xf32>
    %353 = tpu.matmul %351, %352, %cst_160 {dimension_numbers = #tpu.dot_dimension_numbers<[1], [0], [0], [1], [0, 0, 1, 1], [], []>} : vector<16x16xbf16>, vector<16x64xbf16>, vector<16x64xf32> -> vector<16x64xf32>
    %354 = arith.addf %314, %353 : vector<16x64xf32>
    %355 = vector.extract_strided_slice %313 {offsets = [0, 16], sizes = [16, 16], strides = [1, 1]} : vector<16x192xf32> to vector<16x16xf32>
    %356 = vector.extract_strided_slice %313 {offsets = [0, 80], sizes = [16, 16], strides = [1, 1]} : vector<16x192xf32> to vector<16x16xf32>
    %357 = vector.extract_strided_slice %313 {offsets = [0, 144], sizes = [16, 16], strides = [1, 1]} : vector<16x192xf32> to vector<16x16xf32>
    %358 = arith.truncf %355 : vector<16x16xf32> to vector<16x16xbf16>
    %359 = arith.truncf %356 : vector<16x16xf32> to vector<16x16xbf16>
    %cst_161 = arith.constant dense<0.000000e+00> : vector<16x16xf32>
    %360 = tpu.matmul %358, %359, %cst_161 {dimension_numbers = #tpu.dot_dimension_numbers<[1], [1], [0], [0], [0, 0, 1, 0], [], []>} : vector<16x16xbf16>, vector<16x16xbf16>, vector<16x16xf32> -> vector<16x16xf32>
    %cst_162 = arith.constant 2.500000e-01 : f32
    %361 = vector.broadcast %cst_162 : f32 to vector<16x16xf32>
    %362 = arith.mulf %360, %361 : vector<16x16xf32>
    %cst_163 = arith.constant 5.000000e-01 : f32
    %363 = vector.broadcast %cst_163 : f32 to vector<1x16xf32>
    %364 = arith.cmpf ogt, %1, %363 : vector<1x16xf32>
    %cst_164 = arith.constant -1.000000e+30 : f32
    %365 = vector.shape_cast %364 : vector<1x16xi1> to vector<1x16xi1>
    %366 = vector.broadcast %365 : vector<1x16xi1> to vector<16x16xi1>
    %367 = vector.broadcast %cst_164 : f32 to vector<16x16xf32>
    %368 = arith.select %366, %362, %367 : vector<16x16xi1>, vector<16x16xf32>
    %cst_165 = arith.constant dense<0xFF800000> : vector<16xf32>
    %369 = vector.multi_reduction <maximumf>, %368, %cst_165 [1] : vector<16x16xf32> to vector<16xf32>
    %370 = vector.shape_cast %369 : vector<16xf32> to vector<16x1xf32>
    %371 = vector.broadcast %370 : vector<16x1xf32> to vector<16x16xf32>
    %372 = arith.subf %368, %371 : vector<16x16xf32>
    %373 = math.exp %372 : vector<16x16xf32>
    %cst_166 = arith.constant 5.000000e-01 : f32
    %374 = vector.broadcast %cst_166 : f32 to vector<1x16xf32>
    %375 = arith.cmpf ogt, %1, %374 : vector<1x16xf32>
    %cst_167 = arith.constant 0.000000e+00 : f32
    %376 = vector.shape_cast %375 : vector<1x16xi1> to vector<1x16xi1>
    %377 = vector.broadcast %376 : vector<1x16xi1> to vector<16x16xi1>
    %378 = vector.broadcast %cst_167 : f32 to vector<16x16xf32>
    %379 = arith.select %377, %373, %378 : vector<16x16xi1>, vector<16x16xf32>
    %cst_168 = arith.constant dense<0.000000e+00> : vector<16xf32>
    %380 = vector.multi_reduction <add>, %379, %cst_168 [1] : vector<16x16xf32> to vector<16xf32>
    %381 = vector.shape_cast %380 : vector<16xf32> to vector<16x1xf32>
    %cst_169 = arith.constant 9.99999968E-21 : f32
    %382 = vector.broadcast %cst_169 : f32 to vector<16x1xf32>
    %383 = arith.maximumf %381, %382 : vector<16x1xf32>
    %384 = tpu.reciprocal %383 {approx = true} : vector<16x1xf32> -> vector<16x1xf32>
    %385 = vector.broadcast %384 : vector<16x1xf32> to vector<16x16xf32>
    %386 = arith.mulf %379, %385 : vector<16x16xf32>
    %387 = arith.truncf %386 : vector<16x16xf32> to vector<16x16xbf16>
    %388 = arith.truncf %357 : vector<16x16xf32> to vector<16x16xbf16>
    %cst_170 = arith.constant dense<0.000000e+00> : vector<16x16xf32>
    %389 = tpu.matmul %387, %388, %cst_170 {dimension_numbers = #tpu.dot_dimension_numbers<[1], [0], [0], [1], [0, 0, 1, 1], [], []>} : vector<16x16xbf16>, vector<16x16xbf16>, vector<16x16xf32> -> vector<16x16xf32>
    %390 = vector.extract_strided_slice %290 {offsets = [16, 0], sizes = [16, 64], strides = [1, 1]} : vector<64x64xf32> to vector<16x64xf32>
    %391 = arith.truncf %389 : vector<16x16xf32> to vector<16x16xbf16>
    %392 = arith.truncf %390 : vector<16x64xf32> to vector<16x64xbf16>
    %cst_171 = arith.constant dense<0.000000e+00> : vector<16x64xf32>
    %393 = tpu.matmul %391, %392, %cst_171 {dimension_numbers = #tpu.dot_dimension_numbers<[1], [0], [0], [1], [0, 0, 1, 1], [], []>} : vector<16x16xbf16>, vector<16x64xbf16>, vector<16x64xf32> -> vector<16x64xf32>
    %394 = arith.addf %354, %393 : vector<16x64xf32>
    %395 = vector.extract_strided_slice %313 {offsets = [0, 32], sizes = [16, 16], strides = [1, 1]} : vector<16x192xf32> to vector<16x16xf32>
    %396 = vector.extract_strided_slice %313 {offsets = [0, 96], sizes = [16, 16], strides = [1, 1]} : vector<16x192xf32> to vector<16x16xf32>
    %397 = vector.extract_strided_slice %313 {offsets = [0, 160], sizes = [16, 16], strides = [1, 1]} : vector<16x192xf32> to vector<16x16xf32>
    %398 = arith.truncf %395 : vector<16x16xf32> to vector<16x16xbf16>
    %399 = arith.truncf %396 : vector<16x16xf32> to vector<16x16xbf16>
    %cst_172 = arith.constant dense<0.000000e+00> : vector<16x16xf32>
    %400 = tpu.matmul %398, %399, %cst_172 {dimension_numbers = #tpu.dot_dimension_numbers<[1], [1], [0], [0], [0, 0, 1, 0], [], []>} : vector<16x16xbf16>, vector<16x16xbf16>, vector<16x16xf32> -> vector<16x16xf32>
    %cst_173 = arith.constant 2.500000e-01 : f32
    %401 = vector.broadcast %cst_173 : f32 to vector<16x16xf32>
    %402 = arith.mulf %400, %401 : vector<16x16xf32>
    %cst_174 = arith.constant 5.000000e-01 : f32
    %403 = vector.broadcast %cst_174 : f32 to vector<1x16xf32>
    %404 = arith.cmpf ogt, %1, %403 : vector<1x16xf32>
    %cst_175 = arith.constant -1.000000e+30 : f32
    %405 = vector.shape_cast %404 : vector<1x16xi1> to vector<1x16xi1>
    %406 = vector.broadcast %405 : vector<1x16xi1> to vector<16x16xi1>
    %407 = vector.broadcast %cst_175 : f32 to vector<16x16xf32>
    %408 = arith.select %406, %402, %407 : vector<16x16xi1>, vector<16x16xf32>
    %cst_176 = arith.constant dense<0xFF800000> : vector<16xf32>
    %409 = vector.multi_reduction <maximumf>, %408, %cst_176 [1] : vector<16x16xf32> to vector<16xf32>
    %410 = vector.shape_cast %409 : vector<16xf32> to vector<16x1xf32>
    %411 = vector.broadcast %410 : vector<16x1xf32> to vector<16x16xf32>
    %412 = arith.subf %408, %411 : vector<16x16xf32>
    %413 = math.exp %412 : vector<16x16xf32>
    %cst_177 = arith.constant 5.000000e-01 : f32
    %414 = vector.broadcast %cst_177 : f32 to vector<1x16xf32>
    %415 = arith.cmpf ogt, %1, %414 : vector<1x16xf32>
    %cst_178 = arith.constant 0.000000e+00 : f32
    %416 = vector.shape_cast %415 : vector<1x16xi1> to vector<1x16xi1>
    %417 = vector.broadcast %416 : vector<1x16xi1> to vector<16x16xi1>
    %418 = vector.broadcast %cst_178 : f32 to vector<16x16xf32>
    %419 = arith.select %417, %413, %418 : vector<16x16xi1>, vector<16x16xf32>
    %cst_179 = arith.constant dense<0.000000e+00> : vector<16xf32>
    %420 = vector.multi_reduction <add>, %419, %cst_179 [1] : vector<16x16xf32> to vector<16xf32>
    %421 = vector.shape_cast %420 : vector<16xf32> to vector<16x1xf32>
    %cst_180 = arith.constant 9.99999968E-21 : f32
    %422 = vector.broadcast %cst_180 : f32 to vector<16x1xf32>
    %423 = arith.maximumf %421, %422 : vector<16x1xf32>
    %424 = tpu.reciprocal %423 {approx = true} : vector<16x1xf32> -> vector<16x1xf32>
    %425 = vector.broadcast %424 : vector<16x1xf32> to vector<16x16xf32>
    %426 = arith.mulf %419, %425 : vector<16x16xf32>
    %427 = arith.truncf %426 : vector<16x16xf32> to vector<16x16xbf16>
    %428 = arith.truncf %397 : vector<16x16xf32> to vector<16x16xbf16>
    %cst_181 = arith.constant dense<0.000000e+00> : vector<16x16xf32>
    %429 = tpu.matmul %427, %428, %cst_181 {dimension_numbers = #tpu.dot_dimension_numbers<[1], [0], [0], [1], [0, 0, 1, 1], [], []>} : vector<16x16xbf16>, vector<16x16xbf16>, vector<16x16xf32> -> vector<16x16xf32>
    %430 = vector.extract_strided_slice %290 {offsets = [32, 0], sizes = [16, 64], strides = [1, 1]} : vector<64x64xf32> to vector<16x64xf32>
    %431 = arith.truncf %429 : vector<16x16xf32> to vector<16x16xbf16>
    %432 = arith.truncf %430 : vector<16x64xf32> to vector<16x64xbf16>
    %cst_182 = arith.constant dense<0.000000e+00> : vector<16x64xf32>
    %433 = tpu.matmul %431, %432, %cst_182 {dimension_numbers = #tpu.dot_dimension_numbers<[1], [0], [0], [1], [0, 0, 1, 1], [], []>} : vector<16x16xbf16>, vector<16x64xbf16>, vector<16x64xf32> -> vector<16x64xf32>
    %434 = arith.addf %394, %433 : vector<16x64xf32>
    %435 = vector.extract_strided_slice %313 {offsets = [0, 48], sizes = [16, 16], strides = [1, 1]} : vector<16x192xf32> to vector<16x16xf32>
    %436 = vector.extract_strided_slice %313 {offsets = [0, 112], sizes = [16, 16], strides = [1, 1]} : vector<16x192xf32> to vector<16x16xf32>
    %437 = vector.extract_strided_slice %313 {offsets = [0, 176], sizes = [16, 16], strides = [1, 1]} : vector<16x192xf32> to vector<16x16xf32>
    %438 = arith.truncf %435 : vector<16x16xf32> to vector<16x16xbf16>
    %439 = arith.truncf %436 : vector<16x16xf32> to vector<16x16xbf16>
    %cst_183 = arith.constant dense<0.000000e+00> : vector<16x16xf32>
    %440 = tpu.matmul %438, %439, %cst_183 {dimension_numbers = #tpu.dot_dimension_numbers<[1], [1], [0], [0], [0, 0, 1, 0], [], []>} : vector<16x16xbf16>, vector<16x16xbf16>, vector<16x16xf32> -> vector<16x16xf32>
    %cst_184 = arith.constant 2.500000e-01 : f32
    %441 = vector.broadcast %cst_184 : f32 to vector<16x16xf32>
    %442 = arith.mulf %440, %441 : vector<16x16xf32>
    %cst_185 = arith.constant 5.000000e-01 : f32
    %443 = vector.broadcast %cst_185 : f32 to vector<1x16xf32>
    %444 = arith.cmpf ogt, %1, %443 : vector<1x16xf32>
    %cst_186 = arith.constant -1.000000e+30 : f32
    %445 = vector.shape_cast %444 : vector<1x16xi1> to vector<1x16xi1>
    %446 = vector.broadcast %445 : vector<1x16xi1> to vector<16x16xi1>
    %447 = vector.broadcast %cst_186 : f32 to vector<16x16xf32>
    %448 = arith.select %446, %442, %447 : vector<16x16xi1>, vector<16x16xf32>
    %cst_187 = arith.constant dense<0xFF800000> : vector<16xf32>
    %449 = vector.multi_reduction <maximumf>, %448, %cst_187 [1] : vector<16x16xf32> to vector<16xf32>
    %450 = vector.shape_cast %449 : vector<16xf32> to vector<16x1xf32>
    %451 = vector.broadcast %450 : vector<16x1xf32> to vector<16x16xf32>
    %452 = arith.subf %448, %451 : vector<16x16xf32>
    %453 = math.exp %452 : vector<16x16xf32>
    %cst_188 = arith.constant 5.000000e-01 : f32
    %454 = vector.broadcast %cst_188 : f32 to vector<1x16xf32>
    %455 = arith.cmpf ogt, %1, %454 : vector<1x16xf32>
    %cst_189 = arith.constant 0.000000e+00 : f32
    %456 = vector.shape_cast %455 : vector<1x16xi1> to vector<1x16xi1>
    %457 = vector.broadcast %456 : vector<1x16xi1> to vector<16x16xi1>
    %458 = vector.broadcast %cst_189 : f32 to vector<16x16xf32>
    %459 = arith.select %457, %453, %458 : vector<16x16xi1>, vector<16x16xf32>
    %cst_190 = arith.constant dense<0.000000e+00> : vector<16xf32>
    %460 = vector.multi_reduction <add>, %459, %cst_190 [1] : vector<16x16xf32> to vector<16xf32>
    %461 = vector.shape_cast %460 : vector<16xf32> to vector<16x1xf32>
    %cst_191 = arith.constant 9.99999968E-21 : f32
    %462 = vector.broadcast %cst_191 : f32 to vector<16x1xf32>
    %463 = arith.maximumf %461, %462 : vector<16x1xf32>
    %464 = tpu.reciprocal %463 {approx = true} : vector<16x1xf32> -> vector<16x1xf32>
    %465 = vector.broadcast %464 : vector<16x1xf32> to vector<16x16xf32>
    %466 = arith.mulf %459, %465 : vector<16x16xf32>
    %467 = arith.truncf %466 : vector<16x16xf32> to vector<16x16xbf16>
    %468 = arith.truncf %437 : vector<16x16xf32> to vector<16x16xbf16>
    %cst_192 = arith.constant dense<0.000000e+00> : vector<16x16xf32>
    %469 = tpu.matmul %467, %468, %cst_192 {dimension_numbers = #tpu.dot_dimension_numbers<[1], [0], [0], [1], [0, 0, 1, 1], [], []>} : vector<16x16xbf16>, vector<16x16xbf16>, vector<16x16xf32> -> vector<16x16xf32>
    %470 = vector.extract_strided_slice %290 {offsets = [48, 0], sizes = [16, 64], strides = [1, 1]} : vector<64x64xf32> to vector<16x64xf32>
    %471 = arith.truncf %469 : vector<16x16xf32> to vector<16x16xbf16>
    %472 = arith.truncf %470 : vector<16x64xf32> to vector<16x64xbf16>
    %cst_193 = arith.constant dense<0.000000e+00> : vector<16x64xf32>
    %473 = tpu.matmul %471, %472, %cst_193 {dimension_numbers = #tpu.dot_dimension_numbers<[1], [0], [0], [1], [0, 0, 1, 1], [], []>} : vector<16x16xbf16>, vector<16x64xbf16>, vector<16x64xf32> -> vector<16x64xf32>
    %474 = arith.addf %434, %473 : vector<16x64xf32>
    %475 = vector.broadcast %292 : vector<1x64xf32> to vector<16x64xf32>
    %476 = arith.addf %474, %475 : vector<16x64xf32>
    %477 = arith.addf %284, %476 : vector<16x64xf32>
    %cst_194 = arith.constant dense<0.000000e+00> : vector<16xf32>
    %478 = vector.multi_reduction <add>, %477, %cst_194 [1] : vector<16x64xf32> to vector<16xf32>
    %479 = vector.shape_cast %478 : vector<16xf32> to vector<16x1xf32>
    %cst_195 = arith.constant 6.400000e+01 : f32
    %480 = vector.broadcast %cst_195 : f32 to vector<16x1xf32>
    %481 = arith.divf %479, %480 : vector<16x1xf32>
    %482 = vector.broadcast %481 : vector<16x1xf32> to vector<16x64xf32>
    %483 = arith.subf %477, %482 : vector<16x64xf32>
    %484 = arith.mulf %483, %483 : vector<16x64xf32>
    %cst_196 = arith.constant dense<0.000000e+00> : vector<16xf32>
    %485 = vector.multi_reduction <add>, %484, %cst_196 [1] : vector<16x64xf32> to vector<16xf32>
    %486 = vector.shape_cast %485 : vector<16xf32> to vector<16x1xf32>
    %cst_197 = arith.constant 6.400000e+01 : f32
    %487 = vector.broadcast %cst_197 : f32 to vector<16x1xf32>
    %488 = arith.divf %486, %487 : vector<16x1xf32>
    %cst_198 = arith.constant 9.99999974E-6 : f32
    %489 = vector.broadcast %cst_198 : f32 to vector<16x1xf32>
    %490 = arith.addf %488, %489 : vector<16x1xf32>
    %491 = math.rsqrt %490 : vector<16x1xf32>
    %492 = vector.broadcast %491 : vector<16x1xf32> to vector<16x64xf32>
    %493 = arith.mulf %483, %492 : vector<16x64xf32>
    %494 = vector.broadcast %294 : vector<1x64xf32> to vector<16x64xf32>
    %495 = arith.mulf %493, %494 : vector<16x64xf32>
    %496 = vector.broadcast %296 : vector<1x64xf32> to vector<16x64xf32>
    %497 = arith.addf %495, %496 : vector<16x64xf32>
    %498 = arith.truncf %497 : vector<16x64xf32> to vector<16x64xbf16>
    %499 = arith.truncf %298 : vector<64x128xf32> to vector<64x128xbf16>
    %cst_199 = arith.constant dense<0.000000e+00> : vector<16x128xf32>
    %500 = tpu.matmul %498, %499, %cst_199 {dimension_numbers = #tpu.dot_dimension_numbers<[1], [0], [0], [1], [0, 0, 1, 1], [], []>} : vector<16x64xbf16>, vector<64x128xbf16>, vector<16x128xf32> -> vector<16x128xf32>
    %501 = vector.broadcast %300 : vector<1x128xf32> to vector<16x128xf32>
    %502 = arith.addf %500, %501 : vector<16x128xf32>
    %cst_200 = arith.constant 5.000000e-01 : f32
    %503 = vector.broadcast %cst_200 : f32 to vector<16x128xf32>
    %504 = arith.mulf %503, %502 : vector<16x128xf32>
    %cst_201 = arith.constant 4.471500e-02 : f32
    %505 = vector.broadcast %cst_201 : f32 to vector<16x128xf32>
    %506 = arith.mulf %505, %502 : vector<16x128xf32>
    %507 = arith.mulf %506, %502 : vector<16x128xf32>
    %508 = arith.mulf %507, %502 : vector<16x128xf32>
    %509 = arith.addf %502, %508 : vector<16x128xf32>
    %cst_202 = arith.constant 0.797884583 : f32
    %510 = vector.broadcast %cst_202 : f32 to vector<16x128xf32>
    %511 = arith.mulf %510, %509 : vector<16x128xf32>
    %512 = math.tanh %511 : vector<16x128xf32>
    %cst_203 = arith.constant 1.000000e+00 : f32
    %513 = vector.broadcast %cst_203 : f32 to vector<16x128xf32>
    %514 = arith.addf %513, %512 : vector<16x128xf32>
    %515 = arith.mulf %504, %514 : vector<16x128xf32>
    %516 = arith.truncf %515 : vector<16x128xf32> to vector<16x128xbf16>
    %517 = arith.truncf %302 : vector<128x64xf32> to vector<128x64xbf16>
    %cst_204 = arith.constant dense<0.000000e+00> : vector<16x64xf32>
    %518 = tpu.matmul %516, %517, %cst_204 {dimension_numbers = #tpu.dot_dimension_numbers<[1], [0], [0], [1], [0, 0, 1, 1], [], []>} : vector<16x128xbf16>, vector<128x64xbf16>, vector<16x64xf32> -> vector<16x64xf32>
    %519 = vector.broadcast %304 : vector<1x64xf32> to vector<16x64xf32>
    %520 = arith.addf %518, %519 : vector<16x64xf32>
    %521 = arith.addf %497, %520 : vector<16x64xf32>
    %cst_205 = arith.constant dense<0.000000e+00> : vector<16xf32>
    %522 = vector.multi_reduction <add>, %521, %cst_205 [1] : vector<16x64xf32> to vector<16xf32>
    %523 = vector.shape_cast %522 : vector<16xf32> to vector<16x1xf32>
    %cst_206 = arith.constant 6.400000e+01 : f32
    %524 = vector.broadcast %cst_206 : f32 to vector<16x1xf32>
    %525 = arith.divf %523, %524 : vector<16x1xf32>
    %526 = vector.broadcast %525 : vector<16x1xf32> to vector<16x64xf32>
    %527 = arith.subf %521, %526 : vector<16x64xf32>
    %528 = arith.mulf %527, %527 : vector<16x64xf32>
    %cst_207 = arith.constant dense<0.000000e+00> : vector<16xf32>
    %529 = vector.multi_reduction <add>, %528, %cst_207 [1] : vector<16x64xf32> to vector<16xf32>
    %530 = vector.shape_cast %529 : vector<16xf32> to vector<16x1xf32>
    %cst_208 = arith.constant 6.400000e+01 : f32
    %531 = vector.broadcast %cst_208 : f32 to vector<16x1xf32>
    %532 = arith.divf %530, %531 : vector<16x1xf32>
    %cst_209 = arith.constant 9.99999974E-6 : f32
    %533 = vector.broadcast %cst_209 : f32 to vector<16x1xf32>
    %534 = arith.addf %532, %533 : vector<16x1xf32>
    %535 = math.rsqrt %534 : vector<16x1xf32>
    %536 = vector.broadcast %535 : vector<16x1xf32> to vector<16x64xf32>
    %537 = arith.mulf %527, %536 : vector<16x64xf32>
    %538 = vector.broadcast %306 : vector<1x64xf32> to vector<16x64xf32>
    %539 = arith.mulf %537, %538 : vector<16x64xf32>
    %540 = vector.broadcast %308 : vector<1x64xf32> to vector<16x64xf32>
    %541 = arith.addf %539, %540 : vector<16x64xf32>
    %542 = arith.addf %541, %284 : vector<16x64xf32>
    %cst_210 = arith.constant 5.000000e-01 : f32
    %543 = vector.broadcast %cst_210 : f32 to vector<16x64xf32>
    %544 = arith.mulf %543, %542 : vector<16x64xf32>
    %c0_211 = arith.constant 0 : index
    %c0_212 = arith.constant 0 : index
    %c0_213 = arith.constant 0 : index
    %545 = vector.load %arg18[%c0_211, %c0_212, %c0_213] : memref<1x16x64xf32, #tpu.memory_space<vmem>>, vector<1x16x64xf32>
    %546 = vector.shape_cast %545 : vector<1x16x64xf32> to vector<16x64xf32>
    %547 = vector.shape_cast %544 : vector<16x64xf32> to vector<1x16x64xf32>
    tpu.vector_store %arg18[%c0_211, %c0_212, %c0_213], %547 {strides = array<i32>} : memref<1x16x64xf32, #tpu.memory_space<vmem>>, vector<1x16x64xf32>,
    return
  }
  func.func @transform_0(%arg0: i32) -> (i32, i32, i32) {
    %c0_i32 = arith.constant 0 : i32
    %c0_i32_0 = arith.constant 0 : i32
    %c0_i32_1 = arith.constant 0 : i32
    return %arg0, %c0_i32, %c0_i32_0 : i32, i32, i32
  }
  func.func @transform_1(%arg0: i32) -> (i32, i32, i32) {
    %c0_i32 = arith.constant 0 : i32
    %c0_i32_0 = arith.constant 0 : i32
    %c0_i32_1 = arith.constant 0 : i32
    return %arg0, %c0_i32, %c0_i32_0 : i32, i32, i32
  }
  func.func @transform_2(%arg0: i32) -> (i32, i32) {
    %c0_i32 = arith.constant 0 : i32
    %c0_i32_0 = arith.constant 0 : i32
    %c0_i32_1 = arith.constant 0 : i32
    return %c0_i32, %c0_i32_0 : i32, i32
  }
  func.func @transform_3(%arg0: i32) -> (i32, i32) {
    %c0_i32 = arith.constant 0 : i32
    %c0_i32_0 = arith.constant 0 : i32
    %c0_i32_1 = arith.constant 0 : i32
    return %c0_i32, %c0_i32_0 : i32, i32
  }
  func.func @transform_4(%arg0: i32) -> (i32, i32) {
    %c0_i32 = arith.constant 0 : i32
    %c0_i32_0 = arith.constant 0 : i32
    %c0_i32_1 = arith.constant 0 : i32
    return %c0_i32, %c0_i32_0 : i32, i32
  }
  func.func @transform_5(%arg0: i32) -> (i32, i32, i32) {
    %c0_i32 = arith.constant 0 : i32
    %c0_i32_0 = arith.constant 0 : i32
    %c0_i32_1 = arith.constant 0 : i32
    %c0_i32_2 = arith.constant 0 : i32
    return %c0_i32, %c0_i32_0, %c0_i32_1 : i32, i32, i32
  }
  func.func @transform_6(%arg0: i32) -> (i32, i32, i32) {
    %c0_i32 = arith.constant 0 : i32
    %c0_i32_0 = arith.constant 0 : i32
    %c0_i32_1 = arith.constant 0 : i32
    %c0_i32_2 = arith.constant 0 : i32
    return %c0_i32, %c0_i32_0, %c0_i32_1 : i32, i32, i32
  }
  func.func @transform_7(%arg0: i32) -> (i32, i32, i32) {
    %c0_i32 = arith.constant 0 : i32
    %c0_i32_0 = arith.constant 0 : i32
    %c0_i32_1 = arith.constant 0 : i32
    %c0_i32_2 = arith.constant 0 : i32
    return %c0_i32, %c0_i32_0, %c0_i32_1 : i32, i32, i32
  }
  func.func @transform_8(%arg0: i32) -> (i32, i32, i32) {
    %c0_i32 = arith.constant 0 : i32
    %c0_i32_0 = arith.constant 0 : i32
    %c0_i32_1 = arith.constant 0 : i32
    %c0_i32_2 = arith.constant 0 : i32
    return %c0_i32, %c0_i32_0, %c0_i32_1 : i32, i32, i32
  }
  func.func @transform_9(%arg0: i32) -> (i32, i32, i32) {
    %c0_i32 = arith.constant 0 : i32
    %c0_i32_0 = arith.constant 0 : i32
    %c0_i32_1 = arith.constant 0 : i32
    %c0_i32_2 = arith.constant 0 : i32
    return %c0_i32, %c0_i32_0, %c0_i32_1 : i32, i32, i32
  }
  func.func @transform_10(%arg0: i32) -> (i32, i32, i32) {
    %c0_i32 = arith.constant 0 : i32
    %c0_i32_0 = arith.constant 0 : i32
    %c0_i32_1 = arith.constant 0 : i32
    %c0_i32_2 = arith.constant 0 : i32
    return %c0_i32, %c0_i32_0, %c0_i32_1 : i32, i32, i32
  }
  func.func @transform_11(%arg0: i32) -> (i32, i32, i32) {
    %c0_i32 = arith.constant 0 : i32
    %c0_i32_0 = arith.constant 0 : i32
    %c0_i32_1 = arith.constant 0 : i32
    %c0_i32_2 = arith.constant 0 : i32
    return %c0_i32, %c0_i32_0, %c0_i32_1 : i32, i32, i32
  }
  func.func @transform_12(%arg0: i32) -> (i32, i32, i32) {
    %c0_i32 = arith.constant 0 : i32
    %c0_i32_0 = arith.constant 0 : i32
    %c0_i32_1 = arith.constant 0 : i32
    %c0_i32_2 = arith.constant 0 : i32
    return %c0_i32, %c0_i32_0, %c0_i32_1 : i32, i32, i32
  }
  func.func @transform_13(%arg0: i32) -> (i32, i32, i32) {
    %c0_i32 = arith.constant 0 : i32
    %c0_i32_0 = arith.constant 0 : i32
    %c0_i32_1 = arith.constant 0 : i32
    %c0_i32_2 = arith.constant 0 : i32
    return %c0_i32, %c0_i32_0, %c0_i32_1 : i32, i32, i32
  }
  func.func @transform_14(%arg0: i32) -> (i32, i32, i32) {
    %c0_i32 = arith.constant 0 : i32
    %c0_i32_0 = arith.constant 0 : i32
    %c0_i32_1 = arith.constant 0 : i32
    %c0_i32_2 = arith.constant 0 : i32
    return %c0_i32, %c0_i32_0, %c0_i32_1 : i32, i32, i32
  }
  func.func @transform_15(%arg0: i32) -> (i32, i32, i32) {
    %c0_i32 = arith.constant 0 : i32
    %c0_i32_0 = arith.constant 0 : i32
    %c0_i32_1 = arith.constant 0 : i32
    %c0_i32_2 = arith.constant 0 : i32
    return %c0_i32, %c0_i32_0, %c0_i32_1 : i32, i32, i32
  }
  func.func @transform_16(%arg0: i32) -> (i32, i32, i32) {
    %c0_i32 = arith.constant 0 : i32
    %c0_i32_0 = arith.constant 0 : i32
    %c0_i32_1 = arith.constant 0 : i32
    %c0_i32_2 = arith.constant 0 : i32
    return %c0_i32, %c0_i32_0, %c0_i32_1 : i32, i32, i32
  }
  func.func @transform_17(%arg0: i32) -> (i32, i32, i32) {
    %c0_i32 = arith.constant 0 : i32
    %c0_i32_0 = arith.constant 0 : i32
    %c0_i32_1 = arith.constant 0 : i32
    return %arg0, %c0_i32, %c0_i32_0 : i32, i32, i32
  }
}

module attributes {stable_mosaic.version = 11 : i64} {
  func.func @_embgen_kernel(%arg0: i32, %arg1: memref<1x17x64xf32, #tpu.memory_space<vmem>>, %arg2: memref<1x1x17xf32, #tpu.memory_space<vmem>>, %arg3: memref<1x64x192xf32, #tpu.memory_space<vmem>>, %arg4: memref<1x1x192xf32, #tpu.memory_space<vmem>>, %arg5: memref<1x64x64xf32, #tpu.memory_space<vmem>>, %arg6: memref<1x1x64xf32, #tpu.memory_space<vmem>>, %arg7: memref<1x1x64xf32, #tpu.memory_space<vmem>>, %arg8: memref<1x1x64xf32, #tpu.memory_space<vmem>>, %arg9: memref<1x64x128xf32, #tpu.memory_space<vmem>>, %arg10: memref<1x1x128xf32, #tpu.memory_space<vmem>>, %arg11: memref<1x128x64xf32, #tpu.memory_space<vmem>>, %arg12: memref<1x1x64xf32, #tpu.memory_space<vmem>>, %arg13: memref<1x1x64xf32, #tpu.memory_space<vmem>>, %arg14: memref<1x1x64xf32, #tpu.memory_space<vmem>>, %arg15: memref<1x1x64xf32, #tpu.memory_space<vmem>>) attributes {dimension_semantics = [#tpu.dimension_semantics<parallel>], iteration_bounds = array<i64: 4>, scalar_prefetch = 0 : i64, scratch_operands = 0 : i64, tpu.core_type = #tpu.core_type<tc>, window_params = [{transform_indices = @transform_0, window_bounds = array<i64: 1, 17, 64>}, {transform_indices = @transform_1, window_bounds = array<i64: 1, 1, 17>}, {pipeline_mode = #tpu.pipeline_mode<synchronous>, transform_indices = @transform_2, window_bounds = array<i64: 1, 64, 192>}, {pipeline_mode = #tpu.pipeline_mode<synchronous>, transform_indices = @transform_3, window_bounds = array<i64: 1, 1, 192>}, {pipeline_mode = #tpu.pipeline_mode<synchronous>, transform_indices = @transform_4, window_bounds = array<i64: 1, 64, 64>}, {pipeline_mode = #tpu.pipeline_mode<synchronous>, transform_indices = @transform_5, window_bounds = array<i64: 1, 1, 64>}, {pipeline_mode = #tpu.pipeline_mode<synchronous>, transform_indices = @transform_6, window_bounds = array<i64: 1, 1, 64>}, {pipeline_mode = #tpu.pipeline_mode<synchronous>, transform_indices = @transform_7, window_bounds = array<i64: 1, 1, 64>}, {pipeline_mode = #tpu.pipeline_mode<synchronous>, transform_indices = @transform_8, window_bounds = array<i64: 1, 64, 128>}, {pipeline_mode = #tpu.pipeline_mode<synchronous>, transform_indices = @transform_9, window_bounds = array<i64: 1, 1, 128>}, {pipeline_mode = #tpu.pipeline_mode<synchronous>, transform_indices = @transform_10, window_bounds = array<i64: 1, 128, 64>}, {pipeline_mode = #tpu.pipeline_mode<synchronous>, transform_indices = @transform_11, window_bounds = array<i64: 1, 1, 64>}, {pipeline_mode = #tpu.pipeline_mode<synchronous>, transform_indices = @transform_12, window_bounds = array<i64: 1, 1, 64>}, {pipeline_mode = #tpu.pipeline_mode<synchronous>, transform_indices = @transform_13, window_bounds = array<i64: 1, 1, 64>}, {transform_indices = @transform_14, window_bounds = array<i64: 1, 1, 64>}]} {
    %c0 = arith.constant 0 : index
    %c0_0 = arith.constant 0 : index
    %c0_1 = arith.constant 0 : index
    %0 = vector.load %arg2[%c0, %c0_0, %c0_1] : memref<1x1x17xf32, #tpu.memory_space<vmem>>, vector<1x1x17xf32>
    %1 = vector.shape_cast %0 : vector<1x1x17xf32> to vector<1x17xf32>
    %c0_2 = arith.constant 0 : index
    %c0_3 = arith.constant 0 : index
    %c0_4 = arith.constant 0 : index
    %2 = vector.load %arg1[%c0_2, %c0_3, %c0_4] : memref<1x17x64xf32, #tpu.memory_space<vmem>>, vector<1x17x64xf32>
    %3 = vector.shape_cast %2 : vector<1x17x64xf32> to vector<17x64xf32>
    %c0_5 = arith.constant 0 : index
    %c0_6 = arith.constant 0 : index
    %c0_7 = arith.constant 0 : index
    %4 = vector.load %arg3[%c0_5, %c0_6, %c0_7] : memref<1x64x192xf32, #tpu.memory_space<vmem>>, vector<1x64x192xf32>
    %5 = vector.shape_cast %4 : vector<1x64x192xf32> to vector<64x192xf32>
    %c0_8 = arith.constant 0 : index
    %c0_9 = arith.constant 0 : index
    %c0_10 = arith.constant 0 : index
    %6 = vector.load %arg4[%c0_8, %c0_9, %c0_10] : memref<1x1x192xf32, #tpu.memory_space<vmem>>, vector<1x1x192xf32>
    %7 = vector.shape_cast %6 : vector<1x1x192xf32> to vector<1x192xf32>
    %c0_11 = arith.constant 0 : index
    %c0_12 = arith.constant 0 : index
    %c0_13 = arith.constant 0 : index
    %8 = vector.load %arg5[%c0_11, %c0_12, %c0_13] : memref<1x64x64xf32, #tpu.memory_space<vmem>>, vector<1x64x64xf32>
    %9 = vector.shape_cast %8 : vector<1x64x64xf32> to vector<64x64xf32>
    %c0_14 = arith.constant 0 : index
    %c0_15 = arith.constant 0 : index
    %c0_16 = arith.constant 0 : index
    %10 = vector.load %arg6[%c0_14, %c0_15, %c0_16] : memref<1x1x64xf32, #tpu.memory_space<vmem>>, vector<1x1x64xf32>
    %11 = vector.shape_cast %10 : vector<1x1x64xf32> to vector<1x64xf32>
    %c0_17 = arith.constant 0 : index
    %c0_18 = arith.constant 0 : index
    %c0_19 = arith.constant 0 : index
    %12 = vector.load %arg7[%c0_17, %c0_18, %c0_19] : memref<1x1x64xf32, #tpu.memory_space<vmem>>, vector<1x1x64xf32>
    %13 = vector.shape_cast %12 : vector<1x1x64xf32> to vector<1x64xf32>
    %c0_20 = arith.constant 0 : index
    %c0_21 = arith.constant 0 : index
    %c0_22 = arith.constant 0 : index
    %14 = vector.load %arg8[%c0_20, %c0_21, %c0_22] : memref<1x1x64xf32, #tpu.memory_space<vmem>>, vector<1x1x64xf32>
    %15 = vector.shape_cast %14 : vector<1x1x64xf32> to vector<1x64xf32>
    %c0_23 = arith.constant 0 : index
    %c0_24 = arith.constant 0 : index
    %c0_25 = arith.constant 0 : index
    %16 = vector.load %arg9[%c0_23, %c0_24, %c0_25] : memref<1x64x128xf32, #tpu.memory_space<vmem>>, vector<1x64x128xf32>
    %17 = vector.shape_cast %16 : vector<1x64x128xf32> to vector<64x128xf32>
    %c0_26 = arith.constant 0 : index
    %c0_27 = arith.constant 0 : index
    %c0_28 = arith.constant 0 : index
    %18 = vector.load %arg10[%c0_26, %c0_27, %c0_28] : memref<1x1x128xf32, #tpu.memory_space<vmem>>, vector<1x1x128xf32>
    %19 = vector.shape_cast %18 : vector<1x1x128xf32> to vector<1x128xf32>
    %c0_29 = arith.constant 0 : index
    %c0_30 = arith.constant 0 : index
    %c0_31 = arith.constant 0 : index
    %20 = vector.load %arg11[%c0_29, %c0_30, %c0_31] : memref<1x128x64xf32, #tpu.memory_space<vmem>>, vector<1x128x64xf32>
    %21 = vector.shape_cast %20 : vector<1x128x64xf32> to vector<128x64xf32>
    %c0_32 = arith.constant 0 : index
    %c0_33 = arith.constant 0 : index
    %c0_34 = arith.constant 0 : index
    %22 = vector.load %arg12[%c0_32, %c0_33, %c0_34] : memref<1x1x64xf32, #tpu.memory_space<vmem>>, vector<1x1x64xf32>
    %23 = vector.shape_cast %22 : vector<1x1x64xf32> to vector<1x64xf32>
    %c0_35 = arith.constant 0 : index
    %c0_36 = arith.constant 0 : index
    %c0_37 = arith.constant 0 : index
    %24 = vector.load %arg13[%c0_35, %c0_36, %c0_37] : memref<1x1x64xf32, #tpu.memory_space<vmem>>, vector<1x1x64xf32>
    %25 = vector.shape_cast %24 : vector<1x1x64xf32> to vector<1x64xf32>
    %c0_38 = arith.constant 0 : index
    %c0_39 = arith.constant 0 : index
    %c0_40 = arith.constant 0 : index
    %26 = vector.load %arg14[%c0_38, %c0_39, %c0_40] : memref<1x1x64xf32, #tpu.memory_space<vmem>>, vector<1x1x64xf32>
    %27 = vector.shape_cast %26 : vector<1x1x64xf32> to vector<1x64xf32>
    %28 = arith.truncf %3 : vector<17x64xf32> to vector<17x64xbf16>
    %29 = arith.truncf %5 : vector<64x192xf32> to vector<64x192xbf16>
    %cst = arith.constant dense<0.000000e+00> : vector<17x192xf32>
    %30 = tpu.matmul %28, %29, %cst {dimension_numbers = #tpu.dot_dimension_numbers<[1], [0], [0], [1], [0, 0, 1, 1], [], []>} : vector<17x64xbf16>, vector<64x192xbf16>, vector<17x192xf32> -> vector<17x192xf32>
    %31 = vector.broadcast %7 : vector<1x192xf32> to vector<17x192xf32>
    %32 = arith.addf %30, %31 : vector<17x192xf32>
    %cst_41 = arith.constant 0.000000e+00 : f32
    %33 = vector.broadcast %cst_41 : f32 to vector<17x64xf32>
    %34 = vector.extract_strided_slice %32 {offsets = [0, 0], sizes = [17, 16], strides = [1, 1]} : vector<17x192xf32> to vector<17x16xf32>
    %35 = vector.extract_strided_slice %32 {offsets = [0, 64], sizes = [17, 16], strides = [1, 1]} : vector<17x192xf32> to vector<17x16xf32>
    %36 = vector.extract_strided_slice %32 {offsets = [0, 128], sizes = [17, 16], strides = [1, 1]} : vector<17x192xf32> to vector<17x16xf32>
    %37 = arith.truncf %34 : vector<17x16xf32> to vector<17x16xbf16>
    %38 = arith.truncf %35 : vector<17x16xf32> to vector<17x16xbf16>
    %cst_42 = arith.constant dense<0.000000e+00> : vector<17x17xf32>
    %39 = tpu.matmul %37, %38, %cst_42 {dimension_numbers = #tpu.dot_dimension_numbers<[1], [1], [0], [0], [0, 0, 1, 0], [], []>} : vector<17x16xbf16>, vector<17x16xbf16>, vector<17x17xf32> -> vector<17x17xf32>
    %cst_43 = arith.constant 2.500000e-01 : f32
    %40 = vector.broadcast %cst_43 : f32 to vector<17x17xf32>
    %41 = arith.mulf %39, %40 : vector<17x17xf32>
    %cst_44 = arith.constant 5.000000e-01 : f32
    %42 = vector.broadcast %cst_44 : f32 to vector<1x17xf32>
    %43 = arith.cmpf ogt, %1, %42 : vector<1x17xf32>
    %cst_45 = arith.constant -1.000000e+30 : f32
    %44 = vector.shape_cast %43 : vector<1x17xi1> to vector<1x17xi1>
    %45 = vector.broadcast %44 : vector<1x17xi1> to vector<17x17xi1>
    %46 = vector.broadcast %cst_45 : f32 to vector<17x17xf32>
    %47 = arith.select %45, %41, %46 : vector<17x17xi1>, vector<17x17xf32>
    %cst_46 = arith.constant dense<0xFF800000> : vector<17xf32>
    %48 = vector.multi_reduction <maximumf>, %47, %cst_46 [1] : vector<17x17xf32> to vector<17xf32>
    %49 = vector.shape_cast %48 : vector<17xf32> to vector<17x1xf32>
    %50 = vector.broadcast %49 : vector<17x1xf32> to vector<17x17xf32>
    %51 = arith.subf %47, %50 : vector<17x17xf32>
    %52 = math.exp %51 : vector<17x17xf32>
    %cst_47 = arith.constant 5.000000e-01 : f32
    %53 = vector.broadcast %cst_47 : f32 to vector<1x17xf32>
    %54 = arith.cmpf ogt, %1, %53 : vector<1x17xf32>
    %cst_48 = arith.constant 0.000000e+00 : f32
    %55 = vector.shape_cast %54 : vector<1x17xi1> to vector<1x17xi1>
    %56 = vector.broadcast %55 : vector<1x17xi1> to vector<17x17xi1>
    %57 = vector.broadcast %cst_48 : f32 to vector<17x17xf32>
    %58 = arith.select %56, %52, %57 : vector<17x17xi1>, vector<17x17xf32>
    %cst_49 = arith.constant dense<0.000000e+00> : vector<17xf32>
    %59 = vector.multi_reduction <add>, %58, %cst_49 [1] : vector<17x17xf32> to vector<17xf32>
    %60 = vector.shape_cast %59 : vector<17xf32> to vector<17x1xf32>
    %cst_50 = arith.constant 9.99999968E-21 : f32
    %61 = vector.broadcast %cst_50 : f32 to vector<17x1xf32>
    %62 = arith.maximumf %60, %61 : vector<17x1xf32>
    %63 = tpu.reciprocal %62 {approx = true} : vector<17x1xf32> -> vector<17x1xf32>
    %64 = vector.broadcast %63 : vector<17x1xf32> to vector<17x17xf32>
    %65 = arith.mulf %58, %64 : vector<17x17xf32>
    %66 = arith.truncf %65 : vector<17x17xf32> to vector<17x17xbf16>
    %67 = arith.truncf %36 : vector<17x16xf32> to vector<17x16xbf16>
    %cst_51 = arith.constant dense<0.000000e+00> : vector<17x16xf32>
    %68 = tpu.matmul %66, %67, %cst_51 {dimension_numbers = #tpu.dot_dimension_numbers<[1], [0], [0], [1], [0, 0, 1, 1], [], []>} : vector<17x17xbf16>, vector<17x16xbf16>, vector<17x16xf32> -> vector<17x16xf32>
    %69 = vector.extract_strided_slice %9 {offsets = [0, 0], sizes = [16, 64], strides = [1, 1]} : vector<64x64xf32> to vector<16x64xf32>
    %70 = arith.truncf %68 : vector<17x16xf32> to vector<17x16xbf16>
    %71 = arith.truncf %69 : vector<16x64xf32> to vector<16x64xbf16>
    %cst_52 = arith.constant dense<0.000000e+00> : vector<17x64xf32>
    %72 = tpu.matmul %70, %71, %cst_52 {dimension_numbers = #tpu.dot_dimension_numbers<[1], [0], [0], [1], [0, 0, 1, 1], [], []>} : vector<17x16xbf16>, vector<16x64xbf16>, vector<17x64xf32> -> vector<17x64xf32>
    %73 = arith.addf %33, %72 : vector<17x64xf32>
    %74 = vector.extract_strided_slice %32 {offsets = [0, 16], sizes = [17, 16], strides = [1, 1]} : vector<17x192xf32> to vector<17x16xf32>
    %75 = vector.extract_strided_slice %32 {offsets = [0, 80], sizes = [17, 16], strides = [1, 1]} : vector<17x192xf32> to vector<17x16xf32>
    %76 = vector.extract_strided_slice %32 {offsets = [0, 144], sizes = [17, 16], strides = [1, 1]} : vector<17x192xf32> to vector<17x16xf32>
    %77 = arith.truncf %74 : vector<17x16xf32> to vector<17x16xbf16>
    %78 = arith.truncf %75 : vector<17x16xf32> to vector<17x16xbf16>
    %cst_53 = arith.constant dense<0.000000e+00> : vector<17x17xf32>
    %79 = tpu.matmul %77, %78, %cst_53 {dimension_numbers = #tpu.dot_dimension_numbers<[1], [1], [0], [0], [0, 0, 1, 0], [], []>} : vector<17x16xbf16>, vector<17x16xbf16>, vector<17x17xf32> -> vector<17x17xf32>
    %cst_54 = arith.constant 2.500000e-01 : f32
    %80 = vector.broadcast %cst_54 : f32 to vector<17x17xf32>
    %81 = arith.mulf %79, %80 : vector<17x17xf32>
    %cst_55 = arith.constant 5.000000e-01 : f32
    %82 = vector.broadcast %cst_55 : f32 to vector<1x17xf32>
    %83 = arith.cmpf ogt, %1, %82 : vector<1x17xf32>
    %cst_56 = arith.constant -1.000000e+30 : f32
    %84 = vector.shape_cast %83 : vector<1x17xi1> to vector<1x17xi1>
    %85 = vector.broadcast %84 : vector<1x17xi1> to vector<17x17xi1>
    %86 = vector.broadcast %cst_56 : f32 to vector<17x17xf32>
    %87 = arith.select %85, %81, %86 : vector<17x17xi1>, vector<17x17xf32>
    %cst_57 = arith.constant dense<0xFF800000> : vector<17xf32>
    %88 = vector.multi_reduction <maximumf>, %87, %cst_57 [1] : vector<17x17xf32> to vector<17xf32>
    %89 = vector.shape_cast %88 : vector<17xf32> to vector<17x1xf32>
    %90 = vector.broadcast %89 : vector<17x1xf32> to vector<17x17xf32>
    %91 = arith.subf %87, %90 : vector<17x17xf32>
    %92 = math.exp %91 : vector<17x17xf32>
    %cst_58 = arith.constant 5.000000e-01 : f32
    %93 = vector.broadcast %cst_58 : f32 to vector<1x17xf32>
    %94 = arith.cmpf ogt, %1, %93 : vector<1x17xf32>
    %cst_59 = arith.constant 0.000000e+00 : f32
    %95 = vector.shape_cast %94 : vector<1x17xi1> to vector<1x17xi1>
    %96 = vector.broadcast %95 : vector<1x17xi1> to vector<17x17xi1>
    %97 = vector.broadcast %cst_59 : f32 to vector<17x17xf32>
    %98 = arith.select %96, %92, %97 : vector<17x17xi1>, vector<17x17xf32>
    %cst_60 = arith.constant dense<0.000000e+00> : vector<17xf32>
    %99 = vector.multi_reduction <add>, %98, %cst_60 [1] : vector<17x17xf32> to vector<17xf32>
    %100 = vector.shape_cast %99 : vector<17xf32> to vector<17x1xf32>
    %cst_61 = arith.constant 9.99999968E-21 : f32
    %101 = vector.broadcast %cst_61 : f32 to vector<17x1xf32>
    %102 = arith.maximumf %100, %101 : vector<17x1xf32>
    %103 = tpu.reciprocal %102 {approx = true} : vector<17x1xf32> -> vector<17x1xf32>
    %104 = vector.broadcast %103 : vector<17x1xf32> to vector<17x17xf32>
    %105 = arith.mulf %98, %104 : vector<17x17xf32>
    %106 = arith.truncf %105 : vector<17x17xf32> to vector<17x17xbf16>
    %107 = arith.truncf %76 : vector<17x16xf32> to vector<17x16xbf16>
    %cst_62 = arith.constant dense<0.000000e+00> : vector<17x16xf32>
    %108 = tpu.matmul %106, %107, %cst_62 {dimension_numbers = #tpu.dot_dimension_numbers<[1], [0], [0], [1], [0, 0, 1, 1], [], []>} : vector<17x17xbf16>, vector<17x16xbf16>, vector<17x16xf32> -> vector<17x16xf32>
    %109 = vector.extract_strided_slice %9 {offsets = [16, 0], sizes = [16, 64], strides = [1, 1]} : vector<64x64xf32> to vector<16x64xf32>
    %110 = arith.truncf %108 : vector<17x16xf32> to vector<17x16xbf16>
    %111 = arith.truncf %109 : vector<16x64xf32> to vector<16x64xbf16>
    %cst_63 = arith.constant dense<0.000000e+00> : vector<17x64xf32>
    %112 = tpu.matmul %110, %111, %cst_63 {dimension_numbers = #tpu.dot_dimension_numbers<[1], [0], [0], [1], [0, 0, 1, 1], [], []>} : vector<17x16xbf16>, vector<16x64xbf16>, vector<17x64xf32> -> vector<17x64xf32>
    %113 = arith.addf %73, %112 : vector<17x64xf32>
    %114 = vector.extract_strided_slice %32 {offsets = [0, 32], sizes = [17, 16], strides = [1, 1]} : vector<17x192xf32> to vector<17x16xf32>
    %115 = vector.extract_strided_slice %32 {offsets = [0, 96], sizes = [17, 16], strides = [1, 1]} : vector<17x192xf32> to vector<17x16xf32>
    %116 = vector.extract_strided_slice %32 {offsets = [0, 160], sizes = [17, 16], strides = [1, 1]} : vector<17x192xf32> to vector<17x16xf32>
    %117 = arith.truncf %114 : vector<17x16xf32> to vector<17x16xbf16>
    %118 = arith.truncf %115 : vector<17x16xf32> to vector<17x16xbf16>
    %cst_64 = arith.constant dense<0.000000e+00> : vector<17x17xf32>
    %119 = tpu.matmul %117, %118, %cst_64 {dimension_numbers = #tpu.dot_dimension_numbers<[1], [1], [0], [0], [0, 0, 1, 0], [], []>} : vector<17x16xbf16>, vector<17x16xbf16>, vector<17x17xf32> -> vector<17x17xf32>
    %cst_65 = arith.constant 2.500000e-01 : f32
    %120 = vector.broadcast %cst_65 : f32 to vector<17x17xf32>
    %121 = arith.mulf %119, %120 : vector<17x17xf32>
    %cst_66 = arith.constant 5.000000e-01 : f32
    %122 = vector.broadcast %cst_66 : f32 to vector<1x17xf32>
    %123 = arith.cmpf ogt, %1, %122 : vector<1x17xf32>
    %cst_67 = arith.constant -1.000000e+30 : f32
    %124 = vector.shape_cast %123 : vector<1x17xi1> to vector<1x17xi1>
    %125 = vector.broadcast %124 : vector<1x17xi1> to vector<17x17xi1>
    %126 = vector.broadcast %cst_67 : f32 to vector<17x17xf32>
    %127 = arith.select %125, %121, %126 : vector<17x17xi1>, vector<17x17xf32>
    %cst_68 = arith.constant dense<0xFF800000> : vector<17xf32>
    %128 = vector.multi_reduction <maximumf>, %127, %cst_68 [1] : vector<17x17xf32> to vector<17xf32>
    %129 = vector.shape_cast %128 : vector<17xf32> to vector<17x1xf32>
    %130 = vector.broadcast %129 : vector<17x1xf32> to vector<17x17xf32>
    %131 = arith.subf %127, %130 : vector<17x17xf32>
    %132 = math.exp %131 : vector<17x17xf32>
    %cst_69 = arith.constant 5.000000e-01 : f32
    %133 = vector.broadcast %cst_69 : f32 to vector<1x17xf32>
    %134 = arith.cmpf ogt, %1, %133 : vector<1x17xf32>
    %cst_70 = arith.constant 0.000000e+00 : f32
    %135 = vector.shape_cast %134 : vector<1x17xi1> to vector<1x17xi1>
    %136 = vector.broadcast %135 : vector<1x17xi1> to vector<17x17xi1>
    %137 = vector.broadcast %cst_70 : f32 to vector<17x17xf32>
    %138 = arith.select %136, %132, %137 : vector<17x17xi1>, vector<17x17xf32>
    %cst_71 = arith.constant dense<0.000000e+00> : vector<17xf32>
    %139 = vector.multi_reduction <add>, %138, %cst_71 [1] : vector<17x17xf32> to vector<17xf32>
    %140 = vector.shape_cast %139 : vector<17xf32> to vector<17x1xf32>
    %cst_72 = arith.constant 9.99999968E-21 : f32
    %141 = vector.broadcast %cst_72 : f32 to vector<17x1xf32>
    %142 = arith.maximumf %140, %141 : vector<17x1xf32>
    %143 = tpu.reciprocal %142 {approx = true} : vector<17x1xf32> -> vector<17x1xf32>
    %144 = vector.broadcast %143 : vector<17x1xf32> to vector<17x17xf32>
    %145 = arith.mulf %138, %144 : vector<17x17xf32>
    %146 = arith.truncf %145 : vector<17x17xf32> to vector<17x17xbf16>
    %147 = arith.truncf %116 : vector<17x16xf32> to vector<17x16xbf16>
    %cst_73 = arith.constant dense<0.000000e+00> : vector<17x16xf32>
    %148 = tpu.matmul %146, %147, %cst_73 {dimension_numbers = #tpu.dot_dimension_numbers<[1], [0], [0], [1], [0, 0, 1, 1], [], []>} : vector<17x17xbf16>, vector<17x16xbf16>, vector<17x16xf32> -> vector<17x16xf32>
    %149 = vector.extract_strided_slice %9 {offsets = [32, 0], sizes = [16, 64], strides = [1, 1]} : vector<64x64xf32> to vector<16x64xf32>
    %150 = arith.truncf %148 : vector<17x16xf32> to vector<17x16xbf16>
    %151 = arith.truncf %149 : vector<16x64xf32> to vector<16x64xbf16>
    %cst_74 = arith.constant dense<0.000000e+00> : vector<17x64xf32>
    %152 = tpu.matmul %150, %151, %cst_74 {dimension_numbers = #tpu.dot_dimension_numbers<[1], [0], [0], [1], [0, 0, 1, 1], [], []>} : vector<17x16xbf16>, vector<16x64xbf16>, vector<17x64xf32> -> vector<17x64xf32>
    %153 = arith.addf %113, %152 : vector<17x64xf32>
    %154 = vector.extract_strided_slice %32 {offsets = [0, 48], sizes = [17, 16], strides = [1, 1]} : vector<17x192xf32> to vector<17x16xf32>
    %155 = vector.extract_strided_slice %32 {offsets = [0, 112], sizes = [17, 16], strides = [1, 1]} : vector<17x192xf32> to vector<17x16xf32>
    %156 = vector.extract_strided_slice %32 {offsets = [0, 176], sizes = [17, 16], strides = [1, 1]} : vector<17x192xf32> to vector<17x16xf32>
    %157 = arith.truncf %154 : vector<17x16xf32> to vector<17x16xbf16>
    %158 = arith.truncf %155 : vector<17x16xf32> to vector<17x16xbf16>
    %cst_75 = arith.constant dense<0.000000e+00> : vector<17x17xf32>
    %159 = tpu.matmul %157, %158, %cst_75 {dimension_numbers = #tpu.dot_dimension_numbers<[1], [1], [0], [0], [0, 0, 1, 0], [], []>} : vector<17x16xbf16>, vector<17x16xbf16>, vector<17x17xf32> -> vector<17x17xf32>
    %cst_76 = arith.constant 2.500000e-01 : f32
    %160 = vector.broadcast %cst_76 : f32 to vector<17x17xf32>
    %161 = arith.mulf %159, %160 : vector<17x17xf32>
    %cst_77 = arith.constant 5.000000e-01 : f32
    %162 = vector.broadcast %cst_77 : f32 to vector<1x17xf32>
    %163 = arith.cmpf ogt, %1, %162 : vector<1x17xf32>
    %cst_78 = arith.constant -1.000000e+30 : f32
    %164 = vector.shape_cast %163 : vector<1x17xi1> to vector<1x17xi1>
    %165 = vector.broadcast %164 : vector<1x17xi1> to vector<17x17xi1>
    %166 = vector.broadcast %cst_78 : f32 to vector<17x17xf32>
    %167 = arith.select %165, %161, %166 : vector<17x17xi1>, vector<17x17xf32>
    %cst_79 = arith.constant dense<0xFF800000> : vector<17xf32>
    %168 = vector.multi_reduction <maximumf>, %167, %cst_79 [1] : vector<17x17xf32> to vector<17xf32>
    %169 = vector.shape_cast %168 : vector<17xf32> to vector<17x1xf32>
    %170 = vector.broadcast %169 : vector<17x1xf32> to vector<17x17xf32>
    %171 = arith.subf %167, %170 : vector<17x17xf32>
    %172 = math.exp %171 : vector<17x17xf32>
    %cst_80 = arith.constant 5.000000e-01 : f32
    %173 = vector.broadcast %cst_80 : f32 to vector<1x17xf32>
    %174 = arith.cmpf ogt, %1, %173 : vector<1x17xf32>
    %cst_81 = arith.constant 0.000000e+00 : f32
    %175 = vector.shape_cast %174 : vector<1x17xi1> to vector<1x17xi1>
    %176 = vector.broadcast %175 : vector<1x17xi1> to vector<17x17xi1>
    %177 = vector.broadcast %cst_81 : f32 to vector<17x17xf32>
    %178 = arith.select %176, %172, %177 : vector<17x17xi1>, vector<17x17xf32>
    %cst_82 = arith.constant dense<0.000000e+00> : vector<17xf32>
    %179 = vector.multi_reduction <add>, %178, %cst_82 [1] : vector<17x17xf32> to vector<17xf32>
    %180 = vector.shape_cast %179 : vector<17xf32> to vector<17x1xf32>
    %cst_83 = arith.constant 9.99999968E-21 : f32
    %181 = vector.broadcast %cst_83 : f32 to vector<17x1xf32>
    %182 = arith.maximumf %180, %181 : vector<17x1xf32>
    %183 = tpu.reciprocal %182 {approx = true} : vector<17x1xf32> -> vector<17x1xf32>
    %184 = vector.broadcast %183 : vector<17x1xf32> to vector<17x17xf32>
    %185 = arith.mulf %178, %184 : vector<17x17xf32>
    %186 = arith.truncf %185 : vector<17x17xf32> to vector<17x17xbf16>
    %187 = arith.truncf %156 : vector<17x16xf32> to vector<17x16xbf16>
    %cst_84 = arith.constant dense<0.000000e+00> : vector<17x16xf32>
    %188 = tpu.matmul %186, %187, %cst_84 {dimension_numbers = #tpu.dot_dimension_numbers<[1], [0], [0], [1], [0, 0, 1, 1], [], []>} : vector<17x17xbf16>, vector<17x16xbf16>, vector<17x16xf32> -> vector<17x16xf32>
    %189 = vector.extract_strided_slice %9 {offsets = [48, 0], sizes = [16, 64], strides = [1, 1]} : vector<64x64xf32> to vector<16x64xf32>
    %190 = arith.truncf %188 : vector<17x16xf32> to vector<17x16xbf16>
    %191 = arith.truncf %189 : vector<16x64xf32> to vector<16x64xbf16>
    %cst_85 = arith.constant dense<0.000000e+00> : vector<17x64xf32>
    %192 = tpu.matmul %190, %191, %cst_85 {dimension_numbers = #tpu.dot_dimension_numbers<[1], [0], [0], [1], [0, 0, 1, 1], [], []>} : vector<17x16xbf16>, vector<16x64xbf16>, vector<17x64xf32> -> vector<17x64xf32>
    %193 = arith.addf %153, %192 : vector<17x64xf32>
    %194 = vector.broadcast %11 : vector<1x64xf32> to vector<17x64xf32>
    %195 = arith.addf %193, %194 : vector<17x64xf32>
    %196 = arith.addf %3, %195 : vector<17x64xf32>
    %cst_86 = arith.constant dense<0.000000e+00> : vector<17xf32>
    %197 = vector.multi_reduction <add>, %196, %cst_86 [1] : vector<17x64xf32> to vector<17xf32>
    %198 = vector.shape_cast %197 : vector<17xf32> to vector<17x1xf32>
    %cst_87 = arith.constant 6.400000e+01 : f32
    %199 = vector.broadcast %cst_87 : f32 to vector<17x1xf32>
    %200 = arith.divf %198, %199 : vector<17x1xf32>
    %201 = vector.broadcast %200 : vector<17x1xf32> to vector<17x64xf32>
    %202 = arith.subf %196, %201 : vector<17x64xf32>
    %203 = arith.mulf %202, %202 : vector<17x64xf32>
    %cst_88 = arith.constant dense<0.000000e+00> : vector<17xf32>
    %204 = vector.multi_reduction <add>, %203, %cst_88 [1] : vector<17x64xf32> to vector<17xf32>
    %205 = vector.shape_cast %204 : vector<17xf32> to vector<17x1xf32>
    %cst_89 = arith.constant 6.400000e+01 : f32
    %206 = vector.broadcast %cst_89 : f32 to vector<17x1xf32>
    %207 = arith.divf %205, %206 : vector<17x1xf32>
    %cst_90 = arith.constant 9.99999974E-6 : f32
    %208 = vector.broadcast %cst_90 : f32 to vector<17x1xf32>
    %209 = arith.addf %207, %208 : vector<17x1xf32>
    %210 = math.rsqrt %209 : vector<17x1xf32>
    %211 = vector.broadcast %210 : vector<17x1xf32> to vector<17x64xf32>
    %212 = arith.mulf %202, %211 : vector<17x64xf32>
    %213 = vector.broadcast %13 : vector<1x64xf32> to vector<17x64xf32>
    %214 = arith.mulf %212, %213 : vector<17x64xf32>
    %215 = vector.broadcast %15 : vector<1x64xf32> to vector<17x64xf32>
    %216 = arith.addf %214, %215 : vector<17x64xf32>
    %217 = arith.truncf %216 : vector<17x64xf32> to vector<17x64xbf16>
    %218 = arith.truncf %17 : vector<64x128xf32> to vector<64x128xbf16>
    %cst_91 = arith.constant dense<0.000000e+00> : vector<17x128xf32>
    %219 = tpu.matmul %217, %218, %cst_91 {dimension_numbers = #tpu.dot_dimension_numbers<[1], [0], [0], [1], [0, 0, 1, 1], [], []>} : vector<17x64xbf16>, vector<64x128xbf16>, vector<17x128xf32> -> vector<17x128xf32>
    %220 = vector.broadcast %19 : vector<1x128xf32> to vector<17x128xf32>
    %221 = arith.addf %219, %220 : vector<17x128xf32>
    %cst_92 = arith.constant 0.000000e+00 : f32
    %222 = vector.broadcast %cst_92 : f32 to vector<17x128xf32>
    %223 = arith.maximumf %221, %222 : vector<17x128xf32>
    %224 = arith.truncf %223 : vector<17x128xf32> to vector<17x128xbf16>
    %225 = arith.truncf %21 : vector<128x64xf32> to vector<128x64xbf16>
    %cst_93 = arith.constant dense<0.000000e+00> : vector<17x64xf32>
    %226 = tpu.matmul %224, %225, %cst_93 {dimension_numbers = #tpu.dot_dimension_numbers<[1], [0], [0], [1], [0, 0, 1, 1], [], []>} : vector<17x128xbf16>, vector<128x64xbf16>, vector<17x64xf32> -> vector<17x64xf32>
    %227 = vector.broadcast %23 : vector<1x64xf32> to vector<17x64xf32>
    %228 = arith.addf %226, %227 : vector<17x64xf32>
    %229 = arith.addf %216, %228 : vector<17x64xf32>
    %cst_94 = arith.constant dense<0.000000e+00> : vector<17xf32>
    %230 = vector.multi_reduction <add>, %229, %cst_94 [1] : vector<17x64xf32> to vector<17xf32>
    %231 = vector.shape_cast %230 : vector<17xf32> to vector<17x1xf32>
    %cst_95 = arith.constant 6.400000e+01 : f32
    %232 = vector.broadcast %cst_95 : f32 to vector<17x1xf32>
    %233 = arith.divf %231, %232 : vector<17x1xf32>
    %234 = vector.broadcast %233 : vector<17x1xf32> to vector<17x64xf32>
    %235 = arith.subf %229, %234 : vector<17x64xf32>
    %236 = arith.mulf %235, %235 : vector<17x64xf32>
    %cst_96 = arith.constant dense<0.000000e+00> : vector<17xf32>
    %237 = vector.multi_reduction <add>, %236, %cst_96 [1] : vector<17x64xf32> to vector<17xf32>
    %238 = vector.shape_cast %237 : vector<17xf32> to vector<17x1xf32>
    %cst_97 = arith.constant 6.400000e+01 : f32
    %239 = vector.broadcast %cst_97 : f32 to vector<17x1xf32>
    %240 = arith.divf %238, %239 : vector<17x1xf32>
    %cst_98 = arith.constant 9.99999974E-6 : f32
    %241 = vector.broadcast %cst_98 : f32 to vector<17x1xf32>
    %242 = arith.addf %240, %241 : vector<17x1xf32>
    %243 = math.rsqrt %242 : vector<17x1xf32>
    %244 = vector.broadcast %243 : vector<17x1xf32> to vector<17x64xf32>
    %245 = arith.mulf %235, %244 : vector<17x64xf32>
    %246 = vector.broadcast %25 : vector<1x64xf32> to vector<17x64xf32>
    %247 = arith.mulf %245, %246 : vector<17x64xf32>
    %248 = vector.broadcast %27 : vector<1x64xf32> to vector<17x64xf32>
    %249 = arith.addf %247, %248 : vector<17x64xf32>
    %250 = vector.extract_strided_slice %249 {offsets = [0, 0], sizes = [1, 64], strides = [1, 1]} : vector<17x64xf32> to vector<1x64xf32>
    %c0_99 = arith.constant 0 : index
    %c0_100 = arith.constant 0 : index
    %c0_101 = arith.constant 0 : index
    %251 = vector.load %arg15[%c0_99, %c0_100, %c0_101] : memref<1x1x64xf32, #tpu.memory_space<vmem>>, vector<1x1x64xf32>
    %252 = vector.shape_cast %251 : vector<1x1x64xf32> to vector<1x64xf32>
    %253 = vector.shape_cast %250 : vector<1x64xf32> to vector<1x1x64xf32>
    tpu.vector_store %arg15[%c0_99, %c0_100, %c0_101], %253 {strides = array<i32>} : memref<1x1x64xf32, #tpu.memory_space<vmem>>, vector<1x1x64xf32>,
    return
  }
  func.func @transform_0(%arg0: i32) -> (i32, i32, i32) {
    %c0_i32 = arith.constant 0 : i32
    %c0_i32_0 = arith.constant 0 : i32
    %c0_i32_1 = arith.constant 0 : i32
    return %arg0, %c0_i32, %c0_i32_0 : i32, i32, i32
  }
  func.func @transform_1(%arg0: i32) -> (i32, i32, i32) {
    %c0_i32 = arith.constant 0 : i32
    %c0_i32_0 = arith.constant 0 : i32
    %c0_i32_1 = arith.constant 0 : i32
    return %arg0, %c0_i32, %c0_i32_0 : i32, i32, i32
  }
  func.func @transform_2(%arg0: i32) -> (i32, i32, i32) {
    %c0_i32 = arith.constant 0 : i32
    %c0_i32_0 = arith.constant 0 : i32
    %c0_i32_1 = arith.constant 0 : i32
    %c0_i32_2 = arith.constant 0 : i32
    return %c0_i32, %c0_i32_0, %c0_i32_1 : i32, i32, i32
  }
  func.func @transform_3(%arg0: i32) -> (i32, i32, i32) {
    %c0_i32 = arith.constant 0 : i32
    %c0_i32_0 = arith.constant 0 : i32
    %c0_i32_1 = arith.constant 0 : i32
    %c0_i32_2 = arith.constant 0 : i32
    return %c0_i32, %c0_i32_0, %c0_i32_1 : i32, i32, i32
  }
  func.func @transform_4(%arg0: i32) -> (i32, i32, i32) {
    %c0_i32 = arith.constant 0 : i32
    %c0_i32_0 = arith.constant 0 : i32
    %c0_i32_1 = arith.constant 0 : i32
    %c0_i32_2 = arith.constant 0 : i32
    return %c0_i32, %c0_i32_0, %c0_i32_1 : i32, i32, i32
  }
  func.func @transform_5(%arg0: i32) -> (i32, i32, i32) {
    %c0_i32 = arith.constant 0 : i32
    %c0_i32_0 = arith.constant 0 : i32
    %c0_i32_1 = arith.constant 0 : i32
    %c0_i32_2 = arith.constant 0 : i32
    return %c0_i32, %c0_i32_0, %c0_i32_1 : i32, i32, i32
  }
  func.func @transform_6(%arg0: i32) -> (i32, i32, i32) {
    %c0_i32 = arith.constant 0 : i32
    %c0_i32_0 = arith.constant 0 : i32
    %c0_i32_1 = arith.constant 0 : i32
    %c0_i32_2 = arith.constant 0 : i32
    return %c0_i32, %c0_i32_0, %c0_i32_1 : i32, i32, i32
  }
  func.func @transform_7(%arg0: i32) -> (i32, i32, i32) {
    %c0_i32 = arith.constant 0 : i32
    %c0_i32_0 = arith.constant 0 : i32
    %c0_i32_1 = arith.constant 0 : i32
    %c0_i32_2 = arith.constant 0 : i32
    return %c0_i32, %c0_i32_0, %c0_i32_1 : i32, i32, i32
  }
  func.func @transform_8(%arg0: i32) -> (i32, i32, i32) {
    %c0_i32 = arith.constant 0 : i32
    %c0_i32_0 = arith.constant 0 : i32
    %c0_i32_1 = arith.constant 0 : i32
    %c0_i32_2 = arith.constant 0 : i32
    return %c0_i32, %c0_i32_0, %c0_i32_1 : i32, i32, i32
  }
  func.func @transform_9(%arg0: i32) -> (i32, i32, i32) {
    %c0_i32 = arith.constant 0 : i32
    %c0_i32_0 = arith.constant 0 : i32
    %c0_i32_1 = arith.constant 0 : i32
    %c0_i32_2 = arith.constant 0 : i32
    return %c0_i32, %c0_i32_0, %c0_i32_1 : i32, i32, i32
  }
  func.func @transform_10(%arg0: i32) -> (i32, i32, i32) {
    %c0_i32 = arith.constant 0 : i32
    %c0_i32_0 = arith.constant 0 : i32
    %c0_i32_1 = arith.constant 0 : i32
    %c0_i32_2 = arith.constant 0 : i32
    return %c0_i32, %c0_i32_0, %c0_i32_1 : i32, i32, i32
  }
  func.func @transform_11(%arg0: i32) -> (i32, i32, i32) {
    %c0_i32 = arith.constant 0 : i32
    %c0_i32_0 = arith.constant 0 : i32
    %c0_i32_1 = arith.constant 0 : i32
    %c0_i32_2 = arith.constant 0 : i32
    return %c0_i32, %c0_i32_0, %c0_i32_1 : i32, i32, i32
  }
  func.func @transform_12(%arg0: i32) -> (i32, i32, i32) {
    %c0_i32 = arith.constant 0 : i32
    %c0_i32_0 = arith.constant 0 : i32
    %c0_i32_1 = arith.constant 0 : i32
    %c0_i32_2 = arith.constant 0 : i32
    return %c0_i32, %c0_i32_0, %c0_i32_1 : i32, i32, i32
  }
  func.func @transform_13(%arg0: i32) -> (i32, i32, i32) {
    %c0_i32 = arith.constant 0 : i32
    %c0_i32_0 = arith.constant 0 : i32
    %c0_i32_1 = arith.constant 0 : i32
    %c0_i32_2 = arith.constant 0 : i32
    return %c0_i32, %c0_i32_0, %c0_i32_1 : i32, i32, i32
  }
  func.func @transform_14(%arg0: i32) -> (i32, i32, i32) {
    %c0_i32 = arith.constant 0 : i32
    %c0_i32_0 = arith.constant 0 : i32
    %c0_i32_1 = arith.constant 0 : i32
    return %arg0, %c0_i32, %c0_i32_0 : i32, i32, i32
  }
}

module attributes {stable_mosaic.version = 11 : i64} {
  func.func @_task_kernel(%arg0: i32, %arg1: memref<1x16x64xf32, #tpu.memory_space<vmem>>, %arg2: memref<1x1x16xf32, #tpu.memory_space<vmem>>, %arg3: memref<16x64xf32, #tpu.memory_space<vmem>>, %arg4: memref<1x64xf32, #tpu.memory_space<vmem>>, %arg5: memref<1x64xf32, #tpu.memory_space<vmem>>, %arg6: memref<2x64x192xf32, #tpu.memory_space<vmem>>, %arg7: memref<2x1x192xf32, #tpu.memory_space<vmem>>, %arg8: memref<2x64x64xf32, #tpu.memory_space<vmem>>, %arg9: memref<2x1x64xf32, #tpu.memory_space<vmem>>, %arg10: memref<2x1x64xf32, #tpu.memory_space<vmem>>, %arg11: memref<2x1x64xf32, #tpu.memory_space<vmem>>, %arg12: memref<2x64x128xf32, #tpu.memory_space<vmem>>, %arg13: memref<2x1x128xf32, #tpu.memory_space<vmem>>, %arg14: memref<2x128x64xf32, #tpu.memory_space<vmem>>, %arg15: memref<2x1x64xf32, #tpu.memory_space<vmem>>, %arg16: memref<2x1x64xf32, #tpu.memory_space<vmem>>, %arg17: memref<2x1x64xf32, #tpu.memory_space<vmem>>, %arg18: memref<64x64xf32, #tpu.memory_space<vmem>>, %arg19: memref<1x64xf32, #tpu.memory_space<vmem>>, %arg20: memref<1x64xf32, #tpu.memory_space<vmem>>, %arg21: memref<1x64xf32, #tpu.memory_space<vmem>>, %arg22: memref<1x128xf32, #tpu.memory_space<vmem>>, %arg23: memref<1x128x64xf32, #tpu.memory_space<vmem>>, %arg24: memref<1x16x128xf32, #tpu.memory_space<vmem>>, %arg25: memref<1x16x128xf32, #tpu.memory_space<vmem>>, %arg26: memref<1x16x1xf32, #tpu.memory_space<vmem>>) attributes {dimension_semantics = [#tpu.dimension_semantics<parallel>], iteration_bounds = array<i64: 2>, scalar_prefetch = 0 : i64, scratch_operands = 0 : i64, tpu.core_type = #tpu.core_type<tc>, window_params = [{transform_indices = @transform_0, window_bounds = array<i64: 1, 16, 64>}, {transform_indices = @transform_1, window_bounds = array<i64: 1, 1, 16>}, {pipeline_mode = #tpu.pipeline_mode<synchronous>, transform_indices = @transform_2, window_bounds = array<i64: 16, 64>}, {pipeline_mode = #tpu.pipeline_mode<synchronous>, transform_indices = @transform_3, window_bounds = array<i64: 1, 64>}, {pipeline_mode = #tpu.pipeline_mode<synchronous>, transform_indices = @transform_4, window_bounds = array<i64: 1, 64>}, {pipeline_mode = #tpu.pipeline_mode<synchronous>, transform_indices = @transform_5, window_bounds = array<i64: 2, 64, 192>}, {pipeline_mode = #tpu.pipeline_mode<synchronous>, transform_indices = @transform_6, window_bounds = array<i64: 2, 1, 192>}, {pipeline_mode = #tpu.pipeline_mode<synchronous>, transform_indices = @transform_7, window_bounds = array<i64: 2, 64, 64>}, {pipeline_mode = #tpu.pipeline_mode<synchronous>, transform_indices = @transform_8, window_bounds = array<i64: 2, 1, 64>}, {pipeline_mode = #tpu.pipeline_mode<synchronous>, transform_indices = @transform_9, window_bounds = array<i64: 2, 1, 64>}, {pipeline_mode = #tpu.pipeline_mode<synchronous>, transform_indices = @transform_10, window_bounds = array<i64: 2, 1, 64>}, {pipeline_mode = #tpu.pipeline_mode<synchronous>, transform_indices = @transform_11, window_bounds = array<i64: 2, 64, 128>}, {pipeline_mode = #tpu.pipeline_mode<synchronous>, transform_indices = @transform_12, window_bounds = array<i64: 2, 1, 128>}, {pipeline_mode = #tpu.pipeline_mode<synchronous>, transform_indices = @transform_13, window_bounds = array<i64: 2, 128, 64>}, {pipeline_mode = #tpu.pipeline_mode<synchronous>, transform_indices = @transform_14, window_bounds = array<i64: 2, 1, 64>}, {pipeline_mode = #tpu.pipeline_mode<synchronous>, transform_indices = @transform_15, window_bounds = array<i64: 2, 1, 64>}, {pipeline_mode = #tpu.pipeline_mode<synchronous>, transform_indices = @transform_16, window_bounds = array<i64: 2, 1, 64>}, {pipeline_mode = #tpu.pipeline_mode<synchronous>, transform_indices = @transform_17, window_bounds = array<i64: 64, 64>}, {pipeline_mode = #tpu.pipeline_mode<synchronous>, transform_indices = @transform_18, window_bounds = array<i64: 1, 64>}, {pipeline_mode = #tpu.pipeline_mode<synchronous>, transform_indices = @transform_19, window_bounds = array<i64: 1, 64>}, {pipeline_mode = #tpu.pipeline_mode<synchronous>, transform_indices = @transform_20, window_bounds = array<i64: 1, 64>}, {pipeline_mode = #tpu.pipeline_mode<synchronous>, transform_indices = @transform_21, window_bounds = array<i64: 1, 128>}, {transform_indices = @transform_22, window_bounds = array<i64: 1, 128, 64>}, {transform_indices = @transform_23, window_bounds = array<i64: 1, 16, 128>}, {transform_indices = @transform_24, window_bounds = array<i64: 1, 16, 128>}, {transform_indices = @transform_25, window_bounds = array<i64: 1, 16, 1>}]} {
    %c0 = arith.constant 0 : index
    %c0_0 = arith.constant 0 : index
    %c0_1 = arith.constant 0 : index
    %0 = vector.load %arg2[%c0, %c0_0, %c0_1] : memref<1x1x16xf32, #tpu.memory_space<vmem>>, vector<1x1x16xf32>
    %1 = vector.shape_cast %0 : vector<1x1x16xf32> to vector<1x16xf32>
    %c0_2 = arith.constant 0 : index
    %c0_3 = arith.constant 0 : index
    %c0_4 = arith.constant 0 : index
    %2 = vector.load %arg1[%c0_2, %c0_3, %c0_4] : memref<1x16x64xf32, #tpu.memory_space<vmem>>, vector<1x16x64xf32>
    %3 = vector.shape_cast %2 : vector<1x16x64xf32> to vector<16x64xf32>
    %c0_5 = arith.constant 0 : index
    %c0_6 = arith.constant 0 : index
    %4 = vector.load %arg3[%c0_5, %c0_6] : memref<16x64xf32, #tpu.memory_space<vmem>>, vector<16x64xf32>
    %5 = arith.addf %3, %4 : vector<16x64xf32>
    %c0_7 = arith.constant 0 : index
    %c0_8 = arith.constant 0 : index
    %6 = vector.load %arg4[%c0_7, %c0_8] : memref<1x64xf32, #tpu.memory_space<vmem>>, vector<1x64xf32>
    %c0_9 = arith.constant 0 : index
    %c0_10 = arith.constant 0 : index
    %7 = vector.load %arg5[%c0_9, %c0_10] : memref<1x64xf32, #tpu.memory_space<vmem>>, vector<1x64xf32>
    %cst = arith.constant dense<0.000000e+00> : vector<16xf32>
    %8 = vector.multi_reduction <add>, %5, %cst [1] : vector<16x64xf32> to vector<16xf32>
    %9 = vector.shape_cast %8 : vector<16xf32> to vector<16x1xf32>
    %cst_11 = arith.constant 6.400000e+01 : f32
    %10 = vector.broadcast %cst_11 : f32 to vector<16x1xf32>
    %11 = arith.divf %9, %10 : vector<16x1xf32>
    %12 = vector.broadcast %11 : vector<16x1xf32> to vector<16x64xf32>
    %13 = arith.subf %5, %12 : vector<16x64xf32>
    %14 = arith.mulf %13, %13 : vector<16x64xf32>
    %cst_12 = arith.constant dense<0.000000e+00> : vector<16xf32>
    %15 = vector.multi_reduction <add>, %14, %cst_12 [1] : vector<16x64xf32> to vector<16xf32>
    %16 = vector.shape_cast %15 : vector<16xf32> to vector<16x1xf32>
    %cst_13 = arith.constant 6.400000e+01 : f32
    %17 = vector.broadcast %cst_13 : f32 to vector<16x1xf32>
    %18 = arith.divf %16, %17 : vector<16x1xf32>
    %cst_14 = arith.constant 9.99999974E-6 : f32
    %19 = vector.broadcast %cst_14 : f32 to vector<16x1xf32>
    %20 = arith.addf %18, %19 : vector<16x1xf32>
    %21 = math.rsqrt %20 : vector<16x1xf32>
    %22 = vector.broadcast %21 : vector<16x1xf32> to vector<16x64xf32>
    %23 = arith.mulf %13, %22 : vector<16x64xf32>
    %24 = vector.broadcast %6 : vector<1x64xf32> to vector<16x64xf32>
    %25 = arith.mulf %23, %24 : vector<16x64xf32>
    %26 = vector.broadcast %7 : vector<1x64xf32> to vector<16x64xf32>
    %27 = arith.addf %25, %26 : vector<16x64xf32>
    %c0_15 = arith.constant 0 : index
    %c0_16 = arith.constant 0 : index
    %c0_17 = arith.constant 0 : index
    %28 = vector.load %arg6[%c0_15, %c0_16, %c0_17] : memref<2x64x192xf32, #tpu.memory_space<vmem>>, vector<1x64x192xf32>
    %29 = vector.shape_cast %28 : vector<1x64x192xf32> to vector<64x192xf32>
    %c0_18 = arith.constant 0 : index
    %c0_19 = arith.constant 0 : index
    %c0_20 = arith.constant 0 : index
    %30 = vector.load %arg7[%c0_18, %c0_19, %c0_20] : memref<2x1x192xf32, #tpu.memory_space<vmem>>, vector<1x1x192xf32>
    %31 = vector.shape_cast %30 : vector<1x1x192xf32> to vector<1x192xf32>
    %c0_21 = arith.constant 0 : index
    %c0_22 = arith.constant 0 : index
    %c0_23 = arith.constant 0 : index
    %32 = vector.load %arg8[%c0_21, %c0_22, %c0_23] : memref<2x64x64xf32, #tpu.memory_space<vmem>>, vector<1x64x64xf32>
    %33 = vector.shape_cast %32 : vector<1x64x64xf32> to vector<64x64xf32>
    %c0_24 = arith.constant 0 : index
    %c0_25 = arith.constant 0 : index
    %c0_26 = arith.constant 0 : index
    %34 = vector.load %arg9[%c0_24, %c0_25, %c0_26] : memref<2x1x64xf32, #tpu.memory_space<vmem>>, vector<1x1x64xf32>
    %35 = vector.shape_cast %34 : vector<1x1x64xf32> to vector<1x64xf32>
    %c0_27 = arith.constant 0 : index
    %c0_28 = arith.constant 0 : index
    %c0_29 = arith.constant 0 : index
    %36 = vector.load %arg10[%c0_27, %c0_28, %c0_29] : memref<2x1x64xf32, #tpu.memory_space<vmem>>, vector<1x1x64xf32>
    %37 = vector.shape_cast %36 : vector<1x1x64xf32> to vector<1x64xf32>
    %c0_30 = arith.constant 0 : index
    %c0_31 = arith.constant 0 : index
    %c0_32 = arith.constant 0 : index
    %38 = vector.load %arg11[%c0_30, %c0_31, %c0_32] : memref<2x1x64xf32, #tpu.memory_space<vmem>>, vector<1x1x64xf32>
    %39 = vector.shape_cast %38 : vector<1x1x64xf32> to vector<1x64xf32>
    %c0_33 = arith.constant 0 : index
    %c0_34 = arith.constant 0 : index
    %c0_35 = arith.constant 0 : index
    %40 = vector.load %arg12[%c0_33, %c0_34, %c0_35] : memref<2x64x128xf32, #tpu.memory_space<vmem>>, vector<1x64x128xf32>
    %41 = vector.shape_cast %40 : vector<1x64x128xf32> to vector<64x128xf32>
    %c0_36 = arith.constant 0 : index
    %c0_37 = arith.constant 0 : index
    %c0_38 = arith.constant 0 : index
    %42 = vector.load %arg13[%c0_36, %c0_37, %c0_38] : memref<2x1x128xf32, #tpu.memory_space<vmem>>, vector<1x1x128xf32>
    %43 = vector.shape_cast %42 : vector<1x1x128xf32> to vector<1x128xf32>
    %c0_39 = arith.constant 0 : index
    %c0_40 = arith.constant 0 : index
    %c0_41 = arith.constant 0 : index
    %44 = vector.load %arg14[%c0_39, %c0_40, %c0_41] : memref<2x128x64xf32, #tpu.memory_space<vmem>>, vector<1x128x64xf32>
    %45 = vector.shape_cast %44 : vector<1x128x64xf32> to vector<128x64xf32>
    %c0_42 = arith.constant 0 : index
    %c0_43 = arith.constant 0 : index
    %c0_44 = arith.constant 0 : index
    %46 = vector.load %arg15[%c0_42, %c0_43, %c0_44] : memref<2x1x64xf32, #tpu.memory_space<vmem>>, vector<1x1x64xf32>
    %47 = vector.shape_cast %46 : vector<1x1x64xf32> to vector<1x64xf32>
    %c0_45 = arith.constant 0 : index
    %c0_46 = arith.constant 0 : index
    %c0_47 = arith.constant 0 : index
    %48 = vector.load %arg16[%c0_45, %c0_46, %c0_47] : memref<2x1x64xf32, #tpu.memory_space<vmem>>, vector<1x1x64xf32>
    %49 = vector.shape_cast %48 : vector<1x1x64xf32> to vector<1x64xf32>
    %c0_48 = arith.constant 0 : index
    %c0_49 = arith.constant 0 : index
    %c0_50 = arith.constant 0 : index
    %50 = vector.load %arg17[%c0_48, %c0_49, %c0_50] : memref<2x1x64xf32, #tpu.memory_space<vmem>>, vector<1x1x64xf32>
    %51 = vector.shape_cast %50 : vector<1x1x64xf32> to vector<1x64xf32>
    %52 = arith.truncf %27 : vector<16x64xf32> to vector<16x64xbf16>
    %53 = arith.truncf %29 : vector<64x192xf32> to vector<64x192xbf16>
    %cst_51 = arith.constant dense<0.000000e+00> : vector<16x192xf32>
    %54 = tpu.matmul %52, %53, %cst_51 {dimension_numbers = #tpu.dot_dimension_numbers<[1], [0], [0], [1], [0, 0, 1, 1], [], []>} : vector<16x64xbf16>, vector<64x192xbf16>, vector<16x192xf32> -> vector<16x192xf32>
    %55 = vector.broadcast %31 : vector<1x192xf32> to vector<16x192xf32>
    %56 = arith.addf %54, %55 : vector<16x192xf32>
    %cst_52 = arith.constant 0.000000e+00 : f32
    %57 = vector.broadcast %cst_52 : f32 to vector<16x64xf32>
    %58 = vector.extract_strided_slice %56 {offsets = [0, 0], sizes = [16, 16], strides = [1, 1]} : vector<16x192xf32> to vector<16x16xf32>
    %59 = vector.extract_strided_slice %56 {offsets = [0, 64], sizes = [16, 16], strides = [1, 1]} : vector<16x192xf32> to vector<16x16xf32>
    %60 = vector.extract_strided_slice %56 {offsets = [0, 128], sizes = [16, 16], strides = [1, 1]} : vector<16x192xf32> to vector<16x16xf32>
    %61 = arith.truncf %58 : vector<16x16xf32> to vector<16x16xbf16>
    %62 = arith.truncf %59 : vector<16x16xf32> to vector<16x16xbf16>
    %cst_53 = arith.constant dense<0.000000e+00> : vector<16x16xf32>
    %63 = tpu.matmul %61, %62, %cst_53 {dimension_numbers = #tpu.dot_dimension_numbers<[1], [1], [0], [0], [0, 0, 1, 0], [], []>} : vector<16x16xbf16>, vector<16x16xbf16>, vector<16x16xf32> -> vector<16x16xf32>
    %cst_54 = arith.constant 2.500000e-01 : f32
    %64 = vector.broadcast %cst_54 : f32 to vector<16x16xf32>
    %65 = arith.mulf %63, %64 : vector<16x16xf32>
    %cst_55 = arith.constant 5.000000e-01 : f32
    %66 = vector.broadcast %cst_55 : f32 to vector<1x16xf32>
    %67 = arith.cmpf ogt, %1, %66 : vector<1x16xf32>
    %cst_56 = arith.constant -1.000000e+30 : f32
    %68 = vector.shape_cast %67 : vector<1x16xi1> to vector<1x16xi1>
    %69 = vector.broadcast %68 : vector<1x16xi1> to vector<16x16xi1>
    %70 = vector.broadcast %cst_56 : f32 to vector<16x16xf32>
    %71 = arith.select %69, %65, %70 : vector<16x16xi1>, vector<16x16xf32>
    %cst_57 = arith.constant dense<0xFF800000> : vector<16xf32>
    %72 = vector.multi_reduction <maximumf>, %71, %cst_57 [1] : vector<16x16xf32> to vector<16xf32>
    %73 = vector.shape_cast %72 : vector<16xf32> to vector<16x1xf32>
    %74 = vector.broadcast %73 : vector<16x1xf32> to vector<16x16xf32>
    %75 = arith.subf %71, %74 : vector<16x16xf32>
    %76 = math.exp %75 : vector<16x16xf32>
    %cst_58 = arith.constant 5.000000e-01 : f32
    %77 = vector.broadcast %cst_58 : f32 to vector<1x16xf32>
    %78 = arith.cmpf ogt, %1, %77 : vector<1x16xf32>
    %cst_59 = arith.constant 0.000000e+00 : f32
    %79 = vector.shape_cast %78 : vector<1x16xi1> to vector<1x16xi1>
    %80 = vector.broadcast %79 : vector<1x16xi1> to vector<16x16xi1>
    %81 = vector.broadcast %cst_59 : f32 to vector<16x16xf32>
    %82 = arith.select %80, %76, %81 : vector<16x16xi1>, vector<16x16xf32>
    %cst_60 = arith.constant dense<0.000000e+00> : vector<16xf32>
    %83 = vector.multi_reduction <add>, %82, %cst_60 [1] : vector<16x16xf32> to vector<16xf32>
    %84 = vector.shape_cast %83 : vector<16xf32> to vector<16x1xf32>
    %cst_61 = arith.constant 9.99999968E-21 : f32
    %85 = vector.broadcast %cst_61 : f32 to vector<16x1xf32>
    %86 = arith.maximumf %84, %85 : vector<16x1xf32>
    %87 = tpu.reciprocal %86 {approx = true} : vector<16x1xf32> -> vector<16x1xf32>
    %88 = vector.broadcast %87 : vector<16x1xf32> to vector<16x16xf32>
    %89 = arith.mulf %82, %88 : vector<16x16xf32>
    %90 = arith.truncf %89 : vector<16x16xf32> to vector<16x16xbf16>
    %91 = arith.truncf %60 : vector<16x16xf32> to vector<16x16xbf16>
    %cst_62 = arith.constant dense<0.000000e+00> : vector<16x16xf32>
    %92 = tpu.matmul %90, %91, %cst_62 {dimension_numbers = #tpu.dot_dimension_numbers<[1], [0], [0], [1], [0, 0, 1, 1], [], []>} : vector<16x16xbf16>, vector<16x16xbf16>, vector<16x16xf32> -> vector<16x16xf32>
    %93 = vector.extract_strided_slice %33 {offsets = [0, 0], sizes = [16, 64], strides = [1, 1]} : vector<64x64xf32> to vector<16x64xf32>
    %94 = arith.truncf %92 : vector<16x16xf32> to vector<16x16xbf16>
    %95 = arith.truncf %93 : vector<16x64xf32> to vector<16x64xbf16>
    %cst_63 = arith.constant dense<0.000000e+00> : vector<16x64xf32>
    %96 = tpu.matmul %94, %95, %cst_63 {dimension_numbers = #tpu.dot_dimension_numbers<[1], [0], [0], [1], [0, 0, 1, 1], [], []>} : vector<16x16xbf16>, vector<16x64xbf16>, vector<16x64xf32> -> vector<16x64xf32>
    %97 = arith.addf %57, %96 : vector<16x64xf32>
    %98 = vector.extract_strided_slice %56 {offsets = [0, 16], sizes = [16, 16], strides = [1, 1]} : vector<16x192xf32> to vector<16x16xf32>
    %99 = vector.extract_strided_slice %56 {offsets = [0, 80], sizes = [16, 16], strides = [1, 1]} : vector<16x192xf32> to vector<16x16xf32>
    %100 = vector.extract_strided_slice %56 {offsets = [0, 144], sizes = [16, 16], strides = [1, 1]} : vector<16x192xf32> to vector<16x16xf32>
    %101 = arith.truncf %98 : vector<16x16xf32> to vector<16x16xbf16>
    %102 = arith.truncf %99 : vector<16x16xf32> to vector<16x16xbf16>
    %cst_64 = arith.constant dense<0.000000e+00> : vector<16x16xf32>
    %103 = tpu.matmul %101, %102, %cst_64 {dimension_numbers = #tpu.dot_dimension_numbers<[1], [1], [0], [0], [0, 0, 1, 0], [], []>} : vector<16x16xbf16>, vector<16x16xbf16>, vector<16x16xf32> -> vector<16x16xf32>
    %cst_65 = arith.constant 2.500000e-01 : f32
    %104 = vector.broadcast %cst_65 : f32 to vector<16x16xf32>
    %105 = arith.mulf %103, %104 : vector<16x16xf32>
    %cst_66 = arith.constant 5.000000e-01 : f32
    %106 = vector.broadcast %cst_66 : f32 to vector<1x16xf32>
    %107 = arith.cmpf ogt, %1, %106 : vector<1x16xf32>
    %cst_67 = arith.constant -1.000000e+30 : f32
    %108 = vector.shape_cast %107 : vector<1x16xi1> to vector<1x16xi1>
    %109 = vector.broadcast %108 : vector<1x16xi1> to vector<16x16xi1>
    %110 = vector.broadcast %cst_67 : f32 to vector<16x16xf32>
    %111 = arith.select %109, %105, %110 : vector<16x16xi1>, vector<16x16xf32>
    %cst_68 = arith.constant dense<0xFF800000> : vector<16xf32>
    %112 = vector.multi_reduction <maximumf>, %111, %cst_68 [1] : vector<16x16xf32> to vector<16xf32>
    %113 = vector.shape_cast %112 : vector<16xf32> to vector<16x1xf32>
    %114 = vector.broadcast %113 : vector<16x1xf32> to vector<16x16xf32>
    %115 = arith.subf %111, %114 : vector<16x16xf32>
    %116 = math.exp %115 : vector<16x16xf32>
    %cst_69 = arith.constant 5.000000e-01 : f32
    %117 = vector.broadcast %cst_69 : f32 to vector<1x16xf32>
    %118 = arith.cmpf ogt, %1, %117 : vector<1x16xf32>
    %cst_70 = arith.constant 0.000000e+00 : f32
    %119 = vector.shape_cast %118 : vector<1x16xi1> to vector<1x16xi1>
    %120 = vector.broadcast %119 : vector<1x16xi1> to vector<16x16xi1>
    %121 = vector.broadcast %cst_70 : f32 to vector<16x16xf32>
    %122 = arith.select %120, %116, %121 : vector<16x16xi1>, vector<16x16xf32>
    %cst_71 = arith.constant dense<0.000000e+00> : vector<16xf32>
    %123 = vector.multi_reduction <add>, %122, %cst_71 [1] : vector<16x16xf32> to vector<16xf32>
    %124 = vector.shape_cast %123 : vector<16xf32> to vector<16x1xf32>
    %cst_72 = arith.constant 9.99999968E-21 : f32
    %125 = vector.broadcast %cst_72 : f32 to vector<16x1xf32>
    %126 = arith.maximumf %124, %125 : vector<16x1xf32>
    %127 = tpu.reciprocal %126 {approx = true} : vector<16x1xf32> -> vector<16x1xf32>
    %128 = vector.broadcast %127 : vector<16x1xf32> to vector<16x16xf32>
    %129 = arith.mulf %122, %128 : vector<16x16xf32>
    %130 = arith.truncf %129 : vector<16x16xf32> to vector<16x16xbf16>
    %131 = arith.truncf %100 : vector<16x16xf32> to vector<16x16xbf16>
    %cst_73 = arith.constant dense<0.000000e+00> : vector<16x16xf32>
    %132 = tpu.matmul %130, %131, %cst_73 {dimension_numbers = #tpu.dot_dimension_numbers<[1], [0], [0], [1], [0, 0, 1, 1], [], []>} : vector<16x16xbf16>, vector<16x16xbf16>, vector<16x16xf32> -> vector<16x16xf32>
    %133 = vector.extract_strided_slice %33 {offsets = [16, 0], sizes = [16, 64], strides = [1, 1]} : vector<64x64xf32> to vector<16x64xf32>
    %134 = arith.truncf %132 : vector<16x16xf32> to vector<16x16xbf16>
    %135 = arith.truncf %133 : vector<16x64xf32> to vector<16x64xbf16>
    %cst_74 = arith.constant dense<0.000000e+00> : vector<16x64xf32>
    %136 = tpu.matmul %134, %135, %cst_74 {dimension_numbers = #tpu.dot_dimension_numbers<[1], [0], [0], [1], [0, 0, 1, 1], [], []>} : vector<16x16xbf16>, vector<16x64xbf16>, vector<16x64xf32> -> vector<16x64xf32>
    %137 = arith.addf %97, %136 : vector<16x64xf32>
    %138 = vector.extract_strided_slice %56 {offsets = [0, 32], sizes = [16, 16], strides = [1, 1]} : vector<16x192xf32> to vector<16x16xf32>
    %139 = vector.extract_strided_slice %56 {offsets = [0, 96], sizes = [16, 16], strides = [1, 1]} : vector<16x192xf32> to vector<16x16xf32>
    %140 = vector.extract_strided_slice %56 {offsets = [0, 160], sizes = [16, 16], strides = [1, 1]} : vector<16x192xf32> to vector<16x16xf32>
    %141 = arith.truncf %138 : vector<16x16xf32> to vector<16x16xbf16>
    %142 = arith.truncf %139 : vector<16x16xf32> to vector<16x16xbf16>
    %cst_75 = arith.constant dense<0.000000e+00> : vector<16x16xf32>
    %143 = tpu.matmul %141, %142, %cst_75 {dimension_numbers = #tpu.dot_dimension_numbers<[1], [1], [0], [0], [0, 0, 1, 0], [], []>} : vector<16x16xbf16>, vector<16x16xbf16>, vector<16x16xf32> -> vector<16x16xf32>
    %cst_76 = arith.constant 2.500000e-01 : f32
    %144 = vector.broadcast %cst_76 : f32 to vector<16x16xf32>
    %145 = arith.mulf %143, %144 : vector<16x16xf32>
    %cst_77 = arith.constant 5.000000e-01 : f32
    %146 = vector.broadcast %cst_77 : f32 to vector<1x16xf32>
    %147 = arith.cmpf ogt, %1, %146 : vector<1x16xf32>
    %cst_78 = arith.constant -1.000000e+30 : f32
    %148 = vector.shape_cast %147 : vector<1x16xi1> to vector<1x16xi1>
    %149 = vector.broadcast %148 : vector<1x16xi1> to vector<16x16xi1>
    %150 = vector.broadcast %cst_78 : f32 to vector<16x16xf32>
    %151 = arith.select %149, %145, %150 : vector<16x16xi1>, vector<16x16xf32>
    %cst_79 = arith.constant dense<0xFF800000> : vector<16xf32>
    %152 = vector.multi_reduction <maximumf>, %151, %cst_79 [1] : vector<16x16xf32> to vector<16xf32>
    %153 = vector.shape_cast %152 : vector<16xf32> to vector<16x1xf32>
    %154 = vector.broadcast %153 : vector<16x1xf32> to vector<16x16xf32>
    %155 = arith.subf %151, %154 : vector<16x16xf32>
    %156 = math.exp %155 : vector<16x16xf32>
    %cst_80 = arith.constant 5.000000e-01 : f32
    %157 = vector.broadcast %cst_80 : f32 to vector<1x16xf32>
    %158 = arith.cmpf ogt, %1, %157 : vector<1x16xf32>
    %cst_81 = arith.constant 0.000000e+00 : f32
    %159 = vector.shape_cast %158 : vector<1x16xi1> to vector<1x16xi1>
    %160 = vector.broadcast %159 : vector<1x16xi1> to vector<16x16xi1>
    %161 = vector.broadcast %cst_81 : f32 to vector<16x16xf32>
    %162 = arith.select %160, %156, %161 : vector<16x16xi1>, vector<16x16xf32>
    %cst_82 = arith.constant dense<0.000000e+00> : vector<16xf32>
    %163 = vector.multi_reduction <add>, %162, %cst_82 [1] : vector<16x16xf32> to vector<16xf32>
    %164 = vector.shape_cast %163 : vector<16xf32> to vector<16x1xf32>
    %cst_83 = arith.constant 9.99999968E-21 : f32
    %165 = vector.broadcast %cst_83 : f32 to vector<16x1xf32>
    %166 = arith.maximumf %164, %165 : vector<16x1xf32>
    %167 = tpu.reciprocal %166 {approx = true} : vector<16x1xf32> -> vector<16x1xf32>
    %168 = vector.broadcast %167 : vector<16x1xf32> to vector<16x16xf32>
    %169 = arith.mulf %162, %168 : vector<16x16xf32>
    %170 = arith.truncf %169 : vector<16x16xf32> to vector<16x16xbf16>
    %171 = arith.truncf %140 : vector<16x16xf32> to vector<16x16xbf16>
    %cst_84 = arith.constant dense<0.000000e+00> : vector<16x16xf32>
    %172 = tpu.matmul %170, %171, %cst_84 {dimension_numbers = #tpu.dot_dimension_numbers<[1], [0], [0], [1], [0, 0, 1, 1], [], []>} : vector<16x16xbf16>, vector<16x16xbf16>, vector<16x16xf32> -> vector<16x16xf32>
    %173 = vector.extract_strided_slice %33 {offsets = [32, 0], sizes = [16, 64], strides = [1, 1]} : vector<64x64xf32> to vector<16x64xf32>
    %174 = arith.truncf %172 : vector<16x16xf32> to vector<16x16xbf16>
    %175 = arith.truncf %173 : vector<16x64xf32> to vector<16x64xbf16>
    %cst_85 = arith.constant dense<0.000000e+00> : vector<16x64xf32>
    %176 = tpu.matmul %174, %175, %cst_85 {dimension_numbers = #tpu.dot_dimension_numbers<[1], [0], [0], [1], [0, 0, 1, 1], [], []>} : vector<16x16xbf16>, vector<16x64xbf16>, vector<16x64xf32> -> vector<16x64xf32>
    %177 = arith.addf %137, %176 : vector<16x64xf32>
    %178 = vector.extract_strided_slice %56 {offsets = [0, 48], sizes = [16, 16], strides = [1, 1]} : vector<16x192xf32> to vector<16x16xf32>
    %179 = vector.extract_strided_slice %56 {offsets = [0, 112], sizes = [16, 16], strides = [1, 1]} : vector<16x192xf32> to vector<16x16xf32>
    %180 = vector.extract_strided_slice %56 {offsets = [0, 176], sizes = [16, 16], strides = [1, 1]} : vector<16x192xf32> to vector<16x16xf32>
    %181 = arith.truncf %178 : vector<16x16xf32> to vector<16x16xbf16>
    %182 = arith.truncf %179 : vector<16x16xf32> to vector<16x16xbf16>
    %cst_86 = arith.constant dense<0.000000e+00> : vector<16x16xf32>
    %183 = tpu.matmul %181, %182, %cst_86 {dimension_numbers = #tpu.dot_dimension_numbers<[1], [1], [0], [0], [0, 0, 1, 0], [], []>} : vector<16x16xbf16>, vector<16x16xbf16>, vector<16x16xf32> -> vector<16x16xf32>
    %cst_87 = arith.constant 2.500000e-01 : f32
    %184 = vector.broadcast %cst_87 : f32 to vector<16x16xf32>
    %185 = arith.mulf %183, %184 : vector<16x16xf32>
    %cst_88 = arith.constant 5.000000e-01 : f32
    %186 = vector.broadcast %cst_88 : f32 to vector<1x16xf32>
    %187 = arith.cmpf ogt, %1, %186 : vector<1x16xf32>
    %cst_89 = arith.constant -1.000000e+30 : f32
    %188 = vector.shape_cast %187 : vector<1x16xi1> to vector<1x16xi1>
    %189 = vector.broadcast %188 : vector<1x16xi1> to vector<16x16xi1>
    %190 = vector.broadcast %cst_89 : f32 to vector<16x16xf32>
    %191 = arith.select %189, %185, %190 : vector<16x16xi1>, vector<16x16xf32>
    %cst_90 = arith.constant dense<0xFF800000> : vector<16xf32>
    %192 = vector.multi_reduction <maximumf>, %191, %cst_90 [1] : vector<16x16xf32> to vector<16xf32>
    %193 = vector.shape_cast %192 : vector<16xf32> to vector<16x1xf32>
    %194 = vector.broadcast %193 : vector<16x1xf32> to vector<16x16xf32>
    %195 = arith.subf %191, %194 : vector<16x16xf32>
    %196 = math.exp %195 : vector<16x16xf32>
    %cst_91 = arith.constant 5.000000e-01 : f32
    %197 = vector.broadcast %cst_91 : f32 to vector<1x16xf32>
    %198 = arith.cmpf ogt, %1, %197 : vector<1x16xf32>
    %cst_92 = arith.constant 0.000000e+00 : f32
    %199 = vector.shape_cast %198 : vector<1x16xi1> to vector<1x16xi1>
    %200 = vector.broadcast %199 : vector<1x16xi1> to vector<16x16xi1>
    %201 = vector.broadcast %cst_92 : f32 to vector<16x16xf32>
    %202 = arith.select %200, %196, %201 : vector<16x16xi1>, vector<16x16xf32>
    %cst_93 = arith.constant dense<0.000000e+00> : vector<16xf32>
    %203 = vector.multi_reduction <add>, %202, %cst_93 [1] : vector<16x16xf32> to vector<16xf32>
    %204 = vector.shape_cast %203 : vector<16xf32> to vector<16x1xf32>
    %cst_94 = arith.constant 9.99999968E-21 : f32
    %205 = vector.broadcast %cst_94 : f32 to vector<16x1xf32>
    %206 = arith.maximumf %204, %205 : vector<16x1xf32>
    %207 = tpu.reciprocal %206 {approx = true} : vector<16x1xf32> -> vector<16x1xf32>
    %208 = vector.broadcast %207 : vector<16x1xf32> to vector<16x16xf32>
    %209 = arith.mulf %202, %208 : vector<16x16xf32>
    %210 = arith.truncf %209 : vector<16x16xf32> to vector<16x16xbf16>
    %211 = arith.truncf %180 : vector<16x16xf32> to vector<16x16xbf16>
    %cst_95 = arith.constant dense<0.000000e+00> : vector<16x16xf32>
    %212 = tpu.matmul %210, %211, %cst_95 {dimension_numbers = #tpu.dot_dimension_numbers<[1], [0], [0], [1], [0, 0, 1, 1], [], []>} : vector<16x16xbf16>, vector<16x16xbf16>, vector<16x16xf32> -> vector<16x16xf32>
    %213 = vector.extract_strided_slice %33 {offsets = [48, 0], sizes = [16, 64], strides = [1, 1]} : vector<64x64xf32> to vector<16x64xf32>
    %214 = arith.truncf %212 : vector<16x16xf32> to vector<16x16xbf16>
    %215 = arith.truncf %213 : vector<16x64xf32> to vector<16x64xbf16>
    %cst_96 = arith.constant dense<0.000000e+00> : vector<16x64xf32>
    %216 = tpu.matmul %214, %215, %cst_96 {dimension_numbers = #tpu.dot_dimension_numbers<[1], [0], [0], [1], [0, 0, 1, 1], [], []>} : vector<16x16xbf16>, vector<16x64xbf16>, vector<16x64xf32> -> vector<16x64xf32>
    %217 = arith.addf %177, %216 : vector<16x64xf32>
    %218 = vector.broadcast %35 : vector<1x64xf32> to vector<16x64xf32>
    %219 = arith.addf %217, %218 : vector<16x64xf32>
    %220 = arith.addf %27, %219 : vector<16x64xf32>
    %cst_97 = arith.constant dense<0.000000e+00> : vector<16xf32>
    %221 = vector.multi_reduction <add>, %220, %cst_97 [1] : vector<16x64xf32> to vector<16xf32>
    %222 = vector.shape_cast %221 : vector<16xf32> to vector<16x1xf32>
    %cst_98 = arith.constant 6.400000e+01 : f32
    %223 = vector.broadcast %cst_98 : f32 to vector<16x1xf32>
    %224 = arith.divf %222, %223 : vector<16x1xf32>
    %225 = vector.broadcast %224 : vector<16x1xf32> to vector<16x64xf32>
    %226 = arith.subf %220, %225 : vector<16x64xf32>
    %227 = arith.mulf %226, %226 : vector<16x64xf32>
    %cst_99 = arith.constant dense<0.000000e+00> : vector<16xf32>
    %228 = vector.multi_reduction <add>, %227, %cst_99 [1] : vector<16x64xf32> to vector<16xf32>
    %229 = vector.shape_cast %228 : vector<16xf32> to vector<16x1xf32>
    %cst_100 = arith.constant 6.400000e+01 : f32
    %230 = vector.broadcast %cst_100 : f32 to vector<16x1xf32>
    %231 = arith.divf %229, %230 : vector<16x1xf32>
    %cst_101 = arith.constant 9.99999974E-6 : f32
    %232 = vector.broadcast %cst_101 : f32 to vector<16x1xf32>
    %233 = arith.addf %231, %232 : vector<16x1xf32>
    %234 = math.rsqrt %233 : vector<16x1xf32>
    %235 = vector.broadcast %234 : vector<16x1xf32> to vector<16x64xf32>
    %236 = arith.mulf %226, %235 : vector<16x64xf32>
    %237 = vector.broadcast %37 : vector<1x64xf32> to vector<16x64xf32>
    %238 = arith.mulf %236, %237 : vector<16x64xf32>
    %239 = vector.broadcast %39 : vector<1x64xf32> to vector<16x64xf32>
    %240 = arith.addf %238, %239 : vector<16x64xf32>
    %241 = arith.truncf %240 : vector<16x64xf32> to vector<16x64xbf16>
    %242 = arith.truncf %41 : vector<64x128xf32> to vector<64x128xbf16>
    %cst_102 = arith.constant dense<0.000000e+00> : vector<16x128xf32>
    %243 = tpu.matmul %241, %242, %cst_102 {dimension_numbers = #tpu.dot_dimension_numbers<[1], [0], [0], [1], [0, 0, 1, 1], [], []>} : vector<16x64xbf16>, vector<64x128xbf16>, vector<16x128xf32> -> vector<16x128xf32>
    %244 = vector.broadcast %43 : vector<1x128xf32> to vector<16x128xf32>
    %245 = arith.addf %243, %244 : vector<16x128xf32>
    %cst_103 = arith.constant 5.000000e-01 : f32
    %246 = vector.broadcast %cst_103 : f32 to vector<16x128xf32>
    %247 = arith.mulf %246, %245 : vector<16x128xf32>
    %cst_104 = arith.constant 4.471500e-02 : f32
    %248 = vector.broadcast %cst_104 : f32 to vector<16x128xf32>
    %249 = arith.mulf %248, %245 : vector<16x128xf32>
    %250 = arith.mulf %249, %245 : vector<16x128xf32>
    %251 = arith.mulf %250, %245 : vector<16x128xf32>
    %252 = arith.addf %245, %251 : vector<16x128xf32>
    %cst_105 = arith.constant 0.797884583 : f32
    %253 = vector.broadcast %cst_105 : f32 to vector<16x128xf32>
    %254 = arith.mulf %253, %252 : vector<16x128xf32>
    %255 = math.tanh %254 : vector<16x128xf32>
    %cst_106 = arith.constant 1.000000e+00 : f32
    %256 = vector.broadcast %cst_106 : f32 to vector<16x128xf32>
    %257 = arith.addf %256, %255 : vector<16x128xf32>
    %258 = arith.mulf %247, %257 : vector<16x128xf32>
    %259 = arith.truncf %258 : vector<16x128xf32> to vector<16x128xbf16>
    %260 = arith.truncf %45 : vector<128x64xf32> to vector<128x64xbf16>
    %cst_107 = arith.constant dense<0.000000e+00> : vector<16x64xf32>
    %261 = tpu.matmul %259, %260, %cst_107 {dimension_numbers = #tpu.dot_dimension_numbers<[1], [0], [0], [1], [0, 0, 1, 1], [], []>} : vector<16x128xbf16>, vector<128x64xbf16>, vector<16x64xf32> -> vector<16x64xf32>
    %262 = vector.broadcast %47 : vector<1x64xf32> to vector<16x64xf32>
    %263 = arith.addf %261, %262 : vector<16x64xf32>
    %264 = arith.addf %240, %263 : vector<16x64xf32>
    %cst_108 = arith.constant dense<0.000000e+00> : vector<16xf32>
    %265 = vector.multi_reduction <add>, %264, %cst_108 [1] : vector<16x64xf32> to vector<16xf32>
    %266 = vector.shape_cast %265 : vector<16xf32> to vector<16x1xf32>
    %cst_109 = arith.constant 6.400000e+01 : f32
    %267 = vector.broadcast %cst_109 : f32 to vector<16x1xf32>
    %268 = arith.divf %266, %267 : vector<16x1xf32>
    %269 = vector.broadcast %268 : vector<16x1xf32> to vector<16x64xf32>
    %270 = arith.subf %264, %269 : vector<16x64xf32>
    %271 = arith.mulf %270, %270 : vector<16x64xf32>
    %cst_110 = arith.constant dense<0.000000e+00> : vector<16xf32>
    %272 = vector.multi_reduction <add>, %271, %cst_110 [1] : vector<16x64xf32> to vector<16xf32>
    %273 = vector.shape_cast %272 : vector<16xf32> to vector<16x1xf32>
    %cst_111 = arith.constant 6.400000e+01 : f32
    %274 = vector.broadcast %cst_111 : f32 to vector<16x1xf32>
    %275 = arith.divf %273, %274 : vector<16x1xf32>
    %cst_112 = arith.constant 9.99999974E-6 : f32
    %276 = vector.broadcast %cst_112 : f32 to vector<16x1xf32>
    %277 = arith.addf %275, %276 : vector<16x1xf32>
    %278 = math.rsqrt %277 : vector<16x1xf32>
    %279 = vector.broadcast %278 : vector<16x1xf32> to vector<16x64xf32>
    %280 = arith.mulf %270, %279 : vector<16x64xf32>
    %281 = vector.broadcast %49 : vector<1x64xf32> to vector<16x64xf32>
    %282 = arith.mulf %280, %281 : vector<16x64xf32>
    %283 = vector.broadcast %51 : vector<1x64xf32> to vector<16x64xf32>
    %284 = arith.addf %282, %283 : vector<16x64xf32>
    %c1 = arith.constant 1 : index
    %c0_113 = arith.constant 0 : index
    %c0_114 = arith.constant 0 : index
    %285 = vector.load %arg6[%c1, %c0_113, %c0_114] : memref<2x64x192xf32, #tpu.memory_space<vmem>>, vector<1x64x192xf32>
    %286 = vector.shape_cast %285 : vector<1x64x192xf32> to vector<64x192xf32>
    %c1_115 = arith.constant 1 : index
    %c0_116 = arith.constant 0 : index
    %c0_117 = arith.constant 0 : index
    %287 = vector.load %arg7[%c1_115, %c0_116, %c0_117] : memref<2x1x192xf32, #tpu.memory_space<vmem>>, vector<1x1x192xf32>
    %288 = vector.shape_cast %287 : vector<1x1x192xf32> to vector<1x192xf32>
    %c1_118 = arith.constant 1 : index
    %c0_119 = arith.constant 0 : index
    %c0_120 = arith.constant 0 : index
    %289 = vector.load %arg8[%c1_118, %c0_119, %c0_120] : memref<2x64x64xf32, #tpu.memory_space<vmem>>, vector<1x64x64xf32>
    %290 = vector.shape_cast %289 : vector<1x64x64xf32> to vector<64x64xf32>
    %c1_121 = arith.constant 1 : index
    %c0_122 = arith.constant 0 : index
    %c0_123 = arith.constant 0 : index
    %291 = vector.load %arg9[%c1_121, %c0_122, %c0_123] : memref<2x1x64xf32, #tpu.memory_space<vmem>>, vector<1x1x64xf32>
    %292 = vector.shape_cast %291 : vector<1x1x64xf32> to vector<1x64xf32>
    %c1_124 = arith.constant 1 : index
    %c0_125 = arith.constant 0 : index
    %c0_126 = arith.constant 0 : index
    %293 = vector.load %arg10[%c1_124, %c0_125, %c0_126] : memref<2x1x64xf32, #tpu.memory_space<vmem>>, vector<1x1x64xf32>
    %294 = vector.shape_cast %293 : vector<1x1x64xf32> to vector<1x64xf32>
    %c1_127 = arith.constant 1 : index
    %c0_128 = arith.constant 0 : index
    %c0_129 = arith.constant 0 : index
    %295 = vector.load %arg11[%c1_127, %c0_128, %c0_129] : memref<2x1x64xf32, #tpu.memory_space<vmem>>, vector<1x1x64xf32>
    %296 = vector.shape_cast %295 : vector<1x1x64xf32> to vector<1x64xf32>
    %c1_130 = arith.constant 1 : index
    %c0_131 = arith.constant 0 : index
    %c0_132 = arith.constant 0 : index
    %297 = vector.load %arg12[%c1_130, %c0_131, %c0_132] : memref<2x64x128xf32, #tpu.memory_space<vmem>>, vector<1x64x128xf32>
    %298 = vector.shape_cast %297 : vector<1x64x128xf32> to vector<64x128xf32>
    %c1_133 = arith.constant 1 : index
    %c0_134 = arith.constant 0 : index
    %c0_135 = arith.constant 0 : index
    %299 = vector.load %arg13[%c1_133, %c0_134, %c0_135] : memref<2x1x128xf32, #tpu.memory_space<vmem>>, vector<1x1x128xf32>
    %300 = vector.shape_cast %299 : vector<1x1x128xf32> to vector<1x128xf32>
    %c1_136 = arith.constant 1 : index
    %c0_137 = arith.constant 0 : index
    %c0_138 = arith.constant 0 : index
    %301 = vector.load %arg14[%c1_136, %c0_137, %c0_138] : memref<2x128x64xf32, #tpu.memory_space<vmem>>, vector<1x128x64xf32>
    %302 = vector.shape_cast %301 : vector<1x128x64xf32> to vector<128x64xf32>
    %c1_139 = arith.constant 1 : index
    %c0_140 = arith.constant 0 : index
    %c0_141 = arith.constant 0 : index
    %303 = vector.load %arg15[%c1_139, %c0_140, %c0_141] : memref<2x1x64xf32, #tpu.memory_space<vmem>>, vector<1x1x64xf32>
    %304 = vector.shape_cast %303 : vector<1x1x64xf32> to vector<1x64xf32>
    %c1_142 = arith.constant 1 : index
    %c0_143 = arith.constant 0 : index
    %c0_144 = arith.constant 0 : index
    %305 = vector.load %arg16[%c1_142, %c0_143, %c0_144] : memref<2x1x64xf32, #tpu.memory_space<vmem>>, vector<1x1x64xf32>
    %306 = vector.shape_cast %305 : vector<1x1x64xf32> to vector<1x64xf32>
    %c1_145 = arith.constant 1 : index
    %c0_146 = arith.constant 0 : index
    %c0_147 = arith.constant 0 : index
    %307 = vector.load %arg17[%c1_145, %c0_146, %c0_147] : memref<2x1x64xf32, #tpu.memory_space<vmem>>, vector<1x1x64xf32>
    %308 = vector.shape_cast %307 : vector<1x1x64xf32> to vector<1x64xf32>
    %309 = arith.truncf %284 : vector<16x64xf32> to vector<16x64xbf16>
    %310 = arith.truncf %286 : vector<64x192xf32> to vector<64x192xbf16>
    %cst_148 = arith.constant dense<0.000000e+00> : vector<16x192xf32>
    %311 = tpu.matmul %309, %310, %cst_148 {dimension_numbers = #tpu.dot_dimension_numbers<[1], [0], [0], [1], [0, 0, 1, 1], [], []>} : vector<16x64xbf16>, vector<64x192xbf16>, vector<16x192xf32> -> vector<16x192xf32>
    %312 = vector.broadcast %288 : vector<1x192xf32> to vector<16x192xf32>
    %313 = arith.addf %311, %312 : vector<16x192xf32>
    %cst_149 = arith.constant 0.000000e+00 : f32
    %314 = vector.broadcast %cst_149 : f32 to vector<16x64xf32>
    %315 = vector.extract_strided_slice %313 {offsets = [0, 0], sizes = [16, 16], strides = [1, 1]} : vector<16x192xf32> to vector<16x16xf32>
    %316 = vector.extract_strided_slice %313 {offsets = [0, 64], sizes = [16, 16], strides = [1, 1]} : vector<16x192xf32> to vector<16x16xf32>
    %317 = vector.extract_strided_slice %313 {offsets = [0, 128], sizes = [16, 16], strides = [1, 1]} : vector<16x192xf32> to vector<16x16xf32>
    %318 = arith.truncf %315 : vector<16x16xf32> to vector<16x16xbf16>
    %319 = arith.truncf %316 : vector<16x16xf32> to vector<16x16xbf16>
    %cst_150 = arith.constant dense<0.000000e+00> : vector<16x16xf32>
    %320 = tpu.matmul %318, %319, %cst_150 {dimension_numbers = #tpu.dot_dimension_numbers<[1], [1], [0], [0], [0, 0, 1, 0], [], []>} : vector<16x16xbf16>, vector<16x16xbf16>, vector<16x16xf32> -> vector<16x16xf32>
    %cst_151 = arith.constant 2.500000e-01 : f32
    %321 = vector.broadcast %cst_151 : f32 to vector<16x16xf32>
    %322 = arith.mulf %320, %321 : vector<16x16xf32>
    %cst_152 = arith.constant 5.000000e-01 : f32
    %323 = vector.broadcast %cst_152 : f32 to vector<1x16xf32>
    %324 = arith.cmpf ogt, %1, %323 : vector<1x16xf32>
    %cst_153 = arith.constant -1.000000e+30 : f32
    %325 = vector.shape_cast %324 : vector<1x16xi1> to vector<1x16xi1>
    %326 = vector.broadcast %325 : vector<1x16xi1> to vector<16x16xi1>
    %327 = vector.broadcast %cst_153 : f32 to vector<16x16xf32>
    %328 = arith.select %326, %322, %327 : vector<16x16xi1>, vector<16x16xf32>
    %cst_154 = arith.constant dense<0xFF800000> : vector<16xf32>
    %329 = vector.multi_reduction <maximumf>, %328, %cst_154 [1] : vector<16x16xf32> to vector<16xf32>
    %330 = vector.shape_cast %329 : vector<16xf32> to vector<16x1xf32>
    %331 = vector.broadcast %330 : vector<16x1xf32> to vector<16x16xf32>
    %332 = arith.subf %328, %331 : vector<16x16xf32>
    %333 = math.exp %332 : vector<16x16xf32>
    %cst_155 = arith.constant 5.000000e-01 : f32
    %334 = vector.broadcast %cst_155 : f32 to vector<1x16xf32>
    %335 = arith.cmpf ogt, %1, %334 : vector<1x16xf32>
    %cst_156 = arith.constant 0.000000e+00 : f32
    %336 = vector.shape_cast %335 : vector<1x16xi1> to vector<1x16xi1>
    %337 = vector.broadcast %336 : vector<1x16xi1> to vector<16x16xi1>
    %338 = vector.broadcast %cst_156 : f32 to vector<16x16xf32>
    %339 = arith.select %337, %333, %338 : vector<16x16xi1>, vector<16x16xf32>
    %cst_157 = arith.constant dense<0.000000e+00> : vector<16xf32>
    %340 = vector.multi_reduction <add>, %339, %cst_157 [1] : vector<16x16xf32> to vector<16xf32>
    %341 = vector.shape_cast %340 : vector<16xf32> to vector<16x1xf32>
    %cst_158 = arith.constant 9.99999968E-21 : f32
    %342 = vector.broadcast %cst_158 : f32 to vector<16x1xf32>
    %343 = arith.maximumf %341, %342 : vector<16x1xf32>
    %344 = tpu.reciprocal %343 {approx = true} : vector<16x1xf32> -> vector<16x1xf32>
    %345 = vector.broadcast %344 : vector<16x1xf32> to vector<16x16xf32>
    %346 = arith.mulf %339, %345 : vector<16x16xf32>
    %347 = arith.truncf %346 : vector<16x16xf32> to vector<16x16xbf16>
    %348 = arith.truncf %317 : vector<16x16xf32> to vector<16x16xbf16>
    %cst_159 = arith.constant dense<0.000000e+00> : vector<16x16xf32>
    %349 = tpu.matmul %347, %348, %cst_159 {dimension_numbers = #tpu.dot_dimension_numbers<[1], [0], [0], [1], [0, 0, 1, 1], [], []>} : vector<16x16xbf16>, vector<16x16xbf16>, vector<16x16xf32> -> vector<16x16xf32>
    %350 = vector.extract_strided_slice %290 {offsets = [0, 0], sizes = [16, 64], strides = [1, 1]} : vector<64x64xf32> to vector<16x64xf32>
    %351 = arith.truncf %349 : vector<16x16xf32> to vector<16x16xbf16>
    %352 = arith.truncf %350 : vector<16x64xf32> to vector<16x64xbf16>
    %cst_160 = arith.constant dense<0.000000e+00> : vector<16x64xf32>
    %353 = tpu.matmul %351, %352, %cst_160 {dimension_numbers = #tpu.dot_dimension_numbers<[1], [0], [0], [1], [0, 0, 1, 1], [], []>} : vector<16x16xbf16>, vector<16x64xbf16>, vector<16x64xf32> -> vector<16x64xf32>
    %354 = arith.addf %314, %353 : vector<16x64xf32>
    %355 = vector.extract_strided_slice %313 {offsets = [0, 16], sizes = [16, 16], strides = [1, 1]} : vector<16x192xf32> to vector<16x16xf32>
    %356 = vector.extract_strided_slice %313 {offsets = [0, 80], sizes = [16, 16], strides = [1, 1]} : vector<16x192xf32> to vector<16x16xf32>
    %357 = vector.extract_strided_slice %313 {offsets = [0, 144], sizes = [16, 16], strides = [1, 1]} : vector<16x192xf32> to vector<16x16xf32>
    %358 = arith.truncf %355 : vector<16x16xf32> to vector<16x16xbf16>
    %359 = arith.truncf %356 : vector<16x16xf32> to vector<16x16xbf16>
    %cst_161 = arith.constant dense<0.000000e+00> : vector<16x16xf32>
    %360 = tpu.matmul %358, %359, %cst_161 {dimension_numbers = #tpu.dot_dimension_numbers<[1], [1], [0], [0], [0, 0, 1, 0], [], []>} : vector<16x16xbf16>, vector<16x16xbf16>, vector<16x16xf32> -> vector<16x16xf32>
    %cst_162 = arith.constant 2.500000e-01 : f32
    %361 = vector.broadcast %cst_162 : f32 to vector<16x16xf32>
    %362 = arith.mulf %360, %361 : vector<16x16xf32>
    %cst_163 = arith.constant 5.000000e-01 : f32
    %363 = vector.broadcast %cst_163 : f32 to vector<1x16xf32>
    %364 = arith.cmpf ogt, %1, %363 : vector<1x16xf32>
    %cst_164 = arith.constant -1.000000e+30 : f32
    %365 = vector.shape_cast %364 : vector<1x16xi1> to vector<1x16xi1>
    %366 = vector.broadcast %365 : vector<1x16xi1> to vector<16x16xi1>
    %367 = vector.broadcast %cst_164 : f32 to vector<16x16xf32>
    %368 = arith.select %366, %362, %367 : vector<16x16xi1>, vector<16x16xf32>
    %cst_165 = arith.constant dense<0xFF800000> : vector<16xf32>
    %369 = vector.multi_reduction <maximumf>, %368, %cst_165 [1] : vector<16x16xf32> to vector<16xf32>
    %370 = vector.shape_cast %369 : vector<16xf32> to vector<16x1xf32>
    %371 = vector.broadcast %370 : vector<16x1xf32> to vector<16x16xf32>
    %372 = arith.subf %368, %371 : vector<16x16xf32>
    %373 = math.exp %372 : vector<16x16xf32>
    %cst_166 = arith.constant 5.000000e-01 : f32
    %374 = vector.broadcast %cst_166 : f32 to vector<1x16xf32>
    %375 = arith.cmpf ogt, %1, %374 : vector<1x16xf32>
    %cst_167 = arith.constant 0.000000e+00 : f32
    %376 = vector.shape_cast %375 : vector<1x16xi1> to vector<1x16xi1>
    %377 = vector.broadcast %376 : vector<1x16xi1> to vector<16x16xi1>
    %378 = vector.broadcast %cst_167 : f32 to vector<16x16xf32>
    %379 = arith.select %377, %373, %378 : vector<16x16xi1>, vector<16x16xf32>
    %cst_168 = arith.constant dense<0.000000e+00> : vector<16xf32>
    %380 = vector.multi_reduction <add>, %379, %cst_168 [1] : vector<16x16xf32> to vector<16xf32>
    %381 = vector.shape_cast %380 : vector<16xf32> to vector<16x1xf32>
    %cst_169 = arith.constant 9.99999968E-21 : f32
    %382 = vector.broadcast %cst_169 : f32 to vector<16x1xf32>
    %383 = arith.maximumf %381, %382 : vector<16x1xf32>
    %384 = tpu.reciprocal %383 {approx = true} : vector<16x1xf32> -> vector<16x1xf32>
    %385 = vector.broadcast %384 : vector<16x1xf32> to vector<16x16xf32>
    %386 = arith.mulf %379, %385 : vector<16x16xf32>
    %387 = arith.truncf %386 : vector<16x16xf32> to vector<16x16xbf16>
    %388 = arith.truncf %357 : vector<16x16xf32> to vector<16x16xbf16>
    %cst_170 = arith.constant dense<0.000000e+00> : vector<16x16xf32>
    %389 = tpu.matmul %387, %388, %cst_170 {dimension_numbers = #tpu.dot_dimension_numbers<[1], [0], [0], [1], [0, 0, 1, 1], [], []>} : vector<16x16xbf16>, vector<16x16xbf16>, vector<16x16xf32> -> vector<16x16xf32>
    %390 = vector.extract_strided_slice %290 {offsets = [16, 0], sizes = [16, 64], strides = [1, 1]} : vector<64x64xf32> to vector<16x64xf32>
    %391 = arith.truncf %389 : vector<16x16xf32> to vector<16x16xbf16>
    %392 = arith.truncf %390 : vector<16x64xf32> to vector<16x64xbf16>
    %cst_171 = arith.constant dense<0.000000e+00> : vector<16x64xf32>
    %393 = tpu.matmul %391, %392, %cst_171 {dimension_numbers = #tpu.dot_dimension_numbers<[1], [0], [0], [1], [0, 0, 1, 1], [], []>} : vector<16x16xbf16>, vector<16x64xbf16>, vector<16x64xf32> -> vector<16x64xf32>
    %394 = arith.addf %354, %393 : vector<16x64xf32>
    %395 = vector.extract_strided_slice %313 {offsets = [0, 32], sizes = [16, 16], strides = [1, 1]} : vector<16x192xf32> to vector<16x16xf32>
    %396 = vector.extract_strided_slice %313 {offsets = [0, 96], sizes = [16, 16], strides = [1, 1]} : vector<16x192xf32> to vector<16x16xf32>
    %397 = vector.extract_strided_slice %313 {offsets = [0, 160], sizes = [16, 16], strides = [1, 1]} : vector<16x192xf32> to vector<16x16xf32>
    %398 = arith.truncf %395 : vector<16x16xf32> to vector<16x16xbf16>
    %399 = arith.truncf %396 : vector<16x16xf32> to vector<16x16xbf16>
    %cst_172 = arith.constant dense<0.000000e+00> : vector<16x16xf32>
    %400 = tpu.matmul %398, %399, %cst_172 {dimension_numbers = #tpu.dot_dimension_numbers<[1], [1], [0], [0], [0, 0, 1, 0], [], []>} : vector<16x16xbf16>, vector<16x16xbf16>, vector<16x16xf32> -> vector<16x16xf32>
    %cst_173 = arith.constant 2.500000e-01 : f32
    %401 = vector.broadcast %cst_173 : f32 to vector<16x16xf32>
    %402 = arith.mulf %400, %401 : vector<16x16xf32>
    %cst_174 = arith.constant 5.000000e-01 : f32
    %403 = vector.broadcast %cst_174 : f32 to vector<1x16xf32>
    %404 = arith.cmpf ogt, %1, %403 : vector<1x16xf32>
    %cst_175 = arith.constant -1.000000e+30 : f32
    %405 = vector.shape_cast %404 : vector<1x16xi1> to vector<1x16xi1>
    %406 = vector.broadcast %405 : vector<1x16xi1> to vector<16x16xi1>
    %407 = vector.broadcast %cst_175 : f32 to vector<16x16xf32>
    %408 = arith.select %406, %402, %407 : vector<16x16xi1>, vector<16x16xf32>
    %cst_176 = arith.constant dense<0xFF800000> : vector<16xf32>
    %409 = vector.multi_reduction <maximumf>, %408, %cst_176 [1] : vector<16x16xf32> to vector<16xf32>
    %410 = vector.shape_cast %409 : vector<16xf32> to vector<16x1xf32>
    %411 = vector.broadcast %410 : vector<16x1xf32> to vector<16x16xf32>
    %412 = arith.subf %408, %411 : vector<16x16xf32>
    %413 = math.exp %412 : vector<16x16xf32>
    %cst_177 = arith.constant 5.000000e-01 : f32
    %414 = vector.broadcast %cst_177 : f32 to vector<1x16xf32>
    %415 = arith.cmpf ogt, %1, %414 : vector<1x16xf32>
    %cst_178 = arith.constant 0.000000e+00 : f32
    %416 = vector.shape_cast %415 : vector<1x16xi1> to vector<1x16xi1>
    %417 = vector.broadcast %416 : vector<1x16xi1> to vector<16x16xi1>
    %418 = vector.broadcast %cst_178 : f32 to vector<16x16xf32>
    %419 = arith.select %417, %413, %418 : vector<16x16xi1>, vector<16x16xf32>
    %cst_179 = arith.constant dense<0.000000e+00> : vector<16xf32>
    %420 = vector.multi_reduction <add>, %419, %cst_179 [1] : vector<16x16xf32> to vector<16xf32>
    %421 = vector.shape_cast %420 : vector<16xf32> to vector<16x1xf32>
    %cst_180 = arith.constant 9.99999968E-21 : f32
    %422 = vector.broadcast %cst_180 : f32 to vector<16x1xf32>
    %423 = arith.maximumf %421, %422 : vector<16x1xf32>
    %424 = tpu.reciprocal %423 {approx = true} : vector<16x1xf32> -> vector<16x1xf32>
    %425 = vector.broadcast %424 : vector<16x1xf32> to vector<16x16xf32>
    %426 = arith.mulf %419, %425 : vector<16x16xf32>
    %427 = arith.truncf %426 : vector<16x16xf32> to vector<16x16xbf16>
    %428 = arith.truncf %397 : vector<16x16xf32> to vector<16x16xbf16>
    %cst_181 = arith.constant dense<0.000000e+00> : vector<16x16xf32>
    %429 = tpu.matmul %427, %428, %cst_181 {dimension_numbers = #tpu.dot_dimension_numbers<[1], [0], [0], [1], [0, 0, 1, 1], [], []>} : vector<16x16xbf16>, vector<16x16xbf16>, vector<16x16xf32> -> vector<16x16xf32>
    %430 = vector.extract_strided_slice %290 {offsets = [32, 0], sizes = [16, 64], strides = [1, 1]} : vector<64x64xf32> to vector<16x64xf32>
    %431 = arith.truncf %429 : vector<16x16xf32> to vector<16x16xbf16>
    %432 = arith.truncf %430 : vector<16x64xf32> to vector<16x64xbf16>
    %cst_182 = arith.constant dense<0.000000e+00> : vector<16x64xf32>
    %433 = tpu.matmul %431, %432, %cst_182 {dimension_numbers = #tpu.dot_dimension_numbers<[1], [0], [0], [1], [0, 0, 1, 1], [], []>} : vector<16x16xbf16>, vector<16x64xbf16>, vector<16x64xf32> -> vector<16x64xf32>
    %434 = arith.addf %394, %433 : vector<16x64xf32>
    %435 = vector.extract_strided_slice %313 {offsets = [0, 48], sizes = [16, 16], strides = [1, 1]} : vector<16x192xf32> to vector<16x16xf32>
    %436 = vector.extract_strided_slice %313 {offsets = [0, 112], sizes = [16, 16], strides = [1, 1]} : vector<16x192xf32> to vector<16x16xf32>
    %437 = vector.extract_strided_slice %313 {offsets = [0, 176], sizes = [16, 16], strides = [1, 1]} : vector<16x192xf32> to vector<16x16xf32>
    %438 = arith.truncf %435 : vector<16x16xf32> to vector<16x16xbf16>
    %439 = arith.truncf %436 : vector<16x16xf32> to vector<16x16xbf16>
    %cst_183 = arith.constant dense<0.000000e+00> : vector<16x16xf32>
    %440 = tpu.matmul %438, %439, %cst_183 {dimension_numbers = #tpu.dot_dimension_numbers<[1], [1], [0], [0], [0, 0, 1, 0], [], []>} : vector<16x16xbf16>, vector<16x16xbf16>, vector<16x16xf32> -> vector<16x16xf32>
    %cst_184 = arith.constant 2.500000e-01 : f32
    %441 = vector.broadcast %cst_184 : f32 to vector<16x16xf32>
    %442 = arith.mulf %440, %441 : vector<16x16xf32>
    %cst_185 = arith.constant 5.000000e-01 : f32
    %443 = vector.broadcast %cst_185 : f32 to vector<1x16xf32>
    %444 = arith.cmpf ogt, %1, %443 : vector<1x16xf32>
    %cst_186 = arith.constant -1.000000e+30 : f32
    %445 = vector.shape_cast %444 : vector<1x16xi1> to vector<1x16xi1>
    %446 = vector.broadcast %445 : vector<1x16xi1> to vector<16x16xi1>
    %447 = vector.broadcast %cst_186 : f32 to vector<16x16xf32>
    %448 = arith.select %446, %442, %447 : vector<16x16xi1>, vector<16x16xf32>
    %cst_187 = arith.constant dense<0xFF800000> : vector<16xf32>
    %449 = vector.multi_reduction <maximumf>, %448, %cst_187 [1] : vector<16x16xf32> to vector<16xf32>
    %450 = vector.shape_cast %449 : vector<16xf32> to vector<16x1xf32>
    %451 = vector.broadcast %450 : vector<16x1xf32> to vector<16x16xf32>
    %452 = arith.subf %448, %451 : vector<16x16xf32>
    %453 = math.exp %452 : vector<16x16xf32>
    %cst_188 = arith.constant 5.000000e-01 : f32
    %454 = vector.broadcast %cst_188 : f32 to vector<1x16xf32>
    %455 = arith.cmpf ogt, %1, %454 : vector<1x16xf32>
    %cst_189 = arith.constant 0.000000e+00 : f32
    %456 = vector.shape_cast %455 : vector<1x16xi1> to vector<1x16xi1>
    %457 = vector.broadcast %456 : vector<1x16xi1> to vector<16x16xi1>
    %458 = vector.broadcast %cst_189 : f32 to vector<16x16xf32>
    %459 = arith.select %457, %453, %458 : vector<16x16xi1>, vector<16x16xf32>
    %cst_190 = arith.constant dense<0.000000e+00> : vector<16xf32>
    %460 = vector.multi_reduction <add>, %459, %cst_190 [1] : vector<16x16xf32> to vector<16xf32>
    %461 = vector.shape_cast %460 : vector<16xf32> to vector<16x1xf32>
    %cst_191 = arith.constant 9.99999968E-21 : f32
    %462 = vector.broadcast %cst_191 : f32 to vector<16x1xf32>
    %463 = arith.maximumf %461, %462 : vector<16x1xf32>
    %464 = tpu.reciprocal %463 {approx = true} : vector<16x1xf32> -> vector<16x1xf32>
    %465 = vector.broadcast %464 : vector<16x1xf32> to vector<16x16xf32>
    %466 = arith.mulf %459, %465 : vector<16x16xf32>
    %467 = arith.truncf %466 : vector<16x16xf32> to vector<16x16xbf16>
    %468 = arith.truncf %437 : vector<16x16xf32> to vector<16x16xbf16>
    %cst_192 = arith.constant dense<0.000000e+00> : vector<16x16xf32>
    %469 = tpu.matmul %467, %468, %cst_192 {dimension_numbers = #tpu.dot_dimension_numbers<[1], [0], [0], [1], [0, 0, 1, 1], [], []>} : vector<16x16xbf16>, vector<16x16xbf16>, vector<16x16xf32> -> vector<16x16xf32>
    %470 = vector.extract_strided_slice %290 {offsets = [48, 0], sizes = [16, 64], strides = [1, 1]} : vector<64x64xf32> to vector<16x64xf32>
    %471 = arith.truncf %469 : vector<16x16xf32> to vector<16x16xbf16>
    %472 = arith.truncf %470 : vector<16x64xf32> to vector<16x64xbf16>
    %cst_193 = arith.constant dense<0.000000e+00> : vector<16x64xf32>
    %473 = tpu.matmul %471, %472, %cst_193 {dimension_numbers = #tpu.dot_dimension_numbers<[1], [0], [0], [1], [0, 0, 1, 1], [], []>} : vector<16x16xbf16>, vector<16x64xbf16>, vector<16x64xf32> -> vector<16x64xf32>
    %474 = arith.addf %434, %473 : vector<16x64xf32>
    %475 = vector.broadcast %292 : vector<1x64xf32> to vector<16x64xf32>
    %476 = arith.addf %474, %475 : vector<16x64xf32>
    %477 = arith.addf %284, %476 : vector<16x64xf32>
    %cst_194 = arith.constant dense<0.000000e+00> : vector<16xf32>
    %478 = vector.multi_reduction <add>, %477, %cst_194 [1] : vector<16x64xf32> to vector<16xf32>
    %479 = vector.shape_cast %478 : vector<16xf32> to vector<16x1xf32>
    %cst_195 = arith.constant 6.400000e+01 : f32
    %480 = vector.broadcast %cst_195 : f32 to vector<16x1xf32>
    %481 = arith.divf %479, %480 : vector<16x1xf32>
    %482 = vector.broadcast %481 : vector<16x1xf32> to vector<16x64xf32>
    %483 = arith.subf %477, %482 : vector<16x64xf32>
    %484 = arith.mulf %483, %483 : vector<16x64xf32>
    %cst_196 = arith.constant dense<0.000000e+00> : vector<16xf32>
    %485 = vector.multi_reduction <add>, %484, %cst_196 [1] : vector<16x64xf32> to vector<16xf32>
    %486 = vector.shape_cast %485 : vector<16xf32> to vector<16x1xf32>
    %cst_197 = arith.constant 6.400000e+01 : f32
    %487 = vector.broadcast %cst_197 : f32 to vector<16x1xf32>
    %488 = arith.divf %486, %487 : vector<16x1xf32>
    %cst_198 = arith.constant 9.99999974E-6 : f32
    %489 = vector.broadcast %cst_198 : f32 to vector<16x1xf32>
    %490 = arith.addf %488, %489 : vector<16x1xf32>
    %491 = math.rsqrt %490 : vector<16x1xf32>
    %492 = vector.broadcast %491 : vector<16x1xf32> to vector<16x64xf32>
    %493 = arith.mulf %483, %492 : vector<16x64xf32>
    %494 = vector.broadcast %294 : vector<1x64xf32> to vector<16x64xf32>
    %495 = arith.mulf %493, %494 : vector<16x64xf32>
    %496 = vector.broadcast %296 : vector<1x64xf32> to vector<16x64xf32>
    %497 = arith.addf %495, %496 : vector<16x64xf32>
    %498 = arith.truncf %497 : vector<16x64xf32> to vector<16x64xbf16>
    %499 = arith.truncf %298 : vector<64x128xf32> to vector<64x128xbf16>
    %cst_199 = arith.constant dense<0.000000e+00> : vector<16x128xf32>
    %500 = tpu.matmul %498, %499, %cst_199 {dimension_numbers = #tpu.dot_dimension_numbers<[1], [0], [0], [1], [0, 0, 1, 1], [], []>} : vector<16x64xbf16>, vector<64x128xbf16>, vector<16x128xf32> -> vector<16x128xf32>
    %501 = vector.broadcast %300 : vector<1x128xf32> to vector<16x128xf32>
    %502 = arith.addf %500, %501 : vector<16x128xf32>
    %cst_200 = arith.constant 5.000000e-01 : f32
    %503 = vector.broadcast %cst_200 : f32 to vector<16x128xf32>
    %504 = arith.mulf %503, %502 : vector<16x128xf32>
    %cst_201 = arith.constant 4.471500e-02 : f32
    %505 = vector.broadcast %cst_201 : f32 to vector<16x128xf32>
    %506 = arith.mulf %505, %502 : vector<16x128xf32>
    %507 = arith.mulf %506, %502 : vector<16x128xf32>
    %508 = arith.mulf %507, %502 : vector<16x128xf32>
    %509 = arith.addf %502, %508 : vector<16x128xf32>
    %cst_202 = arith.constant 0.797884583 : f32
    %510 = vector.broadcast %cst_202 : f32 to vector<16x128xf32>
    %511 = arith.mulf %510, %509 : vector<16x128xf32>
    %512 = math.tanh %511 : vector<16x128xf32>
    %cst_203 = arith.constant 1.000000e+00 : f32
    %513 = vector.broadcast %cst_203 : f32 to vector<16x128xf32>
    %514 = arith.addf %513, %512 : vector<16x128xf32>
    %515 = arith.mulf %504, %514 : vector<16x128xf32>
    %516 = arith.truncf %515 : vector<16x128xf32> to vector<16x128xbf16>
    %517 = arith.truncf %302 : vector<128x64xf32> to vector<128x64xbf16>
    %cst_204 = arith.constant dense<0.000000e+00> : vector<16x64xf32>
    %518 = tpu.matmul %516, %517, %cst_204 {dimension_numbers = #tpu.dot_dimension_numbers<[1], [0], [0], [1], [0, 0, 1, 1], [], []>} : vector<16x128xbf16>, vector<128x64xbf16>, vector<16x64xf32> -> vector<16x64xf32>
    %519 = vector.broadcast %304 : vector<1x64xf32> to vector<16x64xf32>
    %520 = arith.addf %518, %519 : vector<16x64xf32>
    %521 = arith.addf %497, %520 : vector<16x64xf32>
    %cst_205 = arith.constant dense<0.000000e+00> : vector<16xf32>
    %522 = vector.multi_reduction <add>, %521, %cst_205 [1] : vector<16x64xf32> to vector<16xf32>
    %523 = vector.shape_cast %522 : vector<16xf32> to vector<16x1xf32>
    %cst_206 = arith.constant 6.400000e+01 : f32
    %524 = vector.broadcast %cst_206 : f32 to vector<16x1xf32>
    %525 = arith.divf %523, %524 : vector<16x1xf32>
    %526 = vector.broadcast %525 : vector<16x1xf32> to vector<16x64xf32>
    %527 = arith.subf %521, %526 : vector<16x64xf32>
    %528 = arith.mulf %527, %527 : vector<16x64xf32>
    %cst_207 = arith.constant dense<0.000000e+00> : vector<16xf32>
    %529 = vector.multi_reduction <add>, %528, %cst_207 [1] : vector<16x64xf32> to vector<16xf32>
    %530 = vector.shape_cast %529 : vector<16xf32> to vector<16x1xf32>
    %cst_208 = arith.constant 6.400000e+01 : f32
    %531 = vector.broadcast %cst_208 : f32 to vector<16x1xf32>
    %532 = arith.divf %530, %531 : vector<16x1xf32>
    %cst_209 = arith.constant 9.99999974E-6 : f32
    %533 = vector.broadcast %cst_209 : f32 to vector<16x1xf32>
    %534 = arith.addf %532, %533 : vector<16x1xf32>
    %535 = math.rsqrt %534 : vector<16x1xf32>
    %536 = vector.broadcast %535 : vector<16x1xf32> to vector<16x64xf32>
    %537 = arith.mulf %527, %536 : vector<16x64xf32>
    %538 = vector.broadcast %306 : vector<1x64xf32> to vector<16x64xf32>
    %539 = arith.mulf %537, %538 : vector<16x64xf32>
    %540 = vector.broadcast %308 : vector<1x64xf32> to vector<16x64xf32>
    %541 = arith.addf %539, %540 : vector<16x64xf32>
    %c0_210 = arith.constant 0 : index
    %c0_211 = arith.constant 0 : index
    %542 = vector.load %arg18[%c0_210, %c0_211] : memref<64x64xf32, #tpu.memory_space<vmem>>, vector<64x64xf32>
    %543 = arith.truncf %541 : vector<16x64xf32> to vector<16x64xbf16>
    %544 = arith.truncf %542 : vector<64x64xf32> to vector<64x64xbf16>
    %cst_212 = arith.constant dense<0.000000e+00> : vector<16x64xf32>
    %545 = tpu.matmul %543, %544, %cst_212 {dimension_numbers = #tpu.dot_dimension_numbers<[1], [0], [0], [1], [0, 0, 1, 1], [], []>} : vector<16x64xbf16>, vector<64x64xbf16>, vector<16x64xf32> -> vector<16x64xf32>
    %c0_213 = arith.constant 0 : index
    %c0_214 = arith.constant 0 : index
    %546 = vector.load %arg19[%c0_213, %c0_214] : memref<1x64xf32, #tpu.memory_space<vmem>>, vector<1x64xf32>
    %547 = vector.broadcast %546 : vector<1x64xf32> to vector<16x64xf32>
    %548 = arith.addf %545, %547 : vector<16x64xf32>
    %cst_215 = arith.constant 5.000000e-01 : f32
    %549 = vector.broadcast %cst_215 : f32 to vector<16x64xf32>
    %550 = arith.mulf %549, %548 : vector<16x64xf32>
    %cst_216 = arith.constant 4.471500e-02 : f32
    %551 = vector.broadcast %cst_216 : f32 to vector<16x64xf32>
    %552 = arith.mulf %551, %548 : vector<16x64xf32>
    %553 = arith.mulf %552, %548 : vector<16x64xf32>
    %554 = arith.mulf %553, %548 : vector<16x64xf32>
    %555 = arith.addf %548, %554 : vector<16x64xf32>
    %cst_217 = arith.constant 0.797884583 : f32
    %556 = vector.broadcast %cst_217 : f32 to vector<16x64xf32>
    %557 = arith.mulf %556, %555 : vector<16x64xf32>
    %558 = math.tanh %557 : vector<16x64xf32>
    %cst_218 = arith.constant 1.000000e+00 : f32
    %559 = vector.broadcast %cst_218 : f32 to vector<16x64xf32>
    %560 = arith.addf %559, %558 : vector<16x64xf32>
    %561 = arith.mulf %550, %560 : vector<16x64xf32>
    %c0_219 = arith.constant 0 : index
    %c0_220 = arith.constant 0 : index
    %562 = vector.load %arg20[%c0_219, %c0_220] : memref<1x64xf32, #tpu.memory_space<vmem>>, vector<1x64xf32>
    %c0_221 = arith.constant 0 : index
    %c0_222 = arith.constant 0 : index
    %563 = vector.load %arg21[%c0_221, %c0_222] : memref<1x64xf32, #tpu.memory_space<vmem>>, vector<1x64xf32>
    %cst_223 = arith.constant dense<0.000000e+00> : vector<16xf32>
    %564 = vector.multi_reduction <add>, %561, %cst_223 [1] : vector<16x64xf32> to vector<16xf32>
    %565 = vector.shape_cast %564 : vector<16xf32> to vector<16x1xf32>
    %cst_224 = arith.constant 6.400000e+01 : f32
    %566 = vector.broadcast %cst_224 : f32 to vector<16x1xf32>
    %567 = arith.divf %565, %566 : vector<16x1xf32>
    %568 = vector.broadcast %567 : vector<16x1xf32> to vector<16x64xf32>
    %569 = arith.subf %561, %568 : vector<16x64xf32>
    %570 = arith.mulf %569, %569 : vector<16x64xf32>
    %cst_225 = arith.constant dense<0.000000e+00> : vector<16xf32>
    %571 = vector.multi_reduction <add>, %570, %cst_225 [1] : vector<16x64xf32> to vector<16xf32>
    %572 = vector.shape_cast %571 : vector<16xf32> to vector<16x1xf32>
    %cst_226 = arith.constant 6.400000e+01 : f32
    %573 = vector.broadcast %cst_226 : f32 to vector<16x1xf32>
    %574 = arith.divf %572, %573 : vector<16x1xf32>
    %cst_227 = arith.constant 9.99999974E-6 : f32
    %575 = vector.broadcast %cst_227 : f32 to vector<16x1xf32>
    %576 = arith.addf %574, %575 : vector<16x1xf32>
    %577 = math.rsqrt %576 : vector<16x1xf32>
    %578 = vector.broadcast %577 : vector<16x1xf32> to vector<16x64xf32>
    %579 = arith.mulf %569, %578 : vector<16x64xf32>
    %580 = vector.broadcast %562 : vector<1x64xf32> to vector<16x64xf32>
    %581 = arith.mulf %579, %580 : vector<16x64xf32>
    %582 = vector.broadcast %563 : vector<1x64xf32> to vector<16x64xf32>
    %583 = arith.addf %581, %582 : vector<16x64xf32>
    %c0_228 = arith.constant 0 : index
    %c0_229 = arith.constant 0 : index
    %c0_230 = arith.constant 0 : index
    %584 = vector.load %arg23[%c0_228, %c0_229, %c0_230] : memref<1x128x64xf32, #tpu.memory_space<vmem>>, vector<1x128x64xf32>
    %585 = vector.shape_cast %584 : vector<1x128x64xf32> to vector<128x64xf32>
    %586 = arith.truncf %583 : vector<16x64xf32> to vector<16x64xbf16>
    %587 = arith.truncf %585 : vector<128x64xf32> to vector<128x64xbf16>
    %cst_231 = arith.constant dense<0.000000e+00> : vector<16x128xf32>
    %588 = tpu.matmul %586, %587, %cst_231 {dimension_numbers = #tpu.dot_dimension_numbers<[1], [1], [0], [0], [0, 0, 1, 0], [], []>} : vector<16x64xbf16>, vector<128x64xbf16>, vector<16x128xf32> -> vector<16x128xf32>
    %c0_232 = arith.constant 0 : index
    %c0_233 = arith.constant 0 : index
    %589 = vector.load %arg22[%c0_232, %c0_233] : memref<1x128xf32, #tpu.memory_space<vmem>>, vector<1x128xf32>
    %590 = vector.broadcast %589 : vector<1x128xf32> to vector<16x128xf32>
    %591 = arith.addf %588, %590 : vector<16x128xf32>
    %c0_234 = arith.constant 0 : index
    %c0_235 = arith.constant 0 : index
    %c0_236 = arith.constant 0 : index
    %592 = vector.load %arg25[%c0_234, %c0_235, %c0_236] : memref<1x16x128xf32, #tpu.memory_space<vmem>>, vector<1x16x128xf32>
    %593 = vector.shape_cast %592 : vector<1x16x128xf32> to vector<16x128xf32>
    %594 = vector.shape_cast %591 : vector<16x128xf32> to vector<1x16x128xf32>
    tpu.vector_store %arg25[%c0_234, %c0_235, %c0_236], %594 {strides = array<i32>} : memref<1x16x128xf32, #tpu.memory_space<vmem>>, vector<1x16x128xf32>,
    %cst_237 = arith.constant dense<0xFF800000> : vector<16xf32>
    %595 = vector.multi_reduction <maximumf>, %591, %cst_237 [1] : vector<16x128xf32> to vector<16xf32>
    %596 = vector.shape_cast %595 : vector<16xf32> to vector<16x1xf32>
    %597 = vector.broadcast %596 : vector<16x1xf32> to vector<16x128xf32>
    %598 = arith.subf %591, %597 : vector<16x128xf32>
    %599 = math.exp %598 : vector<16x128xf32>
    %cst_238 = arith.constant dense<0.000000e+00> : vector<16xf32>
    %600 = vector.multi_reduction <add>, %599, %cst_238 [1] : vector<16x128xf32> to vector<16xf32>
    %601 = vector.shape_cast %600 : vector<16xf32> to vector<16x1xf32>
    %602 = math.log %601 : vector<16x1xf32>
    %603 = arith.addf %596, %602 : vector<16x1xf32>
    %c0_239 = arith.constant 0 : index
    %c0_240 = arith.constant 0 : index
    %c0_241 = arith.constant 0 : index
    %604 = vector.load %arg24[%c0_239, %c0_240, %c0_241] : memref<1x16x128xf32, #tpu.memory_space<vmem>>, vector<1x16x128xf32>
    %605 = vector.shape_cast %604 : vector<1x16x128xf32> to vector<16x128xf32>
    %606 = arith.mulf %591, %605 : vector<16x128xf32>
    %cst_242 = arith.constant dense<0.000000e+00> : vector<16xf32>
    %607 = vector.multi_reduction <add>, %606, %cst_242 [1] : vector<16x128xf32> to vector<16xf32>
    %608 = vector.shape_cast %607 : vector<16xf32> to vector<16x1xf32>
    %609 = arith.subf %603, %608 : vector<16x1xf32>
    %c0_243 = arith.constant 0 : index
    %c0_244 = arith.constant 0 : index
    %c0_245 = arith.constant 0 : index
    %610 = vector.load %arg26[%c0_243, %c0_244, %c0_245] : memref<1x16x1xf32, #tpu.memory_space<vmem>>, vector<1x16x1xf32>
    %611 = vector.shape_cast %610 : vector<1x16x1xf32> to vector<16x1xf32>
    %612 = vector.shape_cast %609 : vector<16x1xf32> to vector<1x16x1xf32>
    tpu.vector_store %arg26[%c0_243, %c0_244, %c0_245], %612 {strides = array<i32>} : memref<1x16x1xf32, #tpu.memory_space<vmem>>, vector<1x16x1xf32>,
    return
  }
  func.func @transform_0(%arg0: i32) -> (i32, i32, i32) {
    %c0_i32 = arith.constant 0 : i32
    %c0_i32_0 = arith.constant 0 : i32
    %c0_i32_1 = arith.constant 0 : i32
    return %arg0, %c0_i32, %c0_i32_0 : i32, i32, i32
  }
  func.func @transform_1(%arg0: i32) -> (i32, i32, i32) {
    %c0_i32 = arith.constant 0 : i32
    %c0_i32_0 = arith.constant 0 : i32
    %c0_i32_1 = arith.constant 0 : i32
    return %arg0, %c0_i32, %c0_i32_0 : i32, i32, i32
  }
  func.func @transform_2(%arg0: i32) -> (i32, i32) {
    %c0_i32 = arith.constant 0 : i32
    %c0_i32_0 = arith.constant 0 : i32
    %c0_i32_1 = arith.constant 0 : i32
    return %c0_i32, %c0_i32_0 : i32, i32
  }
  func.func @transform_3(%arg0: i32) -> (i32, i32) {
    %c0_i32 = arith.constant 0 : i32
    %c0_i32_0 = arith.constant 0 : i32
    %c0_i32_1 = arith.constant 0 : i32
    return %c0_i32, %c0_i32_0 : i32, i32
  }
  func.func @transform_4(%arg0: i32) -> (i32, i32) {
    %c0_i32 = arith.constant 0 : i32
    %c0_i32_0 = arith.constant 0 : i32
    %c0_i32_1 = arith.constant 0 : i32
    return %c0_i32, %c0_i32_0 : i32, i32
  }
  func.func @transform_5(%arg0: i32) -> (i32, i32, i32) {
    %c0_i32 = arith.constant 0 : i32
    %c0_i32_0 = arith.constant 0 : i32
    %c0_i32_1 = arith.constant 0 : i32
    %c0_i32_2 = arith.constant 0 : i32
    return %c0_i32, %c0_i32_0, %c0_i32_1 : i32, i32, i32
  }
  func.func @transform_6(%arg0: i32) -> (i32, i32, i32) {
    %c0_i32 = arith.constant 0 : i32
    %c0_i32_0 = arith.constant 0 : i32
    %c0_i32_1 = arith.constant 0 : i32
    %c0_i32_2 = arith.constant 0 : i32
    return %c0_i32, %c0_i32_0, %c0_i32_1 : i32, i32, i32
  }
  func.func @transform_7(%arg0: i32) -> (i32, i32, i32) {
    %c0_i32 = arith.constant 0 : i32
    %c0_i32_0 = arith.constant 0 : i32
    %c0_i32_1 = arith.constant 0 : i32
    %c0_i32_2 = arith.constant 0 : i32
    return %c0_i32, %c0_i32_0, %c0_i32_1 : i32, i32, i32
  }
  func.func @transform_8(%arg0: i32) -> (i32, i32, i32) {
    %c0_i32 = arith.constant 0 : i32
    %c0_i32_0 = arith.constant 0 : i32
    %c0_i32_1 = arith.constant 0 : i32
    %c0_i32_2 = arith.constant 0 : i32
    return %c0_i32, %c0_i32_0, %c0_i32_1 : i32, i32, i32
  }
  func.func @transform_9(%arg0: i32) -> (i32, i32, i32) {
    %c0_i32 = arith.constant 0 : i32
    %c0_i32_0 = arith.constant 0 : i32
    %c0_i32_1 = arith.constant 0 : i32
    %c0_i32_2 = arith.constant 0 : i32
    return %c0_i32, %c0_i32_0, %c0_i32_1 : i32, i32, i32
  }
  func.func @transform_10(%arg0: i32) -> (i32, i32, i32) {
    %c0_i32 = arith.constant 0 : i32
    %c0_i32_0 = arith.constant 0 : i32
    %c0_i32_1 = arith.constant 0 : i32
    %c0_i32_2 = arith.constant 0 : i32
    return %c0_i32, %c0_i32_0, %c0_i32_1 : i32, i32, i32
  }
  func.func @transform_11(%arg0: i32) -> (i32, i32, i32) {
    %c0_i32 = arith.constant 0 : i32
    %c0_i32_0 = arith.constant 0 : i32
    %c0_i32_1 = arith.constant 0 : i32
    %c0_i32_2 = arith.constant 0 : i32
    return %c0_i32, %c0_i32_0, %c0_i32_1 : i32, i32, i32
  }
  func.func @transform_12(%arg0: i32) -> (i32, i32, i32) {
    %c0_i32 = arith.constant 0 : i32
    %c0_i32_0 = arith.constant 0 : i32
    %c0_i32_1 = arith.constant 0 : i32
    %c0_i32_2 = arith.constant 0 : i32
    return %c0_i32, %c0_i32_0, %c0_i32_1 : i32, i32, i32
  }
  func.func @transform_13(%arg0: i32) -> (i32, i32, i32) {
    %c0_i32 = arith.constant 0 : i32
    %c0_i32_0 = arith.constant 0 : i32
    %c0_i32_1 = arith.constant 0 : i32
    %c0_i32_2 = arith.constant 0 : i32
    return %c0_i32, %c0_i32_0, %c0_i32_1 : i32, i32, i32
  }
  func.func @transform_14(%arg0: i32) -> (i32, i32, i32) {
    %c0_i32 = arith.constant 0 : i32
    %c0_i32_0 = arith.constant 0 : i32
    %c0_i32_1 = arith.constant 0 : i32
    %c0_i32_2 = arith.constant 0 : i32
    return %c0_i32, %c0_i32_0, %c0_i32_1 : i32, i32, i32
  }
  func.func @transform_15(%arg0: i32) -> (i32, i32, i32) {
    %c0_i32 = arith.constant 0 : i32
    %c0_i32_0 = arith.constant 0 : i32
    %c0_i32_1 = arith.constant 0 : i32
    %c0_i32_2 = arith.constant 0 : i32
    return %c0_i32, %c0_i32_0, %c0_i32_1 : i32, i32, i32
  }
  func.func @transform_16(%arg0: i32) -> (i32, i32, i32) {
    %c0_i32 = arith.constant 0 : i32
    %c0_i32_0 = arith.constant 0 : i32
    %c0_i32_1 = arith.constant 0 : i32
    %c0_i32_2 = arith.constant 0 : i32
    return %c0_i32, %c0_i32_0, %c0_i32_1 : i32, i32, i32
  }
  func.func @transform_17(%arg0: i32) -> (i32, i32) {
    %c0_i32 = arith.constant 0 : i32
    %c0_i32_0 = arith.constant 0 : i32
    %c0_i32_1 = arith.constant 0 : i32
    return %c0_i32, %c0_i32_0 : i32, i32
  }
  func.func @transform_18(%arg0: i32) -> (i32, i32) {
    %c0_i32 = arith.constant 0 : i32
    %c0_i32_0 = arith.constant 0 : i32
    %c0_i32_1 = arith.constant 0 : i32
    return %c0_i32, %c0_i32_0 : i32, i32
  }
  func.func @transform_19(%arg0: i32) -> (i32, i32) {
    %c0_i32 = arith.constant 0 : i32
    %c0_i32_0 = arith.constant 0 : i32
    %c0_i32_1 = arith.constant 0 : i32
    return %c0_i32, %c0_i32_0 : i32, i32
  }
  func.func @transform_20(%arg0: i32) -> (i32, i32) {
    %c0_i32 = arith.constant 0 : i32
    %c0_i32_0 = arith.constant 0 : i32
    %c0_i32_1 = arith.constant 0 : i32
    return %c0_i32, %c0_i32_0 : i32, i32
  }
  func.func @transform_21(%arg0: i32) -> (i32, i32) {
    %c0_i32 = arith.constant 0 : i32
    %c0_i32_0 = arith.constant 0 : i32
    %c0_i32_1 = arith.constant 0 : i32
    return %c0_i32, %c0_i32_0 : i32, i32
  }
  func.func @transform_22(%arg0: i32) -> (i32, i32, i32) {
    %c0_i32 = arith.constant 0 : i32
    %c0_i32_0 = arith.constant 0 : i32
    %c0_i32_1 = arith.constant 0 : i32
    return %arg0, %c0_i32, %c0_i32_0 : i32, i32, i32
  }
  func.func @transform_23(%arg0: i32) -> (i32, i32, i32) {
    %c0_i32 = arith.constant 0 : i32
    %c0_i32_0 = arith.constant 0 : i32
    %c0_i32_1 = arith.constant 0 : i32
    return %arg0, %c0_i32, %c0_i32_0 : i32, i32, i32
  }
  func.func @transform_24(%arg0: i32) -> (i32, i32, i32) {
    %c0_i32 = arith.constant 0 : i32
    %c0_i32_0 = arith.constant 0 : i32
    %c0_i32_1 = arith.constant 0 : i32
    return %arg0, %c0_i32, %c0_i32_0 : i32, i32, i32
  }
  func.func @transform_25(%arg0: i32) -> (i32, i32, i32) {
    %c0_i32 = arith.constant 0 : i32
    %c0_i32_0 = arith.constant 0 : i32
    %c0_i32_1 = arith.constant 0 : i32
    return %arg0, %c0_i32, %c0_i32_0 : i32, i32, i32
  }
}

</mosaic_0001>

<bundles_post_ra>
// kernel: model_forward.3
= control target key start
LH: loop header
LB: loop body
LE: loop exit
PB: predicated region body
PF: predicated region fallthrough
CT: control target
= control target key end

     0   :  { %s4234_s0 = inlined_call_operand.vmem [shape: f32[4,16,64], index: 0, kind: input, shape index: {}]   ;;  %s4235_s1 = inlined_call_operand.vmem [shape: f32[4,1,16], index: 1, kind: input, shape index: {}]   ;;  %s4236_s2 = inlined_call_operand.vmem [shape: f32[16,64], index: 2, kind: input, shape index: {}]   ;;  %s4237_s3 = inlined_call_operand.vmem [shape: f32[1,64], index: 3, kind: input, shape index: {}]   ;;  %s4238_s4 = inlined_call_operand.vmem [shape: f32[1,64], index: 4, kind: input, shape index: {}]   ;;  %s4239_s5 = inlined_call_operand.vmem [shape: f32[2,64,192], index: 5, kind: input, shape index: {}]   ;;  %s4240_s6 = inlined_call_operand.vmem [shape: f32[2,1,192], index: 6, kind: input, shape index: {}]   ;;  %s4241_s7 = inlined_call_operand.vmem [shape: f32[2,64,64], index: 7, kind: input, shape index: {}]   ;;  %s4242_s8 = inlined_call_operand.vmem [shape: f32[2,1,64], index: 8, kind: input, shape index: {}, may-alias: {8,10,14,16}]   ;;  %s4243_s9 = inlined_call_operand.vmem [shape: f32[2,1,64], index: 9, kind: input, shape index: {}, may-alias: {9,15}]   ;;  %s4244_s10 = inlined_call_operand.vmem [shape: f32[2,1,64], index: 10, kind: input, shape index: {}, may-alias: {8,10,14,16}]   ;;  %s4245_s11 = inlined_call_operand.hbm [shape: f32[2,64,128], index: 11, kind: input, shape index: {}]   ;;  %s4246_s12 = inlined_call_operand.vmem [shape: f32[2,1,128], index: 12, kind: input, shape index: {}]   ;;  %s4247_s13 = inlined_call_operand.vmem [shape: f32[2,128,64], index: 13, kind: input, shape index: {}]   ;;  %s4248_s14 = inlined_call_operand.vmem [shape: f32[2,1,64], index: 14, kind: input, shape index: {}, may-alias: {8,10,14,16}]   ;;  %s4249_s15 = inlined_call_operand.vmem [shape: f32[2,1,64], index: 15, kind: input, shape index: {}, may-alias: {9,15}]   ;;  %s4250_s16 = inlined_call_operand.vmem [shape: f32[2,1,64], index: 16, kind: input, shape index: {}, may-alias: {8,10,14,16}]   ;;  %s4251_s17 = inlined_call_operand.vmem [shape: f32[4,16,64], index: 17, kind: output, shape index: {}]  }
   0x1   :  { %4261 = sst [smem:[#allocation5_spill]] %s4234_s0 }
   0x2   :  { %4262 = sst [smem:[#allocation6_spill]] %s4235_s1 }
   0x3   :  { %22 = vsyncpa [#allocation3], 0  ;;  %s3491_s24 = smov 0  }
   0x4 LB: > { %s3497_s25 = sadd.s32 4294967295, %s3386_s24   ;;  %p2836_p0 = scmp.ge.s32.totalorder %s3386_s24, 1  ;;  %s3386_s24 = sphi %s3491_s24, %s28_s24  }
   0x5   : > { %p426_p1 = scmp.lt.s32.totalorder %s3386_s24, 5  ;;  %s3388_s26 = smov [#allocation2]  }
   0x6   : > { %s465_s27 = sshll.u32 %s3388_s26, 4  ;;  %p4252_p3 = scmp.eq.s32.totalorder %s3497_s25, 0  ;;  %s466_s27 = int_to_ptr.vmem [resolvable:$true] %s465_s27 }
   0x7   : > { %p3501_p2 = pnand %p2836_p0, %p426_p1  ;;  %s3348_s18 = scalar_lea.hbm %s4245_s11, 2048 }
   0x8   : > { %p3349_p6 = scmp.ne.s32.totalorder %s4245_s11, %s3348_s18  ;;  %p3355_p10 = scmp.lt.u32.totalorder %s3348_s18, %s4245_s11 }
   0x9   : > { %s4263_s28 = scalar_select %p3501_p2, 1, 0 }
   0xa   : > { %p3229_p4 = pneg %p3501_p2 }
   0xc   : > { %p3510_p5 = pnand %p4252_p3, %p3229_p4 }
   0xe   : > { %p3350_p7 = pneg %p3510_p5 }
  0x10   : > { %p3351_p8 = pnand %p3350_p7, %p3349_p6 }
  0x12   : > { %p3352_p9 = pneg %p3351_p8 }
  0x14   : > { %p3357_p11 = pnand %p3355_p10, %p3352_p9 }
  0x16   : > { %3360 = shalt.err (!%p3357_p11)
}
  0x17   : > { %s3361_s22 = scalar_lea.vmem %s466_s27, 2048  ;;  %p3369_p1 = scmp.lt.s32.totalorder %s466_s27, %s466_s27 }
  0x18   : > { %p3362_p12 = scmp.ne.s32.totalorder %s466_s27, %s3361_s22  ;;  %p3370_p4 = scmp.lt.s32.totalorder %s3361_s22, %s3361_s22 }
  0x1a   : > { %p3364_p13 = pnand %p3362_p12, %p3350_p7  ;;  %p3371_p3 = por %p3370_p4, %p3369_p1 }
  0x1c   : > { %p3365_p0 = pneg %p3364_p13 }
  0x1e   : > { %p3372_p2 = pnand %p3371_p3, %p3365_p0 }
  0x20   : > { %3375 = shalt.err (!%p3372_p2)
}
  0x21   : > { %s3389_s23 = smov 128   ;;  %s3390_s26 = smov 8  }
  0x22   : > { %3232 = dma.hbm_to_vmem [thread:$0]  (!%p3510_p5), %s4245_s11, 2048, %s466_s27, [#allocation3], %s3389_s23, %s3389_s23, %s3390_s26  }
  0x23   : > { %p4265_p6 = scmp.ne.s32.totalorder %s4263_s28, 0 }
  0x24   : > { %p4266_p8 = scmp.eq.s32.totalorder (!%p4265_p6), %s3497_s25, 0 }
  0x25   : > { %510 = sbr.rel (%p4265_p6) target bundleno = 7825 (0x1e91), region = 88 }
  0x2c   : > { %3381 = dma.done.wait (%p4266_p8), [#allocation3], 2048   ;;  %p4267_p7 = pmov %p4266_p8 }
  0x2d   : > { %p565_p2 = scmp.lt.s32.totalorder %s3497_s25, 3  ;;  %s4268_s19 = sld [smem:[#allocation5_spill]]  ;;  %v582_v1 = vld [vmem:[%s4236_s2] sm:$0xff]  ;;  %vm588_vm0 = vcmask 523264   ;;  %v583_v4 = vld [vmem:[%s4236_s2 + $0x8] sm:$0xff]  ;;  %v635_v19 = vld [vmem:[%s4239_s5 + $0x18] sm:$0xff]  ;;  %v698_v61 = vlaneseq }
  0x2e   : > { %3383 = vsyncadd (%p4267_p7), [#allocation3], 4294965248  ;;  %v633_v18 = vld [vmem:[%s4239_s5 + $0x8] sm:$0xff]  ;;  %v632_v21 = vld [vmem:[%s4239_s5] sm:$0xff]  ;;  %v3391_v41 = vmov 0   ;;  %v3392_v60 = vmov 0.0  }
  0x2f   : > { %s4278_s25 = smov (!%p565_p2, %s3497_s25), 3  ;;  %v690_v20 = vpack.c.bf16 %v635_v19, %v633_v18  ;;  %v634_v22 = vld [vmem:[%s4239_s5 + $0x10] sm:$0xff]  ;;  %v637_v24 = vld [vmem:[%s4239_s5 + $0x28] sm:$0xff]  ;;  %v639_v25 = vld [vmem:[%s4239_s5 + $0x38] sm:$0xff]  ;;  %743 = vmatprep.mubr.bf16.mxu0 %v3391_v41  ;;  %3023 = vmatprep.subr.bf16.mxu1 %v3392_v60  ;;  %v3620_v62 = vshrl.u32 %v698_v61, 7  ;;  %vm3393_vm1 = vmmov 0  }
  0x30   : > { %s4254_s29 = sshll.u32 %s4278_s25, 4  ;;  %v689_v23 = vpack.c.bf16 %v634_v22, %v632_v21  ;;  %v692_v26 = vpack.c.bf16 %v639_v25, %v637_v24  ;;  %v636_v27 = vld [vmem:[%s4239_s5 + $0x20] sm:$0xff]  ;;  %v638_v28 = vld [vmem:[%s4239_s5 + $0x30] sm:$0xff]  ;;  %v641_v30 = vld [vmem:[%s4239_s5 + $0x48] sm:$0xff]  ;;  %3025 = vmatprep.mubr.msk.bf16.mxu1 %vm3393_vm1, %v3392_v60  ;;  %s3394_s0 = smov 48   ;;  %vm758_vm2 = vcmask 130048  }
  0x31   : > { %711 = vmatprep.subr.bf16.mxu0 %v690_v20  ;;  %v691_v29 = vpack.c.bf16 %v638_v28, %v636_v27  ;;  %v643_v31 = vld [vmem:[%s4239_s5 + $0x58] sm:$0xff]  ;;  %v640_v33 = vld [vmem:[%s4239_s5 + $0x40] sm:$0xff]  ;;  %v642_v34 = vld [vmem:[%s4239_s5 + $0x50] sm:$0xff]  ;;  %v3623_v63 = vsub.s32 0, %v3620_v62  ;;  %s3395_s30 = smov 64   ;;  %s3396_s18 = smov 112  }
  0x32   : > { %712 = vmatpush1.bf16.msra.mxu0 %v689_v23  ;;  %v694_v32 = vpack.c.bf16 %v643_v31, %v641_v30  ;;  %v693_v35 = vpack.c.bf16 %v642_v34, %v640_v33  ;;  %v645_v36 = vld [vmem:[%s4239_s5 + $0x68] sm:$0xff]  ;;  %v647_v37 = vld [vmem:[%s4239_s5 + $0x78] sm:$0xff]  ;;  %v644_v38 = vld [vmem:[%s4239_s5 + $0x60] sm:$0xff]  ;;  %s4258_s20 = smov 96   ;;  %s4260_s21 = smov 32  }
  0x33   : > { %s569_s28 = scalar_lea.vmem %s4268_s19, %s4254_s29  ;;  %713 = vmatprep.subr.bf16.mxu0 %v692_v26  ;;  %v696_v39 = vpack.c.bf16 %v647_v37, %v645_v36  ;;  %v646_v40 = vld [vmem:[%s4239_s5 + $0x70] sm:$0xff]  ;;  %v2845_v51 = vld [vmem:[%s4237_s3] ss:$0 sm:$0xff]  ;;  %s4255_s29 = smov 16  }
  0x34   : > { %v580_v0 = vld [vmem:[%s569_s28] sm:$0xff]  ;;  %v581_v2 = vld [vmem:[%s569_s28 + $0x8] sm:$0xff]  ;;  %v695_v42 = vpack.c.bf16 %v646_v40, %v644_v38  ;;  %s4269_s28 = sld [smem:[#allocation6_spill]]  ;;  %s4256_s22 = smov 80  }
  0x35   : > { %v584_v3 = vadd.f32 %v582_v1, %v580_v0  ;;  %v585_v5 = vadd.f32 %v583_v4, %v581_v2  ;;  %v2846_v55 = vld [vmem:[%s4238_s4] ss:$0 sm:$0xff]  ;;  %v704_v1 = vsub.s32 1, %v3620_v62  ;;  %s4275_s23 = smov 16  }
  0x36   : > { %714 = vmatpush1.bf16.msra.mxu0 %v691_v29  ;;  %v648_v0 = vld [vmem:[%s4240_s6] sm:$0x3] }
  0x37   : > { %v589_v6 = vsel %vm588_vm0, %v584_v3, 0.0  ;;  %v592_v7 = vsel %vm588_vm0, %v585_v5, 0.0  ;;  %715 = vmatprep.subr.bf16.mxu0 %v694_v32  ;;  %v701_v2 = vrot.slane %v648_v0, %v3623_v63  ;;  %v705_v4 = vrot.slane %v648_v0, %v704_v1 }
  0x38   : > { %590 = vadd.xlane.f32.xlu0 %v589_v6 }
  0x3a   : > { %716 = vmatpush1.bf16.msra.mxu0 %v693_v35  ;;  %s572_s1 = scalar_lea.vmem %s4269_s28, %s4278_s25 }
  0x3b   : > { %717 = vmatprep.subr.bf16.mxu0 %v696_v39  ;;  %v579_v19 = vld [vmem:[%s572_s1] sm:$0x1]  ;;  %s4274_s1 = smov 80  }
  0x3c   : > { %593 = vadd.xlane.f32.xlu0 %v592_v7  ;;  %vm808_vm3 = vcmp.gt.f32.partialorder %v579_v19, 0.5 }
  0x3d   : > { %v809_v20 = vsel %vm808_vm3, 1, %v3391_v41 }
  0x3e   : > { %718 = vmatpush1.bf16.msra.mxu0 %v695_v42  ;;  %v813_v21 = vrot.slane %v809_v20, %v3623_v63 }
  0x3f   : > { %3017 = vmatprep.subr.bf16.mxu0 %v3392_v60 }
  0x40   : > { %vm3665_vm4 = vcmp.eq.s32.totalorder %v813_v21, 1 }
  0xc5   : > { %v591_v8 = vpop.xlane.xlu0 %590 }
  0xc6   : > { %v596_v9 = vmul.f32 0.015625, %v591_v8 }
  0xc8   : > { %v598_v10 = vsub.f32 %v584_v3, %v596_v9 }
  0xc9   : > { %v594_v11 = vpop.xlane.xlu0 %593 }
  0xca   : > { %v597_v12 = vmul.f32 0.015625, %v594_v11  ;;  %v600_v13 = vmul.f32 %v598_v10, %v598_v10 }
  0xcc   : > { %v599_v14 = vsub.f32 %v585_v5, %v597_v12  ;;  %v602_v15 = vsel %vm588_vm0, %v600_v13, 0.0 }
  0xcd   : > { %603 = vadd.xlane.f32.xlu1 %v602_v15 }
  0xce   : > { %v601_v16 = vmul.f32 %v599_v14, %v599_v14 }
  0xd0   : > { %v605_v17 = vsel %vm588_vm0, %v601_v16, 0.0 }
  0xd1   : > { %606 = vadd.xlane.f32.xlu1 %v605_v17 }
 0x15a   : > { %v604_v43 = vpop.xlane.xlu1 %603 }
 0x15b   : > { %v608_v44 = vmul.f32 0.015625, %v604_v43 }
 0x15d   : > { %v610_v45 = vadd.f32 1e-05, %v608_v44 }
 0x15e   : > { %v607_v46 = vpop.xlane.xlu1 %606 }
 0x15f   : > { %3256 = vrsqrt.f32 %v610_v45  ;;  %v609_v47 = vmul.f32 0.015625, %v607_v46 }
 0x161   : > { %v611_v48 = vadd.f32 1e-05, %v609_v47 }
 0x163   : > { %3258 = vrsqrt.f32 %v611_v48 }
 0x169   : > { %v3257_v49 = vpop.eup %3256 }
 0x16a   : > { %v614_v50 = vmul.f32 %v3257_v49, %v598_v10 }
 0x16c   : > { %v622_v54 = vmul.f32 %v2845_v51, %v614_v50 }
 0x16d   : > { %v3259_v52 = vpop.eup %3258 }
 0x16e   : > { %v615_v53 = vmul.f32 %v3259_v52, %v599_v14  ;;  %v3611_v57 = vadd.f32 %v2846_v55, %v622_v54 }
 0x170   : > { %v623_v56 = vmul.f32 %v2845_v51, %v615_v53 }
 0x172   : > { %v3613_v58 = vadd.f32 %v2846_v55, %v623_v56 }
 0x174   : > { %v688_v59 = vpack.c.bf16 %v3613_v58, %v3611_v57 }
 0x176   : > { %2847 = vmatmul.mubr.msk.bf16.vlgmr.msra.gmra.mrb[0].mxu0 %vm588_vm0, %v688_v59 }
 0x177   : > { %3019 = vmatprep.mubr.msk.bf16.mxu0 %vm3393_vm1, %v3392_v60 }
 0x249   : > { %v745_v3 = vpop.f32.mrb[0].mxu0 }
 0x24a   : > { %v747_v5 = vpop.f32.mrb[1].mxu0  ;;  %v746_v7 = vadd.f32 %v745_v3, %v701_v2 }
 0x24b   : > { %v749_v6 = vpop.f32.mrb[2].mxu0  ;;  %v748_v10 = vadd.f32 %v747_v5, %v705_v4 }
 0x24c   : > { %v750_v8 = vadd.f32 %v749_v6, %v701_v2  ;;  %v751_v9 = vpop.f32.mrb[3].mxu0 }
 0x24d   : > { %v752_v11 = vadd.f32 %v751_v9, %v705_v4 }
 0x24e   : > { %v3636_v12 = vpack.c.bf16 %v750_v8, %v746_v7 }
 0x24f   : > { %v3638_v13 = vpack.c.bf16 %v752_v11, %v748_v10 }
 0x250   : > { %893 = vrot.lane.b32.xlu1 %v3636_v12, %s3394_s0  ;;  %756 = vrot.lane.b32.xlu0 %v3636_v12, %s3395_s30 }
 0x251   : > { %3024 = vmatpush3.bf16.msra.mxu1 %v3638_v13 }
 0x252   : > { %3035 = vmatprep.subr.bf16.mxu1 %v3392_v60 }
 0x254   : > { %891 = vrot.lane.b32.xlu1 %v3636_v12, %s3396_s18 }
 0x2c2   : > { %v757_v14 = vpop.permute.xlu0 %756  ;;  %v894_v16 = vpop.permute.xlu1 %893 }
 0x2c3   : > { %v763_v15 = vsel %vm758_vm2, %v757_v14, 0  ;;  %v899_v17 = vsel %vm758_vm2, %v894_v16, 0 }
 0x2c4   : > { %3018 = vmatpush3.bf16.xpose.msra.mxu0 %v763_v15 }
 0x2c5   : > { %3029 = vmatprep.subr.bf16.mxu0 %v3392_v60 }
 0x2c6   : > { %v892_v18 = vpop.permute.xlu1 %891 }
 0x2cb   : > { %3020 = vmatmul.mubr.msk.bf16.vlgmr.msra.gmra.mrb[4].mxu0 %vm758_vm2, %v3636_v12 }
 0x2cc   : > { %3030 = vmatpush3.bf16.xpose.msra.mxu0 %v899_v17  ;;  %3031 = vmatprep.mubr.msk.bf16.mxu0 %vm3393_vm1, %v3392_v60 }
 0x2cd   : > { %3041 = vmatprep.subr.bf16.mxu0 %v3392_v60 }
 0x2d3   : > { %3032 = vmatmul.mubr.msk.bf16.vlgmr.msra.gmra.mrb[8].mxu0 %vm758_vm2, %v892_v18 }
 0x2d4   : > { %3043 = vmatprep.mubr.msk.bf16.mxu0 %vm3393_vm1, %v3392_v60 }
 0x39e   : > { %v799_v23 = vpop.f32.mrb[4].mxu0 }
 0x39f   : > { %v806_v24 = vmul.f32 0.25, %v799_v23  ;;  %v3021_v25 = vpop.f32.mrb[5].mxu0 }
 0x3a0   : > { %v802_v26 = vpop.f32.mrb[6].mxu0 }
 0x3a1   : > { %v807_v27 = vmul.f32 0.25, %v802_v26  ;;  %v3022_v28 = vpop.f32.mrb[7].mxu0  ;;  %v815_v29 = vsel %vm3665_vm4, %v806_v24, -1e+30 }
 0x3a2   : > { %v817_v30 = vsel %vm758_vm2, %v815_v29, -inf }
 0x3a3   : > { %818 = vmax.xlane.f32.xlu1 %v817_v30  ;;  %v816_v31 = vsel %vm3665_vm4, %v807_v27, -1e+30 }
 0x3a4   : > { %v820_v32 = vsel %vm758_vm2, %v816_v31, -inf }
 0x3a5   : > { %821 = vmax.xlane.f32.xlu0 %v820_v32  ;;  %v649_v32 = vld [vmem:[%s4241_s7] sm:$0xff] }
 0x3a6   : > { %v935_v33 = vpop.f32.mrb[8].mxu0 }
 0x3a7   : > { %v942_v34 = vmul.f32 0.25, %v935_v33  ;;  %v3033_v35 = vpop.f32.mrb[9].mxu0  ;;  %v650_v33 = vld [vmem:[%s4241_s7 + $0x8] sm:$0xff] }
 0x3a8   : > { %v938_v36 = vpop.f32.mrb[10].mxu0  ;;  %v651_v35 = vld [vmem:[%s4241_s7 + $0x10] sm:$0xff] }
 0x3a9   : > { %v943_v37 = vmul.f32 0.25, %v938_v36  ;;  %v3034_v38 = vpop.f32.mrb[11].mxu0  ;;  %v944_v39 = vsel %vm3665_vm4, %v942_v34, -1e+30  ;;  %v890_v34 = vpack.c.bf16 %v650_v33, %v649_v32  ;;  %v652_v36 = vld [vmem:[%s4241_s7 + $0x18] sm:$0xff] }
 0x3aa   : > { %v946_v40 = vsel %vm758_vm2, %v944_v39, -inf }
 0x3ab   : > { %947 = vmax.xlane.f32.xlu0 %v946_v40  ;;  %v945_v42 = vsel %vm3665_vm4, %v943_v37, -1e+30  ;;  %v1022_v37 = vpack.c.bf16 %v652_v36, %v651_v35 }
 0x3ac   : > { %v949_v43 = vsel %vm758_vm2, %v945_v42, -inf }
 0x3ad   : > { %3042 = vmatpush3.bf16.msra.mxu0 %v1022_v37 }
 0x3ae   : > { %3053 = vmatprep.subr.bf16.mxu0 %v3392_v60 }
 0x3af   : > { %950 = vmax.xlane.f32.xlu0 %v949_v43 }
 0x430   : > { %v819_v44 = vpop.xlane.xlu1 %818 }
 0x431   : > { %v823_v45 = vsub.f32 %v815_v29, %v819_v44 }
 0x432   : > { %v822_v46 = vpop.xlane.xlu0 %821 }
 0x433   : > { %v825_v47 = vmul.f32 1.442695, %v823_v45  ;;  %v824_v48 = vsub.f32 %v816_v31, %v822_v46 }
 0x435   : > { %3260 = vpow2.f32 %v825_v47  ;;  %v827_v49 = vmul.f32 1.442695, %v824_v48 }
 0x437   : > { %3262 = vpow2.f32 %v827_v49 }
 0x438   : > { %v948_v50 = vpop.xlane.xlu0 %947 }
 0x439   : > { %v952_v51 = vsub.f32 %v944_v39, %v948_v50 }
 0x43b   : > { %v954_v52 = vmul.f32 1.442695, %v952_v51 }
 0x43c   : > { %v951_v53 = vpop.xlane.xlu0 %950 }
 0x43d   : > { %3264 = vpow2.f32 %v954_v52  ;;  %v953_v54 = vsub.f32 %v945_v42, %v951_v53 }
 0x43f   : > { %v3261_v55 = vpop.eup %3260  ;;  %v956_v56 = vmul.f32 1.442695, %v953_v54 }
 0x440   : > { %v829_v59 = vsel %vm3665_vm4, %v3261_v55, 0.0 }
 0x441   : > { %v3263_v61 = vpop.eup %3262  ;;  %3266 = vpow2.f32 %v956_v56  ;;  %v831_v0 = vsel %vm758_vm2, %v829_v59, 0.0 }
 0x442   : > { %832 = vadd.xlane.f32.xlu1 %v831_v0  ;;  %v830_v2 = vsel %vm3665_vm4, %v3263_v61, 0.0 }
 0x443   : > { %v834_v3 = vsel %vm758_vm2, %v830_v2, 0.0 }
 0x444   : > { %835 = vadd.xlane.f32.xlu0 %v834_v3 }
 0x447   : > { %v3265_v4 = vpop.eup %3264 }
 0x448   : > { %v958_v5 = vsel %vm3665_vm4, %v3265_v4, 0.0 }
 0x449   : > { %v960_v6 = vsel %vm758_vm2, %v958_v5, 0.0 }
 0x44a   : > { %961 = vadd.xlane.f32.xlu1 %v960_v6 }
 0x44b   : > { %v3267_v7 = vpop.eup %3266 }
 0x44c   : > { %v959_v8 = vsel %vm3665_vm4, %v3267_v7, 0.0 }
 0x44d   : > { %v963_v9 = vsel %vm758_vm2, %v959_v8, 0.0 }
 0x44e   : > { %964 = vadd.xlane.f32.xlu0 %v963_v9 }
 0x45b   : > { %974 = vrot.lane.b32.xlu1 %v3638_v13, %s3396_s18 }
 0x45f   : > { %1111 = vrot.lane.b32.xlu1 %v3636_v12, %s4258_s20 }
 0x464   : > { %1113 = vrot.lane.b32.xlu0 %v3636_v12, %s4260_s21 }
 0x4cf   : > { %v833_v10 = vpop.xlane.xlu1 %832 }
 0x4d0   : > { %v837_v11 = vmax.f32 %v833_v10, 1e-20 }
 0x4d1   : > { %v836_v14 = vpop.xlane.xlu0 %835 }
 0x4d2   : > { %3268 = vrcp.f32 %v837_v11  ;;  %v838_v15 = vmax.f32 %v836_v14, 1e-20 }
 0x4d4   : > { %3270 = vrcp.f32 %v838_v15 }
 0x4d7   : > { %v962_v16 = vpop.xlane.xlu1 %961 }
 0x4d8   : > { %v966_v17 = vmax.f32 %v962_v16, 1e-20 }
 0x4da   : > { %3272 = vrcp.f32 %v966_v17 }
 0x4db   : > { %v965_v18 = vpop.xlane.xlu0 %964  ;;  %v975_v26 = vpop.permute.xlu1 %974 }
 0x4dc   : > { %v3269_v19 = vpop.eup %3268  ;;  %v967_v20 = vmax.f32 %v965_v18, 1e-20 }
 0x4dd   : > { %v841_v23 = vmul.f32 %v3269_v19, %v829_v59 }
 0x4de   : > { %v3271_v21 = vpop.eup %3270  ;;  %3274 = vrcp.f32 %v967_v20 }
 0x4df   : > { %v842_v24 = vmul.f32 %v3271_v21, %v830_v2  ;;  %v1114_v46 = vpop.permute.xlu0 %1113  ;;  %v1112_v51 = vpop.permute.xlu1 %1111 }
 0x4e0   : > { %v1119_v50 = vsel %vm758_vm2, %v1114_v46, 0 }
 0x4e1   : > { %v843_v25 = vpack.c.bf16 %v842_v24, %v841_v23 }
 0x4e3   : > { %3026 = vmatmul.mubr.msk.bf16.vlgmr.msra.gmra.mrb[0].mxu1 %vm758_vm2, %v843_v25 }
 0x4e4   : > { %3036 = vmatpush3.bf16.msra.mxu1 %v975_v26  ;;  %3037 = vmatprep.mubr.msk.bf16.mxu1 %vm3393_vm1, %v3392_v60  ;;  %v3273_v27 = vpop.eup %3272 }
 0x4e5   : > { %3047 = vmatprep.subr.bf16.mxu1 %v3392_v60  ;;  %v970_v29 = vmul.f32 %v3273_v27, %v958_v5 }
 0x4e8   : > { %v3275_v28 = vpop.eup %3274 }
 0x4e9   : > { %v971_v30 = vmul.f32 %v3275_v28, %v959_v8 }
 0x4eb   : > { %v972_v31 = vpack.c.bf16 %v971_v30, %v970_v29 }
 0x4ed   : > { %3038 = vmatmul.mubr.msk.bf16.vlgmr.msra.gmra.mrb[4].mxu1 %vm758_vm2, %v972_v31 }
 0x4ee   : > { %3049 = vmatprep.mubr.msk.bf16.mxu1 %vm3393_vm1, %v3392_v60  ;;  %3048 = vmatpush3.bf16.msra.mxu1 %v890_v34 }
 0x4ef   : > { %3059 = vmatprep.subr.bf16.mxu1 %v3392_v60 }
 0x5b6   : > { %v882_v38 = vpop.f32.mrb[0].mxu1 }
 0x5b7   : > { %v3027_v39 = vpop.f32.mrb[1].mxu1 }
 0x5b8   : > { %v885_v40 = vpop.f32.mrb[2].mxu1 }
 0x5b9   : > { %v889_v42 = vpack.c.bf16 %v885_v40, %v882_v38  ;;  %v3028_v43 = vpop.f32.mrb[3].mxu1 }
 0x5ba   : > { %v654_v43 = vld [vmem:[%s4241_s7 + $0x28] sm:$0xff] }
 0x5bb   : > { %3050 = vmatmul.mubr.msk.bf16.vlgmr.msra.gmra.mrb[8].mxu1 %vm758_vm2, %v889_v42  ;;  %v653_v42 = vld [vmem:[%s4241_s7 + $0x20] sm:$0xff] }
 0x5bc   : > { %3061 = vmatprep.mubr.msk.bf16.mxu1 %vm3393_vm1, %v3392_v60 }
 0x5c0   : > { %v1014_v44 = vpop.f32.mrb[4].mxu1 }
 0x5c1   : > { %v3039_v45 = vpop.f32.mrb[5].mxu1 }
 0x5c2   : > { %v1017_v47 = vpop.f32.mrb[6].mxu1 }
 0x5c3   : > { %v1021_v48 = vpack.c.bf16 %v1017_v47, %v1014_v44  ;;  %v3040_v49 = vpop.f32.mrb[7].mxu1  ;;  %v1241_v44 = vpack.c.bf16 %v654_v43, %v653_v42 }
 0x5c5   : > { %3044 = vmatmul.mubr.msk.bf16.vlgmr.msra.gmra.mrb[12].mxu0 %vm758_vm2, %v1021_v48 }
 0x5c6   : > { %3054 = vmatpush3.bf16.xpose.msra.mxu0 %v1119_v50  ;;  %3055 = vmatprep.mubr.msk.bf16.mxu0 %vm3393_vm1, %v3392_v60 }
 0x5c7   : > { %3065 = vmatprep.subr.bf16.mxu0 %v3392_v60 }
 0x5cd   : > { %3056 = vmatmul.mubr.msk.bf16.vlgmr.msra.gmra.mrb[16].mxu0 %vm758_vm2, %v1112_v51 }
 0x5ce   : > { %3067 = vmatprep.mubr.msk.bf16.mxu0 %vm3393_vm1, %v3392_v60  ;;  %3066 = vmatpush3.bf16.msra.mxu0 %v1241_v44 }
 0x5cf   : > { %3077 = vmatprep.subr.bf16.mxu0 %v3392_v60 }
 0x68e   : > { %v1104_v52 = vpop.f32.mrb[8].mxu1 }
 0x68f   : > { %v3051_v53 = vpop.f32.mrb[9].mxu1 }
 0x690   : > { %v1107_v54 = vpop.f32.mrb[10].mxu1 }
 0x691   : > { %v3052_v55 = vpop.f32.mrb[11].mxu1 }
 0x698   : > { %v1060_v56 = vpop.f32.mrb[12].mxu0 }
 0x699   : > { %v3731_v59 = vadd.f32 %v1104_v52, %v1060_v56  ;;  %v3045_v61 = vpop.f32.mrb[13].mxu0 }
 0x69a   : > { %v1063_v0 = vpop.f32.mrb[14].mxu0 }
 0x69b   : > { %v3733_v2 = vadd.f32 %v1107_v54, %v1063_v0  ;;  %v3046_v3 = vpop.f32.mrb[15].mxu0 }
 0x6a0   : > { %v1155_v4 = vpop.f32.mrb[16].mxu0 }
 0x6a1   : > { %v1162_v5 = vmul.f32 0.25, %v1155_v4  ;;  %v3057_v6 = vpop.f32.mrb[17].mxu0 }
 0x6a2   : > { %v1158_v7 = vpop.f32.mrb[18].mxu0 }
 0x6a3   : > { %v1163_v8 = vmul.f32 0.25, %v1158_v7  ;;  %v3058_v9 = vpop.f32.mrb[19].mxu0  ;;  %v1164_v10 = vsel %vm3665_vm4, %v1162_v5, -1e+30 }
 0x6a4   : > { %v1166_v11 = vsel %vm758_vm2, %v1164_v10, -inf }
 0x6a5   : > { %1167 = vmax.xlane.f32.xlu1 %v1166_v11  ;;  %v1165_v14 = vsel %vm3665_vm4, %v1163_v8, -1e+30 }
 0x6a6   : > { %v1169_v15 = vsel %vm758_vm2, %v1165_v14, -inf }
 0x6a7   : > { %1170 = vmax.xlane.f32.xlu0 %v1169_v15 }
 0x732   : > { %v1168_v16 = vpop.xlane.xlu1 %1167 }
 0x733   : > { %v1172_v17 = vsub.f32 %v1164_v10, %v1168_v16 }
 0x734   : > { %v1171_v18 = vpop.xlane.xlu0 %1170 }
 0x735   : > { %v1174_v19 = vmul.f32 1.442695, %v1172_v17  ;;  %v1173_v20 = vsub.f32 %v1165_v14, %v1171_v18  ;;  %v655_v18 = vld [vmem:[%s4241_s7 + $0x30] sm:$0xff] }
 0x737   : > { %3276 = vpow2.f32 %v1174_v19  ;;  %v1176_v21 = vmul.f32 1.442695, %v1173_v20  ;;  %v656_v19 = vld [vmem:[%s4241_s7 + $0x38] sm:$0xff] }
 0x738   : > { %v1418_v20 = vpack.c.bf16 %v656_v19, %v655_v18 }
 0x739   : > { %3278 = vpow2.f32 %v1176_v21 }
 0x741   : > { %v3277_v23 = vpop.eup %3276 }
 0x742   : > { %v1178_v24 = vsel %vm3665_vm4, %v3277_v23, 0.0 }
 0x743   : > { %v3279_v25 = vpop.eup %3278  ;;  %v1180_v26 = vsel %vm758_vm2, %v1178_v24, 0.0 }
 0x744   : > { %1181 = vadd.xlane.f32.xlu0 %v1180_v26  ;;  %v1179_v27 = vsel %vm3665_vm4, %v3279_v25, 0.0 }
 0x745   : > { %v1183_v28 = vsel %vm758_vm2, %v1179_v27, 0.0 }
 0x746   : > { %1184 = vadd.xlane.f32.xlu1 %v1183_v28 }
 0x757   : > { %1290 = vrot.lane.b32.xlu1 %v3636_v12, %s4255_s29 }
 0x75a   : > { %1193 = vrot.lane.b32.xlu0 %v3638_v13, %s4258_s20 }
 0x75b   : > { %1288 = vrot.lane.b32.xlu1 %v3636_v12, %s4256_s22 }
 0x7d1   : > { %v1182_v29 = vpop.xlane.xlu0 %1181 }
 0x7d2   : > { %v1186_v30 = vmax.f32 %v1182_v29, 1e-20 }
 0x7d3   : > { %v1185_v31 = vpop.xlane.xlu1 %1184 }
 0x7d4   : > { %3280 = vrcp.f32 %v1186_v30  ;;  %v1187_v32 = vmax.f32 %v1185_v31, 1e-20 }
 0x7d5   : > { %v1194_v33 = vpop.permute.xlu0 %1193 }
 0x7d6   : > { %3282 = vrcp.f32 %v1187_v32  ;;  %3060 = vmatpush3.bf16.msra.mxu1 %v1194_v33 }
 0x7d7   : > { %3071 = vmatprep.subr.bf16.mxu1 %v3392_v60  ;;  %v1291_v38 = vpop.permute.xlu1 %1290 }
 0x7d8   : > { %v1296_v40 = vsel %vm758_vm2, %v1291_v38, 0 }
 0x7db   : > { %v1289_v12 = vpop.permute.xlu1 %1288 }
 0x7de   : > { %v3281_v34 = vpop.eup %3280 }
 0x7df   : > { %v1190_v36 = vmul.f32 %v3281_v34, %v1178_v24 }
 0x7e0   : > { %v3283_v35 = vpop.eup %3282 }
 0x7e1   : > { %v1191_v37 = vmul.f32 %v3283_v35, %v1179_v27 }
 0x7e3   : > { %v1192_v39 = vpack.c.bf16 %v1191_v37, %v1190_v36 }
 0x7e5   : > { %3062 = vmatmul.mubr.msk.bf16.vlgmr.msra.gmra.mrb[12].mxu1 %vm758_vm2, %v1192_v39 }
 0x7e6   : > { %3072 = vmatpush3.bf16.xpose.msra.mxu1 %v1296_v40  ;;  %3073 = vmatprep.mubr.msk.bf16.mxu1 %vm3393_vm1, %v3392_v60  ;;  %v2860_v40 = vld [vmem:[%s4242_s8] ss:$0 sm:$0xff] }
 0x7e7   : > { %3083 = vmatprep.subr.bf16.mxu1 %v3392_v60 }
 0x7ed   : > { %3074 = vmatmul.mubr.msk.bf16.vlgmr.msra.gmra.mrb[16].mxu1 %vm758_vm2, %v1289_v12 }
 0x7ee   : > { %3085 = vmatprep.mubr.msk.bf16.mxu1 %vm3393_vm1, %v3392_v60  ;;  %3084 = vmatpush3.bf16.msra.mxu1 %v1418_v20 }
 0x7ef   : > { %3101 = vmatprep.subr.bf16.mxu1 %v3392_v60 }
 0x8b8   : > { %v1233_v45 = vpop.f32.mrb[12].mxu1 }
 0x8b9   : > { %v3063_v46 = vpop.f32.mrb[13].mxu1 }
 0x8ba   : > { %v1236_v47 = vpop.f32.mrb[14].mxu1 }
 0x8bb   : > { %v1240_v48 = vpack.c.bf16 %v1236_v47, %v1233_v45  ;;  %v3064_v49 = vpop.f32.mrb[15].mxu1 }
 0x8bd   : > { %3068 = vmatmul.mubr.msk.bf16.vlgmr.msra.gmra.mrb[20].mxu0 %vm758_vm2, %v1240_v48 }
 0x8be   : > { %3079 = vmatprep.mubr.msk.bf16.mxu0 %vm3393_vm1, %v3392_v60 }
 0x8c0   : > { %v1332_v50 = vpop.f32.mrb[16].mxu1 }
 0x8c1   : > { %v1339_v51 = vmul.f32 0.25, %v1332_v50  ;;  %v3075_v52 = vpop.f32.mrb[17].mxu1 }
 0x8c2   : > { %v1335_v53 = vpop.f32.mrb[18].mxu1 }
 0x8c3   : > { %v1340_v54 = vmul.f32 0.25, %v1335_v53  ;;  %v3076_v55 = vpop.f32.mrb[19].mxu1  ;;  %v1341_v56 = vsel %vm3665_vm4, %v1339_v51, -1e+30 }
 0x8c4   : > { %v1343_v61 = vsel %vm758_vm2, %v1341_v56, -inf }
 0x8c5   : > { %1344 = vmax.xlane.f32.xlu1 %v1343_v61  ;;  %v1342_v0 = vsel %vm3665_vm4, %v1340_v54, -1e+30 }
 0x8c6   : > { %v1346_v3 = vsel %vm758_vm2, %v1342_v0, -inf }
 0x8c7   : > { %1347 = vmax.xlane.f32.xlu0 %v1346_v3 }
 0x8d6   : > { %1370 = vrot.lane.b32.xlu1 %v3638_v13, %s4256_s22 }
 0x952   : > { %v1345_v4 = vpop.xlane.xlu1 %1344 }
 0x953   : > { %v1349_v5 = vsub.f32 %v1341_v56, %v1345_v4 }
 0x954   : > { %v1348_v6 = vpop.xlane.xlu0 %1347 }
 0x955   : > { %v1351_v7 = vmul.f32 1.442695, %v1349_v5  ;;  %v1350_v8 = vsub.f32 %v1342_v0, %v1348_v6  ;;  %v660_v6 = vld [vmem:[#allocation2] sm:$0xff] }
 0x956   : > { %v1371_v9 = vpop.permute.xlu1 %1370 }
 0x957   : > { %3284 = vpow2.f32 %v1351_v7  ;;  %v1353_v10 = vmul.f32 1.442695, %v1350_v8  ;;  %3078 = vmatpush3.bf16.msra.mxu0 %v1371_v9  ;;  %v662_v8 = vld [vmem:[#allocation2 + $0x10] sm:$0xff]  ;;  %v663_v9 = vld [vmem:[#allocation2 + $0x18] sm:$0xff] }
 0x958   : > { %3089 = vmatprep.subr.bf16.mxu0 %v3392_v60 }
 0x959   : > { %3286 = vpow2.f32 %v1353_v10  ;;  %v1519_v10 = vpack.c.bf16 %v663_v9, %v662_v8 }
 0x961   : > { %v3285_v11 = vpop.eup %3284 }
 0x962   : > { %v1355_v14 = vsel %vm3665_vm4, %v3285_v11, 0.0  ;;  %v664_v11 = vld [vmem:[#allocation2 + $0x20] sm:$0xff] }
 0x963   : > { %v3287_v15 = vpop.eup %3286  ;;  %v1357_v16 = vsel %vm758_vm2, %v1355_v14, 0.0 }
 0x964   : > { %1358 = vadd.xlane.f32.xlu0 %v1357_v16  ;;  %v1356_v13 = vsel %vm3665_vm4, %v3287_v15, 0.0  ;;  %v666_v16 = vld [vmem:[#allocation2 + $0x30] sm:$0xff] }
 0x965   : > { %v1360_v17 = vsel %vm758_vm2, %v1356_v13, 0.0 }
 0x968   : > { %1361 = vadd.xlane.f32.xlu0 %v1360_v17 }
 0x990   : > { %v1279_v21 = vpop.f32.mrb[20].mxu0 }
 0x991   : > { %v1286_v23 = vadd.f32 %v1279_v21, %v3731_v59  ;;  %v3069_v24 = vpop.f32.mrb[21].mxu0 }
 0x992   : > { %v1282_v25 = vpop.f32.mrb[22].mxu0 }
 0x993   : > { %v1287_v26 = vadd.f32 %v1282_v25, %v3733_v2  ;;  %v3070_v27 = vpop.f32.mrb[23].mxu0 }
 0x994   : > { %v2861_v27 = vld [vmem:[%s4243_s9] ss:$0 sm:$0xff] }
 0x9f1   : > { %v1359_v28 = vpop.xlane.xlu0 %1358 }
 0x9f2   : > { %v1363_v29 = vmax.f32 %v1359_v28, 1e-20 }
 0x9f4   : > { %3288 = vrcp.f32 %v1363_v29 }
 0x9f5   : > { %v1362_v30 = vpop.xlane.xlu0 %1361 }
 0x9f6   : > { %v1364_v31 = vmax.f32 %v1362_v30, 1e-20 }
 0x9f8   : > { %3290 = vrcp.f32 %v1364_v31  ;;  %v2862_v31 = vld [vmem:[%s4244_s10] ss:$0 sm:$0xff] }
 0x9fe   : > { %v3289_v32 = vpop.eup %3288 }
 0x9ff   : > { %v1367_v34 = vmul.f32 %v3289_v32, %v1355_v14  ;;  %v665_v14 = vld [vmem:[#allocation2 + $0x28] sm:$0xff] }
 0xa00   : > { %v1520_v15 = vpack.c.bf16 %v665_v14, %v664_v11 }
 0xa02   : > { %v3291_v33 = vpop.eup %3290 }
 0xa03   : > { %v1368_v35 = vmul.f32 %v3291_v33, %v1356_v13  ;;  %v667_v13 = vld [vmem:[#allocation2 + $0x38] sm:$0xff] }
 0xa04   : > { %v1521_v17 = vpack.c.bf16 %v667_v13, %v666_v16 }
 0xa05   : > { %v1369_v36 = vpack.c.bf16 %v1368_v35, %v1367_v34 }
 0xa07   : > { %3080 = vmatmul.mubr.msk.bf16.vlgmr.msra.gmra.mrb[24].mxu0 %vm758_vm2, %v1369_v36  ;;  %v669_v36 = vld [vmem:[%s4247_s13] sm:$0xff] }
 0xa08   : > { %3097 = vmatprep.mubr.msk.bf16.mxu0 %vm3393_vm1, %v3392_v60 }
 0xada   : > { %v1410_v59 = vpop.f32.mrb[24].mxu0 }
 0xadb   : > { %v3081_v37 = vpop.f32.mrb[25].mxu0 }
 0xadc   : > { %v1413_v2 = vpop.f32.mrb[26].mxu0 }
 0xadd   : > { %v1417_v38 = vpack.c.bf16 %v1413_v2, %v1410_v59  ;;  %v3082_v39 = vpop.f32.mrb[27].mxu0  ;;  %v670_v59 = vld [vmem:[%s4247_s13 + $0x8] sm:$0xff]  ;;  %v671_v2 = vld [vmem:[%s4247_s13 + $0x10] sm:$0xff] }
 0xade   : > { %v1591_v37 = vpack.c.bf16 %v670_v59, %v669_v36  ;;  %v673_v39 = vld [vmem:[%s4247_s13 + $0x20] sm:$0xff] }
 0xadf   : > { %3086 = vmatmul.mubr.msk.bf16.vlgmr.msra.gmra.mrb[20].mxu1 %vm758_vm2, %v1417_v38 }
 0xae0   : > { %3117 = vmatprep.mubr.msk.bf16.mxu1 %vm3393_vm1, %v3392_v60  ;;  %3102 = vmatpush3.bf16.msra.mxu1 %v1591_v37 }
 0xae1   : > { %3103 = vmatprep.subr.bf16.mxu1 %v3392_v60 }
 0xbb2   : > { %v1456_v12 = vpop.f32.mrb[20].mxu1 }
 0xbb3   : > { %v1463_v42 = vadd.f32 %v1456_v12, %v1286_v23  ;;  %v3087_v43 = vpop.f32.mrb[21].mxu1 }
 0xbb4   : > { %v1459_v44 = vpop.f32.mrb[22].mxu1  ;;  %v676_v43 = vld [vmem:[%s4247_s13 + $0x38] sm:$0xff] }
 0xbb5   : > { %v1471_v45 = vadd.f32 %v2860_v40, %v1463_v42  ;;  %v1464_v46 = vadd.f32 %v1459_v44, %v1287_v26  ;;  %v3088_v47 = vpop.f32.mrb[23].mxu1  ;;  %v675_v42 = vld [vmem:[%s4247_s13 + $0x30] sm:$0xff] }
 0xbb6   : > { %v1594_v44 = vpack.c.bf16 %v676_v43, %v675_v42  ;;  %v679_v47 = vld [vmem:[%s4247_s13 + $0x50] sm:$0xff] }
 0xbb7   : > { %v1472_v48 = vadd.f32 %v2860_v40, %v1464_v46  ;;  %v1473_v49 = vadd.f32 %v1471_v45, %v3611_v57  ;;  %v674_v40 = vld [vmem:[%s4247_s13 + $0x28] sm:$0xff]  ;;  %v677_v45 = vld [vmem:[%s4247_s13 + $0x40] sm:$0xff] }
 0xbb8   : > { %v1593_v12 = vpack.c.bf16 %v674_v40, %v673_v39  ;;  %v678_v46 = vld [vmem:[%s4247_s13 + $0x48] sm:$0xff] }
 0xbb9   : > { %v1475_v50 = vsel %vm588_vm0, %v1473_v49, 0.0  ;;  %v1474_v51 = vadd.f32 %v1472_v48, %v3613_v58  ;;  %v661_v58 = vld [vmem:[#allocation2 + $0x8] sm:$0xff]  ;;  %v1595_v48 = vpack.c.bf16 %v678_v46, %v677_v45  ;;  %v2871_v46 = vld [vmem:[%s4239_s5 + $0x98] sm:$0xff] }
 0xbba   : > { %1476 = vadd.xlane.f32.xlu0 %v1475_v50  ;;  %v1518_v7 = vpack.c.bf16 %v661_v58, %v660_v6 }
 0xbbb   : > { %v1478_v52 = vsel %vm588_vm0, %v1474_v51, 0.0 }
 0xbbc   : > { %3090 = vmatpush3.bf16.msra.mxu0 %v1518_v7 }
 0xbbd   : > { %3091 = vmatprep.subr.bf16.mxu0 %v3392_v60 }
 0xbbe   : > { %1479 = vadd.xlane.f32.xlu0 %v1478_v52  ;;  %v682_v52 = vld [vmem:[%s4247_s13 + $0x68] sm:$0xff] }
 0xbc0   : > { %3092 = vmatpush3.bf16.msra.mxu0 %v1519_v10 }
 0xbc1   : > { %3093 = vmatprep.subr.bf16.mxu0 %v3392_v60 }
 0xbc4   : > { %3094 = vmatpush3.bf16.msra.mxu0 %v1520_v15 }
 0xbc5   : > { %3095 = vmatprep.subr.bf16.mxu0 %v3392_v60 }
 0xbc8   : > { %3096 = vmatpush3.bf16.msra.mxu0 %v1521_v17 }
 0xc47   : > { %v1477_v53 = vpop.xlane.xlu0 %1476 }
 0xc48   : > { %v1481_v54 = vmul.f32 0.015625, %v1477_v53 }
 0xc4a   : > { %v1483_v55 = vsub.f32 %v1473_v49, %v1481_v54  ;;  %v680_v49 = vld [vmem:[%s4247_s13 + $0x58] sm:$0xff]  ;;  %v683_v54 = vld [vmem:[%s4247_s13 + $0x70] sm:$0xff] }
 0xc4b   : > { %v1480_v56 = vpop.xlane.xlu0 %1479  ;;  %v1596_v50 = vpack.c.bf16 %v680_v49, %v679_v47  ;;  %v2870_v49 = vld [vmem:[%s4239_s5 + $0x90] sm:$0xff] }
 0xc4c   : > { %v1482_v61 = vmul.f32 0.015625, %v1480_v56  ;;  %v1485_v0 = vmul.f32 %v1483_v55, %v1483_v55 }
 0xc4e   : > { %v1484_v3 = vsub.f32 %v1474_v51, %v1482_v61  ;;  %v1487_v4 = vsel %vm588_vm0, %v1485_v0, 0.0  ;;  %v681_v51 = vld [vmem:[%s4247_s13 + $0x60] sm:$0xff] }
 0xc4f   : > { %1488 = vadd.xlane.f32.xlu0 %v1487_v4  ;;  %v1597_v53 = vpack.c.bf16 %v682_v52, %v681_v51  ;;  %v2863_v61 = vld [vmem:[%s4246_s12] ss:$0 sm:$0xff]  ;;  %v2873_v51 = vld [vmem:[%s4239_s5 + $0xa8] sm:$0xff]  ;;  %v2875_v52 = vld [vmem:[%s4239_s5 + $0xb8] sm:$0xff] }
 0xc50   : > { %v1486_v5 = vmul.f32 %v1484_v3, %v1484_v3 }
 0xc52   : > { %v1490_v57 = vsel %vm588_vm0, %v1486_v5, 0.0 }
 0xc53   : > { %1491 = vadd.xlane.f32.xlu0 %v1490_v57 }
 0xcdc   : > { %v1489_v18 = vpop.xlane.xlu0 %1488 }
 0xcdd   : > { %v1493_v19 = vmul.f32 0.015625, %v1489_v18 }
 0xcdf   : > { %v1495_v20 = vadd.f32 1e-05, %v1493_v19 }
 0xce0   : > { %v1492_v21 = vpop.xlane.xlu0 %1491 }
 0xce1   : > { %3292 = vrsqrt.f32 %v1495_v20  ;;  %v1494_v23 = vmul.f32 0.015625, %v1492_v21 }
 0xce3   : > { %v1496_v24 = vadd.f32 1e-05, %v1494_v23 }
 0xce5   : > { %3294 = vrsqrt.f32 %v1496_v24 }
 0xceb   : > { %v3293_v25 = vpop.eup %3292 }
 0xcec   : > { %v1499_v26 = vmul.f32 %v3293_v25, %v1483_v55  ;;  %v684_v55 = vld [vmem:[%s4247_s13 + $0x78] sm:$0xff] }
 0xced   : > { %v1598_v56 = vpack.c.bf16 %v684_v55, %v683_v54  ;;  %v2872_v54 = vld [vmem:[%s4239_s5 + $0xa0] sm:$0xff]  ;;  %v2874_v55 = vld [vmem:[%s4239_s5 + $0xb0] sm:$0xff] }
 0xcee   : > { %v1507_v29 = vmul.f32 %v2861_v27, %v1499_v26 }
 0xcef   : > { %v3295_v28 = vpop.eup %3294 }
 0xcf0   : > { %v1500_v30 = vmul.f32 %v3295_v28, %v1484_v3  ;;  %v3820_v33 = vadd.f32 %v2862_v31, %v1507_v29 }
 0xcf2   : > { %v1508_v32 = vmul.f32 %v2861_v27, %v1500_v30  ;;  %v2865_v27 = vld [vmem:[%s4248_s14] ss:$0 sm:$0xff] }
 0xcf4   : > { %v3822_v34 = vadd.f32 %v2862_v31, %v1508_v32 }
 0xcf6   : > { %v1517_v35 = vpack.c.bf16 %v3822_v34, %v3820_v33 }
 0xcf8   : > { %3098 = vmatmul.mubr.msk.bf16.vlgmr.msra.gmra.mrb[28].mxu0 %vm588_vm0, %v1517_v35 }
 0xcf9   : > { %1813 = vmatprep.mubr.bf16.mxu0 %v3391_v41  ;;  %v672_v41 = vld [vmem:[%s4247_s13 + $0x18] sm:$0xff] }
 0xcfa   : > { %v1592_v38 = vpack.c.bf16 %v672_v41, %v671_v2 }
 0xcfc   : > { %3104 = vmatpush3.bf16.msra.mxu1 %v1592_v38 }
 0xcfd   : > { %3105 = vmatprep.subr.bf16.mxu1 %v3392_v60 }
 0xd00   : > { %3106 = vmatpush3.bf16.msra.mxu1 %v1593_v12 }
 0xd01   : > { %3107 = vmatprep.subr.bf16.mxu1 %v3392_v60 }
 0xd04   : > { %3108 = vmatpush3.bf16.msra.mxu1 %v1594_v44 }
 0xd05   : > { %3109 = vmatprep.subr.bf16.mxu1 %v3392_v60 }
 0xd08   : > { %3110 = vmatpush3.bf16.msra.mxu1 %v1595_v48  ;;  %v2868_v48 = vld [vmem:[%s4239_s5 + $0x80] sm:$0xff] }
 0xd09   : > { %3111 = vmatprep.subr.bf16.mxu1 %v3392_v60 }
 0xd0c   : > { %3112 = vmatpush3.bf16.msra.mxu1 %v1596_v50  ;;  %v1759_v50 = vpack.c.bf16 %v2870_v49, %v2868_v48 }
 0xd0d   : > { %3113 = vmatprep.subr.bf16.mxu1 %v3392_v60 }
 0xd10   : > { %3114 = vmatpush3.bf16.msra.mxu1 %v1597_v53  ;;  %v1762_v53 = vpack.c.bf16 %v2875_v52, %v2873_v51 }
 0xd11   : > { %3115 = vmatprep.subr.bf16.mxu1 %v3392_v60 }
 0xd14   : > { %3116 = vmatpush3.bf16.msra.mxu1 %v1598_v56  ;;  %v1761_v56 = vpack.c.bf16 %v2874_v55, %v2872_v54 }
 0xd15   : > { %3127 = vmatprep.subr.bf16.mxu1 %v3392_v60 }
 0xdcb   : > { %v1565_v0 = vpop.f32.mrb[28].mxu0 }
 0xdcc   : > { %v1566_v3 = vadd.f32 %v2863_v61, %v1565_v0  ;;  %v3099_v4 = vpop.f32.mrb[29].mxu0  ;;  %v2879_v0 = vld [vmem:[%s4239_s5 + $0xd8] sm:$0xff] }
 0xdcd   : > { %v1568_v5 = vpop.f32.mrb[30].mxu0  ;;  %v2876_v4 = vld [vmem:[%s4239_s5 + $0xc0] sm:$0xff] }
 0xdce   : > { %v1574_v57 = vmul.f32 0.044715, %v1566_v3  ;;  %v1569_v6 = vadd.f32 %v2863_v61, %v1568_v5  ;;  %v3100_v58 = vpop.f32.mrb[31].mxu0  ;;  %v1572_v20 = vmul.f32 0.5, %v1566_v3  ;;  %v2877_v61 = vld [vmem:[%s4239_s5 + $0xc8] sm:$0xff]  ;;  %v2878_v5 = vld [vmem:[%s4239_s5 + $0xd0] sm:$0xff] }
 0xdcf   : > { %v2883_v58 = vld [vmem:[%s4239_s5 + $0xf8] sm:$0xff] }
 0xdd0   : > { %v1576_v7 = vmul.f32 %v1574_v57, %v1566_v3  ;;  %v1575_v8 = vmul.f32 0.044715, %v1569_v6  ;;  %v1573_v21 = vmul.f32 0.5, %v1569_v6  ;;  %v1763_v57 = vpack.c.bf16 %v2878_v5, %v2876_v4 }
 0xdd2   : > { %v1578_v9 = vmul.f32 %v1576_v7, %v1566_v3  ;;  %v1577_v10 = vmul.f32 %v1575_v8, %v1569_v6  ;;  %v2880_v7 = vld [vmem:[%s4239_s5 + $0xe0] sm:$0xff] }
 0xdd4   : > { %v1580_v11 = vadd.f32 %v1578_v9, %v1566_v3  ;;  %v1579_v14 = vmul.f32 %v1577_v10, %v1569_v6  ;;  %v1764_v3 = vpack.c.bf16 %v2879_v0, %v2877_v61  ;;  %v2882_v9 = vld [vmem:[%s4239_s5 + $0xf0] sm:$0xff] }
 0xdd5   : > { %v1765_v10 = vpack.c.bf16 %v2882_v9, %v2880_v7 }
 0xdd6   : > { %v1582_v15 = vmul.f32 0.7978846, %v1580_v11  ;;  %v1581_v16 = vadd.f32 %v1579_v14, %v1569_v6  ;;  %v2881_v6 = vld [vmem:[%s4239_s5 + $0xe8] sm:$0xff] }
 0xdd7   : > { %v1766_v8 = vpack.c.bf16 %v2883_v58, %v2881_v6 }
 0xdd8   : > { %3296 = vtanh.f32 %v1582_v15  ;;  %v1583_v13 = vmul.f32 0.7978846, %v1581_v16 }
 0xdda   : > { %3298 = vtanh.f32 %v1583_v13 }
 0xde2   : > { %v3297_v17 = vpop.eup %3296 }
 0xde3   : > { %v1586_v18 = vadd.f32 1.0, %v3297_v17 }
 0xde4   : > { %v3299_v19 = vpop.eup %3298 }
 0xde5   : > { %v1587_v23 = vadd.f32 1.0, %v3299_v19  ;;  %v1588_v24 = vmul.f32 %v1586_v18, %v1572_v20  ;;  %v2866_v20 = vld [vmem:[%s4249_s15] ss:$0 sm:$0xff] }
 0xde7   : > { %v1589_v25 = vmul.f32 %v1587_v23, %v1573_v21 }
 0xde9   : > { %v1590_v26 = vpack.c.bf16 %v1589_v25, %v1588_v24  ;;  %v2867_v25 = vld [vmem:[%s4250_s16] ss:$0 sm:$0xff] }
 0xdeb   : > { %3118 = vmatmul.mubr.bf16.vlgmr.msra.gmra.mrb[24].mxu1 %v1590_v26 }
 0xdec   : > { %3129 = vmatprep.mubr.msk.bf16.mxu1 %vm3393_vm1, %v3392_v60 }
 0xebe   : > { %v1639_v28 = vpop.f32.mrb[24].mxu1 }
 0xebf   : > { %v1640_v29 = vadd.f32 %v2865_v27, %v1639_v28  ;;  %v3119_v30 = vpop.f32.mrb[25].mxu1 }
 0xec0   : > { %v1642_v31 = vpop.f32.mrb[26].mxu1  ;;  %v2884_v30 = vld [vmem:[%s4240_s6 + $0x2] sm:$0x3] }
 0xec1   : > { %v1643_v32 = vadd.f32 %v2865_v27, %v1642_v31  ;;  %v3120_v35 = vpop.f32.mrb[27].mxu1  ;;  %v1646_v36 = vadd.f32 %v1640_v29, %v3820_v33  ;;  %v1771_v31 = vrot.slane %v2884_v30, %v3623_v63 }
 0xec2   : > { %v1775_v35 = vrot.slane %v2884_v30, %v704_v1 }
 0xec3   : > { %v1648_v59 = vsel %vm588_vm0, %v1646_v36, 0.0  ;;  %v1647_v37 = vadd.f32 %v1643_v32, %v3822_v34  ;;  %v2869_v34 = vld [vmem:[%s4239_s5 + $0x88] sm:$0xff] }
 0xec4   : > { %1649 = vadd.xlane.f32.xlu1 %v1648_v59  ;;  %v1760_v47 = vpack.c.bf16 %v2871_v46, %v2869_v34 }
 0xec5   : > { %v1651_v2 = vsel %vm588_vm0, %v1647_v37, 0.0 }
 0xec6   : > { %1652 = vadd.xlane.f32.xlu0 %v1651_v2  ;;  %1781 = vmatprep.subr.bf16.mxu0 %v1760_v47 }
 0xec7   : > { %1782 = vmatpush1.bf16.msra.mxu0 %v1759_v50 }
 0xec8   : > { %1783 = vmatprep.subr.bf16.mxu0 %v1762_v53 }
 0xecb   : > { %1784 = vmatpush1.bf16.msra.mxu0 %v1761_v56 }
 0xecc   : > { %1785 = vmatprep.subr.bf16.mxu0 %v1764_v3 }
 0xecf   : > { %1786 = vmatpush1.bf16.msra.mxu0 %v1763_v57 }
 0xed0   : > { %1787 = vmatprep.subr.bf16.mxu0 %v1766_v8 }
 0xed3   : > { %1788 = vmatpush1.bf16.msra.mxu0 %v1765_v10 }
 0xed4   : > { %3121 = vmatprep.subr.bf16.mxu0 %v3392_v60 }
 0xf51   : > { %v1650_v41 = vpop.xlane.xlu1 %1649 }
 0xf52   : > { %v1654_v38 = vmul.f32 0.015625, %v1650_v41 }
 0xf53   : > { %v1653_v39 = vpop.xlane.xlu0 %1652 }
 0xf54   : > { %v1656_v40 = vsub.f32 %v1646_v36, %v1654_v38  ;;  %v1655_v12 = vmul.f32 0.015625, %v1653_v39 }
 0xf56   : > { %v1657_v42 = vsub.f32 %v1647_v37, %v1655_v12  ;;  %v1658_v43 = vmul.f32 %v1656_v40, %v1656_v40 }
 0xf58   : > { %v1660_v44 = vsel %vm588_vm0, %v1658_v43, 0.0  ;;  %v1659_v45 = vmul.f32 %v1657_v42, %v1657_v42 }
 0xf59   : > { %1661 = vadd.xlane.f32.xlu0 %v1660_v44 }
 0xf5a   : > { %v1663_v33 = vsel %vm588_vm0, %v1659_v45, 0.0 }
 0xf5d   : > { %1664 = vadd.xlane.f32.xlu0 %v1663_v33 }
 0xfe6   : > { %v1662_v11 = vpop.xlane.xlu0 %1661 }
 0xfe7   : > { %v1666_v14 = vmul.f32 0.015625, %v1662_v11 }
 0xfe9   : > { %v1668_v15 = vadd.f32 1e-05, %v1666_v14 }
 0xfea   : > { %v1665_v16 = vpop.xlane.xlu0 %1664 }
 0xfeb   : > { %3300 = vrsqrt.f32 %v1668_v15  ;;  %v1667_v13 = vmul.f32 0.015625, %v1665_v16 }
 0xfed   : > { %v1669_v17 = vadd.f32 1e-05, %v1667_v13 }
 0xfef   : > { %3302 = vrsqrt.f32 %v1669_v17 }
 0xff5   : > { %v3301_v18 = vpop.eup %3300 }
 0xff6   : > { %v1672_v19 = vmul.f32 %v3301_v18, %v1656_v40 }
 0xff8   : > { %v1680_v23 = vmul.f32 %v2866_v20, %v1672_v19 }
 0xff9   : > { %v3303_v21 = vpop.eup %3302 }
 0xffa   : > { %v1673_v24 = vmul.f32 %v3303_v21, %v1657_v42  ;;  %v3953_v27 = vadd.f32 %v2867_v25, %v1680_v23 }
 0xffc   : > { %v1681_v26 = vmul.f32 %v2866_v20, %v1673_v24 }
 0xffe   : > { %v3955_v28 = vadd.f32 %v2867_v25, %v1681_v26 }
0x1000   : > { %v1758_v29 = vpack.c.bf16 %v3955_v28, %v3953_v27 }
0x1002   : > { %2916 = vmatmul.mubr.msk.bf16.vlgmr.msra.gmra.mrb[32].mxu0 %vm588_vm0, %v1758_v29 }
0x1003   : > { %3123 = vmatprep.mubr.msk.bf16.mxu0 %vm3393_vm1, %v3392_v60 }
0x10d5   : > { %v1815_v32 = vpop.f32.mrb[32].mxu0 }
0x10d6   : > { %v1817_v36 = vpop.f32.mrb[33].mxu0  ;;  %v1816_v37 = vadd.f32 %v1815_v32, %v1771_v31 }
0x10d7   : > { %v1819_v59 = vpop.f32.mrb[34].mxu0  ;;  %v1818_v38 = vadd.f32 %v1817_v36, %v1775_v35 }
0x10d8   : > { %v1820_v2 = vadd.f32 %v1819_v59, %v1771_v31  ;;  %v1821_v41 = vpop.f32.mrb[35].mxu0 }
0x10d9   : > { %v1822_v39 = vadd.f32 %v1821_v41, %v1775_v35 }
0x10da   : > { %v3968_v40 = vpack.c.bf16 %v1820_v2, %v1816_v37 }
0x10db   : > { %v3970_v12 = vpack.c.bf16 %v1822_v39, %v1818_v38 }
0x10dc   : > { %1955 = vrot.lane.b32.xlu1 %v3968_v40, %s3394_s0  ;;  %1826 = vrot.lane.b32.xlu0 %v3968_v40, %s3395_s30  ;;  %s4272_s0 = smov 32   ;;  %s4273_s30 = smov 96  }
0x10dd   : > { %3128 = vmatpush3.bf16.msra.mxu1 %v3970_v12 }
0x10de   : > { %3139 = vmatprep.subr.bf16.mxu1 %v3392_v60 }
0x10e0   : > { %1953 = vrot.lane.b32.xlu0 %v3968_v40, %s3396_s18 }
0x114e   : > { %v1827_v62 = vpop.permute.xlu0 %1826  ;;  %v1956_v1 = vpop.permute.xlu1 %1955 }
0x114f   : > { %v1832_v63 = vsel %vm758_vm2, %v1827_v62, 0  ;;  %v1961_v42 = vsel %vm758_vm2, %v1956_v1, 0 }
0x1150   : > { %3122 = vmatpush3.bf16.xpose.msra.mxu0 %v1832_v63 }
0x1151   : > { %3133 = vmatprep.subr.bf16.mxu0 %v3392_v60 }
0x1152   : > { %v1954_v43 = vpop.permute.xlu0 %1953 }
0x1157   : > { %3124 = vmatmul.mubr.msk.bf16.vlgmr.msra.gmra.mrb[36].mxu0 %vm758_vm2, %v3968_v40 }
0x1158   : > { %3134 = vmatpush3.bf16.xpose.msra.mxu0 %v1961_v42  ;;  %3135 = vmatprep.mubr.msk.bf16.mxu0 %vm3393_vm1, %v3392_v60 }
0x1159   : > { %3145 = vmatprep.subr.bf16.mxu0 %v3392_v60 }
0x115f   : > { %3136 = vmatmul.mubr.msk.bf16.vlgmr.msra.gmra.mrb[40].mxu0 %vm758_vm2, %v1954_v43 }
0x1160   : > { %3147 = vmatprep.mubr.msk.bf16.mxu0 %vm3393_vm1, %v3392_v60 }
0x122a   : > { %v1868_v44 = vpop.f32.mrb[36].mxu0 }
0x122b   : > { %v1875_v45 = vmul.f32 0.25, %v1868_v44  ;;  %v3125_v33 = vpop.f32.mrb[37].mxu0 }
0x122c   : > { %v1871_v34 = vpop.f32.mrb[38].mxu0 }
0x122d   : > { %v1876_v46 = vmul.f32 0.25, %v1871_v34  ;;  %v3126_v47 = vpop.f32.mrb[39].mxu0  ;;  %v1877_v48 = vsel %vm3665_vm4, %v1875_v45, -1e+30 }
0x122e   : > { %v1879_v49 = vsel %vm758_vm2, %v1877_v48, -inf  ;;  %v2885_v47 = vld [vmem:[%s4241_s7 + $0x40] sm:$0xff] }
0x122f   : > { %1880 = vmax.xlane.f32.xlu0 %v1879_v49  ;;  %v1878_v50 = vsel %vm3665_vm4, %v1876_v46, -1e+30 }
0x1230   : > { %v1882_v51 = vsel %vm758_vm2, %v1878_v50, -inf }
0x1231   : > { %1883 = vmax.xlane.f32.xlu1 %v1882_v51  ;;  %v2888_v51 = vld [vmem:[%s4241_s7 + $0x58] sm:$0xff] }
0x1232   : > { %v1997_v52 = vpop.f32.mrb[40].mxu0 }
0x1233   : > { %v2004_v53 = vmul.f32 0.25, %v1997_v52  ;;  %v3137_v54 = vpop.f32.mrb[41].mxu0 }
0x1234   : > { %v2000_v55 = vpop.f32.mrb[42].mxu0 }
0x1235   : > { %v2005_v56 = vmul.f32 0.25, %v2000_v55  ;;  %v3138_v61 = vpop.f32.mrb[43].mxu0  ;;  %v2006_v0 = vsel %vm3665_vm4, %v2004_v53, -1e+30 }
0x1236   : > { %v2008_v3 = vsel %vm758_vm2, %v2006_v0, -inf }
0x1237   : > { %2009 = vmax.xlane.f32.xlu0 %v2008_v3  ;;  %v2007_v4 = vsel %vm3665_vm4, %v2005_v56, -1e+30 }
0x1238   : > { %v2011_v5 = vsel %vm758_vm2, %v2007_v4, -inf }
0x123b   : > { %2012 = vmax.xlane.f32.xlu0 %v2011_v5 }
0x12bc   : > { %v1881_v57 = vpop.xlane.xlu0 %1880 }
0x12bd   : > { %v1885_v6 = vsub.f32 %v1877_v48, %v1881_v57  ;;  %v2886_v48 = vld [vmem:[%s4241_s7 + $0x48] sm:$0xff] }
0x12be   : > { %v1884_v58 = vpop.xlane.xlu1 %1883  ;;  %v1952_v49 = vpack.c.bf16 %v2886_v48, %v2885_v47 }
0x12bf   : > { %v1887_v7 = vmul.f32 1.442695, %v1885_v6  ;;  %v1886_v8 = vsub.f32 %v1878_v50, %v1884_v58  ;;  %v2887_v50 = vld [vmem:[%s4241_s7 + $0x50] sm:$0xff] }
0x12c0   : > { %v2084_v52 = vpack.c.bf16 %v2888_v51, %v2887_v50 }
0x12c1   : > { %3304 = vpow2.f32 %v1887_v7  ;;  %v1889_v9 = vmul.f32 1.442695, %v1886_v8 }
0x12c2   : > { %3146 = vmatpush3.bf16.msra.mxu0 %v2084_v52  ;;  %v2889_v52 = vld [vmem:[%s4241_s7 + $0x60] sm:$0xff] }
0x12c3   : > { %3306 = vpow2.f32 %v1889_v9  ;;  %3157 = vmatprep.subr.bf16.mxu0 %v3392_v60 }
0x12c4   : > { %v2010_v10 = vpop.xlane.xlu0 %2009 }
0x12c5   : > { %v2014_v11 = vsub.f32 %v2006_v0, %v2010_v10 }
0x12c7   : > { %v2016_v14 = vmul.f32 1.442695, %v2014_v11 }
0x12c8   : > { %v2013_v15 = vpop.xlane.xlu0 %2012 }
0x12c9   : > { %3308 = vpow2.f32 %v2016_v14  ;;  %v2015_v16 = vsub.f32 %v2007_v4, %v2013_v15 }
0x12cb   : > { %v3305_v13 = vpop.eup %3304  ;;  %v2018_v17 = vmul.f32 1.442695, %v2015_v16 }
0x12cc   : > { %v1891_v18 = vsel %vm3665_vm4, %v3305_v13, 0.0 }
0x12cd   : > { %v3307_v19 = vpop.eup %3306  ;;  %3310 = vpow2.f32 %v2018_v17  ;;  %v1893_v20 = vsel %vm758_vm2, %v1891_v18, 0.0 }
0x12ce   : > { %1894 = vadd.xlane.f32.xlu0 %v1893_v20  ;;  %v1892_v21 = vsel %vm3665_vm4, %v3307_v19, 0.0 }
0x12cf   : > { %v1896_v23 = vsel %vm758_vm2, %v1892_v21, 0.0 }
0x12d2   : > { %1897 = vadd.xlane.f32.xlu0 %v1896_v23 }
0x12d3   : > { %v3309_v24 = vpop.eup %3308 }
0x12d4   : > { %v2020_v25 = vsel %vm3665_vm4, %v3309_v24, 0.0 }
0x12d5   : > { %v2022_v26 = vsel %vm758_vm2, %v2020_v25, 0.0 }
0x12d6   : > { %2023 = vadd.xlane.f32.xlu0 %v2022_v26 }
0x12d7   : > { %v3311_v29 = vpop.eup %3310 }
0x12d8   : > { %v2021_v30 = vsel %vm3665_vm4, %v3311_v29, 0.0 }
0x12d9   : > { %v2025_v31 = vsel %vm758_vm2, %v2021_v30, 0.0 }
0x12da   : > { %2026 = vadd.xlane.f32.xlu1 %v2025_v31 }
0x12eb   : > { %2175 = vrot.lane.b32.xlu1 %v3968_v40, %s4272_s0 }
0x12ec   : > { %2036 = vrot.lane.b32.xlu0 %v3970_v12, %s3396_s18 }
0x12ef   : > { %2173 = vrot.lane.b32.xlu1 %v3968_v40, %s4273_s30 }
0x135b   : > { %v1895_v32 = vpop.xlane.xlu0 %1894 }
0x135c   : > { %v1899_v35 = vmax.f32 %v1895_v32, 1e-20 }
0x135e   : > { %3312 = vrcp.f32 %v1899_v35 }
0x135f   : > { %v1898_v36 = vpop.xlane.xlu0 %1897 }
0x1360   : > { %v1900_v59 = vmax.f32 %v1898_v36, 1e-20 }
0x1362   : > { %3314 = vrcp.f32 %v1900_v59 }
0x1363   : > { %v2024_v37 = vpop.xlane.xlu0 %2023 }
0x1364   : > { %v2028_v2 = vmax.f32 %v2024_v37, 1e-20 }
0x1366   : > { %3316 = vrcp.f32 %v2028_v2 }
0x1367   : > { %v2027_v41 = vpop.xlane.xlu1 %2026  ;;  %v2037_v43 = vpop.permute.xlu0 %2036 }
0x1368   : > { %v2029_v38 = vmax.f32 %v2027_v41, 1e-20  ;;  %v3313_v39 = vpop.eup %3312 }
0x1369   : > { %v1903_v63 = vmul.f32 %v3313_v39, %v1891_v18 }
0x136a   : > { %3318 = vrcp.f32 %v2029_v38 }
0x136b   : > { %v2176_v4 = vpop.permute.xlu1 %2175 }
0x136c   : > { %v3315_v62 = vpop.eup %3314  ;;  %v2181_v58 = vsel %vm758_vm2, %v2176_v4, 0 }
0x136d   : > { %v1904_v1 = vmul.f32 %v3315_v62, %v1892_v21 }
0x136f   : > { %v1905_v42 = vpack.c.bf16 %v1904_v1, %v1903_v63  ;;  %v2174_v7 = vpop.permute.xlu1 %2173 }
0x1370   : > { %v3317_v44 = vpop.eup %3316 }
0x1371   : > { %3130 = vmatmul.mubr.msk.bf16.vlgmr.msra.gmra.mrb[28].mxu1 %vm758_vm2, %v1905_v42  ;;  %v2032_v33 = vmul.f32 %v3317_v44, %v2020_v25 }
0x1372   : > { %3140 = vmatpush3.bf16.msra.mxu1 %v2037_v43  ;;  %3141 = vmatprep.mubr.msk.bf16.mxu1 %vm3393_vm1, %v3392_v60 }
0x1373   : > { %3151 = vmatprep.subr.bf16.mxu1 %v3392_v60 }
0x1374   : > { %v3319_v45 = vpop.eup %3318 }
0x1375   : > { %v2033_v34 = vmul.f32 %v3319_v45, %v2021_v30 }
0x1377   : > { %v2034_v46 = vpack.c.bf16 %v2033_v34, %v2032_v33 }
0x1379   : > { %3142 = vmatmul.mubr.msk.bf16.vlgmr.msra.gmra.mrb[32].mxu1 %vm758_vm2, %v2034_v46 }
0x137a   : > { %3153 = vmatprep.mubr.msk.bf16.mxu1 %vm3393_vm1, %v3392_v60  ;;  %3152 = vmatpush3.bf16.msra.mxu1 %v1952_v49 }
0x137b   : > { %3163 = vmatprep.subr.bf16.mxu1 %v3392_v60 }
0x1444   : > { %v1944_v53 = vpop.f32.mrb[28].mxu1 }
0x1445   : > { %v3131_v54 = vpop.f32.mrb[29].mxu1 }
0x1446   : > { %v1947_v55 = vpop.f32.mrb[30].mxu1 }
0x1447   : > { %v1951_v56 = vpack.c.bf16 %v1947_v55, %v1944_v53  ;;  %v3132_v61 = vpop.f32.mrb[31].mxu1  ;;  %v2890_v53 = vld [vmem:[%s4241_s7 + $0x68] sm:$0xff] }
0x1448   : > { %v2303_v54 = vpack.c.bf16 %v2890_v53, %v2889_v52 }
0x1449   : > { %3154 = vmatmul.mubr.msk.bf16.vlgmr.msra.gmra.mrb[36].mxu1 %vm758_vm2, %v1951_v56 }
0x144a   : > { %3165 = vmatprep.mubr.msk.bf16.mxu1 %vm3393_vm1, %v3392_v60 }
0x144c   : > { %v2076_v0 = vpop.f32.mrb[32].mxu1 }
0x144d   : > { %v3143_v3 = vpop.f32.mrb[33].mxu1 }
0x144e   : > { %v2079_v5 = vpop.f32.mrb[34].mxu1 }
0x144f   : > { %v2083_v57 = vpack.c.bf16 %v2079_v5, %v2076_v0  ;;  %v3144_v6 = vpop.f32.mrb[35].mxu1 }
0x1451   : > { %3148 = vmatmul.mubr.msk.bf16.vlgmr.msra.gmra.mrb[44].mxu0 %vm758_vm2, %v2083_v57 }
0x1452   : > { %3158 = vmatpush3.bf16.xpose.msra.mxu0 %v2181_v58  ;;  %3159 = vmatprep.mubr.msk.bf16.mxu0 %vm3393_vm1, %v3392_v60 }
0x1453   : > { %3169 = vmatprep.subr.bf16.mxu0 %v3392_v60 }
0x1459   : > { %3160 = vmatmul.mubr.msk.bf16.vlgmr.msra.gmra.mrb[48].mxu0 %vm758_vm2, %v2174_v7 }
0x145a   : > { %3171 = vmatprep.mubr.msk.bf16.mxu0 %vm3393_vm1, %v3392_v60  ;;  %3170 = vmatpush3.bf16.msra.mxu0 %v2303_v54 }
0x145b   : > { %3181 = vmatprep.subr.bf16.mxu0 %v3392_v60 }
0x151c   : > { %v2166_v8 = vpop.f32.mrb[36].mxu1 }
0x151d   : > { %v3155_v9 = vpop.f32.mrb[37].mxu1 }
0x151e   : > { %v2169_v10 = vpop.f32.mrb[38].mxu1 }
0x151f   : > { %v3156_v11 = vpop.f32.mrb[39].mxu1 }
0x1524   : > { %v2122_v14 = vpop.f32.mrb[44].mxu0 }
0x1525   : > { %v4053_v15 = vadd.f32 %v2166_v8, %v2122_v14  ;;  %v3149_v16 = vpop.f32.mrb[45].mxu0 }
0x1526   : > { %v2125_v13 = vpop.f32.mrb[46].mxu0 }
0x1527   : > { %v4055_v17 = vadd.f32 %v2169_v10, %v2125_v13  ;;  %v3150_v18 = vpop.f32.mrb[47].mxu0 }
0x152c   : > { %v2217_v19 = vpop.f32.mrb[48].mxu0 }
0x152d   : > { %v2224_v20 = vmul.f32 0.25, %v2217_v19  ;;  %v3161_v21 = vpop.f32.mrb[49].mxu0 }
0x152e   : > { %v2220_v23 = vpop.f32.mrb[50].mxu0 }
0x152f   : > { %v2225_v24 = vmul.f32 0.25, %v2220_v23  ;;  %v3162_v25 = vpop.f32.mrb[51].mxu0  ;;  %v2226_v26 = vsel %vm3665_vm4, %v2224_v20, -1e+30 }
0x1530   : > { %v2228_v29 = vsel %vm758_vm2, %v2226_v26, -inf }
0x1531   : > { %2229 = vmax.xlane.f32.xlu0 %v2228_v29  ;;  %v2227_v30 = vsel %vm3665_vm4, %v2225_v24, -1e+30 }
0x1532   : > { %v2231_v31 = vsel %vm758_vm2, %v2227_v30, -inf }
0x1533   : > { %2232 = vmax.xlane.f32.xlu1 %v2231_v31  ;;  %v2892_v31 = vld [vmem:[%s4241_s7 + $0x78] sm:$0xff] }
0x1544   : > { %2255 = vrot.lane.b32.xlu1 %v3970_v12, %s4273_s30  ;;  %s4276_s30 = sshll.u32 %s4278_s25, 4 }
0x1545   : > { %s577_s22 = scalar_lea.vmem %s4251_s17, %s4276_s30 }
0x1548   : > { %2350 = vrot.lane.b32.xlu1 %v3968_v40, %s4274_s1 }
0x15be   : > { %v2230_v32 = vpop.xlane.xlu0 %2229 }
0x15bf   : > { %v2234_v35 = vsub.f32 %v2226_v26, %v2230_v32 }
0x15c0   : > { %v2233_v36 = vpop.xlane.xlu1 %2232 }
0x15c1   : > { %v2236_v59 = vmul.f32 1.442695, %v2234_v35  ;;  %v2235_v37 = vsub.f32 %v2227_v30, %v2233_v36  ;;  %v2891_v30 = vld [vmem:[%s4241_s7 + $0x70] sm:$0xff] }
0x15c2   : > { %v2480_v32 = vpack.c.bf16 %v2892_v31, %v2891_v30 }
0x15c3   : > { %3320 = vpow2.f32 %v2236_v59  ;;  %v2238_v2 = vmul.f32 1.442695, %v2235_v37 }
0x15c4   : > { %v2256_v41 = vpop.permute.xlu1 %2255 }
0x15c5   : > { %3322 = vpow2.f32 %v2238_v2  ;;  %3164 = vmatpush3.bf16.msra.mxu1 %v2256_v41 }
0x15c6   : > { %3175 = vmatprep.subr.bf16.mxu1 %v3392_v60 }
0x15cd   : > { %v3321_v38 = vpop.eup %3320 }
0x15ce   : > { %v2240_v39 = vsel %vm3665_vm4, %v3321_v38, 0.0 }
0x15cf   : > { %v3323_v62 = vpop.eup %3322  ;;  %v2242_v63 = vsel %vm758_vm2, %v2240_v39, 0.0 }
0x15d0   : > { %2243 = vadd.xlane.f32.xlu0 %v2242_v63  ;;  %v2241_v1 = vsel %vm3665_vm4, %v3323_v62, 0.0 }
0x15d1   : > { %v2245_v42 = vsel %vm758_vm2, %v2241_v1, 0.0 }
0x15d4   : > { %2246 = vadd.xlane.f32.xlu0 %v2245_v42 }
0x15ea   : > { %2352 = vrot.lane.b32.xlu0 %v3968_v40, %s4275_s23  ;;  %v2351_v40 = vpop.permute.xlu1 %2350 }
0x165d   : > { %v2244_v43 = vpop.xlane.xlu0 %2243 }
0x165e   : > { %v2248_v44 = vmax.f32 %v2244_v43, 1e-20 }
0x1660   : > { %3324 = vrcp.f32 %v2248_v44 }
0x1661   : > { %v2247_v45 = vpop.xlane.xlu0 %2246 }
0x1662   : > { %v2249_v33 = vmax.f32 %v2247_v45, 1e-20 }
0x1664   : > { %3326 = vrcp.f32 %v2249_v33 }
0x1665   : > { %v2353_v49 = vpop.permute.xlu0 %2352 }
0x1666   : > { %v2358_v51 = vsel %vm758_vm2, %v2353_v49, 0 }
0x166a   : > { %v3325_v34 = vpop.eup %3324 }
0x166b   : > { %v2252_v47 = vmul.f32 %v3325_v34, %v2240_v39 }
0x166e   : > { %v3327_v46 = vpop.eup %3326 }
0x166f   : > { %v2253_v48 = vmul.f32 %v3327_v46, %v2241_v1  ;;  %v2929_v46 = vld [vmem:[%s4242_s8 + $0x1] ss:$0 sm:$0xff] }
0x1671   : > { %v2254_v50 = vpack.c.bf16 %v2253_v48, %v2252_v47 }
0x1673   : > { %3166 = vmatmul.mubr.msk.bf16.vlgmr.msra.gmra.mrb[40].mxu1 %vm758_vm2, %v2254_v50 }
0x1674   : > { %3176 = vmatpush3.bf16.xpose.msra.mxu1 %v2358_v51  ;;  %3177 = vmatprep.mubr.msk.bf16.mxu1 %vm3393_vm1, %v3392_v60 }
0x1675   : > { %3187 = vmatprep.subr.bf16.mxu1 %v3392_v60 }
0x167b   : > { %3178 = vmatmul.mubr.msk.bf16.vlgmr.msra.gmra.mrb[44].mxu1 %vm758_vm2, %v2351_v40 }
0x167c   : > { %3189 = vmatprep.mubr.msk.bf16.mxu1 %vm3393_vm1, %v3392_v60  ;;  %3188 = vmatpush3.bf16.msra.mxu1 %v2480_v32 }
0x167d   : > { %3205 = vmatprep.subr.bf16.mxu1 %v3392_v60 }
0x1746   : > { %v2295_v55 = vpop.f32.mrb[40].mxu1 }
0x1747   : > { %v3167_v56 = vpop.f32.mrb[41].mxu1 }
0x1748   : > { %v2298_v61 = vpop.f32.mrb[42].mxu1 }
0x1749   : > { %v2302_v0 = vpack.c.bf16 %v2298_v61, %v2295_v55  ;;  %v3168_v3 = vpop.f32.mrb[43].mxu1 }
0x174b   : > { %3172 = vmatmul.mubr.msk.bf16.vlgmr.msra.gmra.mrb[52].mxu0 %vm758_vm2, %v2302_v0 }
0x174c   : > { %3183 = vmatprep.mubr.msk.bf16.mxu0 %vm3393_vm1, %v3392_v60 }
0x174e   : > { %v2394_v4 = vpop.f32.mrb[44].mxu1 }
0x174f   : > { %v2401_v5 = vmul.f32 0.25, %v2394_v4  ;;  %v3179_v57 = vpop.f32.mrb[45].mxu1 }
0x1750   : > { %v2397_v6 = vpop.f32.mrb[46].mxu1 }
0x1751   : > { %v2402_v58 = vmul.f32 0.25, %v2397_v6  ;;  %v3180_v7 = vpop.f32.mrb[47].mxu1  ;;  %v2403_v8 = vsel %vm3665_vm4, %v2401_v5, -1e+30 }
0x1752   : > { %v2405_v9 = vsel %vm758_vm2, %v2403_v8, -inf }
0x1753   : > { %2406 = vmax.xlane.f32.xlu1 %v2405_v9  ;;  %v2404_v10 = vsel %vm3665_vm4, %v2402_v58, -1e+30 }
0x1754   : > { %v2408_v11 = vsel %vm758_vm2, %v2404_v10, -inf }
0x1755   : > { %2409 = vmax.xlane.f32.xlu0 %v2408_v11  ;;  %v1726_v11 = vld [vmem:[#allocation2 + $0x48] sm:$0xff] }
0x17e0   : > { %v2407_v14 = vpop.xlane.xlu1 %2406 }
0x17e1   : > { %v2411_v16 = vsub.f32 %v2403_v8, %v2407_v14 }
0x17e2   : > { %v2410_v13 = vpop.xlane.xlu0 %2409 }
0x17e3   : > { %v2413_v18 = vmul.f32 1.442695, %v2411_v16  ;;  %v2412_v19 = vsub.f32 %v2404_v10, %v2410_v13  ;;  %v1725_v10 = vld [vmem:[#allocation2 + $0x40] sm:$0xff]  ;;  %v1727_v16 = vld [vmem:[#allocation2 + $0x50] sm:$0xff]  ;;  %v1728_v13 = vld [vmem:[#allocation2 + $0x58] sm:$0xff] }
0x17e4   : > { %v2580_v14 = vpack.c.bf16 %v1726_v11, %v1725_v10 }
0x17e5   : > { %3328 = vpow2.f32 %v2413_v18  ;;  %v2415_v20 = vmul.f32 1.442695, %v2412_v19  ;;  %v2581_v18 = vpack.c.bf16 %v1728_v13, %v1727_v16  ;;  %v1729_v19 = vld [vmem:[#allocation2 + $0x60] sm:$0xff] }
0x17e7   : > { %3330 = vpow2.f32 %v2415_v20  ;;  %v1730_v20 = vld [vmem:[#allocation2 + $0x68] sm:$0xff] }
0x17ef   : > { %v3329_v21 = vpop.eup %3328 }
0x17f0   : > { %v2417_v23 = vsel %vm3665_vm4, %v3329_v21, 0.0  ;;  %v2582_v21 = vpack.c.bf16 %v1730_v20, %v1729_v19 }
0x17f1   : > { %v3331_v24 = vpop.eup %3330  ;;  %v2419_v25 = vsel %vm758_vm2, %v2417_v23, 0.0 }
0x17f2   : > { %2420 = vadd.xlane.f32.xlu0 %v2419_v25  ;;  %v2418_v26 = vsel %vm3665_vm4, %v3331_v24, 0.0  ;;  %v1732_v24 = vld [vmem:[#allocation2 + $0x78] sm:$0xff] }
0x17f3   : > { %v2422_v29 = vsel %vm758_vm2, %v2418_v26, 0.0 }
0x17f4   : > { %2423 = vadd.xlane.f32.xlu1 %v2422_v29 }
0x1808   : > { %2432 = vrot.lane.b32.xlu0 %v3970_v12, %s4274_s1 }
0x181e   : > { %v2341_v22 = vpop.f32.mrb[52].mxu0 }
0x181f   : > { %v2348_v35 = vadd.f32 %v2341_v22, %v4053_v15  ;;  %v3173_v36 = vpop.f32.mrb[53].mxu0 }
0x1820   : > { %v2344_v59 = vpop.f32.mrb[54].mxu0 }
0x1821   : > { %v2349_v37 = vadd.f32 %v2344_v59, %v4055_v17  ;;  %v3174_v12 = vpop.f32.mrb[55].mxu0  ;;  %v2930_v59 = vld [vmem:[%s4243_s9 + $0x1] ss:$0 sm:$0xff] }
0x187f   : > { %v2421_v2 = vpop.xlane.xlu0 %2420 }
0x1880   : > { %v2425_v41 = vmax.f32 %v2421_v2, 1e-20 }
0x1881   : > { %v2424_v38 = vpop.xlane.xlu1 %2423 }
0x1882   : > { %3332 = vrcp.f32 %v2425_v41  ;;  %v2426_v39 = vmax.f32 %v2424_v38, 1e-20  ;;  %v2931_v41 = vld [vmem:[%s4244_s10 + $0x1] ss:$0 sm:$0xff] }
0x1883   : > { %v2433_v62 = vpop.permute.xlu0 %2432 }
0x1884   : > { %3334 = vrcp.f32 %v2426_v39  ;;  %3182 = vmatpush3.bf16.msra.mxu0 %v2433_v62 }
0x1885   : > { %3193 = vmatprep.subr.bf16.mxu0 %v3392_v60 }
0x188c   : > { %v3333_v63 = vpop.eup %3332 }
0x188d   : > { %v2429_v42 = vmul.f32 %v3333_v63, %v2417_v23  ;;  %v1731_v23 = vld [vmem:[#allocation2 + $0x70] sm:$0xff] }
0x188e   : > { %v3335_v1 = vpop.eup %3334  ;;  %v2583_v25 = vpack.c.bf16 %v1732_v24, %v1731_v23 }
0x188f   : > { %v2430_v43 = vmul.f32 %v3335_v1, %v2418_v26  ;;  %v2897_v1 = vld [vmem:[%s4247_s13 + $0x80] sm:$0xff] }
0x1891   : > { %v2431_v15 = vpack.c.bf16 %v2430_v43, %v2429_v42  ;;  %v2898_v42 = vld [vmem:[%s4247_s13 + $0x88] sm:$0xff] }
0x1892   : > { %v2653_v43 = vpack.c.bf16 %v2898_v42, %v2897_v1 }
0x1893   : > { %3184 = vmatmul.mubr.msk.bf16.vlgmr.msra.gmra.mrb[56].mxu0 %vm758_vm2, %v2431_v15  ;;  %v2899_v15 = vld [vmem:[%s4247_s13 + $0x90] sm:$0xff] }
0x1894   : > { %3201 = vmatprep.mubr.msk.bf16.mxu0 %vm3393_vm1, %v3392_v60  ;;  %3194 = vmatpush3.bf16.msra.mxu0 %v2580_v14 }
0x1895   : > { %3195 = vmatprep.subr.bf16.mxu0 %v3392_v60 }
0x1898   : > { %3196 = vmatpush3.bf16.msra.mxu0 %v2581_v18 }
0x1899   : > { %3197 = vmatprep.subr.bf16.mxu0 %v3392_v60 }
0x189c   : > { %3198 = vmatpush3.bf16.msra.mxu0 %v2582_v21 }
0x189d   : > { %3199 = vmatprep.subr.bf16.mxu0 %v3392_v60 }
0x18a0   : > { %3200 = vmatpush3.bf16.msra.mxu0 %v2583_v25 }
0x1966   : > { %v2472_v17 = vpop.f32.mrb[56].mxu0 }
0x1967   : > { %v3185_v44 = vpop.f32.mrb[57].mxu0 }
0x1968   : > { %v2475_v45 = vpop.f32.mrb[58].mxu0 }
0x1969   : > { %v2479_v33 = vpack.c.bf16 %v2475_v45, %v2472_v17  ;;  %v3186_v34 = vpop.f32.mrb[59].mxu0  ;;  %v2900_v17 = vld [vmem:[%s4247_s13 + $0x98] sm:$0xff]  ;;  %v2901_v45 = vld [vmem:[%s4247_s13 + $0xa0] sm:$0xff] }
0x196a   : > { %v2654_v44 = vpack.c.bf16 %v2900_v17, %v2899_v15 }
0x196b   : > { %3190 = vmatmul.mubr.msk.bf16.vlgmr.msra.gmra.mrb[48].mxu1 %vm758_vm2, %v2479_v33  ;;  %v2902_v33 = vld [vmem:[%s4247_s13 + $0xa8] sm:$0xff] }
0x196c   : > { %3221 = vmatprep.mubr.msk.bf16.mxu1 %vm3393_vm1, %v3392_v60  ;;  %3206 = vmatpush3.bf16.msra.mxu1 %v2653_v43  ;;  %v2655_v34 = vpack.c.bf16 %v2902_v33, %v2901_v45 }
0x196d   : > { %3207 = vmatprep.subr.bf16.mxu1 %v3392_v60 }
0x1970   : > { %3208 = vmatpush3.bf16.msra.mxu1 %v2654_v44 }
0x1971   : > { %3209 = vmatprep.subr.bf16.mxu1 %v3392_v60 }
0x1974   : > { %3210 = vmatpush3.bf16.msra.mxu1 %v2655_v34 }
0x1975   : > { %3211 = vmatprep.subr.bf16.mxu1 %v3392_v60 }
0x1a3e   : > { %v2518_v47 = vpop.f32.mrb[48].mxu1 }
0x1a3f   : > { %v2525_v48 = vadd.f32 %v2518_v47, %v2348_v35  ;;  %v3191_v49 = vpop.f32.mrb[49].mxu1  ;;  %v2904_v47 = vld [vmem:[%s4247_s13 + $0xb8] sm:$0xff] }
0x1a40   : > { %v2521_v50 = vpop.f32.mrb[50].mxu1  ;;  %v2905_v49 = vld [vmem:[%s4247_s13 + $0xc0] sm:$0xff] }
0x1a41   : > { %v2533_v51 = vadd.f32 %v2929_v46, %v2525_v48  ;;  %v2526_v40 = vadd.f32 %v2521_v50, %v2349_v37  ;;  %v3192_v52 = vpop.f32.mrb[51].mxu1  ;;  %v2906_v50 = vld [vmem:[%s4247_s13 + $0xc8] sm:$0xff] }
0x1a42   : > { %v2908_v52 = vld [vmem:[%s4247_s13 + $0xd8] sm:$0xff] }
0x1a43   : > { %v2534_v53 = vadd.f32 %v2929_v46, %v2526_v40  ;;  %v2535_v54 = vadd.f32 %v2533_v51, %v3953_v27  ;;  %v2903_v46 = vld [vmem:[%s4247_s13 + $0xb0] sm:$0xff]  ;;  %v2657_v40 = vpack.c.bf16 %v2906_v50, %v2905_v49 }
0x1a44   : > { %v2656_v48 = vpack.c.bf16 %v2904_v47, %v2903_v46  ;;  %v2907_v51 = vld [vmem:[%s4247_s13 + $0xd0] sm:$0xff] }
0x1a45   : > { %v2537_v55 = vsel %vm588_vm0, %v2535_v54, 0.0  ;;  %v2536_v56 = vadd.f32 %v2534_v53, %v3955_v28  ;;  %v2658_v53 = vpack.c.bf16 %v2908_v52, %v2907_v51  ;;  %v2935_v52 = vld [vmem:[%s4249_s15 + $0x1] ss:$0 sm:$0xff] }
0x1a46   : > { %2538 = vadd.xlane.f32.xlu1 %v2537_v55  ;;  %3212 = vmatpush3.bf16.msra.mxu1 %v2656_v48  ;;  %v2910_v55 = vld [vmem:[%s4247_s13 + $0xe8] sm:$0xff] }
0x1a47   : > { %v2540_v61 = vsel %vm588_vm0, %v2536_v56, 0.0  ;;  %3213 = vmatprep.subr.bf16.mxu1 %v3392_v60 }
0x1a4a   : > { %2541 = vadd.xlane.f32.xlu1 %v2540_v61  ;;  %3214 = vmatpush3.bf16.msra.mxu1 %v2657_v40  ;;  %v2911_v61 = vld [vmem:[%s4247_s13 + $0xf0] sm:$0xff] }
0x1a4b   : > { %3215 = vmatprep.subr.bf16.mxu1 %v3392_v60 }
0x1a4e   : > { %3216 = vmatpush3.bf16.msra.mxu1 %v2658_v53 }
0x1a4f   : > { %3217 = vmatprep.subr.bf16.mxu1 %v3392_v60 }
0x1ad3   : > { %v2539_v0 = vpop.xlane.xlu1 %2538 }
0x1ad4   : > { %v2543_v3 = vmul.f32 0.015625, %v2539_v0  ;;  %v2912_v0 = vld [vmem:[%s4247_s13 + $0xf8] sm:$0xff] }
0x1ad6   : > { %v2545_v4 = vsub.f32 %v2535_v54, %v2543_v3  ;;  %v2909_v54 = vld [vmem:[%s4247_s13 + $0xe0] sm:$0xff]  ;;  %v2660_v3 = vpack.c.bf16 %v2912_v0, %v2911_v61 }
0x1ad7   : > { %v2542_v5 = vpop.xlane.xlu1 %2541 }
0x1ad8   : > { %v2544_v57 = vmul.f32 0.015625, %v2542_v5  ;;  %v2547_v6 = vmul.f32 %v2545_v4, %v2545_v4 }
0x1ada   : > { %v2546_v58 = vsub.f32 %v2536_v56, %v2544_v57  ;;  %v2549_v7 = vsel %vm588_vm0, %v2547_v6, 0.0  ;;  %v2659_v56 = vpack.c.bf16 %v2910_v55, %v2909_v54  ;;  %v2936_v54 = vld [vmem:[%s4250_s16 + $0x1] ss:$0 sm:$0xff] }
0x1adb   : > { %2550 = vadd.xlane.f32.xlu1 %v2549_v7 }
0x1adc   : > { %v2548_v8 = vmul.f32 %v2546_v58, %v2546_v58  ;;  %3218 = vmatpush3.bf16.msra.mxu1 %v2659_v56 }
0x1add   : > { %3219 = vmatprep.subr.bf16.mxu1 %v3392_v60 }
0x1ade   : > { %v2552_v9 = vsel %vm588_vm0, %v2548_v8, 0.0 }
0x1adf   : > { %2553 = vadd.xlane.f32.xlu1 %v2552_v9 }
0x1ae0   : > { %3220 = vmatpush3.bf16.msra.mxu1 %v2660_v3 }
0x1b68   : > { %v2551_v26 = vpop.xlane.xlu1 %2550 }
0x1b69   : > { %v2555_v29 = vmul.f32 0.015625, %v2551_v26 }
0x1b6b   : > { %v2557_v30 = vadd.f32 1e-05, %v2555_v29 }
0x1b6c   : > { %v2554_v31 = vpop.xlane.xlu1 %2553 }
0x1b6d   : > { %3336 = vrsqrt.f32 %v2557_v30  ;;  %v2556_v32 = vmul.f32 0.015625, %v2554_v31 }
0x1b6f   : > { %v2558_v22 = vadd.f32 1e-05, %v2556_v32 }
0x1b71   : > { %3338 = vrsqrt.f32 %v2558_v22  ;;  %v2934_v22 = vld [vmem:[%s4248_s14 + $0x1] ss:$0 sm:$0xff] }
0x1b77   : > { %v3337_v35 = vpop.eup %3336 }
0x1b78   : > { %v2561_v36 = vmul.f32 %v3337_v35, %v2545_v4  ;;  %v2932_v4 = vld [vmem:[%s4246_s12 + $0x1] ss:$0 sm:$0xff] }
0x1b7a   : > { %v2569_v12 = vmul.f32 %v2930_v59, %v2561_v36 }
0x1b7b   : > { %v3339_v37 = vpop.eup %3338 }
0x1b7c   : > { %v2562_v2 = vmul.f32 %v3339_v37, %v2546_v58  ;;  %v4142_v39 = vadd.f32 %v2931_v41, %v2569_v12 }
0x1b7e   : > { %v2570_v38 = vmul.f32 %v2930_v59, %v2562_v2 }
0x1b80   : > { %v4144_v62 = vadd.f32 %v2931_v41, %v2570_v38 }
0x1b82   : > { %v2579_v63 = vpack.c.bf16 %v4144_v62, %v4142_v39 }
0x1b84   : > { %3202 = vmatmul.mubr.msk.bf16.vlgmr.msra.gmra.mrb[60].mxu0 %vm588_vm0, %v2579_v63 }
0x1c57   : > { %v2627_v5 = vpop.f32.mrb[60].mxu0 }
0x1c58   : > { %v2628_v57 = vadd.f32 %v2932_v4, %v2627_v5  ;;  %v3203_v6 = vpop.f32.mrb[61].mxu0 }
0x1c59   : > { %v2630_v58 = vpop.f32.mrb[62].mxu0 }
0x1c5a   : > { %v2636_v7 = vmul.f32 0.044715, %v2628_v57  ;;  %v2631_v8 = vadd.f32 %v2932_v4, %v2630_v58  ;;  %v3204_v9 = vpop.f32.mrb[63].mxu0  ;;  %v2634_v25 = vmul.f32 0.5, %v2628_v57 }
0x1c5c   : > { %v2638_v10 = vmul.f32 %v2636_v7, %v2628_v57  ;;  %v2637_v11 = vmul.f32 0.044715, %v2631_v8  ;;  %v2635_v26 = vmul.f32 0.5, %v2631_v8 }
0x1c5e   : > { %v2640_v14 = vmul.f32 %v2638_v10, %v2628_v57  ;;  %v2639_v16 = vmul.f32 %v2637_v11, %v2631_v8 }
0x1c60   : > { %v2642_v13 = vadd.f32 %v2640_v14, %v2628_v57  ;;  %v2641_v18 = vmul.f32 %v2639_v16, %v2631_v8 }
0x1c62   : > { %v2644_v19 = vmul.f32 0.7978846, %v2642_v13  ;;  %v2643_v60 = vadd.f32 %v2641_v18, %v2631_v8 }
0x1c64   : > { %3340 = vtanh.f32 %v2644_v19  ;;  %v2645_v20 = vmul.f32 0.7978846, %v2643_v60 }
0x1c66   : > { %3342 = vtanh.f32 %v2645_v20 }
0x1c6e   : > { %v3341_v21 = vpop.eup %3340 }
0x1c6f   : > { %v2648_v23 = vadd.f32 1.0, %v3341_v21 }
0x1c70   : > { %v3343_v24 = vpop.eup %3342 }
0x1c71   : > { %v2649_v29 = vadd.f32 1.0, %v3343_v24  ;;  %v2650_v30 = vmul.f32 %v2648_v23, %v2634_v25 }
0x1c73   : > { %v2651_v31 = vmul.f32 %v2649_v29, %v2635_v26 }
0x1c75   : > { %v2652_v32 = vpack.c.bf16 %v2651_v31, %v2650_v30 }
0x1c77   : > { %3222 = vmatmul.mubr.bf16.vlgmr.msra.gmra.mrb[52].mxu1 %v2652_v32 }
0x1d4a   : > { %v2701_v35 = vpop.f32.mrb[52].mxu1 }
0x1d4b   : > { %v2702_v36 = vadd.f32 %v2934_v22, %v2701_v35  ;;  %v3223_v59 = vpop.f32.mrb[53].mxu1 }
0x1d4c   : > { %v2704_v37 = vpop.f32.mrb[54].mxu1 }
0x1d4d   : > { %v2705_v12 = vadd.f32 %v2934_v22, %v2704_v37  ;;  %v3224_v2 = vpop.f32.mrb[55].mxu1  ;;  %v2708_v41 = vadd.f32 %v2702_v36, %v4142_v39 }
0x1d4f   : > { %v2710_v38 = vsel %vm588_vm0, %v2708_v41, 0.0  ;;  %v2709_v63 = vadd.f32 %v2705_v12, %v4144_v62 }
0x1d50   : > { %2711 = vadd.xlane.f32.xlu1 %v2710_v38 }
0x1d51   : > { %v2713_v1 = vsel %vm588_vm0, %v2709_v63, 0.0 }
0x1d54   : > { %2714 = vadd.xlane.f32.xlu1 %v2713_v1 }
0x1ddd   : > { %v2712_v42 = vpop.xlane.xlu1 %2711 }
0x1dde   : > { %v2716_v43 = vmul.f32 0.015625, %v2712_v42 }
0x1de0   : > { %v2718_v15 = vsub.f32 %v2708_v41, %v2716_v43 }
0x1de1   : > { %v2715_v17 = vpop.xlane.xlu1 %2714 }
0x1de2   : > { %v2717_v44 = vmul.f32 0.015625, %v2715_v17  ;;  %v2720_v45 = vmul.f32 %v2718_v15, %v2718_v15 }
0x1de4   : > { %v2719_v33 = vsub.f32 %v2709_v63, %v2717_v44  ;;  %v2722_v34 = vsel %vm588_vm0, %v2720_v45, 0.0 }
0x1de5   : > { %2723 = vadd.xlane.f32.xlu0 %v2722_v34 }
0x1de6   : > { %v2721_v46 = vmul.f32 %v2719_v33, %v2719_v33 }
0x1de8   : > { %v2725_v39 = vsel %vm588_vm0, %v2721_v46, 0.0 }
0x1de9   : > { %2726 = vadd.xlane.f32.xlu1 %v2725_v39 }
0x1e72   : > { %v2724_v47 = vpop.xlane.xlu0 %2723 }
0x1e73   : > { %v2728_v62 = vmul.f32 0.015625, %v2724_v47 }
0x1e75   : > { %v2730_v48 = vadd.f32 1e-05, %v2728_v62 }
0x1e76   : > { %v2727_v49 = vpop.xlane.xlu1 %2726 }
0x1e77   : > { %3344 = vrsqrt.f32 %v2730_v48  ;;  %v2729_v50 = vmul.f32 0.015625, %v2727_v49 }
0x1e79   : > { %v2731_v51 = vadd.f32 1e-05, %v2729_v50 }
0x1e7b   : > { %3346 = vrsqrt.f32 %v2731_v51 }
0x1e81   : > { %v3345_v40 = vpop.eup %3344 }
0x1e82   : > { %v2734_v53 = vmul.f32 %v3345_v40, %v2718_v15 }
0x1e84   : > { %v2742_v55 = vmul.f32 %v2935_v52, %v2734_v53 }
0x1e85   : > { %v3347_v56 = vpop.eup %3346 }
0x1e86   : > { %v2750_v61 = vadd.f32 %v2936_v54, %v2742_v55  ;;  %v2735_v0 = vmul.f32 %v3347_v56, %v2719_v33 }
0x1e88   : > { %v2752_v3 = vadd.f32 %v2750_v61, %v3953_v27  ;;  %v2743_v4 = vmul.f32 %v2935_v52, %v2735_v0 }
0x1e8a   : > { %v2754_v5 = vmul.f32 0.5, %v2752_v3  ;;  %v2751_v57 = vadd.f32 %v2936_v54, %v2743_v4 }
0x1e8c   : > { %2756 = vst.msk [vmem:[%s577_s22] sm:$0xff] %vm588_vm0, %v2754_v5  ;;  %v2753_v6 = vadd.f32 %v2751_v57, %v3955_v28 }
0x1e8e   : > { %v2755_v58 = vmul.f32 0.5, %v2753_v6 }
0x1e90   : > { %2757 = vst.msk [vmem:[%s577_s22 + $0x8] sm:$0xff] %vm588_vm0, %v2755_v58 }
0x1e91 PF: > { %s28_s24 = sadd.s32 1, %s3386_s24  }
0x1e92   : > { %p25_p3 = scmp.ge.s32.totalorder %s28_s24, 6  }
0x1e94   :  { %27 = sbr.rel (!%p25_p3) target bundleno = 4 (0x4), region = 138 }
0x1e9b   :  { %2779 = vsyncpa [#allocation3], 1 }
0x1e9c   :  { %2781 = vsyncpa [#allocation3 + $0x1], 1 }

// kernel: model_forward.4
= control target key start
LH: loop header
LB: loop body
LE: loop exit
PB: predicated region body
PF: predicated region fallthrough
CT: control target
= control target key end

     0   :  { %s2254_s29 = smov 0   ;;  %s2669_s0 = inlined_call_operand.vmem [shape: f32[4,17,64], index: 0, kind: input, shape index: {}]   ;;  %s2670_s1 = inlined_call_operand.vmem [shape: f32[4,1,17], index: 1, kind: input, shape index: {}]   ;;  %s2671_s2 = inlined_call_operand.vmem [shape: f32[1,64,192], index: 2, kind: input, shape index: {}]   ;;  %s2672_s3 = inlined_call_operand.vmem [shape: f32[1,1,192], index: 3, kind: input, shape index: {}]   ;;  %s2673_s4 = inlined_call_operand.vmem [shape: f32[1,64,64], index: 4, kind: input, shape index: {}]   ;;  %s2674_s5 = inlined_call_operand.vmem [shape: f32[1,1,64], index: 5, kind: input, shape index: {}, may-alias: {5,7,11,13}]   ;;  %s2675_s6 = inlined_call_operand.vmem [shape: f32[1,1,64], index: 6, kind: input, shape index: {}, may-alias: {6,12}]   ;;  %s2676_s7 = inlined_call_operand.vmem [shape: f32[1,1,64], index: 7, kind: input, shape index: {}, may-alias: {5,7,11,13}]   ;;  %s2677_s8 = inlined_call_operand.vmem [shape: f32[1,64,128], index: 8, kind: input, shape index: {}]   ;;  %s2678_s9 = inlined_call_operand.vmem [shape: f32[1,1,128], index: 9, kind: input, shape index: {}]   ;;  %s2679_s10 = inlined_call_operand.vmem [shape: f32[1,128,64], index: 10, kind: input, shape index: {}]   ;;  %s2680_s11 = inlined_call_operand.vmem [shape: f32[1,1,64], index: 11, kind: input, shape index: {}, may-alias: {5,7,11,13}]   ;;  %s2681_s12 = inlined_call_operand.vmem [shape: f32[1,1,64], index: 12, kind: input, shape index: {}, may-alias: {6,12}]   ;;  %s2682_s13 = inlined_call_operand.vmem [shape: f32[1,1,64], index: 13, kind: input, shape index: {}, may-alias: {5,7,11,13}]   ;;  %s2683_s14 = inlined_call_operand.vmem [shape: f32[4,1,64], index: 14, kind: output, shape index: {}]  }
   0x1 LB: > { %s1859_s30 = sadd.s32 4294967295, %s2169_s29   ;;  %p1863_p0 = scmp.ge.s32.totalorder %s2169_s29, 1  ;;  %s2169_s29 = sphi %s2254_s29, %s24_s29  }
   0x2   : > { %p420_p1 = scmp.lt.s32.totalorder %s2169_s29, 5 }
   0x4   : > { %p421_p2 = pnand %p1863_p0, %p420_p1 }
   0x5   : > { %v484_v0 = vld [vmem:[%s2671_s2 + $0x8] sm:$0xff] (!%p421_p2)  ;;  %v486_v1 = vld [vmem:[%s2671_s2 + $0x18] sm:$0xff] (!%p421_p2)  ;;  %v483_v2 = vld [vmem:[%s2671_s2] sm:$0xff] (!%p421_p2)  ;;  %p467_p3 = scmp.lt.s32.totalorder (!%p421_p2), %s1859_s30, 3  ;;  %v2171_v7 = vmov (!%p421_p2), 0   ;;  %vm560_vm0 = vcmask (!%p421_p2), 523264   ;;  %v550_v30 = vlaneseq (!%p421_p2) }
   0x6   : > { %424 = sbr.rel (%p421_p2) target bundleno = 3498 (0xdaa), region = 76  ;;  %v542_v3 = vpack.c.bf16 (!%p421_p2), %v486_v1, %v484_v0  ;;  %v485_v4 = vld [vmem:[%s2671_s2 + $0x10] sm:$0xff] (!%p421_p2)  ;;  %v488_v5 = vld [vmem:[%s2671_s2 + $0x28] sm:$0xff] (!%p421_p2)  ;;  %v490_v6 = vld [vmem:[%s2671_s2 + $0x38] sm:$0xff] (!%p421_p2)  ;;  %599 = vmatprep.mubr.bf16.mxu0 (!%p421_p2), %v2171_v7  ;;  %vm626_vm1 = vcmask (!%p421_p2), 130048   ;;  %s2173_s26 = smov (!%p421_p2), 48  }
   0x7   : > { %v541_v8 = vpack.c.bf16 (!%p421_p2), %v485_v4, %v483_v2  ;;  %v544_v9 = vpack.c.bf16 (!%p421_p2), %v490_v6, %v488_v5  ;;  %v487_v10 = vld [vmem:[%s2671_s2 + $0x20] sm:$0xff] (!%p421_p2)  ;;  %v489_v11 = vld [vmem:[%s2671_s2 + $0x30] sm:$0xff] (!%p421_p2)  ;;  %v492_v12 = vld [vmem:[%s2671_s2 + $0x48] sm:$0xff] (!%p421_p2)  ;;  %v551_v31 = vshrl.u32 (!%p421_p2), %v550_v30, 7  ;;  %vm700_vm4 = vcmask (!%p421_p2), 138240   ;;  %s2174_s16 = smov (!%p421_p2), 64  }
   0x8   : > { %567 = vmatprep.subr.bf16.mxu0 (!%p421_p2), %v542_v3  ;;  %v494_v13 = vld [vmem:[%s2671_s2 + $0x58] sm:$0xff] (!%p421_p2)  ;;  %v543_v14 = vpack.c.bf16 (!%p421_p2), %v489_v11, %v487_v10  ;;  %v491_v16 = vld [vmem:[%s2671_s2 + $0x40] sm:$0xff] (!%p421_p2)  ;;  %v493_v17 = vld [vmem:[%s2671_s2 + $0x50] sm:$0xff] (!%p421_p2)  ;;  %vm707_vm5 = vcmask (!%p421_p2), 131072   ;;  %s2175_s17 = smov (!%p421_p2), 32   ;;  %s2176_s18 = smov (!%p421_p2), 96  }
   0x9   : > { %568 = vmatpush1.bf16.msra.mxu0 (!%p421_p2), %v541_v8  ;;  %v546_v15 = vpack.c.bf16 (!%p421_p2), %v494_v13, %v492_v12  ;;  %v496_v18 = vld [vmem:[%s2671_s2 + $0x68] sm:$0xff] (!%p421_p2)  ;;  %v498_v19 = vld [vmem:[%s2671_s2 + $0x78] sm:$0xff] (!%p421_p2)  ;;  %v545_v20 = vpack.c.bf16 (!%p421_p2), %v493_v17, %v491_v16  ;;  %v495_v22 = vld [vmem:[%s2671_s2 + $0x60] sm:$0xff] (!%p421_p2)  ;;  %v556_v32 = vsub.s32 (!%p421_p2), 1, %v551_v31  ;;  %v552_v34 = vsub.s32 (!%p421_p2), 0, %v551_v31  ;;  %s2177_s23 = smov (!%p421_p2), 16  }
   0xa   : > { %569 = vmatprep.subr.bf16.mxu0 (!%p421_p2), %v544_v9  ;;  %v548_v21 = vpack.c.bf16 (!%p421_p2), %v498_v19, %v496_v18  ;;  %v497_v23 = vld [vmem:[%s2671_s2 + $0x70] sm:$0xff] (!%p421_p2)  ;;  %v499_v33 = vld [vmem:[%s2672_s3] sm:$0x3] (!%p421_p2)  ;;  %vm751_vm6 = vcmask (!%p421_p2), 1040384   ;;  %s2178_s24 = smov (!%p421_p2), 80   ;;  %vm1590_vm7 = vcmask (!%p421_p2), 516096  }
   0xb   : > { %v547_v24 = vpack.c.bf16 (!%p421_p2), %v497_v23, %v495_v22  ;;  %v557_v35 = vrot.slane (!%p421_p2), %v499_v33, %v556_v32  ;;  %v553_v36 = vrot.slane (!%p421_p2), %v499_v33, %v552_v34 }
   0xd   : > { %s2685_s30 = smov (!%p467_p3, %s1859_s30), 3  ;;  %570 = vmatpush1.bf16.msra.mxu0 %v543_v14 }
   0xe   : > { %s2090_s25 = smul.u32 24, %s2685_s30  ;;  %571 = vmatprep.subr.bf16.mxu0 %v546_v15  ;;  %s474_s15 = scalar_lea.vmem %s2670_s1, %s2685_s30 }
   0xf   : > { %v479_v59 = vld [vmem:[%s474_s15] sm:$0x1] }
  0x10   : > { %s471_s22 = scalar_lea.vmem %s2669_s0, %s2090_s25  ;;  %s2172_s25 = smov 112   ;;  %vm690_vm2 = vcmp.gt.f32.partialorder %v479_v59, 0.5 }
  0x11   : > { %572 = vmatpush1.bf16.msra.mxu0 %v545_v20  ;;  %v2317_v25 = vld [vmem:[%s471_s22] sm:$0xff]  ;;  %v2319_v26 = vld [vmem:[%s471_s22 + $0x8] sm:$0xff]  ;;  %v2325_v28 = vld [vmem:[%s471_s22 + $0x10] sm:$0x1]  ;;  %v691_v60 = vsel %vm690_vm2, 1, %v2171_v7 }
  0x12   : > { %573 = vmatprep.subr.bf16.mxu0 %v548_v21  ;;  %v539_v27 = vpack.c.bf16 %v2319_v26, %v2317_v25  ;;  %v540_v29 = vpack.c.bf16 %v2325_v28, %v2325_v28  ;;  %v2358_v61 = vrot.slane %v691_v60, %v552_v34 }
  0x14   : > { %vm696_vm3 = vcmp.eq.s32.totalorder %v2358_v61, 1 }
  0x15   : > { %574 = vmatpush1.bf16.msra.mxu0 %v547_v24 }
  0x18   : > { %1865 = vmatmul.mubr.msk.bf16.vlgmr.msra.gmra.mrb[0].mxu0 %vm560_vm0, %v539_v27 }
  0x19   : > { %609 = vmatprep.mubr.bf16.mxu0 %v2171_v7 }
  0x20   : > { %1866 = vmatmul.mubr.msk.bf16.gmra.mrb[4].mxu0 %vm560_vm0, %v540_v29 }
  0xeb   : > { %v601_v37 = vpop.f32.mrb[0].mxu0 }
  0xec   : > { %v603_v38 = vpop.f32.mrb[1].mxu0  ;;  %v602_v41 = vadd.f32 %v601_v37, %v553_v36 }
  0xed   : > { %v604_v39 = vadd.f32 %v603_v38, %v557_v35  ;;  %v605_v40 = vpop.f32.mrb[2].mxu0 }
  0xee   : > { %v606_v42 = vadd.f32 %v605_v40, %v553_v36  ;;  %v607_v43 = vpop.f32.mrb[3].mxu0 }
  0xef   : > { %v608_v44 = vadd.f32 %v607_v43, %v557_v35 }
  0xf0   : > { %v2333_v45 = vpack.c.bf16 %v606_v42, %v602_v41 }
  0xf1   : > { %v2335_v46 = vpack.c.bf16 %v608_v44, %v604_v39 }
  0xf2   : > { %808 = vrot.lane.b32.xlu1 %v2333_v45, %s2172_s25  ;;  %812 = vrot.lane.b32.xlu0 %v2333_v45, %s2173_s26 }
  0xf3   : > { %1966 = vmatprep.mubr.msk.bf16.mxu1 %vm626_vm1, %v2333_v45  ;;  %v611_v47 = vpop.f32.mrb[4].mxu0 }
  0xf4   : > { %v612_v48 = vadd.f32 %v611_v47, %v553_v36  ;;  %v613_v49 = vpop.f32.mrb[5].mxu0 }
  0xf5   : > { %v615_v50 = vpop.f32.mrb[6].mxu0  ;;  %v614_v12 = vadd.f32 %v613_v49, %v557_v35 }
  0xf6   : > { %v2342_v51 = vpack.c.bf16 %v612_v48, %v612_v48  ;;  %v616_v52 = vpop.f32.mrb[7].mxu0  ;;  %v2401_v48 = vsel %vm751_vm6, 65535, %v2171_v7  ;;  %v502_v50 = vld [vmem:[%s2673_s4 + $0x10] sm:$0xff] }
  0xf7   : > { %v2372_v13 = vpack.c.bf16 %v614_v12, %v614_v12  ;;  %v503_v52 = vld [vmem:[%s2673_s4 + $0x18] sm:$0xff] }
  0xf8   : > { %810 = vrot.lane.b32.xlu1 %v2342_v51, %s2172_s25  ;;  %814 = vrot.lane.b32.xlu0 %v2342_v51, %s2173_s26 }
  0xf9   : > { %v755_v7 = vand.u32 %v2401_v48, %v2372_v13 }
 0x164   : > { %v809_v53 = vpop.permute.xlu1 %808  ;;  %v813_v54 = vpop.permute.xlu0 %812 }
 0x165   : > { %v823_v55 = vsel %vm626_vm1, %v813_v54, 0  ;;  %2084 = vmatprep.subr.msk.bf16.mxu0 %vm626_vm1, %v813_v54  ;;  %1982 = vmatprep.mubr.msk.bf16.mxu0 %vm626_vm1, %v809_v53  ;;  %v989_v54 = vpack.c.bf16 %v503_v52, %v502_v50 }
 0x166   : > { %1979 = vmatpush3.bf16.xpose.msra.mxu0 %v823_v55 }
 0x16a   : > { %v815_v56 = vpop.permute.xlu0 %814  ;;  %v811_v58 = vpop.permute.xlu1 %810 }
 0x16b   : > { %v826_v57 = vsel %vm626_vm1, %v815_v56, 0  ;;  %2085 = vmatprep.subr.msk.bf16.mxu0 %vm626_vm1, %v815_v56 }
 0x16e   : > { %1981 = vmatpush3.bf16.xpose.msra.mxu0 %v826_v57 }
 0x175   : > { %1983 = vmatmul.mubr.msk.bf16.vlgmr.msra.gmra.mrb[8].mxu0 %vm626_vm1, %v811_v58 }
 0x248   : > { %v1984_v62 = vpop.f32.mrb[8].mxu0 }
 0x249   : > { %v862_v63 = vpop.f32.mrb[9].mxu0  ;;  %v878_v0 = vmul.f32 0.25, %v1984_v62 }
 0x24a   : > { %v876_v1 = vmul.f32 0.25, %v862_v63  ;;  %v1985_v2 = vpop.f32.mrb[10].mxu0 }
 0x24b   : > { %v865_v3 = vpop.f32.mrb[11].mxu0  ;;  %v881_v9 = vsel %vm696_vm3, %v878_v0, -1e+30 }
 0x24c   : > { %v877_v4 = vmul.f32 0.25, %v865_v3  ;;  %v879_v5 = vsel %vm696_vm3, %v876_v1, -1e+30  ;;  %v888_v11 = vsel %vm707_vm5, %v881_v9, -inf }
 0x24d   : > { %v882_v6 = vsel %vm700_vm4, %v879_v5, -inf }
 0x24e   : > { %883 = vmax.xlane.f32.xlu0 %v882_v6  ;;  %v880_v8 = vsel %vm696_vm3, %v877_v4, -1e+30 }
 0x24f   : > { %v885_v10 = vsel %vm700_vm4, %v880_v8, -inf }
 0x250   : > { %886 = vmax.xlane.f32.xlu1 %v885_v10 }
 0x252   : > { %889 = vmax.xlane.f32.xlu0 %v888_v11 }
 0x261   : > { %622 = vrot.lane.b32.xlu1 %v2333_v45, %s2174_s16 }
 0x265   : > { %927 = vrot.lane.b32.xlu1 %v2372_v13, %s2172_s25 }
 0x2db   : > { %v884_v14 = vpop.xlane.xlu0 %883 }
 0x2dc   : > { %v891_v15 = vsub.f32 %v879_v5, %v884_v14 }
 0x2dd   : > { %v887_v16 = vpop.xlane.xlu1 %886 }
 0x2de   : > { %v892_v17 = vsub.f32 %v880_v8, %v887_v16  ;;  %v894_v18 = vmul.f32 1.442695, %v891_v15 }
 0x2df   : > { %v890_v19 = vpop.xlane.xlu0 %889 }
 0x2e0   : > { %v896_v20 = vmul.f32 1.442695, %v892_v17  ;;  %v893_v21 = vsub.f32 %v881_v9, %v890_v19 }
 0x2e1   : > { %v623_v22 = vpop.permute.xlu1 %622 }
 0x2e2   : > { %2107 = vpow2.f32 %v896_v20  ;;  %v898_v23 = vmul.f32 1.442695, %v893_v21  ;;  %2082 = vmatprep.subr.msk.bf16.mxu1 %vm626_vm1, %v623_v22  ;;  %v634_v24 = vsel %vm626_vm1, %v623_v22, 0 }
 0x2e3   : > { %2109 = vpow2.f32 %v894_v18  ;;  %1963 = vmatpush3.bf16.xpose.msra.mxu1 %v634_v24 }
 0x2e4   : > { %2111 = vpow2.f32 %v898_v23 }
 0x2e5   : > { %v928_v37 = vpop.permute.xlu1 %927 }
 0x2e6   : > { %v937_v53 = vand.u32 %v928_v37, %v2401_v48 }
 0x2ec   : > { %v2108_v27 = vpop.eup %2107 }
 0x2ed   : > { %v2110_v29 = vpop.eup %2109  ;;  %v901_v30 = vsel %vm696_vm3, %v2108_v27, 0.0 }
 0x2ee   : > { %v2112_v31 = vpop.eup %2111  ;;  %v906_v32 = vsel %vm700_vm4, %v901_v30, 0.0  ;;  %v900_v35 = vsel %vm696_vm3, %v2110_v29, 0.0 }
 0x2ef   : > { %907 = vadd.xlane.f32.xlu1 %v906_v32  ;;  %v902_v33 = vsel %vm696_vm3, %v2112_v31, 0.0  ;;  %v903_v36 = vsel %vm700_vm4, %v900_v35, 0.0 }
 0x2f0   : > { %v909_v34 = vsel %vm707_vm5, %v902_v33, 0.0 }
 0x2f1   : > { %910 = vadd.xlane.f32.xlu0 %v909_v34 }
 0x2f5   : > { %904 = vadd.xlane.f32.xlu0 %v903_v36 }
 0x300   : > { %624 = vrot.lane.b32.xlu1 %v2342_v51, %s2174_s16 }
 0x304   : > { %1104 = vrot.lane.b32.xlu1 %v2342_v51, %s2175_s17 }
 0x308   : > { %1100 = vrot.lane.b32.xlu1 %v2342_v51, %s2176_s18 }
 0x30b   : > { %925 = vrot.lane.b32.xlu0 %v2335_v46, %s2172_s25 }
 0x30f   : > { %1102 = vrot.lane.b32.xlu0 %v2333_v45, %s2175_s17  ;;  %s477_s17 = scalar_lea.vmem %s2683_s14, %s2685_s30 }
 0x313   : > { %1098 = vrot.lane.b32.xlu0 %v2333_v45, %s2176_s18 }
 0x37c   : > { %v908_v38 = vpop.xlane.xlu1 %907 }
 0x37d   : > { %v913_v40 = vmax.f32 %v908_v38, 1e-20 }
 0x37e   : > { %v911_v39 = vpop.xlane.xlu0 %910 }
 0x37f   : > { %v914_v41 = vmax.f32 %v911_v39, 1e-20 }
 0x380   : > { %v625_v42 = vpop.permute.xlu1 %624 }
 0x381   : > { %2083 = vmatprep.subr.msk.bf16.mxu1 %vm626_vm1, %v625_v42  ;;  %v637_v43 = vsel %vm626_vm1, %v625_v42, 0  ;;  %2113 = vrcp.f32 %v914_v41 }
 0x382   : > { %v905_v44 = vpop.xlane.xlu0 %904  ;;  %1965 = vmatpush3.bf16.xpose.msra.mxu1 %v637_v43  ;;  %2115 = vrcp.f32 %v913_v40 }
 0x383   : > { %v912_v47 = vmax.f32 %v905_v44, 1e-20  ;;  %1970 = vmatprep.subr.bf16.mxu1 %v2335_v46 }
 0x384   : > { %v1105_v24 = vpop.permute.xlu1 %1104 }
 0x385   : > { %2117 = vrcp.f32 %v912_v47  ;;  %v1116_v27 = vsel %vm626_vm1, %v1105_v24, 0 }
 0x386   : > { %v926_v49 = vpop.permute.xlu0 %925 }
 0x387   : > { %1986 = vmatprep.subr.bf16.mxu0 %v926_v49 }
 0x388   : > { %1987 = vmatpush3.bf16.msra.mxu0 %v926_v49  ;;  %v1101_v29 = vpop.permute.xlu1 %1100 }
 0x389   : > { %1967 = vmatmul.mubr.msk.bf16.vlgmr.msra.gmra.mrb[0].mxu1 %vm626_vm1, %v2342_v51  ;;  %1988 = vmatprep.subr.bf16.mxu0 %v937_v53 }
 0x38a   : > { %1971 = vmatpush3.bf16.msra.mxu1 %v2335_v46  ;;  %v1103_v0 = vpop.permute.xlu0 %1102 }
 0x38b   : > { %1972 = vmatprep.subr.bf16.mxu1 %v755_v7  ;;  %v2114_v55 = vpop.eup %2113  ;;  %v1113_v22 = vsel %vm626_vm1, %v1103_v0, 0 }
 0x38c   : > { %1989 = vmatpush3.bf16.msra.mxu0 %v937_v53  ;;  %v2116_v56 = vpop.eup %2115  ;;  %v920_v58 = vmul.f32 %v2114_v55, %v902_v33 }
 0x38d   : > { %1994 = vmatprep.subr.bf16.mxu0 %v989_v54  ;;  %v919_v60 = vmul.f32 %v2116_v56, %v901_v30 }
 0x38e   : > { %1973 = vmatpush3.bf16.msra.mxu1 %v755_v7  ;;  %v922_v63 = vpack.c.bf16 %v920_v58, %v920_v58  ;;  %v1099_v23 = vpop.permute.xlu0 %1098 }
 0x38f   : > { %v2118_v57 = vpop.eup %2117 }
 0x390   : > { %v918_v59 = vmul.f32 %v2118_v57, %v900_v35 }
 0x392   : > { %v921_v62 = vpack.c.bf16 %v919_v60, %v918_v59 }
 0x394   : > { %1990 = vmatprep.mubr.msk.bf16.mxu0 %vm700_vm4, %v921_v62 }
 0x395   : > { %1991 = vmatmul.mubr.msk.bf16.vlgmr.msra.gmra.mrb[12].mxu0 %vm700_vm4, %v922_v63 }
 0x396   : > { %1995 = vmatpush3.bf16.msra.mxu0 %v989_v54 }
 0x397   : > { %2086 = vmatprep.subr.msk.bf16.mxu0 %vm626_vm1, %v1103_v0 }
 0x45c   : > { %v1968_v1 = vpop.f32.mrb[0].mxu1 }
 0x45d   : > { %v673_v2 = vpop.f32.mrb[1].mxu1  ;;  %v689_v3 = vmul.f32 0.25, %v1968_v1 }
 0x45e   : > { %v687_v4 = vmul.f32 0.25, %v673_v2  ;;  %v1969_v5 = vpop.f32.mrb[2].mxu1 }
 0x45f   : > { %v676_v6 = vpop.f32.mrb[3].mxu1  ;;  %v699_v12 = vsel %vm696_vm3, %v689_v3, -1e+30 }
 0x460   : > { %v688_v8 = vmul.f32 0.25, %v676_v6  ;;  %v697_v9 = vsel %vm696_vm3, %v687_v4, -1e+30  ;;  %v708_v15 = vsel %vm707_vm5, %v699_v12, -inf }
 0x461   : > { %v701_v10 = vsel %vm700_vm4, %v697_v9, -inf }
 0x462   : > { %702 = vmax.xlane.f32.xlu0 %v701_v10  ;;  %v698_v11 = vsel %vm696_vm3, %v688_v8, -1e+30 }
 0x463   : > { %v704_v14 = vsel %vm700_vm4, %v698_v11, -inf }
 0x464   : > { %705 = vmax.xlane.f32.xlu1 %v704_v14 }
 0x466   : > { %709 = vmax.xlane.f32.xlu0 %v708_v15 }
 0x468   : > { %v1992_v16 = vpop.f32.mrb[12].mxu0 }
 0x469   : > { %v973_v17 = vpop.f32.mrb[13].mxu0  ;;  %v988_v21 = vpack.c.bf16 %v1992_v16, %v1992_v16 }
 0x46a   : > { %v1993_v18 = vpop.f32.mrb[14].mxu0 }
 0x46b   : > { %v976_v19 = vpop.f32.mrb[15].mxu0 }
 0x46c   : > { %v987_v20 = vpack.c.bf16 %v976_v19, %v973_v17 }
 0x46e   : > { %1996 = vmatprep.mubr.msk.bf16.mxu0 %vm626_vm1, %v987_v20 }
 0x46f   : > { %1997 = vmatmul.mubr.msk.bf16.vlgmr.msra.gmra.mrb[16].mxu0 %vm626_vm1, %v988_v21 }
 0x470   : > { %2007 = vmatpush3.bf16.xpose.msra.mxu0 %v1113_v22  ;;  %2010 = vmatprep.mubr.msk.bf16.mxu0 %vm626_vm1, %v1099_v23 }
 0x471   : > { %2087 = vmatprep.subr.msk.bf16.mxu0 %vm626_vm1, %v1105_v24 }
 0x478   : > { %2009 = vmatpush3.bf16.xpose.msra.mxu0 %v1116_v27 }
 0x47f   : > { %2011 = vmatmul.mubr.msk.bf16.vlgmr.msra.gmra.mrb[20].mxu0 %vm626_vm1, %v1101_v29 }
 0x4ef   : > { %v703_v30 = vpop.xlane.xlu0 %702 }
 0x4f0   : > { %v711_v31 = vsub.f32 %v697_v9, %v703_v30 }
 0x4f1   : > { %v706_v32 = vpop.xlane.xlu1 %705 }
 0x4f2   : > { %v714_v33 = vmul.f32 1.442695, %v711_v31  ;;  %v712_v34 = vsub.f32 %v698_v11, %v706_v32 }
 0x4f3   : > { %v710_v35 = vpop.xlane.xlu0 %709 }
 0x4f4   : > { %2119 = vpow2.f32 %v714_v33  ;;  %v716_v36 = vmul.f32 1.442695, %v712_v34  ;;  %v713_v37 = vsub.f32 %v699_v12, %v710_v35 }
 0x4f6   : > { %2121 = vpow2.f32 %v716_v36  ;;  %v718_v38 = vmul.f32 1.442695, %v713_v37 }
 0x4f8   : > { %2123 = vpow2.f32 %v718_v38 }
 0x4fe   : > { %v2120_v39 = vpop.eup %2119 }
 0x4ff   : > { %v720_v40 = vsel %vm696_vm3, %v2120_v39, 0.0 }
 0x500   : > { %v2122_v41 = vpop.eup %2121  ;;  %v723_v42 = vsel %vm700_vm4, %v720_v40, 0.0 }
 0x501   : > { %724 = vadd.xlane.f32.xlu0 %v723_v42  ;;  %v721_v43 = vsel %vm696_vm3, %v2122_v41, 0.0  ;;  %v500_v42 = vld [vmem:[%s2673_s4] sm:$0xff] }
 0x502   : > { %v2124_v44 = vpop.eup %2123  ;;  %v726_v47 = vsel %vm700_vm4, %v721_v43, 0.0 }
 0x503   : > { %727 = vadd.xlane.f32.xlu1 %v726_v47  ;;  %v722_v49 = vsel %vm696_vm3, %v2124_v44, 0.0 }
 0x504   : > { %v729_v50 = vsel %vm707_vm5, %v722_v49, 0.0 }
 0x505   : > { %730 = vadd.xlane.f32.xlu0 %v729_v50 }
 0x514   : > { %1339 = vrot.lane.b32.xlu1 %v2333_v45, %s2177_s23 }
 0x518   : > { %1335 = vrot.lane.b32.xlu1 %v2333_v45, %s2178_s24 }
 0x51b   : > { %1341 = vrot.lane.b32.xlu0 %v2342_v51, %s2177_s23 }
 0x51c   : > { %1337 = vrot.lane.b32.xlu1 %v2342_v51, %s2178_s24 }
 0x542   : > { %v2449_v52 = vpop.f32.mrb[16].mxu0 }
 0x543   : > { %v2451_v53 = vpop.f32.mrb[17].mxu0 }
 0x544   : > { %v1999_v7 = vpop.f32.mrb[18].mxu0 }
 0x545   : > { %v2453_v54 = vpop.f32.mrb[19].mxu0 }
 0x552   : > { %v2012_v55 = vpop.f32.mrb[20].mxu0 }
 0x553   : > { %v1152_v56 = vpop.f32.mrb[21].mxu0  ;;  %v1168_v57 = vmul.f32 0.25, %v2012_v55 }
 0x554   : > { %v1166_v58 = vmul.f32 0.25, %v1152_v56  ;;  %v2013_v59 = vpop.f32.mrb[22].mxu0 }
 0x555   : > { %v1155_v60 = vpop.f32.mrb[23].mxu0  ;;  %v1171_v0 = vsel %vm696_vm3, %v1168_v57, -1e+30 }
 0x556   : > { %v1167_v62 = vmul.f32 0.25, %v1155_v60  ;;  %v1169_v45 = vsel %vm696_vm3, %v1166_v58, -1e+30  ;;  %v1178_v2 = vsel %vm707_vm5, %v1171_v0, -inf }
 0x557   : > { %v1172_v63 = vsel %vm700_vm4, %v1169_v45, -inf }
 0x558   : > { %1173 = vmax.xlane.f32.xlu0 %v1172_v63  ;;  %v1170_v51 = vsel %vm696_vm3, %v1167_v62, -1e+30 }
 0x559   : > { %v1175_v1 = vsel %vm700_vm4, %v1170_v51, -inf }
 0x55a   : > { %1176 = vmax.xlane.f32.xlu1 %v1175_v1 }
 0x55c   : > { %1179 = vmax.xlane.f32.xlu0 %v1178_v2 }
 0x58e   : > { %v725_v3 = vpop.xlane.xlu0 %724 }
 0x58f   : > { %v732_v4 = vmax.f32 %v725_v3, 1e-20 }
 0x590   : > { %v728_v5 = vpop.xlane.xlu1 %727 }
 0x591   : > { %2125 = vrcp.f32 %v732_v4  ;;  %v733_v6 = vmax.f32 %v728_v5, 1e-20 }
 0x592   : > { %v731_v8 = vpop.xlane.xlu0 %730 }
 0x593   : > { %2127 = vrcp.f32 %v733_v6  ;;  %v734_v9 = vmax.f32 %v731_v8, 1e-20 }
 0x594   : > { %v1340_v10 = vpop.permute.xlu1 %1339 }
 0x595   : > { %2129 = vrcp.f32 %v734_v9  ;;  %v1350_v11 = vsel %vm626_vm1, %v1340_v10, 0  ;;  %2088 = vmatprep.subr.msk.bf16.mxu0 %vm626_vm1, %v1340_v10 }
 0x596   : > { %v1342_v12 = vpop.permute.xlu0 %1341  ;;  %2029 = vmatpush3.bf16.xpose.msra.mxu0 %v1350_v11 }
 0x597   : > { %2089 = vmatprep.subr.msk.bf16.mxu0 %vm626_vm1, %v1342_v12  ;;  %v1353_v17 = vsel %vm626_vm1, %v1342_v12, 0 }
 0x598   : > { %v1336_v14 = vpop.permute.xlu1 %1335 }
 0x599   : > { %2032 = vmatprep.mubr.msk.bf16.mxu0 %vm626_vm1, %v1336_v14 }
 0x59b   : > { %v2126_v15 = vpop.eup %2125 }
 0x59c   : > { %v738_v18 = vmul.f32 %v2126_v15, %v720_v40  ;;  %v1338_v24 = vpop.permute.xlu1 %1337 }
 0x59d   : > { %v2128_v16 = vpop.eup %2127 }
 0x59e   : > { %2031 = vmatpush3.bf16.xpose.msra.mxu0 %v1353_v17  ;;  %v739_v19 = vmul.f32 %v2128_v16, %v721_v43  ;;  %v501_v43 = vld [vmem:[%s2673_s4 + $0x8] sm:$0xff] }
 0x59f   : > { %v2130_v20 = vpop.eup %2129  ;;  %v807_v47 = vpack.c.bf16 %v501_v43, %v500_v42 }
 0x5a0   : > { %v740_v21 = vmul.f32 %v2130_v20, %v722_v49  ;;  %v741_v22 = vpack.c.bf16 %v739_v19, %v738_v18 }
 0x5a1   : > { %2000 = vmatprep.subr.bf16.mxu1 %v807_v47 }
 0x5a2   : > { %1974 = vmatprep.mubr.msk.bf16.mxu1 %vm700_vm4, %v741_v22  ;;  %v742_v23 = vpack.c.bf16 %v740_v21, %v740_v21 }
 0x5a4   : > { %1975 = vmatmul.mubr.msk.bf16.vlgmr.msra.gmra.mrb[4].mxu1 %vm700_vm4, %v742_v23 }
 0x5a5   : > { %2033 = vmatmul.mubr.msk.bf16.vlgmr.msra.gmra.mrb[24].mxu0 %vm626_vm1, %v1338_v24  ;;  %2001 = vmatpush3.bf16.msra.mxu1 %v807_v47 }
 0x5e5   : > { %v1174_v27 = vpop.xlane.xlu0 %1173 }
 0x5e6   : > { %v1181_v29 = vsub.f32 %v1169_v45, %v1174_v27 }
 0x5e7   : > { %v1177_v30 = vpop.xlane.xlu1 %1176 }
 0x5e8   : > { %v1182_v31 = vsub.f32 %v1170_v51, %v1177_v30  ;;  %v1184_v32 = vmul.f32 1.442695, %v1181_v29 }
 0x5e9   : > { %v1180_v33 = vpop.xlane.xlu0 %1179 }
 0x5ea   : > { %v1186_v34 = vmul.f32 1.442695, %v1182_v31  ;;  %v1183_v35 = vsub.f32 %v1171_v0, %v1180_v33  ;;  %v504_v31 = vld [vmem:[%s2673_s4 + $0x20] sm:$0xff] }
 0x5ec   : > { %2131 = vpow2.f32 %v1186_v34  ;;  %v1188_v36 = vmul.f32 1.442695, %v1183_v35 }
 0x5ed   : > { %2133 = vpow2.f32 %v1184_v32  ;;  %v505_v32 = vld [vmem:[%s2673_s4 + $0x28] sm:$0xff] }
 0x5ee   : > { %2135 = vpow2.f32 %v1188_v36  ;;  %v1277_v33 = vpack.c.bf16 %v505_v32, %v504_v31 }
 0x5f6   : > { %v2132_v37 = vpop.eup %2131 }
 0x5f7   : > { %v2134_v38 = vpop.eup %2133  ;;  %v1191_v39 = vsel %vm696_vm3, %v2132_v37, 0.0 }
 0x5f8   : > { %v2136_v40 = vpop.eup %2135  ;;  %v1196_v41 = vsel %vm700_vm4, %v1191_v39, 0.0  ;;  %v1190_v50 = vsel %vm696_vm3, %v2134_v38, 0.0 }
 0x5f9   : > { %1197 = vadd.xlane.f32.xlu1 %v1196_v41  ;;  %v1192_v44 = vsel %vm696_vm3, %v2136_v40, 0.0  ;;  %v1193_v7 = vsel %vm700_vm4, %v1190_v50, 0.0 }
 0x5fa   : > { %v1199_v49 = vsel %vm707_vm5, %v1192_v44, 0.0 }
 0x5fb   : > { %1200 = vadd.xlane.f32.xlu0 %v1199_v49 }
 0x5ff   : > { %1194 = vadd.xlane.f32.xlu0 %v1193_v7 }
 0x60a   : > { %1213 = vrot.lane.b32.xlu1 %v2335_v46, %s2176_s18 }
 0x615   : > { %1215 = vrot.lane.b32.xlu0 %v2372_v13, %s2176_s18 }
 0x677   : > { %v1976_v55 = vpop.f32.mrb[4].mxu1 }
 0x678   : > { %v791_v56 = vpop.f32.mrb[5].mxu1  ;;  %v2034_v57 = vpop.f32.mrb[24].mxu0  ;;  %v806_v1 = vpack.c.bf16 %v1976_v55, %v1976_v55 }
 0x679   : > { %v1977_v58 = vpop.f32.mrb[6].mxu1  ;;  %v1389_v59 = vpop.f32.mrb[25].mxu0  ;;  %v1405_v60 = vmul.f32 0.25, %v2034_v57 }
 0x67a   : > { %v1403_v62 = vmul.f32 0.25, %v1389_v59  ;;  %v794_v45 = vpop.f32.mrb[7].mxu1  ;;  %v2035_v63 = vpop.f32.mrb[26].mxu0 }
 0x67b   : > { %v805_v51 = vpack.c.bf16 %v794_v45, %v791_v56  ;;  %v1392_v0 = vpop.f32.mrb[27].mxu0  ;;  %v1408_v6 = vsel %vm696_vm3, %v1405_v60, -1e+30 }
 0x67c   : > { %v1404_v2 = vmul.f32 0.25, %v1392_v0  ;;  %v1406_v3 = vsel %vm696_vm3, %v1403_v62, -1e+30  ;;  %v1415_v9 = vsel %vm707_vm5, %v1408_v6, -inf }
 0x67d   : > { %2002 = vmatprep.mubr.msk.bf16.mxu1 %vm626_vm1, %v805_v51  ;;  %v1409_v4 = vsel %vm700_vm4, %v1406_v3, -inf }
 0x67e   : > { %2003 = vmatmul.mubr.msk.bf16.vlgmr.msra.gmra.mrb[8].mxu1 %vm626_vm1, %v806_v1  ;;  %1410 = vmax.xlane.f32.xlu1 %v1409_v4  ;;  %v1407_v5 = vsel %vm696_vm3, %v1404_v2, -1e+30 }
 0x67f   : > { %v1412_v8 = vsel %vm700_vm4, %v1407_v5, -inf }
 0x680   : > { %1413 = vmax.xlane.f32.xlu0 %v1412_v8 }
 0x682   : > { %1416 = vmax.xlane.f32.xlu1 %v1415_v9 }
 0x686   : > { %v1198_v10 = vpop.xlane.xlu1 %1197 }
 0x687   : > { %v1203_v12 = vmax.f32 %v1198_v10, 1e-20 }
 0x688   : > { %v1201_v11 = vpop.xlane.xlu0 %1200 }
 0x689   : > { %v1204_v14 = vmax.f32 %v1201_v11, 1e-20 }
 0x68a   : > { %v1214_v15 = vpop.permute.xlu1 %1213 }
 0x68b   : > { %2014 = vmatprep.subr.bf16.mxu1 %v1214_v15  ;;  %2137 = vrcp.f32 %v1204_v14 }
 0x68c   : > { %v1195_v16 = vpop.xlane.xlu0 %1194  ;;  %2015 = vmatpush3.bf16.msra.mxu1 %v1214_v15  ;;  %2139 = vrcp.f32 %v1203_v12 }
 0x68d   : > { %v1202_v17 = vmax.f32 %v1195_v16, 1e-20 }
 0x68f   : > { %2141 = vrcp.f32 %v1202_v17 }
 0x690   : > { %v1216_v18 = vpop.permute.xlu0 %1215 }
 0x691   : > { %v1225_v19 = vand.u32 %v1216_v18, %v2401_v48 }
 0x693   : > { %2016 = vmatprep.subr.bf16.mxu1 %v1225_v19 }
 0x694   : > { %2017 = vmatpush3.bf16.msra.mxu1 %v1225_v19  ;;  %v506_v19 = vld [vmem:[%s2673_s4 + $0x30] sm:$0xff] }
 0x695   : > { %v2138_v20 = vpop.eup %2137  ;;  %2022 = vmatprep.subr.bf16.mxu1 %v1277_v33 }
 0x696   : > { %v2140_v21 = vpop.eup %2139  ;;  %v1210_v23 = vmul.f32 %v2138_v20, %v1192_v44 }
 0x697   : > { %v1209_v27 = vmul.f32 %v2140_v21, %v1191_v39 }
 0x698   : > { %v1212_v30 = vpack.c.bf16 %v1210_v23, %v1210_v23 }
 0x699   : > { %v2142_v22 = vpop.eup %2141 }
 0x69a   : > { %v1208_v24 = vmul.f32 %v2142_v22, %v1190_v50 }
 0x69c   : > { %v1211_v29 = vpack.c.bf16 %v1209_v27, %v1208_v24 }
 0x69e   : > { %2018 = vmatprep.mubr.msk.bf16.mxu1 %vm700_vm4, %v1211_v29 }
 0x69f   : > { %2019 = vmatmul.mubr.msk.bf16.vlgmr.msra.gmra.mrb[12].mxu1 %vm700_vm4, %v1212_v30 }
 0x6a0   : > { %2023 = vmatpush3.bf16.msra.mxu1 %v1277_v33 }
 0x70b   : > { %v1411_v34 = vpop.xlane.xlu1 %1410 }
 0x70c   : > { %v1418_v35 = vsub.f32 %v1406_v3, %v1411_v34 }
 0x70d   : > { %v1414_v36 = vpop.xlane.xlu0 %1413 }
 0x70e   : > { %v1419_v37 = vsub.f32 %v1407_v5, %v1414_v36  ;;  %v1421_v38 = vmul.f32 1.442695, %v1418_v35 }
 0x70f   : > { %v1417_v39 = vpop.xlane.xlu1 %1416 }
 0x710   : > { %v1423_v40 = vmul.f32 1.442695, %v1419_v37  ;;  %v1420_v41 = vsub.f32 %v1408_v6, %v1417_v39 }
 0x712   : > { %2143 = vpow2.f32 %v1423_v40  ;;  %v1425_v42 = vmul.f32 1.442695, %v1420_v41 }
 0x713   : > { %2145 = vpow2.f32 %v1421_v38  ;;  %v1891_v38 = vld [vmem:[%s2674_s5] ss:$0 sm:$0xff] }
 0x714   : > { %2147 = vpow2.f32 %v1425_v42 }
 0x71c   : > { %v2144_v43 = vpop.eup %2143 }
 0x71d   : > { %v2146_v44 = vpop.eup %2145  ;;  %v1428_v47 = vsel %vm696_vm3, %v2144_v43, 0.0 }
 0x71e   : > { %v2148_v49 = vpop.eup %2147  ;;  %v1433_v50 = vsel %vm700_vm4, %v1428_v47, 0.0  ;;  %v1427_v56 = vsel %vm696_vm3, %v2146_v44, 0.0 }
 0x71f   : > { %1434 = vadd.xlane.f32.xlu1 %v1433_v50  ;;  %v1429_v7 = vsel %vm696_vm3, %v2148_v49, 0.0  ;;  %v1430_v57 = vsel %vm700_vm4, %v1427_v56, 0.0 }
 0x720   : > { %v1436_v55 = vsel %vm707_vm5, %v1429_v7, 0.0 }
 0x721   : > { %1437 = vadd.xlane.f32.xlu0 %v1436_v55 }
 0x725   : > { %1431 = vadd.xlane.f32.xlu0 %v1430_v57 }
 0x730   : > { %1450 = vrot.lane.b32.xlu1 %v2335_v46, %s2178_s24 }
 0x73b   : > { %1452 = vrot.lane.b32.xlu0 %v2372_v13, %s2178_s24 }
 0x751   : > { %v2004_v58 = vpop.f32.mrb[8].mxu1 }
 0x752   : > { %v1093_v59 = vadd.f32 %v2004_v58, %v2449_v52  ;;  %v1084_v60 = vpop.f32.mrb[9].mxu1 }
 0x753   : > { %v1085_v62 = vadd.f32 %v1084_v60, %v2451_v53  ;;  %v2005_v45 = vpop.f32.mrb[10].mxu1 }
 0x754   : > { %v1087_v63 = vpop.f32.mrb[11].mxu1 }
 0x755   : > { %v1088_v61 = vadd.f32 %v1087_v63, %v2453_v54 }
 0x772   : > { %v2020_v51 = vpop.f32.mrb[12].mxu1 }
 0x773   : > { %v1261_v0 = vpop.f32.mrb[13].mxu1  ;;  %v1276_v4 = vpack.c.bf16 %v2020_v51, %v2020_v51 }
 0x774   : > { %v2021_v1 = vpop.f32.mrb[14].mxu1 }
 0x775   : > { %v1264_v2 = vpop.f32.mrb[15].mxu1 }
 0x776   : > { %v1275_v3 = vpack.c.bf16 %v1264_v2, %v1261_v0 }
 0x778   : > { %2024 = vmatprep.mubr.msk.bf16.mxu1 %vm626_vm1, %v1275_v3 }
 0x779   : > { %2025 = vmatmul.mubr.msk.bf16.vlgmr.msra.gmra.mrb[16].mxu1 %vm626_vm1, %v1276_v4 }
 0x7ac   : > { %v1435_v46 = vpop.xlane.xlu1 %1434 }
 0x7ad   : > { %v1440_v52 = vmax.f32 %v1435_v46, 1e-20 }
 0x7ae   : > { %v1438_v13 = vpop.xlane.xlu0 %1437 }
 0x7af   : > { %v1441_v5 = vmax.f32 %v1438_v13, 1e-20  ;;  %v511_v13 = vld [vmem:[%s2677_s8] sm:$0xff] }
 0x7b0   : > { %v1451_v6 = vpop.permute.xlu1 %1450 }
 0x7b1   : > { %2036 = vmatprep.subr.bf16.mxu1 %v1451_v6  ;;  %2149 = vrcp.f32 %v1441_v5 }
 0x7b2   : > { %v1432_v53 = vpop.xlane.xlu0 %1431  ;;  %2037 = vmatpush3.bf16.msra.mxu1 %v1451_v6  ;;  %2151 = vrcp.f32 %v1440_v52  ;;  %v512_v52 = vld [vmem:[%s2677_s8 + $0x8] sm:$0xff]  ;;  %v513_v6 = vld [vmem:[%s2677_s8 + $0x10] sm:$0xff] }
 0x7b3   : > { %v1439_v54 = vmax.f32 %v1432_v53, 1e-20  ;;  %v1645_v5 = vpack.c.bf16 %v512_v52, %v511_v13  ;;  %v514_v53 = vld [vmem:[%s2677_s8 + $0x18] sm:$0xff] }
 0x7b5   : > { %2153 = vrcp.f32 %v1439_v54  ;;  %2050 = vmatprep.subr.bf16.mxu0 %v1645_v5  ;;  %v1646_v54 = vpack.c.bf16 %v514_v53, %v513_v6 }
 0x7b6   : > { %v1453_v8 = vpop.permute.xlu0 %1452  ;;  %2051 = vmatpush3.bf16.msra.mxu0 %v1645_v5 }
 0x7b7   : > { %v1462_v9 = vand.u32 %v1453_v8, %v2401_v48  ;;  %v507_v48 = vld [vmem:[%s2673_s4 + $0x38] sm:$0xff]  ;;  %2052 = vmatprep.subr.bf16.mxu0 %v1646_v54  ;;  %v515_v8 = vld [vmem:[%s2677_s8 + $0x20] sm:$0xff] }
 0x7b8   : > { %v1514_v20 = vpack.c.bf16 %v507_v48, %v506_v19  ;;  %v523_v19 = vld [vmem:[%s2679_s10 + $0x18] sm:$0xff] }
 0x7b9   : > { %2038 = vmatprep.subr.bf16.mxu1 %v1462_v9 }
 0x7ba   : > { %2039 = vmatpush3.bf16.msra.mxu1 %v1462_v9  ;;  %2053 = vmatpush3.bf16.msra.mxu0 %v1646_v54  ;;  %v516_v9 = vld [vmem:[%s2677_s8 + $0x28] sm:$0xff] }
 0x7bb   : > { %v2150_v10 = vpop.eup %2149  ;;  %2044 = vmatprep.subr.bf16.mxu1 %v1514_v20 }
 0x7bc   : > { %v2152_v11 = vpop.eup %2151  ;;  %v1447_v14 = vmul.f32 %v2150_v10, %v1429_v7  ;;  %v1647_v10 = vpack.c.bf16 %v516_v9, %v515_v8 }
 0x7bd   : > { %v1446_v16 = vmul.f32 %v2152_v11, %v1428_v47  ;;  %v517_v11 = vld [vmem:[%s2677_s8 + $0x30] sm:$0xff] }
 0x7be   : > { %v1449_v18 = vpack.c.bf16 %v1447_v14, %v1447_v14  ;;  %2054 = vmatprep.subr.bf16.mxu0 %v1647_v10 }
 0x7bf   : > { %v2154_v12 = vpop.eup %2153  ;;  %2055 = vmatpush3.bf16.msra.mxu0 %v1647_v10 }
 0x7c0   : > { %v1445_v15 = vmul.f32 %v2154_v12, %v1427_v56  ;;  %v518_v12 = vld [vmem:[%s2677_s8 + $0x38] sm:$0xff] }
 0x7c1   : > { %v1648_v14 = vpack.c.bf16 %v518_v12, %v517_v11  ;;  %v1897_v12 = vld [vmem:[%s2680_s11] ss:$0 sm:$0xff] }
 0x7c2   : > { %v1448_v17 = vpack.c.bf16 %v1446_v16, %v1445_v15  ;;  %v520_v15 = vld [vmem:[%s2679_s10] sm:$0xff]  ;;  %v521_v16 = vld [vmem:[%s2679_s10 + $0x8] sm:$0xff] }
 0x7c3   : > { %2056 = vmatprep.subr.bf16.mxu0 %v1648_v14 }
 0x7c4   : > { %2040 = vmatprep.mubr.msk.bf16.mxu1 %vm700_vm4, %v1448_v17  ;;  %2057 = vmatpush3.bf16.msra.mxu0 %v1648_v14  ;;  %v522_v17 = vld [vmem:[%s2679_s10 + $0x10] sm:$0xff] }
 0x7c5   : > { %2041 = vmatmul.mubr.msk.bf16.vlgmr.msra.gmra.mrb[20].mxu1 %vm700_vm4, %v1449_v18  ;;  %v1714_v18 = vpack.c.bf16 %v521_v16, %v520_v15  ;;  %v1715_v48 = vpack.c.bf16 %v523_v19, %v522_v17 }
 0x7c6   : > { %2045 = vmatpush3.bf16.msra.mxu1 %v1514_v20  ;;  %v524_v20 = vld [vmem:[%s2679_s10 + $0x20] sm:$0xff] }
 0x7c7   : > { %2062 = vmatprep.subr.bf16.mxu1 %v1714_v18 }
 0x84c   : > { %v2026_v21 = vpop.f32.mrb[16].mxu1 }
 0x84d   : > { %v1334_v22 = vadd.f32 %v2026_v21, %v1093_v59  ;;  %v1318_v23 = vpop.f32.mrb[17].mxu1  ;;  %v525_v21 = vld [vmem:[%s2679_s10 + $0x28] sm:$0xff] }
 0x84e   : > { %v1332_v24 = vadd.f32 %v1318_v23, %v1085_v62  ;;  %v2027_v27 = vpop.f32.mrb[18].mxu1  ;;  %v526_v23 = vld [vmem:[%s2679_s10 + $0x30] sm:$0xff] }
 0x84f   : > { %v1321_v29 = vpop.f32.mrb[19].mxu1 }
 0x850   : > { %v1333_v30 = vadd.f32 %v1321_v29, %v1088_v61  ;;  %v528_v29 = vld [vmem:[%s2679_s10 + $0x40] sm:$0xff] }
 0x898   : > { %v2042_v31 = vpop.f32.mrb[20].mxu1 }
 0x899   : > { %v1498_v32 = vpop.f32.mrb[21].mxu1  ;;  %v1513_v36 = vpack.c.bf16 %v2042_v31, %v2042_v31 }
 0x89a   : > { %v2043_v33 = vpop.f32.mrb[22].mxu1 }
 0x89b   : > { %v1501_v34 = vpop.f32.mrb[23].mxu1  ;;  %v531_v33 = vld [vmem:[%s2679_s10 + $0x58] sm:$0xff] }
 0x89c   : > { %v1512_v35 = vpack.c.bf16 %v1501_v34, %v1498_v32  ;;  %v530_v32 = vld [vmem:[%s2679_s10 + $0x50] sm:$0xff] }
 0x89d   : > { %v1719_v34 = vpack.c.bf16 %v531_v33, %v530_v32  ;;  %v1898_v32 = vld [vmem:[%s2681_s12] ss:$0 sm:$0xff] }
 0x89e   : > { %2046 = vmatprep.mubr.msk.bf16.mxu1 %vm626_vm1, %v1512_v35 }
 0x89f   : > { %2047 = vmatmul.mubr.msk.bf16.vlgmr.msra.gmra.mrb[24].mxu1 %vm626_vm1, %v1513_v36 }
 0x8a0   : > { %2063 = vmatpush3.bf16.msra.mxu1 %v1714_v18 }
 0x8a1   : > { %2064 = vmatprep.subr.bf16.mxu1 %v1715_v48 }
 0x8a4   : > { %2065 = vmatpush3.bf16.msra.mxu1 %v1715_v48 }
 0x972   : > { %v2048_v37 = vpop.f32.mrb[24].mxu1 }
 0x973   : > { %v1571_v39 = vadd.f32 %v2048_v37, %v1334_v22  ;;  %v1555_v40 = vpop.f32.mrb[25].mxu1  ;;  %v1716_v22 = vpack.c.bf16 %v525_v21, %v524_v20 }
 0x974   : > { %v1569_v41 = vadd.f32 %v1555_v40, %v1332_v24  ;;  %v2049_v42 = vpop.f32.mrb[26].mxu1  ;;  %v527_v24 = vld [vmem:[%s2679_s10 + $0x38] sm:$0xff] }
 0x975   : > { %v1558_v43 = vpop.f32.mrb[27].mxu1  ;;  %v1580_v44 = vadd.f32 %v1891_v38, %v1571_v39  ;;  %2066 = vmatprep.subr.bf16.mxu1 %v1716_v22  ;;  %v1717_v27 = vpack.c.bf16 %v527_v24, %v526_v23 }
 0x976   : > { %v1578_v47 = vadd.f32 %v1891_v38, %v1569_v41  ;;  %v1570_v49 = vadd.f32 %v1558_v43, %v1333_v30  ;;  %v529_v30 = vld [vmem:[%s2679_s10 + $0x48] sm:$0xff]  ;;  %2067 = vmatpush3.bf16.msra.mxu1 %v1716_v22 }
 0x977   : > { %v1583_v57 = vadd.f32 %v1580_v44, %v2325_v28  ;;  %2068 = vmatprep.subr.bf16.mxu1 %v1717_v27  ;;  %v1718_v31 = vpack.c.bf16 %v529_v30, %v528_v29 }
 0x978   : > { %v1579_v50 = vadd.f32 %v1891_v38, %v1570_v49  ;;  %v1581_v7 = vadd.f32 %v1578_v47, %v2317_v25  ;;  %v1892_v47 = vld [vmem:[%s2675_s6] ss:$0 sm:$0xff] }
 0x979   : > { %v1591_v59 = vsel %vm1590_vm7, %v1583_v57, 0.0 }
 0x97a   : > { %v1584_v55 = vsel %vm560_vm0, %v1581_v7, 0.0  ;;  %v1582_v56 = vadd.f32 %v1579_v50, %v2319_v26  ;;  %2069 = vmatpush3.bf16.msra.mxu1 %v1717_v27 }
 0x97b   : > { %1585 = vadd.xlane.f32.xlu1 %v1584_v55  ;;  %2070 = vmatprep.subr.bf16.mxu1 %v1718_v31 }
 0x97c   : > { %v1587_v58 = vsel %vm560_vm0, %v1582_v56, 0.0 }
 0x97d   : > { %1588 = vadd.xlane.f32.xlu0 %v1587_v58 }
 0x97e   : > { %2071 = vmatpush3.bf16.msra.mxu1 %v1718_v31 }
 0x97f   : > { %1592 = vadd.xlane.f32.xlu1 %v1591_v59  ;;  %2072 = vmatprep.subr.bf16.mxu1 %v1719_v34 }
 0x982   : > { %2073 = vmatpush3.bf16.msra.mxu1 %v1719_v34  ;;  %v1899_v34 = vld [vmem:[%s2682_s13] ss:$0 sm:$0xff] }
 0xa08   : > { %v1586_v60 = vpop.xlane.xlu1 %1585 }
 0xa09   : > { %v1595_v62 = vmul.f32 0.015625, %v1586_v60 }
 0xa0a   : > { %v1589_v45 = vpop.xlane.xlu0 %1588 }
 0xa0b   : > { %v2549_v63 = vsub.f32 %v1581_v7, %v1595_v62  ;;  %v1596_v25 = vmul.f32 0.015625, %v1589_v45 }
 0xa0c   : > { %v1593_v61 = vpop.xlane.xlu1 %1592 }
 0xa0d   : > { %v2551_v51 = vsub.f32 %v1582_v56, %v1596_v25  ;;  %v1597_v26 = vmul.f32 0.015625, %v1593_v61  ;;  %v1601_v28 = vmul.f32 %v2549_v63, %v2549_v63 }
 0xa0f   : > { %v2555_v0 = vsub.f32 %v1583_v57, %v1597_v26  ;;  %v1604_v1 = vsel %vm560_vm0, %v1601_v28, 0.0  ;;  %v1602_v2 = vmul.f32 %v2551_v51, %v2551_v51  ;;  %v1893_v57 = vld [vmem:[%s2676_s7] ss:$0 sm:$0xff]  ;;  %v533_v26 = vld [vmem:[%s2679_s10 + $0x68] sm:$0xff] }
 0xa10   : > { %1605 = vadd.xlane.f32.xlu0 %v1604_v1  ;;  %v535_v1 = vld [vmem:[%s2679_s10 + $0x78] sm:$0xff] }
 0xa11   : > { %v1607_v3 = vsel %vm560_vm0, %v1602_v2, 0.0  ;;  %v1603_v4 = vmul.f32 %v2555_v0, %v2555_v0 }
 0xa12   : > { %1608 = vadd.xlane.f32.xlu1 %v1607_v3  ;;  %v1894_v3 = vld [vmem:[%s2678_s9] ss:$0 sm:$0xff] }
 0xa13   : > { %v1610_v46 = vsel %vm1590_vm7, %v1603_v4, 0.0 }
 0xa14   : > { %1611 = vadd.xlane.f32.xlu0 %v1610_v46 }
 0xa9d   : > { %v1606_v35 = vpop.xlane.xlu0 %1605 }
 0xa9e   : > { %v1613_v36 = vmul.f32 0.015625, %v1606_v35 }
 0xa9f   : > { %v1609_v37 = vpop.xlane.xlu1 %1608 }
 0xaa0   : > { %v1616_v38 = vadd.f32 1e-05, %v1613_v36  ;;  %v1614_v39 = vmul.f32 0.015625, %v1609_v37 }
 0xaa1   : > { %v1612_v40 = vpop.xlane.xlu0 %1611 }
 0xaa2   : > { %2155 = vrsqrt.f32 %v1616_v38  ;;  %v1617_v41 = vadd.f32 1e-05, %v1614_v39  ;;  %v1615_v42 = vmul.f32 0.015625, %v1612_v40 }
 0xaa4   : > { %2157 = vrsqrt.f32 %v1617_v41  ;;  %v1618_v43 = vadd.f32 1e-05, %v1615_v42 }
 0xaa6   : > { %2159 = vrsqrt.f32 %v1618_v43 }
 0xaac   : > { %v2156_v44 = vpop.eup %2155 }
 0xaad   : > { %v1622_v49 = vmul.f32 %v2156_v44, %v2549_v63 }
 0xaae   : > { %v2158_v50 = vpop.eup %2157 }
 0xaaf   : > { %v1623_v7 = vmul.f32 %v2158_v50, %v2551_v51  ;;  %v1631_v55 = vmul.f32 %v1892_v47, %v1622_v49  ;;  %v532_v51 = vld [vmem:[%s2679_s10 + $0x60] sm:$0xff] }
 0xab0   : > { %v2160_v56 = vpop.eup %2159  ;;  %v1720_v28 = vpack.c.bf16 %v533_v26, %v532_v51 }
 0xab1   : > { %v1624_v58 = vmul.f32 %v2160_v56, %v2555_v0  ;;  %v1632_v59 = vmul.f32 %v1892_v47, %v1623_v7  ;;  %v1640_v60 = vadd.f32 %v1893_v57, %v1631_v55  ;;  %v534_v0 = vld [vmem:[%s2679_s10 + $0x70] sm:$0xff] }
 0xab2   : > { %2074 = vmatprep.subr.bf16.mxu1 %v1720_v28  ;;  %v1721_v2 = vpack.c.bf16 %v535_v1, %v534_v0 }
 0xab3   : > { %v1641_v62 = vadd.f32 %v1893_v57, %v1632_v59  ;;  %v1633_v45 = vmul.f32 %v1892_v47, %v1624_v58  ;;  %2075 = vmatpush3.bf16.msra.mxu1 %v1720_v28 }
 0xab4   : > { %2076 = vmatprep.subr.bf16.mxu1 %v1721_v2 }
 0xab5   : > { %v1643_v25 = vpack.c.bf16 %v1641_v62, %v1640_v60  ;;  %v1642_v61 = vadd.f32 %v1893_v57, %v1633_v45 }
 0xab7   : > { %2058 = vmatprep.mubr.msk.bf16.mxu0 %vm560_vm0, %v1643_v25  ;;  %v1644_v63 = vpack.c.bf16 %v1642_v61, %v1642_v61  ;;  %2077 = vmatpush3.bf16.msra.mxu1 %v1721_v2 }
 0xab9   : > { %2059 = vmatmul.mubr.msk.bf16.vlgmr.msra.gmra.mrb[28].mxu0 %vm560_vm0, %v1644_v63 }
 0xb8c   : > { %v2060_v4 = vpop.f32.mrb[28].mxu0 }
 0xb8d   : > { %v1704_v46 = vadd.f32 %v2060_v4, %v1894_v3  ;;  %v1695_v13 = vpop.f32.mrb[29].mxu0 }
 0xb8e   : > { %v1696_v52 = vadd.f32 %v1894_v3, %v1695_v13  ;;  %v2061_v5 = vpop.f32.mrb[30].mxu0 }
 0xb8f   : > { %v1698_v6 = vpop.f32.mrb[31].mxu0  ;;  %v1711_v54 = vmax.f32 %v1704_v46, 0.0 }
 0xb90   : > { %v1699_v53 = vadd.f32 %v1894_v3, %v1698_v6  ;;  %v1709_v8 = vmax.f32 %v1696_v52, 0.0 }
 0xb91   : > { %v1713_v11 = vpack.c.bf16 %v1711_v54, %v1711_v54 }
 0xb92   : > { %v1710_v9 = vmax.f32 %v1699_v53, 0.0 }
 0xb94   : > { %v1712_v10 = vpack.c.bf16 %v1710_v9, %v1709_v8 }
 0xb96   : > { %2078 = vmatprep.mubr.bf16.mxu1 %v1712_v10 }
 0xb97   : > { %2079 = vmatmul.mubr.bf16.vlgmr.msra.gmra.mrb[28].mxu1 %v1713_v11 }
 0xc6a   : > { %v2080_v14 = vpop.f32.mrb[28].mxu1 }
 0xc6b   : > { %v1762_v15 = vpop.f32.mrb[29].mxu1 }
 0xc6c   : > { %v1763_v16 = vadd.f32 %v1897_v12, %v1762_v15  ;;  %v2081_v17 = vpop.f32.mrb[30].mxu1 }
 0xc6d   : > { %v1765_v18 = vpop.f32.mrb[31].mxu1 }
 0xc6e   : > { %v1774_v19 = vadd.f32 %v1763_v16, %v1640_v60 }
 0xc70   : > { %v1775_v48 = vsel %vm560_vm0, %v1774_v19, 0.0 }
 0xc71   : > { %1776 = vadd.xlane.f32.xlu1 %v1775_v48 }
 0xcfe   : > { %v1777_v20 = vpop.xlane.xlu1 %1776 }
 0xcff   : > { %v1778_v21 = vmul.f32 0.015625, %v1777_v20 }
 0xd01   : > { %v1779_v22 = vsub.f32 %v1774_v19, %v1778_v21 }
 0xd03   : > { %v1780_v23 = vmul.f32 %v1779_v22, %v1779_v22 }
 0xd05   : > { %v1781_v24 = vsel %vm560_vm0, %v1780_v23, 0.0 }
 0xd06   : > { %1782 = vadd.xlane.f32.xlu0 %v1781_v24 }
 0xd93   : > { %v1783_v27 = vpop.xlane.xlu0 %1782 }
 0xd94   : > { %v1784_v29 = vmul.f32 0.015625, %v1783_v27 }
 0xd96   : > { %v1785_v30 = vadd.f32 1e-05, %v1784_v29 }
 0xd98   : > { %2161 = vrsqrt.f32 %v1785_v30 }
 0xda2   : > { %v2162_v31 = vpop.eup %2161 }
 0xda3   : > { %v1787_v33 = vmul.f32 %v2162_v31, %v1779_v22 }
 0xda5   : > { %v1794_v35 = vmul.f32 %v1898_v32, %v1787_v33 }
 0xda7   : > { %v1801_v36 = vadd.f32 %v1899_v34, %v1794_v35 }
 0xda9   : > { %1802 = vst.msk [vmem:[%s477_s17] sm:$0x1] %vm1590_vm7, %v1801_v36 }
 0xdaa PF: > { %s24_s29 = sadd.s32 1, %s2169_s29  }
 0xdab   : > { %p21_p4 = scmp.ge.s32.totalorder %s24_s29, 6  }
 0xdad   :  { %23 = sbr.rel (!%p21_p4) target bundleno = 1 (0x1), region = 109 }

// kernel: model_forward.5
= control target key start
LH: loop header
LB: loop body
LE: loop exit
PB: predicated region body
PF: predicated region fallthrough
CT: control target
= control target key end

     0   :  { %s5174_s0 = inlined_call_operand.vmem [shape: f32[2,16,64], index: 0, kind: input, shape index: {}]   ;;  %s5175_s1 = inlined_call_operand.vmem [shape: f32[2,1,16], index: 1, kind: input, shape index: {}]   ;;  %s5176_s2 = inlined_call_operand.vmem [shape: f32[16,64], index: 2, kind: input, shape index: {}]   ;;  %s5177_s3 = inlined_call_operand.vmem [shape: f32[1,64], index: 3, kind: input, shape index: {}, may-alias: {3,19}]   ;;  %s5178_s4 = inlined_call_operand.vmem [shape: f32[1,64], index: 4, kind: input, shape index: {}, may-alias: {4,18,20}]   ;;  %s5179_s5 = inlined_call_operand.vmem [shape: f32[2,64,192], index: 5, kind: input, shape index: {}]   ;;  %s5180_s6 = inlined_call_operand.vmem [shape: f32[2,1,192], index: 6, kind: input, shape index: {}]   ;;  %s5181_s7 = inlined_call_operand.vmem [shape: f32[2,64,64], index: 7, kind: input, shape index: {}]   ;;  %s5182_s8 = inlined_call_operand.vmem [shape: f32[2,1,64], index: 8, kind: input, shape index: {}, may-alias: {8,10,14,16}]   ;;  %s5183_s9 = inlined_call_operand.vmem [shape: f32[2,1,64], index: 9, kind: input, shape index: {}, may-alias: {9,15}]   ;;  %s5184_s10 = inlined_call_operand.vmem [shape: f32[2,1,64], index: 10, kind: input, shape index: {}, may-alias: {8,10,14,16}]   ;;  %s5185_s11 = inlined_call_operand.vmem [shape: f32[2,64,128], index: 11, kind: input, shape index: {}]   ;;  %s5186_s12 = inlined_call_operand.vmem [shape: f32[2,1,128], index: 12, kind: input, shape index: {}]   ;;  %s5187_s13 = inlined_call_operand.vmem [shape: f32[2,128,64], index: 13, kind: input, shape index: {}]   ;;  %s5188_s14 = inlined_call_operand.vmem [shape: f32[2,1,64], index: 14, kind: input, shape index: {}, may-alias: {8,10,14,16}]   ;;  %s5189_s15 = inlined_call_operand.vmem [shape: f32[2,1,64], index: 15, kind: input, shape index: {}, may-alias: {9,15}]   ;;  %s5190_s16 = inlined_call_operand.vmem [shape: f32[2,1,64], index: 16, kind: input, shape index: {}, may-alias: {8,10,14,16}]   ;;  %s5191_s17 = inlined_call_operand.vmem [shape: f32[64,64], index: 17, kind: input, shape index: {}]   ;;  %s5192_s18 = inlined_call_operand.vmem [shape: f32[1,64], index: 18, kind: input, shape index: {}, may-alias: {4,18,20}]   ;;  %s5193_s19 = inlined_call_operand.vmem [shape: f32[1,64], index: 19, kind: input, shape index: {}, may-alias: {3,19}]   ;;  %s5194_s20 = inlined_call_operand.vmem [shape: f32[1,64], index: 20, kind: input, shape index: {}, may-alias: {4,18,20}]   ;;  %s5195_s21 = inlined_call_operand.vmem [shape: f32[1,128], index: 21, kind: input, shape index: {}]   ;;  %s5196_s22 = inlined_call_operand.vmem [shape: f32[2,128,64], index: 22, kind: input, shape index: {}]   ;;  %s5197_s23 = inlined_call_operand.vmem [shape: f32[2,16,128], index: 23, kind: input, shape index: {}]   ;;  %s5198_s24 = inlined_call_operand.hbm [shape: f32[2,16,128], index: 24, kind: output, shape index: {0}]   ;;  %s5199_s25 = inlined_call_operand.vmem [shape: f32[2,16,1], index: 25, kind: output, shape index: {1}]  }
   0x1   :  { %5232 = sst [smem:[#allocation14_spill]] %s5174_s0 }
   0x2   :  { %5233 = sst [smem:[#allocation15_spill]] %s5175_s1 }
   0x3   :  { %5234 = sst [smem:[#allocation16_spill]] %s5176_s2 }
   0x4   :  { %5235 = sst [smem:[#allocation17_spill]] %s5177_s3 }
   0x5   :  { %5236 = sst [smem:[#allocation18_spill]] %s5178_s4 }
   0x6   :  { %5237 = sst [smem:[#allocation19_spill]] %s5179_s5 }
   0x7   :  { %5238 = sst [smem:[#allocation20_spill]] %s5180_s6 }
   0x8   :  { %5239 = sst [smem:[#allocation21_spill]] %s5181_s7 }
   0x9   :  { %5240 = sst [smem:[#allocation22_spill]] %s5182_s8 }
   0xa   :  { %5241 = sst [smem:[#allocation23_spill]] %s5183_s9 }
   0xb   :  { %5242 = sst [smem:[#allocation24_spill]] %s5197_s23 }
   0xc   :  { %5243 = sst [smem:[#allocation25_spill]] %s5198_s24 }
   0xd   :  { %5244 = sst [smem:[#allocation26_spill]] %s5199_s25 }
   0xe   :  { %31 = vsyncpa [#allocation3], 0 }
   0xf   :  { %33 = vsyncpa [#allocation3 + $0x1], 0  ;;  %s4232_s29 = smov 0   ;;  %s4234_s2 = smov 0  }
  0x10   :  { %s4236_s6 = smov 0   ;;  %s4238_s30 = smov 0  }
  0x11 LB: > { %5245 = sst [smem:[#allocation5_spill]] %s4075_s29  ;;  %s4253_s7 = sadd.s32 4294967295, %s4087_s30   ;;  %s4087_s30 = sphi %s4238_s30, %s5287_s30   ;;  %s4083_s6 = sphi %s4236_s6, %s5289_s6   ;;  %s4079_s2 = sphi %s4234_s2, %s5291_s2   ;;  %s4075_s29 = sphi %s4232_s29, %s5290_s29  }
  0x12   : > { %5246 = sst [smem:[#allocation6_spill]] %s4083_s6  ;;  %s3407_s3 = sadd.s32 4294967294, %s4087_s30  }
  0x13   : > { %5247 = sst [smem:[#allocation7_spill]] %s4087_s30  ;;  %s4257_s26 = sadd.s32 1, %s4087_s30  }
  0x14   : > { %5248 = sst [smem:[#allocation8_spill]] %s4253_s7  ;;  %s570_s1 = sadd.s32 1, %s4083_s6 }
  0x15   : > { %5249 = sst [smem:[#allocation9_spill]] %s4257_s26  ;;  %s567_s8 = ssub.s32 %s4087_s30, %s4257_s26 }
  0x16   : > { %p580_p0 = scmp.ne.s32.totalorder %s4083_s6, %s4079_s2  ;;  %p568_p1 = scmp.eq.s32.totalorder %s567_s8, 0 }
  0x17   : > { %p581_p2 = scmp.eq.s32.totalorder %s4253_s7, 1  ;;  %p586_p3 = scmp.ne.s32.totalorder %s4079_s2, %s4075_s29 }
  0x18   : > { %p587_p4 = scmp.eq.s32.totalorder %s3407_s3, 1  ;;  %p3410_p7 = scmp.ge.s32.totalorder %s4087_s30, 1 }
  0x19   : > { %s4268_s27 = scalar_select %p568_p1, %s4083_s6, %s570_s1  }
  0x1a   : > { %p4270_p5 = por %p581_p2, %p580_p0  ;;  %p4274_p6 = por %p587_p4, %p586_p3 }
  0x1b   : > { %5250 = sst [smem:[#allocation10_spill]] %s4268_s27  ;;  %p721_p8 = scmp.lt.s32.totalorder %s4087_s30, 3 }
  0x1c   : > { %s5251_s4 = scalar_select %p4270_p5, 1, 0 }
  0x1d   : > { %s5253_s28 = scalar_select %p4274_p6, 1, 0 }
  0x1e   : > { %5252 = sst [smem:[#allocation11_spill]] %s5251_s4  ;;  %p722_p9 = pnand %p3410_p7, %p721_p8 }
  0x1f   : > { %5254 = sst [smem:[#allocation12_spill]] %s5253_s28 }
  0x20   : > { %725 = sbr.rel (%p722_p9) target bundleno = 8908 (0x22cc), region = 116 }
  0x27   : > { %p807_p10 = scmp.lt.s32.totalorder %s4253_s7, 1  ;;  %s5256_s1 = sld [smem:[#allocation16_spill]]  ;;  %vm840_vm0 = vcmask 523264   ;;  %v4089_v41 = vmov 0   ;;  %v950_v60 = vlaneseq  ;;  %v4090_v62 = vmov 0.0  }
  0x28   : > { %s5257_s28 = sld [smem:[#allocation14_spill]]  ;;  %s5258_s26 = sld [smem:[#allocation19_spill]]  ;;  %995 = vmatprep.mubr.bf16.mxu1 %v4089_v41  ;;  %3638 = vmatprep.subr.bf16.mxu0 %v4090_v62  ;;  %vm4091_vm1 = vmmov 0   ;;  %vm1010_vm2 = vcmask 130048  }
  0x29   : > { %s4282_s9 = scalar_select %p807_p10, %s4253_s7, 1  ;;  %v4363_v61 = vshrl.u32 %v950_v60, 7  ;;  %3640 = vmatprep.mubr.msk.bf16.mxu0 %vm4091_vm1, %v4090_v62 }
  0x2a   : > { %s5259_s0 = sld [smem:[#allocation17_spill]]  ;;  %s5260_s8 = sld [smem:[#allocation18_spill]] }
  0x2b   : > { %s4285_s5 = sshll.u32 %s4282_s9, 4  ;;  %v4368_v63 = vsub.s32 0, %v4363_v61  ;;  %s5217_s6 = smov 48  }
  0x2c   : > { %5255 = sst [smem:[#allocation13_spill]] %s4285_s5  ;;  %s5218_s30 = smov 96  }
  0x2d   : > { %v834_v0 = vld [vmem:[%s5256_s1] sm:$0xff]  ;;  %v835_v1 = vld [vmem:[%s5256_s1 + $0x8] sm:$0xff]  ;;  %s5271_s23 = smov 48   ;;  %s5274_s24 = smov 32  }
  0x2e   : > { %s811_s29 = scalar_lea.vmem %s5257_s28, %s4285_s5  ;;  %v885_v18 = vld [vmem:[%s5258_s26 + $0x8] sm:$0xff]  ;;  %v887_v19 = vld [vmem:[%s5258_s26 + $0x18] sm:$0xff]  ;;  %v884_v21 = vld [vmem:[%s5258_s26] sm:$0xff]  ;;  %s5216_s28 = smov 64  }
  0x2f   : > { %v832_v2 = vld [vmem:[%s811_s29] sm:$0xff]  ;;  %v833_v3 = vld [vmem:[%s811_s29 + $0x8] sm:$0xff]  ;;  %v942_v20 = vpack.c.bf16 %v887_v19, %v885_v18  ;;  %v886_v22 = vld [vmem:[%s5258_s26 + $0x10] sm:$0xff]  ;;  %s5261_s29 = sld [smem:[#allocation20_spill]]  ;;  %s5278_s5 = sld [smem:[#allocation8_spill]] }
  0x30   : > { %v836_v4 = vadd.f32 %v834_v0, %v832_v2  ;;  %v837_v5 = vadd.f32 %v835_v1, %v833_v3  ;;  %v941_v23 = vpack.c.bf16 %v886_v22, %v884_v21  ;;  %v889_v24 = vld [vmem:[%s5258_s26 + $0x28] sm:$0xff]  ;;  %v891_v25 = vld [vmem:[%s5258_s26 + $0x38] sm:$0xff]  ;;  %v888_v27 = vld [vmem:[%s5258_s26 + $0x20] sm:$0xff]  ;;  %v956_v1 = vsub.s32 1, %v4363_v61 }
  0x31   : > { %963 = vmatprep.subr.bf16.mxu1 %v942_v20  ;;  %v944_v26 = vpack.c.bf16 %v891_v25, %v889_v24  ;;  %v890_v28 = vld [vmem:[%s5258_s26 + $0x30] sm:$0xff]  ;;  %v893_v30 = vld [vmem:[%s5258_s26 + $0x48] sm:$0xff]  ;;  %v895_v31 = vld [vmem:[%s5258_s26 + $0x58] sm:$0xff] }
  0x32   : > { %v841_v6 = vsel %vm840_vm0, %v836_v4, 0.0  ;;  %v844_v7 = vsel %vm840_vm0, %v837_v5, 0.0  ;;  %964 = vmatpush1.bf16.msra.mxu1 %v941_v23  ;;  %v943_v29 = vpack.c.bf16 %v890_v28, %v888_v27  ;;  %v946_v32 = vpack.c.bf16 %v895_v31, %v893_v30  ;;  %v892_v33 = vld [vmem:[%s5258_s26 + $0x40] sm:$0xff]  ;;  %v894_v34 = vld [vmem:[%s5258_s26 + $0x50] sm:$0xff]  ;;  %v897_v36 = vld [vmem:[%s5258_s26 + $0x68] sm:$0xff] }
  0x33   : > { %842 = vadd.xlane.f32.xlu0 %v841_v6  ;;  %965 = vmatprep.subr.bf16.mxu1 %v944_v26  ;;  %v945_v35 = vpack.c.bf16 %v894_v34, %v892_v33  ;;  %v899_v37 = vld [vmem:[%s5258_s26 + $0x78] sm:$0xff]  ;;  %v896_v38 = vld [vmem:[%s5258_s26 + $0x60] sm:$0xff]  ;;  %v898_v40 = vld [vmem:[%s5258_s26 + $0x70] sm:$0xff] }
  0x34   : > { %v948_v39 = vpack.c.bf16 %v899_v37, %v897_v36  ;;  %v947_v42 = vpack.c.bf16 %v898_v40, %v896_v38  ;;  %v3420_v51 = vld [vmem:[%s5259_s0] ss:$0 sm:$0xff]  ;;  %s5214_s0 = smov 112  }
  0x35   : > { %v3421_v55 = vld [vmem:[%s5260_s8] ss:$0 sm:$0xff]  ;;  %s5262_s27 = smov %s5261_s29  ;;  %s5263_s8 = sld [smem:[#allocation15_spill]] }
  0x36   : > { %966 = vmatpush1.bf16.msra.mxu1 %v943_v29  ;;  %v900_v0 = vld [vmem:[%s5261_s29] sm:$0x3]  ;;  %s5213_s29 = smov 32  }
  0x37   : > { %845 = vadd.xlane.f32.xlu0 %v844_v7  ;;  %967 = vmatprep.subr.bf16.mxu1 %v946_v32  ;;  %v953_v2 = vrot.slane %v900_v0, %v4368_v63 }
  0x3a   : > { %968 = vmatpush1.bf16.msra.mxu1 %v945_v35 }
  0x3b   : > { %969 = vmatprep.subr.bf16.mxu1 %v948_v39  ;;  %s814_s25 = scalar_lea.vmem %s5263_s8, %s4282_s9  ;;  %s5266_s8 = sld [smem:[#allocation21_spill]] }
  0x3c   : > { %v831_v19 = vld [vmem:[%s814_s25] sm:$0x1]  ;;  %s5270_s25 = sld [smem:[#allocation23_spill]] }
  0x3d   : > { %vm1060_vm3 = vcmp.gt.f32.partialorder %v831_v19, 0.5 }
  0x3e   : > { %970 = vmatpush1.bf16.msra.mxu1 %v947_v42  ;;  %v1061_v20 = vsel %vm1060_vm3, 1, %v4089_v41 }
  0x3f   : > { %3626 = vmatprep.subr.bf16.mxu1 %v4090_v62  ;;  %v1065_v21 = vrot.slane %v1061_v20, %v4368_v63 }
  0x41   : > { %vm4410_vm4 = vcmp.eq.s32.totalorder %v1065_v21, 1 }
  0xc0   : > { %v843_v8 = vpop.xlane.xlu0 %842 }
  0xc1   : > { %v848_v9 = vmul.f32 0.015625, %v843_v8 }
  0xc3   : > { %v850_v10 = vsub.f32 %v836_v4, %v848_v9  ;;  %v957_v4 = vrot.slane %v900_v0, %v956_v1 }
  0xc4   : > { %v846_v11 = vpop.xlane.xlu0 %845 }
  0xc5   : > { %v849_v12 = vmul.f32 0.015625, %v846_v11  ;;  %v852_v13 = vmul.f32 %v850_v10, %v850_v10 }
  0xc7   : > { %v851_v14 = vsub.f32 %v837_v5, %v849_v12  ;;  %v854_v15 = vsel %vm840_vm0, %v852_v13, 0.0 }
  0xc8   : > { %855 = vadd.xlane.f32.xlu1 %v854_v15 }
  0xc9   : > { %v853_v16 = vmul.f32 %v851_v14, %v851_v14 }
  0xcb   : > { %v857_v17 = vsel %vm840_vm0, %v853_v16, 0.0 }
  0xcc   : > { %858 = vadd.xlane.f32.xlu1 %v857_v17 }
 0x155   : > { %v856_v43 = vpop.xlane.xlu1 %855 }
 0x156   : > { %v860_v44 = vmul.f32 0.015625, %v856_v43 }
 0x158   : > { %v862_v45 = vadd.f32 1e-05, %v860_v44 }
 0x159   : > { %v859_v46 = vpop.xlane.xlu1 %858 }
 0x15a   : > { %3917 = vrsqrt.f32 %v862_v45  ;;  %v861_v47 = vmul.f32 0.015625, %v859_v46 }
 0x15c   : > { %v863_v48 = vadd.f32 1e-05, %v861_v47 }
 0x15e   : > { %3919 = vrsqrt.f32 %v863_v48 }
 0x164   : > { %v3918_v49 = vpop.eup %3917 }
 0x165   : > { %v866_v50 = vmul.f32 %v3918_v49, %v850_v10 }
 0x167   : > { %v874_v54 = vmul.f32 %v3420_v51, %v866_v50 }
 0x168   : > { %v3920_v52 = vpop.eup %3919 }
 0x169   : > { %v867_v53 = vmul.f32 %v3920_v52, %v851_v14  ;;  %v4356_v57 = vadd.f32 %v3421_v55, %v874_v54 }
 0x16b   : > { %v875_v56 = vmul.f32 %v3420_v51, %v867_v53 }
 0x16d   : > { %v4358_v58 = vadd.f32 %v3421_v55, %v875_v56 }
 0x16f   : > { %v940_v59 = vpack.c.bf16 %v4358_v58, %v4356_v57 }
 0x171   : > { %3422 = vmatmul.mubr.msk.bf16.vlgmr.msra.gmra.mrb[0].mxu1 %vm840_vm0, %v940_v59 }
 0x172   : > { %3628 = vmatprep.mubr.msk.bf16.mxu1 %vm4091_vm1, %v4090_v62 }
 0x244   : > { %v997_v3 = vpop.f32.mrb[0].mxu1 }
 0x245   : > { %v999_v5 = vpop.f32.mrb[1].mxu1  ;;  %v998_v7 = vadd.f32 %v997_v3, %v953_v2 }
 0x246   : > { %v1001_v6 = vpop.f32.mrb[2].mxu1  ;;  %v1000_v10 = vadd.f32 %v999_v5, %v957_v4 }
 0x247   : > { %v1002_v8 = vadd.f32 %v1001_v6, %v953_v2  ;;  %v1003_v9 = vpop.f32.mrb[3].mxu1 }
 0x248   : > { %v1004_v11 = vadd.f32 %v1003_v9, %v957_v4 }
 0x249   : > { %v4381_v12 = vpack.c.bf16 %v1002_v8, %v998_v7 }
 0x24a   : > { %v4383_v13 = vpack.c.bf16 %v1004_v11, %v1000_v10 }
 0x24b   : > { %1145 = vrot.lane.b32.xlu1 %v4381_v12, %s5217_s6  ;;  %1008 = vrot.lane.b32.xlu0 %v4381_v12, %s5216_s28  ;;  %s5220_s6 = smov 16   ;;  %s5267_s28 = smov 96  }
 0x24f   : > { %1143 = vrot.lane.b32.xlu1 %v4381_v12, %s5214_s0 }
 0x2bd   : > { %v1146_v14 = vpop.permute.xlu1 %1145  ;;  %v1009_v15 = vpop.permute.xlu0 %1008 }
 0x2be   : > { %v1015_v16 = vsel %vm1010_vm2, %v1009_v15, 0  ;;  %v1151_v17 = vsel %vm1010_vm2, %v1146_v14, 0 }
 0x2bf   : > { %3627 = vmatpush3.bf16.xpose.msra.mxu1 %v1015_v16  ;;  %3639 = vmatpush3.bf16.xpose.msra.mxu0 %v1151_v17 }
 0x2c0   : > { %3632 = vmatprep.subr.bf16.mxu1 %v4090_v62  ;;  %3650 = vmatprep.subr.bf16.mxu0 %v4090_v62 }
 0x2c1   : > { %v1144_v18 = vpop.permute.xlu1 %1143 }
 0x2c6   : > { %3629 = vmatmul.mubr.msk.bf16.vlgmr.msra.gmra.mrb[4].mxu1 %vm1010_vm2, %v4381_v12  ;;  %3641 = vmatmul.mubr.msk.bf16.vlgmr.msra.gmra.mrb[0].mxu0 %vm1010_vm2, %v1144_v18 }
 0x2c7   : > { %3633 = vmatpush3.bf16.msra.mxu1 %v4383_v13  ;;  %3634 = vmatprep.mubr.msk.bf16.mxu1 %vm4091_vm1, %v4090_v62 }
 0x2c8   : > { %3644 = vmatprep.subr.bf16.mxu1 %v4090_v62  ;;  %3652 = vmatprep.mubr.msk.bf16.mxu0 %vm4091_vm1, %v4090_v62 }
 0x399   : > { %v1051_v23 = vpop.f32.mrb[4].mxu1  ;;  %v1187_v24 = vpop.f32.mrb[0].mxu0 }
 0x39a   : > { %v1058_v25 = vmul.f32 0.25, %v1051_v23  ;;  %v3630_v26 = vpop.f32.mrb[5].mxu1  ;;  %v3642_v27 = vpop.f32.mrb[1].mxu0  ;;  %v1194_v30 = vmul.f32 0.25, %v1187_v24 }
 0x39b   : > { %v1054_v28 = vpop.f32.mrb[6].mxu1  ;;  %v1190_v29 = vpop.f32.mrb[2].mxu0 }
 0x39c   : > { %v1059_v31 = vmul.f32 0.25, %v1054_v28  ;;  %v3631_v32 = vpop.f32.mrb[7].mxu1  ;;  %v3643_v33 = vpop.f32.mrb[3].mxu0  ;;  %v1067_v34 = vsel %vm4410_vm4, %v1058_v25, -1e+30  ;;  %v1195_v38 = vmul.f32 0.25, %v1190_v29 }
 0x39d   : > { %v1069_v35 = vsel %vm1010_vm2, %v1067_v34, -inf  ;;  %v1196_v39 = vsel %vm4410_vm4, %v1194_v30, -1e+30  ;;  %v901_v32 = vld [vmem:[%s5266_s8] sm:$0xff]  ;;  %v902_v33 = vld [vmem:[%s5266_s8 + $0x8] sm:$0xff] }
 0x39e   : > { %1070 = vmax.xlane.f32.xlu1 %v1069_v35  ;;  %v1068_v36 = vsel %vm4410_vm4, %v1059_v31, -1e+30  ;;  %v1198_v40 = vsel %vm1010_vm2, %v1196_v39, -inf  ;;  %v1197_v42 = vsel %vm4410_vm4, %v1195_v38, -1e+30  ;;  %v903_v35 = vld [vmem:[%s5266_s8 + $0x10] sm:$0xff] }
 0x39f   : > { %v1072_v37 = vsel %vm1010_vm2, %v1068_v36, -inf  ;;  %v1201_v43 = vsel %vm1010_vm2, %v1197_v42, -inf }
 0x3a0   : > { %1073 = vmax.xlane.f32.xlu0 %v1072_v37 }
 0x3a4   : > { %1199 = vmax.xlane.f32.xlu0 %v1198_v40 }
 0x3a8   : > { %1202 = vmax.xlane.f32.xlu0 %v1201_v43 }
 0x42b   : > { %v1071_v44 = vpop.xlane.xlu1 %1070 }
 0x42c   : > { %v1075_v45 = vsub.f32 %v1067_v34, %v1071_v44  ;;  %v1142_v34 = vpack.c.bf16 %v902_v33, %v901_v32 }
 0x42d   : > { %v1074_v46 = vpop.xlane.xlu0 %1073 }
 0x42e   : > { %v1077_v47 = vmul.f32 1.442695, %v1075_v45  ;;  %v1076_v48 = vsub.f32 %v1068_v36, %v1074_v46  ;;  %v904_v36 = vld [vmem:[%s5266_s8 + $0x18] sm:$0xff] }
 0x42f   : > { %v1274_v37 = vpack.c.bf16 %v904_v36, %v903_v35 }
 0x430   : > { %3921 = vpow2.f32 %v1077_v47  ;;  %v1079_v49 = vmul.f32 1.442695, %v1076_v48 }
 0x431   : > { %v1200_v50 = vpop.xlane.xlu0 %1199  ;;  %3651 = vmatpush3.bf16.msra.mxu0 %v1274_v37 }
 0x432   : > { %3923 = vpow2.f32 %v1079_v49  ;;  %v1204_v51 = vsub.f32 %v1196_v39, %v1200_v50  ;;  %3662 = vmatprep.subr.bf16.mxu0 %v4090_v62 }
 0x434   : > { %v1206_v52 = vmul.f32 1.442695, %v1204_v51 }
 0x435   : > { %v1203_v53 = vpop.xlane.xlu0 %1202 }
 0x436   : > { %3925 = vpow2.f32 %v1206_v52  ;;  %v1205_v54 = vsub.f32 %v1197_v42, %v1203_v53 }
 0x438   : > { %v1208_v55 = vmul.f32 1.442695, %v1205_v54 }
 0x43a   : > { %v3922_v56 = vpop.eup %3921  ;;  %3927 = vpow2.f32 %v1208_v55 }
 0x43b   : > { %v1081_v59 = vsel %vm4410_vm4, %v3922_v56, 0.0 }
 0x43c   : > { %v3924_v60 = vpop.eup %3923  ;;  %v1083_v0 = vsel %vm1010_vm2, %v1081_v59, 0.0 }
 0x43d   : > { %1084 = vadd.xlane.f32.xlu1 %v1083_v0  ;;  %v1082_v2 = vsel %vm4410_vm4, %v3924_v60, 0.0 }
 0x43e   : > { %v1086_v3 = vsel %vm1010_vm2, %v1082_v2, 0.0 }
 0x43f   : > { %1087 = vadd.xlane.f32.xlu0 %v1086_v3 }
 0x440   : > { %v3926_v4 = vpop.eup %3925 }
 0x441   : > { %v1210_v5 = vsel %vm4410_vm4, %v3926_v4, 0.0 }
 0x442   : > { %v1212_v6 = vsel %vm1010_vm2, %v1210_v5, 0.0 }
 0x443   : > { %1213 = vadd.xlane.f32.xlu1 %v1212_v6 }
 0x444   : > { %v3928_v7 = vpop.eup %3927 }
 0x445   : > { %v1211_v8 = vsel %vm4410_vm4, %v3928_v7, 0.0 }
 0x446   : > { %v1215_v9 = vsel %vm1010_vm2, %v1211_v8, 0.0 }
 0x447   : > { %1216 = vadd.xlane.f32.xlu0 %v1215_v9 }
 0x454   : > { %1226 = vrot.lane.b32.xlu1 %v4383_v13, %s5214_s0  ;;  %s5221_s0 = smov 80  }
 0x458   : > { %1363 = vrot.lane.b32.xlu1 %v4381_v12, %s5218_s30  ;;  %s5268_s30 = sld [smem:[#allocation22_spill]] }
 0x45d   : > { %1365 = vrot.lane.b32.xlu0 %v4381_v12, %s5213_s29  ;;  %s5279_s29 = sld [smem:[#allocation24_spill]] }
 0x45e   : > { %s5269_s3 = smov %s5268_s30 }
 0x4ca   : > { %v1085_v10 = vpop.xlane.xlu1 %1084 }
 0x4cb   : > { %v1089_v11 = vmax.f32 %v1085_v10, 1e-20 }
 0x4cc   : > { %v1088_v14 = vpop.xlane.xlu0 %1087 }
 0x4cd   : > { %3929 = vrcp.f32 %v1089_v11  ;;  %v1090_v15 = vmax.f32 %v1088_v14, 1e-20 }
 0x4cf   : > { %3931 = vrcp.f32 %v1090_v15 }
 0x4d0   : > { %v1214_v16 = vpop.xlane.xlu1 %1213 }
 0x4d1   : > { %v1218_v17 = vmax.f32 %v1214_v16, 1e-20 }
 0x4d3   : > { %3933 = vrcp.f32 %v1218_v17 }
 0x4d4   : > { %v1217_v18 = vpop.xlane.xlu0 %1216  ;;  %v1227_v26 = vpop.permute.xlu1 %1226 }
 0x4d5   : > { %v1219_v19 = vmax.f32 %v1217_v18, 1e-20 }
 0x4d7   : > { %v3930_v20 = vpop.eup %3929  ;;  %3935 = vrcp.f32 %v1219_v19 }
 0x4d8   : > { %v1093_v23 = vmul.f32 %v3930_v20, %v1081_v59  ;;  %v1366_v46 = vpop.permute.xlu0 %1365  ;;  %v1364_v51 = vpop.permute.xlu1 %1363 }
 0x4d9   : > { %v3932_v21 = vpop.eup %3931  ;;  %v1371_v50 = vsel %vm1010_vm2, %v1366_v46, 0 }
 0x4da   : > { %v1094_v24 = vmul.f32 %v3932_v21, %v1082_v2 }
 0x4dc   : > { %v1095_v25 = vpack.c.bf16 %v1094_v24, %v1093_v23 }
 0x4dd   : > { %v3934_v27 = vpop.eup %3933 }
 0x4de   : > { %3635 = vmatmul.mubr.msk.bf16.vlgmr.msra.gmra.mrb[8].mxu1 %vm1010_vm2, %v1095_v25  ;;  %v1222_v29 = vmul.f32 %v3934_v27, %v1210_v5 }
 0x4df   : > { %3645 = vmatpush3.bf16.msra.mxu1 %v1227_v26  ;;  %3646 = vmatprep.mubr.msk.bf16.mxu1 %vm4091_vm1, %v4090_v62 }
 0x4e0   : > { %3656 = vmatprep.subr.bf16.mxu1 %v4090_v62 }
 0x4e1   : > { %v3936_v28 = vpop.eup %3935 }
 0x4e2   : > { %v1223_v30 = vmul.f32 %v3936_v28, %v1211_v8 }
 0x4e4   : > { %v1224_v31 = vpack.c.bf16 %v1223_v30, %v1222_v29 }
 0x4e6   : > { %3647 = vmatmul.mubr.msk.bf16.vlgmr.msra.gmra.mrb[12].mxu1 %vm1010_vm2, %v1224_v31 }
 0x4e7   : > { %3658 = vmatprep.mubr.msk.bf16.mxu1 %vm4091_vm1, %v4090_v62  ;;  %3657 = vmatpush3.bf16.msra.mxu1 %v1142_v34 }
 0x4e8   : > { %3668 = vmatprep.subr.bf16.mxu1 %v4090_v62 }
 0x5b1   : > { %v1134_v38 = vpop.f32.mrb[8].mxu1 }
 0x5b2   : > { %v3636_v39 = vpop.f32.mrb[9].mxu1 }
 0x5b3   : > { %v1137_v40 = vpop.f32.mrb[10].mxu1 }
 0x5b4   : > { %v1141_v42 = vpack.c.bf16 %v1137_v40, %v1134_v38  ;;  %v3637_v43 = vpop.f32.mrb[11].mxu1 }
 0x5b5   : > { %v906_v43 = vld [vmem:[%s5266_s8 + $0x28] sm:$0xff] }
 0x5b6   : > { %3659 = vmatmul.mubr.msk.bf16.vlgmr.msra.gmra.mrb[16].mxu1 %vm1010_vm2, %v1141_v42  ;;  %v905_v42 = vld [vmem:[%s5266_s8 + $0x20] sm:$0xff] }
 0x5b7   : > { %3670 = vmatprep.mubr.msk.bf16.mxu1 %vm4091_vm1, %v4090_v62 }
 0x5b9   : > { %v1266_v44 = vpop.f32.mrb[12].mxu1 }
 0x5ba   : > { %v3648_v45 = vpop.f32.mrb[13].mxu1 }
 0x5bb   : > { %v1269_v47 = vpop.f32.mrb[14].mxu1 }
 0x5bc   : > { %v1273_v48 = vpack.c.bf16 %v1269_v47, %v1266_v44  ;;  %v3649_v49 = vpop.f32.mrb[15].mxu1  ;;  %v1493_v44 = vpack.c.bf16 %v906_v43, %v905_v42 }
 0x5be   : > { %3653 = vmatmul.mubr.msk.bf16.vlgmr.msra.gmra.mrb[4].mxu0 %vm1010_vm2, %v1273_v48 }
 0x5bf   : > { %3663 = vmatpush3.bf16.xpose.msra.mxu0 %v1371_v50  ;;  %3664 = vmatprep.mubr.msk.bf16.mxu0 %vm4091_vm1, %v4090_v62 }
 0x5c0   : > { %3674 = vmatprep.subr.bf16.mxu0 %v4090_v62 }
 0x5c6   : > { %3665 = vmatmul.mubr.msk.bf16.vlgmr.msra.gmra.mrb[8].mxu0 %vm1010_vm2, %v1364_v51 }
 0x5c7   : > { %3676 = vmatprep.mubr.msk.bf16.mxu0 %vm4091_vm1, %v4090_v62  ;;  %3675 = vmatpush3.bf16.msra.mxu0 %v1493_v44 }
 0x5c8   : > { %3686 = vmatprep.subr.bf16.mxu0 %v4090_v62 }
 0x689   : > { %v1356_v52 = vpop.f32.mrb[16].mxu1 }
 0x68a   : > { %v3660_v53 = vpop.f32.mrb[17].mxu1 }
 0x68b   : > { %v1359_v54 = vpop.f32.mrb[18].mxu1 }
 0x68c   : > { %v3661_v55 = vpop.f32.mrb[19].mxu1 }
 0x691   : > { %v1312_v56 = vpop.f32.mrb[4].mxu0 }
 0x692   : > { %v4476_v59 = vadd.f32 %v1356_v52, %v1312_v56  ;;  %v3654_v60 = vpop.f32.mrb[5].mxu0 }
 0x693   : > { %v1315_v0 = vpop.f32.mrb[6].mxu0 }
 0x694   : > { %v4478_v2 = vadd.f32 %v1359_v54, %v1315_v0  ;;  %v3655_v3 = vpop.f32.mrb[7].mxu0 }
 0x699   : > { %v1407_v4 = vpop.f32.mrb[8].mxu0 }
 0x69a   : > { %v1414_v5 = vmul.f32 0.25, %v1407_v4  ;;  %v3666_v6 = vpop.f32.mrb[9].mxu0 }
 0x69b   : > { %v1410_v7 = vpop.f32.mrb[10].mxu0 }
 0x69c   : > { %v1415_v8 = vmul.f32 0.25, %v1410_v7  ;;  %v3667_v9 = vpop.f32.mrb[11].mxu0  ;;  %v1416_v10 = vsel %vm4410_vm4, %v1414_v5, -1e+30 }
 0x69d   : > { %v1418_v11 = vsel %vm1010_vm2, %v1416_v10, -inf }
 0x69e   : > { %1419 = vmax.xlane.f32.xlu1 %v1418_v11  ;;  %v1417_v14 = vsel %vm4410_vm4, %v1415_v8, -1e+30 }
 0x69f   : > { %v1421_v15 = vsel %vm1010_vm2, %v1417_v14, -inf }
 0x6a0   : > { %1422 = vmax.xlane.f32.xlu0 %v1421_v15 }
 0x72b   : > { %v1420_v16 = vpop.xlane.xlu1 %1419 }
 0x72c   : > { %v1424_v17 = vsub.f32 %v1416_v10, %v1420_v16 }
 0x72d   : > { %v1423_v18 = vpop.xlane.xlu0 %1422 }
 0x72e   : > { %v1426_v19 = vmul.f32 1.442695, %v1424_v17  ;;  %v1425_v20 = vsub.f32 %v1417_v14, %v1423_v18  ;;  %v907_v18 = vld [vmem:[%s5266_s8 + $0x30] sm:$0xff] }
 0x730   : > { %3937 = vpow2.f32 %v1426_v19  ;;  %v1428_v21 = vmul.f32 1.442695, %v1425_v20  ;;  %v908_v19 = vld [vmem:[%s5266_s8 + $0x38] sm:$0xff] }
 0x731   : > { %v1670_v20 = vpack.c.bf16 %v908_v19, %v907_v18 }
 0x732   : > { %3939 = vpow2.f32 %v1428_v21 }
 0x73a   : > { %v3938_v23 = vpop.eup %3937 }
 0x73b   : > { %v1430_v24 = vsel %vm4410_vm4, %v3938_v23, 0.0 }
 0x73c   : > { %v3940_v25 = vpop.eup %3939  ;;  %v1432_v26 = vsel %vm1010_vm2, %v1430_v24, 0.0 }
 0x73d   : > { %1433 = vadd.xlane.f32.xlu0 %v1432_v26  ;;  %v1431_v27 = vsel %vm4410_vm4, %v3940_v25, 0.0 }
 0x73e   : > { %v1435_v28 = vsel %vm1010_vm2, %v1431_v27, 0.0 }
 0x73f   : > { %1436 = vadd.xlane.f32.xlu1 %v1435_v28 }
 0x750   : > { %1542 = vrot.lane.b32.xlu1 %v4381_v12, %s5220_s6  ;;  %s5272_s6 = smov 64  }
 0x753   : > { %1445 = vrot.lane.b32.xlu0 %v4383_v13, %s5267_s28 }
 0x754   : > { %1540 = vrot.lane.b32.xlu1 %v4381_v12, %s5221_s0 }
 0x7ca   : > { %v1434_v29 = vpop.xlane.xlu0 %1433 }
 0x7cb   : > { %v1438_v30 = vmax.f32 %v1434_v29, 1e-20 }
 0x7cc   : > { %v1437_v31 = vpop.xlane.xlu1 %1436 }
 0x7cd   : > { %3941 = vrcp.f32 %v1438_v30  ;;  %v1439_v32 = vmax.f32 %v1437_v31, 1e-20 }
 0x7ce   : > { %v1446_v33 = vpop.permute.xlu0 %1445 }
 0x7cf   : > { %3943 = vrcp.f32 %v1439_v32  ;;  %3669 = vmatpush3.bf16.msra.mxu1 %v1446_v33 }
 0x7d0   : > { %3680 = vmatprep.subr.bf16.mxu1 %v4090_v62  ;;  %v1543_v38 = vpop.permute.xlu1 %1542 }
 0x7d1   : > { %v1548_v40 = vsel %vm1010_vm2, %v1543_v38, 0 }
 0x7d4   : > { %v1541_v12 = vpop.permute.xlu1 %1540 }
 0x7d7   : > { %v3942_v34 = vpop.eup %3941 }
 0x7d8   : > { %v1442_v36 = vmul.f32 %v3942_v34, %v1430_v24 }
 0x7d9   : > { %v3944_v35 = vpop.eup %3943 }
 0x7da   : > { %v1443_v37 = vmul.f32 %v3944_v35, %v1431_v27 }
 0x7dc   : > { %v1444_v39 = vpack.c.bf16 %v1443_v37, %v1442_v36 }
 0x7de   : > { %3671 = vmatmul.mubr.msk.bf16.vlgmr.msra.gmra.mrb[20].mxu1 %vm1010_vm2, %v1444_v39 }
 0x7df   : > { %3681 = vmatpush3.bf16.xpose.msra.mxu1 %v1548_v40  ;;  %3682 = vmatprep.mubr.msk.bf16.mxu1 %vm4091_vm1, %v4090_v62  ;;  %v3435_v40 = vld [vmem:[%s5268_s30] ss:$0 sm:$0xff] }
 0x7e0   : > { %3692 = vmatprep.subr.bf16.mxu1 %v4090_v62 }
 0x7e6   : > { %3683 = vmatmul.mubr.msk.bf16.vlgmr.msra.gmra.mrb[24].mxu1 %vm1010_vm2, %v1541_v12 }
 0x7e7   : > { %3694 = vmatprep.mubr.msk.bf16.mxu1 %vm4091_vm1, %v4090_v62  ;;  %3693 = vmatpush3.bf16.msra.mxu1 %v1670_v20 }
 0x7e8   : > { %3698 = vmatprep.subr.bf16.mxu1 %v4090_v62 }
 0x8b1   : > { %v1485_v45 = vpop.f32.mrb[20].mxu1 }
 0x8b2   : > { %v3672_v46 = vpop.f32.mrb[21].mxu1 }
 0x8b3   : > { %v1488_v47 = vpop.f32.mrb[22].mxu1 }
 0x8b4   : > { %v1492_v48 = vpack.c.bf16 %v1488_v47, %v1485_v45  ;;  %v3673_v49 = vpop.f32.mrb[23].mxu1 }
 0x8b6   : > { %3677 = vmatmul.mubr.msk.bf16.vlgmr.msra.gmra.mrb[12].mxu0 %vm1010_vm2, %v1492_v48 }
 0x8b7   : > { %3688 = vmatprep.mubr.msk.bf16.mxu0 %vm4091_vm1, %v4090_v62 }
 0x8b9   : > { %v1584_v50 = vpop.f32.mrb[24].mxu1 }
 0x8ba   : > { %v1591_v51 = vmul.f32 0.25, %v1584_v50  ;;  %v3684_v52 = vpop.f32.mrb[25].mxu1 }
 0x8bb   : > { %v1587_v53 = vpop.f32.mrb[26].mxu1 }
 0x8bc   : > { %v1592_v54 = vmul.f32 0.25, %v1587_v53  ;;  %v3685_v55 = vpop.f32.mrb[27].mxu1  ;;  %v1593_v56 = vsel %vm4410_vm4, %v1591_v51, -1e+30 }
 0x8bd   : > { %v1595_v60 = vsel %vm1010_vm2, %v1593_v56, -inf }
 0x8be   : > { %1596 = vmax.xlane.f32.xlu1 %v1595_v60  ;;  %v1594_v0 = vsel %vm4410_vm4, %v1592_v54, -1e+30 }
 0x8bf   : > { %v1598_v3 = vsel %vm1010_vm2, %v1594_v0, -inf }
 0x8c0   : > { %1599 = vmax.xlane.f32.xlu0 %v1598_v3 }
 0x8cf   : > { %1622 = vrot.lane.b32.xlu1 %v4383_v13, %s5221_s0  ;;  %s5273_s0 = smov 112  }
 0x94b   : > { %v1597_v4 = vpop.xlane.xlu1 %1596 }
 0x94c   : > { %v1601_v5 = vsub.f32 %v1593_v56, %v1597_v4 }
 0x94d   : > { %v1600_v6 = vpop.xlane.xlu0 %1599 }
 0x94e   : > { %v1603_v7 = vmul.f32 1.442695, %v1601_v5  ;;  %v1602_v8 = vsub.f32 %v1594_v0, %v1600_v6  ;;  %v913_v5 = vld [vmem:[%s5185_s11 + $0x8] sm:$0xff] }
 0x94f   : > { %v1623_v9 = vpop.permute.xlu1 %1622 }
 0x950   : > { %3945 = vpow2.f32 %v1603_v7  ;;  %v1605_v10 = vmul.f32 1.442695, %v1602_v8  ;;  %3687 = vmatpush3.bf16.msra.mxu0 %v1623_v9  ;;  %v914_v7 = vld [vmem:[%s5185_s11 + $0x10] sm:$0xff]  ;;  %v915_v8 = vld [vmem:[%s5185_s11 + $0x18] sm:$0xff] }
 0x951   : > { %v1771_v9 = vpack.c.bf16 %v915_v8, %v914_v7 }
 0x952   : > { %3947 = vpow2.f32 %v1605_v10  ;;  %v916_v10 = vld [vmem:[%s5185_s11 + $0x20] sm:$0xff] }
 0x95a   : > { %v3946_v11 = vpop.eup %3945 }
 0x95b   : > { %v1607_v14 = vsel %vm4410_vm4, %v3946_v11, 0.0  ;;  %v917_v11 = vld [vmem:[%s5185_s11 + $0x28] sm:$0xff] }
 0x95c   : > { %v3948_v15 = vpop.eup %3947  ;;  %v1609_v16 = vsel %vm1010_vm2, %v1607_v14, 0.0 }
 0x95d   : > { %1610 = vadd.xlane.f32.xlu0 %v1609_v16  ;;  %v1608_v13 = vsel %vm4410_vm4, %v3948_v15, 0.0  ;;  %v918_v15 = vld [vmem:[%s5185_s11 + $0x30] sm:$0xff]  ;;  %v919_v16 = vld [vmem:[%s5185_s11 + $0x38] sm:$0xff] }
 0x95e   : > { %v1612_v17 = vsel %vm1010_vm2, %v1608_v13, 0.0 }
 0x961   : > { %1613 = vadd.xlane.f32.xlu0 %v1612_v17 }
 0x989   : > { %v1531_v21 = vpop.f32.mrb[12].mxu0 }
 0x98a   : > { %v1538_v23 = vadd.f32 %v1531_v21, %v4476_v59  ;;  %v3678_v24 = vpop.f32.mrb[13].mxu0 }
 0x98b   : > { %v1534_v25 = vpop.f32.mrb[14].mxu0 }
 0x98c   : > { %v1539_v26 = vadd.f32 %v1534_v25, %v4478_v2  ;;  %v3679_v27 = vpop.f32.mrb[15].mxu0 }
 0x9ea   : > { %v1611_v28 = vpop.xlane.xlu0 %1610 }
 0x9eb   : > { %v1615_v29 = vmax.f32 %v1611_v28, 1e-20 }
 0x9ed   : > { %3949 = vrcp.f32 %v1615_v29 }
 0x9ee   : > { %v1614_v30 = vpop.xlane.xlu0 %1613 }
 0x9ef   : > { %v1616_v31 = vmax.f32 %v1614_v30, 1e-20  ;;  %v3437_v30 = vld [vmem:[%s5184_s10] ss:$0 sm:$0xff] }
 0x9f1   : > { %3951 = vrcp.f32 %v1616_v31 }
 0x9f7   : > { %v3950_v32 = vpop.eup %3949 }
 0x9f8   : > { %v1619_v34 = vmul.f32 %v3950_v32, %v1607_v14  ;;  %v1772_v14 = vpack.c.bf16 %v917_v11, %v916_v10 }
 0x9fb   : > { %v3952_v33 = vpop.eup %3951 }
 0x9fc   : > { %v1620_v35 = vmul.f32 %v3952_v33, %v1608_v13  ;;  %v1773_v13 = vpack.c.bf16 %v919_v16, %v918_v15 }
 0x9fe   : > { %v1621_v36 = vpack.c.bf16 %v1620_v35, %v1619_v34  ;;  %v921_v35 = vld [vmem:[%s5187_s13] sm:$0xff] }
 0xa00   : > { %3689 = vmatmul.mubr.msk.bf16.vlgmr.msra.gmra.mrb[16].mxu0 %vm1010_vm2, %v1621_v36  ;;  %v922_v36 = vld [vmem:[%s5187_s13 + $0x8] sm:$0xff] }
 0xa01   : > { %2065 = vmatprep.mubr.bf16.mxu0 %v4089_v41 }
 0xad3   : > { %v1662_v59 = vpop.f32.mrb[16].mxu0 }
 0xad4   : > { %v3690_v37 = vpop.f32.mrb[17].mxu0 }
 0xad5   : > { %v1665_v38 = vpop.f32.mrb[18].mxu0  ;;  %v923_v37 = vld [vmem:[%s5187_s13 + $0x10] sm:$0xff] }
 0xad6   : > { %v1669_v2 = vpack.c.bf16 %v1665_v38, %v1662_v59  ;;  %v3691_v39 = vpop.f32.mrb[19].mxu0  ;;  %v1843_v59 = vpack.c.bf16 %v922_v36, %v921_v35  ;;  %v924_v38 = vld [vmem:[%s5187_s13 + $0x18] sm:$0xff] }
 0xad7   : > { %v925_v39 = vld [vmem:[%s5187_s13 + $0x20] sm:$0xff] }
 0xad8   : > { %3695 = vmatmul.mubr.msk.bf16.vlgmr.msra.gmra.mrb[28].mxu1 %vm1010_vm2, %v1669_v2  ;;  %v1844_v2 = vpack.c.bf16 %v924_v38, %v923_v37 }
 0xad9   : > { %3706 = vmatprep.mubr.msk.bf16.mxu1 %vm4091_vm1, %v4090_v62 }
 0xbab   : > { %v1708_v12 = vpop.f32.mrb[28].mxu1 }
 0xbac   : > { %v1715_v42 = vadd.f32 %v1708_v12, %v1538_v23  ;;  %v3696_v43 = vpop.f32.mrb[29].mxu1 }
 0xbad   : > { %v1711_v44 = vpop.f32.mrb[30].mxu1  ;;  %v928_v43 = vld [vmem:[%s5187_s13 + $0x38] sm:$0xff] }
 0xbae   : > { %v1723_v45 = vadd.f32 %v3435_v40, %v1715_v42  ;;  %v1716_v41 = vadd.f32 %v1711_v44, %v1539_v26  ;;  %v3697_v46 = vpop.f32.mrb[31].mxu1  ;;  %v3436_v26 = vld [vmem:[%s5270_s25] ss:$0 sm:$0xff]  ;;  %v927_v42 = vld [vmem:[%s5187_s13 + $0x30] sm:$0xff] }
 0xbaf   : > { %v1846_v44 = vpack.c.bf16 %v928_v43, %v927_v42  ;;  %v931_v46 = vld [vmem:[%s5187_s13 + $0x50] sm:$0xff] }
 0xbb0   : > { %v1724_v47 = vadd.f32 %v3435_v40, %v1716_v41  ;;  %v1725_v48 = vadd.f32 %v1723_v45, %v4356_v57  ;;  %v926_v40 = vld [vmem:[%s5187_s13 + $0x28] sm:$0xff]  ;;  %v929_v45 = vld [vmem:[%s5187_s13 + $0x40] sm:$0xff] }
 0xbb1   : > { %v1845_v12 = vpack.c.bf16 %v926_v40, %v925_v39  ;;  %v930_v41 = vld [vmem:[%s5187_s13 + $0x48] sm:$0xff] }
 0xbb2   : > { %v1727_v49 = vsel %vm840_vm0, %v1725_v48, 0.0  ;;  %v1726_v50 = vadd.f32 %v1724_v47, %v4358_v58  ;;  %v912_v58 = vld [vmem:[%s5185_s11] sm:$0xff]  ;;  %v1847_v47 = vpack.c.bf16 %v930_v41, %v929_v45  ;;  %v3446_v41 = vld [vmem:[%s5258_s26 + $0x98] sm:$0xff] }
 0xbb3   : > { %1728 = vadd.xlane.f32.xlu0 %v1727_v49  ;;  %v1770_v6 = vpack.c.bf16 %v913_v5, %v912_v58 }
 0xbb4   : > { %v1730_v51 = vsel %vm840_vm0, %v1726_v50, 0.0 }
 0xbb5   : > { %3699 = vmatpush3.bf16.msra.mxu1 %v1770_v6 }
 0xbb6   : > { %3700 = vmatprep.subr.bf16.mxu1 %v4090_v62 }
 0xbb7   : > { %1731 = vadd.xlane.f32.xlu0 %v1730_v51  ;;  %v934_v51 = vld [vmem:[%s5187_s13 + $0x68] sm:$0xff] }
 0xbb9   : > { %3701 = vmatpush3.bf16.msra.mxu1 %v1771_v9 }
 0xbba   : > { %3702 = vmatprep.subr.bf16.mxu1 %v4090_v62 }
 0xbbd   : > { %3703 = vmatpush3.bf16.msra.mxu1 %v1772_v14 }
 0xbbe   : > { %3704 = vmatprep.subr.bf16.mxu1 %v4090_v62 }
 0xbc1   : > { %3705 = vmatpush3.bf16.msra.mxu1 %v1773_v13 }
 0xbc2   : > { %3710 = vmatprep.subr.bf16.mxu1 %v4090_v62 }
 0xc40   : > { %v1729_v52 = vpop.xlane.xlu0 %1728 }
 0xc41   : > { %v1733_v53 = vmul.f32 0.015625, %v1729_v52 }
 0xc43   : > { %v1735_v54 = vsub.f32 %v1725_v48, %v1733_v53  ;;  %v932_v48 = vld [vmem:[%s5187_s13 + $0x58] sm:$0xff]  ;;  %v935_v53 = vld [vmem:[%s5187_s13 + $0x70] sm:$0xff] }
 0xc44   : > { %v1732_v55 = vpop.xlane.xlu0 %1731  ;;  %v1848_v49 = vpack.c.bf16 %v932_v48, %v931_v46  ;;  %v3445_v48 = vld [vmem:[%s5258_s26 + $0x90] sm:$0xff] }
 0xc45   : > { %v1734_v56 = vmul.f32 0.015625, %v1732_v55  ;;  %v1737_v60 = vmul.f32 %v1735_v54, %v1735_v54 }
 0xc47   : > { %v1736_v0 = vsub.f32 %v1726_v50, %v1734_v56  ;;  %v1739_v3 = vsel %vm840_vm0, %v1737_v60, 0.0  ;;  %v933_v50 = vld [vmem:[%s5187_s13 + $0x60] sm:$0xff] }
 0xc48   : > { %1740 = vadd.xlane.f32.xlu0 %v1739_v3  ;;  %v1849_v52 = vpack.c.bf16 %v934_v51, %v933_v50  ;;  %v3438_v56 = vld [vmem:[%s5186_s12] ss:$0 sm:$0xff]  ;;  %v3448_v50 = vld [vmem:[%s5258_s26 + $0xa8] sm:$0xff]  ;;  %v3450_v51 = vld [vmem:[%s5258_s26 + $0xb8] sm:$0xff] }
 0xc49   : > { %v1738_v4 = vmul.f32 %v1736_v0, %v1736_v0 }
 0xc4b   : > { %v1742_v57 = vsel %vm840_vm0, %v1738_v4, 0.0 }
 0xc4c   : > { %1743 = vadd.xlane.f32.xlu0 %v1742_v57 }
 0xcd5   : > { %v1741_v17 = vpop.xlane.xlu0 %1740 }
 0xcd6   : > { %v1745_v18 = vmul.f32 0.015625, %v1741_v17 }
 0xcd8   : > { %v1747_v19 = vadd.f32 1e-05, %v1745_v18 }
 0xcd9   : > { %v1744_v20 = vpop.xlane.xlu0 %1743 }
 0xcda   : > { %3953 = vrsqrt.f32 %v1747_v19  ;;  %v1746_v21 = vmul.f32 0.015625, %v1744_v20 }
 0xcdc   : > { %v1748_v23 = vadd.f32 1e-05, %v1746_v21 }
 0xcde   : > { %3955 = vrsqrt.f32 %v1748_v23 }
 0xce4   : > { %v3954_v24 = vpop.eup %3953 }
 0xce5   : > { %v1751_v25 = vmul.f32 %v3954_v24, %v1735_v54  ;;  %v936_v54 = vld [vmem:[%s5187_s13 + $0x78] sm:$0xff] }
 0xce6   : > { %v1850_v55 = vpack.c.bf16 %v936_v54, %v935_v53  ;;  %v3447_v53 = vld [vmem:[%s5258_s26 + $0xa0] sm:$0xff]  ;;  %v3449_v54 = vld [vmem:[%s5258_s26 + $0xb0] sm:$0xff] }
 0xce7   : > { %v1759_v28 = vmul.f32 %v3436_v26, %v1751_v25 }
 0xce8   : > { %v3956_v27 = vpop.eup %3955 }
 0xce9   : > { %v1752_v29 = vmul.f32 %v3956_v27, %v1736_v0  ;;  %v4588_v32 = vadd.f32 %v3437_v30, %v1759_v28 }
 0xceb   : > { %v1760_v31 = vmul.f32 %v3436_v26, %v1752_v29  ;;  %v3440_v26 = vld [vmem:[%s5188_s14] ss:$0 sm:$0xff] }
 0xced   : > { %v4590_v33 = vadd.f32 %v3437_v30, %v1760_v31 }
 0xcef   : > { %v1769_v34 = vpack.c.bf16 %v4590_v33, %v4588_v32 }
 0xcf1   : > { %3707 = vmatmul.mubr.msk.bf16.vlgmr.msra.gmra.mrb[32].mxu1 %vm840_vm0, %v1769_v34 }
 0xcf2   : > { %3726 = vmatprep.mubr.msk.bf16.mxu1 %vm4091_vm1, %v4090_v62  ;;  %3711 = vmatpush3.bf16.msra.mxu1 %v1843_v59 }
 0xcf3   : > { %3712 = vmatprep.subr.bf16.mxu1 %v4090_v62 }
 0xcf6   : > { %3713 = vmatpush3.bf16.msra.mxu1 %v1844_v2 }
 0xcf7   : > { %3714 = vmatprep.subr.bf16.mxu1 %v4090_v62 }
 0xcfa   : > { %3715 = vmatpush3.bf16.msra.mxu1 %v1845_v12 }
 0xcfb   : > { %3716 = vmatprep.subr.bf16.mxu1 %v4090_v62 }
 0xcfe   : > { %3717 = vmatpush3.bf16.msra.mxu1 %v1846_v44 }
 0xcff   : > { %3718 = vmatprep.subr.bf16.mxu1 %v4090_v62 }
 0xd02   : > { %3719 = vmatpush3.bf16.msra.mxu1 %v1847_v47  ;;  %v3443_v47 = vld [vmem:[%s5258_s26 + $0x80] sm:$0xff] }
 0xd03   : > { %3720 = vmatprep.subr.bf16.mxu1 %v4090_v62 }
 0xd06   : > { %3721 = vmatpush3.bf16.msra.mxu1 %v1848_v49  ;;  %v2011_v49 = vpack.c.bf16 %v3445_v48, %v3443_v47 }
 0xd07   : > { %3722 = vmatprep.subr.bf16.mxu1 %v4090_v62 }
 0xd0a   : > { %3723 = vmatpush3.bf16.msra.mxu1 %v1849_v52  ;;  %v2014_v52 = vpack.c.bf16 %v3450_v51, %v3448_v50 }
 0xd0b   : > { %3724 = vmatprep.subr.bf16.mxu1 %v4090_v62 }
 0xd0e   : > { %3725 = vmatpush3.bf16.msra.mxu1 %v1850_v55  ;;  %v2013_v55 = vpack.c.bf16 %v3449_v54, %v3447_v53 }
 0xd0f   : > { %3736 = vmatprep.subr.bf16.mxu1 %v4090_v62 }
 0xdc4   : > { %v1817_v60 = vpop.f32.mrb[32].mxu1 }
 0xdc5   : > { %v1818_v0 = vadd.f32 %v3438_v56, %v1817_v60  ;;  %v3708_v3 = vpop.f32.mrb[33].mxu1  ;;  %v3454_v60 = vld [vmem:[%s5258_s26 + $0xd8] sm:$0xff] }
 0xdc6   : > { %v1820_v4 = vpop.f32.mrb[34].mxu1  ;;  %v3451_v3 = vld [vmem:[%s5258_s26 + $0xc0] sm:$0xff] }
 0xdc7   : > { %v1826_v57 = vmul.f32 0.044715, %v1818_v0  ;;  %v1821_v58 = vadd.f32 %v3438_v56, %v1820_v4  ;;  %v3709_v5 = vpop.f32.mrb[35].mxu1  ;;  %v1824_v19 = vmul.f32 0.5, %v1818_v0  ;;  %v3452_v56 = vld [vmem:[%s5258_s26 + $0xc8] sm:$0xff]  ;;  %v3453_v4 = vld [vmem:[%s5258_s26 + $0xd0] sm:$0xff] }
 0xdc8   : > { %v3458_v5 = vld [vmem:[%s5258_s26 + $0xf8] sm:$0xff] }
 0xdc9   : > { %v1828_v6 = vmul.f32 %v1826_v57, %v1818_v0  ;;  %v1827_v7 = vmul.f32 0.044715, %v1821_v58  ;;  %v1825_v20 = vmul.f32 0.5, %v1821_v58  ;;  %v2015_v57 = vpack.c.bf16 %v3453_v4, %v3451_v3 }
 0xdcb   : > { %v1830_v8 = vmul.f32 %v1828_v6, %v1818_v0  ;;  %v1829_v9 = vmul.f32 %v1827_v7, %v1821_v58  ;;  %v3455_v6 = vld [vmem:[%s5258_s26 + $0xe0] sm:$0xff] }
 0xdcd   : > { %v1832_v10 = vadd.f32 %v1830_v8, %v1818_v0  ;;  %v1831_v11 = vmul.f32 %v1829_v9, %v1821_v58  ;;  %v2016_v0 = vpack.c.bf16 %v3454_v60, %v3452_v56  ;;  %v3457_v8 = vld [vmem:[%s5258_s26 + $0xf0] sm:$0xff] }
 0xdce   : > { %v2017_v9 = vpack.c.bf16 %v3457_v8, %v3455_v6 }
 0xdcf   : > { %v1834_v14 = vmul.f32 0.7978846, %v1832_v10  ;;  %v1833_v15 = vadd.f32 %v1831_v11, %v1821_v58  ;;  %v3456_v58 = vld [vmem:[%s5258_s26 + $0xe8] sm:$0xff] }
 0xdd0   : > { %v2018_v7 = vpack.c.bf16 %v3458_v5, %v3456_v58 }
 0xdd1   : > { %3957 = vtanh.f32 %v1834_v14  ;;  %v1835_v16 = vmul.f32 0.7978846, %v1833_v15 }
 0xdd3   : > { %3959 = vtanh.f32 %v1835_v16 }
 0xddb   : > { %v3958_v13 = vpop.eup %3957 }
 0xddc   : > { %v1838_v17 = vadd.f32 1.0, %v3958_v13 }
 0xddd   : > { %v3960_v18 = vpop.eup %3959 }
 0xdde   : > { %v1839_v21 = vadd.f32 1.0, %v3960_v18  ;;  %v1840_v23 = vmul.f32 %v1838_v17, %v1824_v19  ;;  %v3441_v19 = vld [vmem:[%s5189_s15] ss:$0 sm:$0xff] }
 0xde0   : > { %v1841_v24 = vmul.f32 %v1839_v21, %v1825_v20 }
 0xde2   : > { %v1842_v25 = vpack.c.bf16 %v1841_v24, %v1840_v23  ;;  %v3442_v24 = vld [vmem:[%s5190_s16] ss:$0 sm:$0xff] }
 0xde4   : > { %3727 = vmatmul.mubr.bf16.vlgmr.msra.gmra.mrb[36].mxu1 %v1842_v25 }
 0xde5   : > { %3738 = vmatprep.mubr.msk.bf16.mxu1 %vm4091_vm1, %v4090_v62 }
 0xeb7   : > { %v1891_v27 = vpop.f32.mrb[36].mxu1 }
 0xeb8   : > { %v1892_v28 = vadd.f32 %v3440_v26, %v1891_v27  ;;  %v3728_v29 = vpop.f32.mrb[37].mxu1 }
 0xeb9   : > { %v1894_v30 = vpop.f32.mrb[38].mxu1  ;;  %v3459_v29 = vld [vmem:[%s5262_s27 + $0x2] sm:$0x3] }
 0xeba   : > { %v1895_v31 = vadd.f32 %v3440_v26, %v1894_v30  ;;  %v3729_v34 = vpop.f32.mrb[39].mxu1  ;;  %v1898_v35 = vadd.f32 %v1892_v28, %v4588_v32  ;;  %v2023_v30 = vrot.slane %v3459_v29, %v4368_v63 }
 0xebb   : > { %v2027_v34 = vrot.slane %v3459_v29, %v956_v1 }
 0xebc   : > { %v1900_v36 = vsel %vm840_vm0, %v1898_v35, 0.0  ;;  %v1899_v59 = vadd.f32 %v1895_v31, %v4590_v33  ;;  %v3444_v33 = vld [vmem:[%s5258_s26 + $0x88] sm:$0xff] }
 0xebd   : > { %1901 = vadd.xlane.f32.xlu1 %v1900_v36  ;;  %v2012_v46 = vpack.c.bf16 %v3446_v41, %v3444_v33 }
 0xebe   : > { %v1903_v37 = vsel %vm840_vm0, %v1899_v59, 0.0 }
 0xebf   : > { %1904 = vadd.xlane.f32.xlu0 %v1903_v37  ;;  %2033 = vmatprep.subr.bf16.mxu0 %v2012_v46 }
 0xec0   : > { %2034 = vmatpush1.bf16.msra.mxu0 %v2011_v49 }
 0xec1   : > { %2035 = vmatprep.subr.bf16.mxu0 %v2014_v52 }
 0xec4   : > { %2036 = vmatpush1.bf16.msra.mxu0 %v2013_v55 }
 0xec5   : > { %2037 = vmatprep.subr.bf16.mxu0 %v2016_v0 }
 0xec8   : > { %2038 = vmatpush1.bf16.msra.mxu0 %v2015_v57 }
 0xec9   : > { %2039 = vmatprep.subr.bf16.mxu0 %v2018_v7 }
 0xecc   : > { %2040 = vmatpush1.bf16.msra.mxu0 %v2017_v9 }
 0xecd   : > { %3730 = vmatprep.subr.bf16.mxu0 %v4090_v62 }
 0xf4a   : > { %v1902_v38 = vpop.xlane.xlu1 %1901 }
 0xf4b   : > { %v1906_v2 = vmul.f32 0.015625, %v1902_v38 }
 0xf4c   : > { %v1905_v39 = vpop.xlane.xlu0 %1904 }
 0xf4d   : > { %v1908_v40 = vsub.f32 %v1898_v35, %v1906_v2  ;;  %v1907_v12 = vmul.f32 0.015625, %v1905_v39 }
 0xf4f   : > { %v1909_v42 = vsub.f32 %v1899_v59, %v1907_v12  ;;  %v1910_v43 = vmul.f32 %v1908_v40, %v1908_v40 }
 0xf51   : > { %v1912_v44 = vsel %vm840_vm0, %v1910_v43, 0.0  ;;  %v1911_v45 = vmul.f32 %v1909_v42, %v1909_v42 }
 0xf52   : > { %1913 = vadd.xlane.f32.xlu0 %v1912_v44 }
 0xf53   : > { %v1915_v32 = vsel %vm840_vm0, %v1911_v45, 0.0 }
 0xf56   : > { %1916 = vadd.xlane.f32.xlu0 %v1915_v32 }
 0xfdf   : > { %v1914_v10 = vpop.xlane.xlu0 %1913 }
 0xfe0   : > { %v1918_v11 = vmul.f32 0.015625, %v1914_v10 }
 0xfe2   : > { %v1920_v14 = vadd.f32 1e-05, %v1918_v11 }
 0xfe3   : > { %v1917_v15 = vpop.xlane.xlu0 %1916 }
 0xfe4   : > { %3961 = vrsqrt.f32 %v1920_v14  ;;  %v1919_v16 = vmul.f32 0.015625, %v1917_v15 }
 0xfe6   : > { %v1921_v13 = vadd.f32 1e-05, %v1919_v16 }
 0xfe8   : > { %3963 = vrsqrt.f32 %v1921_v13 }
 0xfee   : > { %v3962_v17 = vpop.eup %3961 }
 0xfef   : > { %v1924_v18 = vmul.f32 %v3962_v17, %v1908_v40 }
 0xff1   : > { %v1932_v21 = vmul.f32 %v3441_v19, %v1924_v18 }
 0xff2   : > { %v3964_v20 = vpop.eup %3963 }
 0xff3   : > { %v1925_v23 = vmul.f32 %v3964_v20, %v1909_v42  ;;  %v4722_v26 = vadd.f32 %v3442_v24, %v1932_v21 }
 0xff5   : > { %v1933_v25 = vmul.f32 %v3441_v19, %v1925_v23 }
 0xff7   : > { %v4724_v27 = vadd.f32 %v3442_v24, %v1933_v25 }
 0xff9   : > { %v2010_v28 = vpack.c.bf16 %v4724_v27, %v4722_v26 }
 0xffb   : > { %3499 = vmatmul.mubr.msk.bf16.vlgmr.msra.gmra.mrb[20].mxu0 %vm840_vm0, %v2010_v28 }
 0xffc   : > { %3732 = vmatprep.mubr.msk.bf16.mxu0 %vm4091_vm1, %v4090_v62 }
0x10ce   : > { %v2067_v31 = vpop.f32.mrb[20].mxu0 }
0x10cf   : > { %v2069_v35 = vpop.f32.mrb[21].mxu0  ;;  %v2068_v59 = vadd.f32 %v2067_v31, %v2023_v30 }
0x10d0   : > { %v2071_v36 = vpop.f32.mrb[22].mxu0  ;;  %v2070_v2 = vadd.f32 %v2069_v35, %v2027_v34 }
0x10d1   : > { %v2072_v37 = vadd.f32 %v2071_v36, %v2023_v30  ;;  %v2073_v38 = vpop.f32.mrb[23].mxu0 }
0x10d2   : > { %v2074_v39 = vadd.f32 %v2073_v38, %v2027_v34 }
0x10d3   : > { %v4737_v40 = vpack.c.bf16 %v2072_v37, %v2068_v59 }
0x10d4   : > { %v4739_v12 = vpack.c.bf16 %v2074_v39, %v2070_v2 }
0x10d5   : > { %2207 = vrot.lane.b32.xlu1 %v4737_v40, %s5271_s23  ;;  %2078 = vrot.lane.b32.xlu0 %v4737_v40, %s5272_s6  ;;  %s5229_s23 = sand.u32 1, %s4079_s2  }
0x10d6   : > { %3737 = vmatpush3.bf16.msra.mxu1 %v4739_v12  ;;  %s3411_s6 = sshll.u32 %s5229_s23, 4 }
0x10d7   : > { %3748 = vmatprep.subr.bf16.mxu1 %v4090_v62  ;;  %s5106_s7 = scalar_lea.vmem [#allocation2], %s3411_s6  ;;  %s3535_s6 = sshll.u32 %s5278_s5, 8 }
0x10d8   : > { %s4099_s5 = smov [#allocation2]  }
0x10d9   : > { %2205 = vrot.lane.b32.xlu0 %v4737_v40, %s5273_s0 }
0x1147   : > { %v2079_v61 = vpop.permute.xlu0 %2078  ;;  %v2208_v1 = vpop.permute.xlu1 %2207 }
0x1148   : > { %v2084_v63 = vsel %vm1010_vm2, %v2079_v61, 0  ;;  %v2213_v42 = vsel %vm1010_vm2, %v2208_v1, 0 }
0x1149   : > { %3731 = vmatpush3.bf16.xpose.msra.mxu0 %v2084_v63 }
0x114a   : > { %3742 = vmatprep.subr.bf16.mxu0 %v4090_v62 }
0x114b   : > { %v2206_v43 = vpop.permute.xlu0 %2205 }
0x1150   : > { %3733 = vmatmul.mubr.msk.bf16.vlgmr.msra.gmra.mrb[24].mxu0 %vm1010_vm2, %v4737_v40 }
0x1151   : > { %3743 = vmatpush3.bf16.xpose.msra.mxu0 %v2213_v42  ;;  %3744 = vmatprep.mubr.msk.bf16.mxu0 %vm4091_vm1, %v4090_v62 }
0x1152   : > { %3754 = vmatprep.subr.bf16.mxu0 %v4090_v62 }
0x1158   : > { %3745 = vmatmul.mubr.msk.bf16.vlgmr.msra.gmra.mrb[28].mxu0 %vm1010_vm2, %v2206_v43 }
0x1159   : > { %3756 = vmatprep.mubr.msk.bf16.mxu0 %vm4091_vm1, %v4090_v62 }
0x1223   : > { %v2120_v44 = vpop.f32.mrb[24].mxu0 }
0x1224   : > { %v2127_v45 = vmul.f32 0.25, %v2120_v44  ;;  %v3734_v32 = vpop.f32.mrb[25].mxu0 }
0x1225   : > { %v2123_v33 = vpop.f32.mrb[26].mxu0 }
0x1226   : > { %v2128_v41 = vmul.f32 0.25, %v2123_v33  ;;  %v3735_v46 = vpop.f32.mrb[27].mxu0  ;;  %v2129_v47 = vsel %vm4410_vm4, %v2127_v45, -1e+30 }
0x1227   : > { %v2131_v48 = vsel %vm1010_vm2, %v2129_v47, -inf  ;;  %v3460_v46 = vld [vmem:[%s5266_s8 + $0x40] sm:$0xff] }
0x1228   : > { %2132 = vmax.xlane.f32.xlu0 %v2131_v48  ;;  %v2130_v49 = vsel %vm4410_vm4, %v2128_v41, -1e+30 }
0x1229   : > { %v2134_v50 = vsel %vm1010_vm2, %v2130_v49, -inf }
0x122a   : > { %2135 = vmax.xlane.f32.xlu1 %v2134_v50  ;;  %v3463_v50 = vld [vmem:[%s5266_s8 + $0x58] sm:$0xff] }
0x122b   : > { %v2249_v51 = vpop.f32.mrb[28].mxu0 }
0x122c   : > { %v2256_v52 = vmul.f32 0.25, %v2249_v51  ;;  %v3746_v53 = vpop.f32.mrb[29].mxu0 }
0x122d   : > { %v2252_v54 = vpop.f32.mrb[30].mxu0 }
0x122e   : > { %v2257_v55 = vmul.f32 0.25, %v2252_v54  ;;  %v3747_v56 = vpop.f32.mrb[31].mxu0  ;;  %v2258_v60 = vsel %vm4410_vm4, %v2256_v52, -1e+30 }
0x122f   : > { %v2260_v0 = vsel %vm1010_vm2, %v2258_v60, -inf }
0x1230   : > { %2261 = vmax.xlane.f32.xlu0 %v2260_v0  ;;  %v2259_v3 = vsel %vm4410_vm4, %v2257_v55, -1e+30 }
0x1231   : > { %v2263_v4 = vsel %vm1010_vm2, %v2259_v3, -inf }
0x1234   : > { %2264 = vmax.xlane.f32.xlu0 %v2263_v4 }
0x12b5   : > { %v2133_v57 = vpop.xlane.xlu0 %2132 }
0x12b6   : > { %v2137_v58 = vsub.f32 %v2129_v47, %v2133_v57  ;;  %v3461_v47 = vld [vmem:[%s5266_s8 + $0x48] sm:$0xff] }
0x12b7   : > { %v2136_v5 = vpop.xlane.xlu1 %2135  ;;  %v2204_v48 = vpack.c.bf16 %v3461_v47, %v3460_v46 }
0x12b8   : > { %v2139_v6 = vmul.f32 1.442695, %v2137_v58  ;;  %v2138_v7 = vsub.f32 %v2130_v49, %v2136_v5  ;;  %v3462_v49 = vld [vmem:[%s5266_s8 + $0x50] sm:$0xff] }
0x12b9   : > { %v2336_v51 = vpack.c.bf16 %v3463_v50, %v3462_v49 }
0x12ba   : > { %3965 = vpow2.f32 %v2139_v6  ;;  %v2141_v8 = vmul.f32 1.442695, %v2138_v7 }
0x12bb   : > { %3755 = vmatpush3.bf16.msra.mxu0 %v2336_v51  ;;  %v3464_v51 = vld [vmem:[%s5266_s8 + $0x60] sm:$0xff] }
0x12bc   : > { %3967 = vpow2.f32 %v2141_v8  ;;  %3766 = vmatprep.subr.bf16.mxu0 %v4090_v62 }
0x12bd   : > { %v2262_v9 = vpop.xlane.xlu0 %2261 }
0x12be   : > { %v2266_v10 = vsub.f32 %v2258_v60, %v2262_v9 }
0x12c0   : > { %v2268_v11 = vmul.f32 1.442695, %v2266_v10 }
0x12c1   : > { %v2265_v14 = vpop.xlane.xlu0 %2264 }
0x12c2   : > { %3969 = vpow2.f32 %v2268_v11  ;;  %v2267_v15 = vsub.f32 %v2259_v3, %v2265_v14 }
0x12c4   : > { %v3966_v16 = vpop.eup %3965  ;;  %v2270_v13 = vmul.f32 1.442695, %v2267_v15 }
0x12c5   : > { %v2143_v17 = vsel %vm4410_vm4, %v3966_v16, 0.0 }
0x12c6   : > { %v3968_v18 = vpop.eup %3967  ;;  %3971 = vpow2.f32 %v2270_v13  ;;  %v2145_v19 = vsel %vm1010_vm2, %v2143_v17, 0.0 }
0x12c7   : > { %2146 = vadd.xlane.f32.xlu0 %v2145_v19  ;;  %v2144_v20 = vsel %vm4410_vm4, %v3968_v18, 0.0 }
0x12c8   : > { %v2148_v21 = vsel %vm1010_vm2, %v2144_v20, 0.0 }
0x12cb   : > { %2149 = vadd.xlane.f32.xlu0 %v2148_v21 }
0x12cc   : > { %v3970_v23 = vpop.eup %3969 }
0x12cd   : > { %v2272_v24 = vsel %vm4410_vm4, %v3970_v23, 0.0 }
0x12ce   : > { %v2274_v25 = vsel %vm1010_vm2, %v2272_v24, 0.0 }
0x12cf   : > { %2275 = vadd.xlane.f32.xlu0 %v2274_v25 }
0x12d0   : > { %v3972_v28 = vpop.eup %3971 }
0x12d1   : > { %v2273_v29 = vsel %vm4410_vm4, %v3972_v28, 0.0 }
0x12d2   : > { %v2277_v30 = vsel %vm1010_vm2, %v2273_v29, 0.0 }
0x12d3   : > { %2278 = vadd.xlane.f32.xlu1 %v2277_v30 }
0x12e4   : > { %2427 = vrot.lane.b32.xlu1 %v4737_v40, %s5274_s24  ;;  %s3532_s24 = sshll.u32 %s4282_s9, 7 }
0x12e5   : > { %2288 = vrot.lane.b32.xlu0 %v4739_v12, %s5273_s0  ;;  %s5275_s0 = smov 80   ;;  %s5058_s4 = scalar_lea.vmem %s5196_s22, %s3532_s24 }
0x12e6   : > { %s5277_s24 = sld [smem:[#allocation13_spill]] }
0x12e8   : > { %2425 = vrot.lane.b32.xlu1 %v4737_v40, %s5267_s28 }
0x12ec   : > { %s824_s1 = scalar_lea.vmem %s5279_s29, %s5277_s24 }
0x1354   : > { %v2147_v31 = vpop.xlane.xlu0 %2146 }
0x1355   : > { %v2151_v34 = vmax.f32 %v2147_v31, 1e-20 }
0x1357   : > { %3973 = vrcp.f32 %v2151_v34 }
0x1358   : > { %v2150_v35 = vpop.xlane.xlu0 %2149 }
0x1359   : > { %v2152_v36 = vmax.f32 %v2150_v35, 1e-20 }
0x135b   : > { %3975 = vrcp.f32 %v2152_v36 }
0x135c   : > { %v2276_v59 = vpop.xlane.xlu0 %2275 }
0x135d   : > { %v2280_v37 = vmax.f32 %v2276_v59, 1e-20 }
0x135f   : > { %3977 = vrcp.f32 %v2280_v37 }
0x1360   : > { %v2279_v38 = vpop.xlane.xlu1 %2278  ;;  %v2289_v43 = vpop.permute.xlu0 %2288 }
0x1361   : > { %v2281_v2 = vmax.f32 %v2279_v38, 1e-20  ;;  %v3974_v39 = vpop.eup %3973 }
0x1362   : > { %v2155_v63 = vmul.f32 %v3974_v39, %v2143_v17 }
0x1363   : > { %3979 = vrcp.f32 %v2281_v2 }
0x1364   : > { %v2428_v3 = vpop.permute.xlu1 %2427 }
0x1365   : > { %v3976_v61 = vpop.eup %3975  ;;  %v2433_v5 = vsel %vm1010_vm2, %v2428_v3, 0 }
0x1366   : > { %v2156_v1 = vmul.f32 %v3976_v61, %v2144_v20 }
0x1368   : > { %v2157_v42 = vpack.c.bf16 %v2156_v1, %v2155_v63  ;;  %v2426_v6 = vpop.permute.xlu1 %2425 }
0x1369   : > { %v3978_v44 = vpop.eup %3977 }
0x136a   : > { %3739 = vmatmul.mubr.msk.bf16.vlgmr.msra.gmra.mrb[40].mxu1 %vm1010_vm2, %v2157_v42  ;;  %v2284_v32 = vmul.f32 %v3978_v44, %v2272_v24 }
0x136b   : > { %3749 = vmatpush3.bf16.msra.mxu1 %v2289_v43  ;;  %3750 = vmatprep.mubr.msk.bf16.mxu1 %vm4091_vm1, %v4090_v62 }
0x136c   : > { %3760 = vmatprep.subr.bf16.mxu1 %v4090_v62 }
0x136d   : > { %v3980_v45 = vpop.eup %3979 }
0x136e   : > { %v2285_v33 = vmul.f32 %v3980_v45, %v2273_v29 }
0x1370   : > { %v2286_v41 = vpack.c.bf16 %v2285_v33, %v2284_v32 }
0x1372   : > { %3751 = vmatmul.mubr.msk.bf16.vlgmr.msra.gmra.mrb[44].mxu1 %vm1010_vm2, %v2286_v41 }
0x1373   : > { %3762 = vmatprep.mubr.msk.bf16.mxu1 %vm4091_vm1, %v4090_v62  ;;  %3761 = vmatpush3.bf16.msra.mxu1 %v2204_v48 }
0x1374   : > { %3772 = vmatprep.subr.bf16.mxu1 %v4090_v62 }
0x143d   : > { %v2196_v52 = vpop.f32.mrb[40].mxu1 }
0x143e   : > { %v3740_v53 = vpop.f32.mrb[41].mxu1 }
0x143f   : > { %v2199_v54 = vpop.f32.mrb[42].mxu1 }
0x1440   : > { %v2203_v55 = vpack.c.bf16 %v2199_v54, %v2196_v52  ;;  %v3741_v56 = vpop.f32.mrb[43].mxu1  ;;  %v3465_v52 = vld [vmem:[%s5266_s8 + $0x68] sm:$0xff] }
0x1441   : > { %v2555_v53 = vpack.c.bf16 %v3465_v52, %v3464_v51 }
0x1442   : > { %3763 = vmatmul.mubr.msk.bf16.vlgmr.msra.gmra.mrb[48].mxu1 %vm1010_vm2, %v2203_v55 }
0x1443   : > { %3774 = vmatprep.mubr.msk.bf16.mxu1 %vm4091_vm1, %v4090_v62 }
0x1445   : > { %v2328_v60 = vpop.f32.mrb[44].mxu1 }
0x1446   : > { %v3752_v0 = vpop.f32.mrb[45].mxu1 }
0x1447   : > { %v2331_v4 = vpop.f32.mrb[46].mxu1 }
0x1448   : > { %v2335_v57 = vpack.c.bf16 %v2331_v4, %v2328_v60  ;;  %v3753_v58 = vpop.f32.mrb[47].mxu1 }
0x144a   : > { %3757 = vmatmul.mubr.msk.bf16.vlgmr.msra.gmra.mrb[32].mxu0 %vm1010_vm2, %v2335_v57 }
0x144b   : > { %3767 = vmatpush3.bf16.xpose.msra.mxu0 %v2433_v5  ;;  %3768 = vmatprep.mubr.msk.bf16.mxu0 %vm4091_vm1, %v4090_v62 }
0x144c   : > { %3778 = vmatprep.subr.bf16.mxu0 %v4090_v62 }
0x1452   : > { %3769 = vmatmul.mubr.msk.bf16.vlgmr.msra.gmra.mrb[36].mxu0 %vm1010_vm2, %v2426_v6 }
0x1453   : > { %3780 = vmatprep.mubr.msk.bf16.mxu0 %vm4091_vm1, %v4090_v62  ;;  %3779 = vmatpush3.bf16.msra.mxu0 %v2555_v53 }
0x1454   : > { %3790 = vmatprep.subr.bf16.mxu0 %v4090_v62 }
0x1515   : > { %v2418_v7 = vpop.f32.mrb[48].mxu1 }
0x1516   : > { %v3764_v8 = vpop.f32.mrb[49].mxu1 }
0x1517   : > { %v2421_v9 = vpop.f32.mrb[50].mxu1 }
0x1518   : > { %v3765_v10 = vpop.f32.mrb[51].mxu1 }
0x151d   : > { %v2374_v11 = vpop.f32.mrb[32].mxu0 }
0x151e   : > { %v4822_v14 = vadd.f32 %v2418_v7, %v2374_v11  ;;  %v3758_v15 = vpop.f32.mrb[33].mxu0 }
0x151f   : > { %v2377_v16 = vpop.f32.mrb[34].mxu0 }
0x1520   : > { %v4824_v13 = vadd.f32 %v2421_v9, %v2377_v16  ;;  %v3759_v17 = vpop.f32.mrb[35].mxu0 }
0x1525   : > { %v2469_v18 = vpop.f32.mrb[36].mxu0 }
0x1526   : > { %v2476_v19 = vmul.f32 0.25, %v2469_v18  ;;  %v3770_v20 = vpop.f32.mrb[37].mxu0 }
0x1527   : > { %v2472_v21 = vpop.f32.mrb[38].mxu0 }
0x1528   : > { %v2477_v23 = vmul.f32 0.25, %v2472_v21  ;;  %v3771_v24 = vpop.f32.mrb[39].mxu0  ;;  %v2478_v25 = vsel %vm4410_vm4, %v2476_v19, -1e+30 }
0x1529   : > { %v2480_v28 = vsel %vm1010_vm2, %v2478_v25, -inf }
0x152a   : > { %2481 = vmax.xlane.f32.xlu0 %v2480_v28  ;;  %v2479_v29 = vsel %vm4410_vm4, %v2477_v23, -1e+30 }
0x152b   : > { %v2483_v30 = vsel %vm1010_vm2, %v2479_v29, -inf }
0x152c   : > { %2484 = vmax.xlane.f32.xlu1 %v2483_v30  ;;  %v3467_v30 = vld [vmem:[%s5266_s8 + $0x78] sm:$0xff] }
0x153d   : > { %2507 = vrot.lane.b32.xlu1 %v4739_v12, %s5267_s28  ;;  %s5276_s28 = smov 16  }
0x1541   : > { %2602 = vrot.lane.b32.xlu1 %v4737_v40, %s5275_s0 }
0x15b7   : > { %v2482_v31 = vpop.xlane.xlu0 %2481 }
0x15b8   : > { %v2486_v34 = vsub.f32 %v2478_v25, %v2482_v31 }
0x15b9   : > { %v2485_v35 = vpop.xlane.xlu1 %2484 }
0x15ba   : > { %v2488_v36 = vmul.f32 1.442695, %v2486_v34  ;;  %v2487_v59 = vsub.f32 %v2479_v29, %v2485_v35  ;;  %v3466_v29 = vld [vmem:[%s5266_s8 + $0x70] sm:$0xff] }
0x15bb   : > { %v2732_v31 = vpack.c.bf16 %v3467_v30, %v3466_v29 }
0x15bc   : > { %3981 = vpow2.f32 %v2488_v36  ;;  %v2490_v37 = vmul.f32 1.442695, %v2487_v59 }
0x15bd   : > { %v2508_v38 = vpop.permute.xlu1 %2507 }
0x15be   : > { %3983 = vpow2.f32 %v2490_v37  ;;  %3773 = vmatpush3.bf16.msra.mxu1 %v2508_v38 }
0x15bf   : > { %3784 = vmatprep.subr.bf16.mxu1 %v4090_v62 }
0x15c6   : > { %v3982_v2 = vpop.eup %3981 }
0x15c7   : > { %v2492_v39 = vsel %vm4410_vm4, %v3982_v2, 0.0 }
0x15c8   : > { %v3984_v61 = vpop.eup %3983  ;;  %v2494_v63 = vsel %vm1010_vm2, %v2492_v39, 0.0 }
0x15c9   : > { %2495 = vadd.xlane.f32.xlu0 %v2494_v63  ;;  %v2493_v1 = vsel %vm4410_vm4, %v3984_v61, 0.0 }
0x15ca   : > { %v2497_v42 = vsel %vm1010_vm2, %v2493_v1, 0.0 }
0x15cd   : > { %2498 = vadd.xlane.f32.xlu0 %v2497_v42 }
0x15e3   : > { %2604 = vrot.lane.b32.xlu0 %v4737_v40, %s5276_s28  ;;  %v2603_v40 = vpop.permute.xlu1 %2602 }
0x1656   : > { %v2496_v43 = vpop.xlane.xlu0 %2495 }
0x1657   : > { %v2500_v44 = vmax.f32 %v2496_v43, 1e-20 }
0x1659   : > { %3985 = vrcp.f32 %v2500_v44 }
0x165a   : > { %v2499_v45 = vpop.xlane.xlu0 %2498 }
0x165b   : > { %v2501_v32 = vmax.f32 %v2499_v45, 1e-20 }
0x165d   : > { %3987 = vrcp.f32 %v2501_v32 }
0x165e   : > { %v2605_v48 = vpop.permute.xlu0 %2604 }
0x165f   : > { %v2610_v50 = vsel %vm1010_vm2, %v2605_v48, 0 }
0x1663   : > { %v3986_v33 = vpop.eup %3985 }
0x1664   : > { %v2504_v46 = vmul.f32 %v3986_v33, %v2492_v39 }
0x1667   : > { %v3988_v41 = vpop.eup %3987 }
0x1668   : > { %v2505_v47 = vmul.f32 %v3988_v41, %v2493_v1  ;;  %v3512_v41 = vld [vmem:[%s5269_s3 + $0x1] ss:$0 sm:$0xff]  ;;  %s5281_s3 = sld [smem:[#allocation25_spill]] }
0x166a   : > { %v2506_v49 = vpack.c.bf16 %v2505_v47, %v2504_v46 }
0x166c   : > { %3775 = vmatmul.mubr.msk.bf16.vlgmr.msra.gmra.mrb[52].mxu1 %vm1010_vm2, %v2506_v49 }
0x166d   : > { %3785 = vmatpush3.bf16.xpose.msra.mxu1 %v2610_v50  ;;  %3786 = vmatprep.mubr.msk.bf16.mxu1 %vm4091_vm1, %v4090_v62 }
0x166e   : > { %3796 = vmatprep.subr.bf16.mxu1 %v4090_v62  ;;  %s5122_s8 = scalar_lea.hbm %s5281_s3, %s3535_s6 }
0x1674   : > { %3787 = vmatmul.mubr.msk.bf16.vlgmr.msra.gmra.mrb[56].mxu1 %vm1010_vm2, %v2603_v40 }
0x1675   : > { %3798 = vmatprep.mubr.msk.bf16.mxu1 %vm4091_vm1, %v4090_v62  ;;  %3797 = vmatpush3.bf16.msra.mxu1 %v2732_v31 }
0x1676   : > { %3814 = vmatprep.subr.bf16.mxu1 %v4090_v62 }
0x173f   : > { %v2547_v54 = vpop.f32.mrb[52].mxu1 }
0x1740   : > { %v3776_v55 = vpop.f32.mrb[53].mxu1 }
0x1741   : > { %v2550_v56 = vpop.f32.mrb[54].mxu1 }
0x1742   : > { %v2554_v60 = vpack.c.bf16 %v2550_v56, %v2547_v54  ;;  %v3777_v0 = vpop.f32.mrb[55].mxu1 }
0x1744   : > { %3781 = vmatmul.mubr.msk.bf16.vlgmr.msra.gmra.mrb[40].mxu0 %vm1010_vm2, %v2554_v60 }
0x1745   : > { %3792 = vmatprep.mubr.msk.bf16.mxu0 %vm4091_vm1, %v4090_v62 }
0x1747   : > { %v2646_v3 = vpop.f32.mrb[56].mxu1 }
0x1748   : > { %v2653_v4 = vmul.f32 0.25, %v2646_v3  ;;  %v3788_v57 = vpop.f32.mrb[57].mxu1 }
0x1749   : > { %v2649_v58 = vpop.f32.mrb[58].mxu1 }
0x174a   : > { %v2654_v5 = vmul.f32 0.25, %v2649_v58  ;;  %v3789_v6 = vpop.f32.mrb[59].mxu1  ;;  %v2655_v7 = vsel %vm4410_vm4, %v2653_v4, -1e+30 }
0x174b   : > { %v2657_v8 = vsel %vm1010_vm2, %v2655_v7, -inf }
0x174c   : > { %2658 = vmax.xlane.f32.xlu1 %v2657_v8  ;;  %v2656_v9 = vsel %vm4410_vm4, %v2654_v5, -1e+30  ;;  %v3472_v8 = vld [vmem:[%s5185_s11 + $0x48] sm:$0xff] }
0x174d   : > { %v2660_v10 = vsel %vm1010_vm2, %v2656_v9, -inf }
0x174e   : > { %2661 = vmax.xlane.f32.xlu0 %v2660_v10  ;;  %v3473_v10 = vld [vmem:[%s5185_s11 + $0x50] sm:$0xff] }
0x17d9   : > { %v2659_v11 = vpop.xlane.xlu1 %2658 }
0x17da   : > { %v2663_v15 = vsub.f32 %v2655_v7, %v2659_v11  ;;  %v3474_v11 = vld [vmem:[%s5185_s11 + $0x58] sm:$0xff] }
0x17db   : > { %v2662_v16 = vpop.xlane.xlu0 %2661 }
0x17dc   : > { %v2665_v17 = vmul.f32 1.442695, %v2663_v15  ;;  %v2664_v18 = vsub.f32 %v2656_v9, %v2662_v16  ;;  %v2833_v15 = vpack.c.bf16 %v3474_v11, %v3473_v10  ;;  %v3475_v16 = vld [vmem:[%s5185_s11 + $0x60] sm:$0xff] }
0x17de   : > { %3989 = vpow2.f32 %v2665_v17  ;;  %v2667_v19 = vmul.f32 1.442695, %v2664_v18  ;;  %v3476_v17 = vld [vmem:[%s5185_s11 + $0x68] sm:$0xff] }
0x17df   : > { %v2834_v18 = vpack.c.bf16 %v3476_v17, %v3475_v16 }
0x17e0   : > { %3991 = vpow2.f32 %v2667_v19  ;;  %v3477_v19 = vld [vmem:[%s5185_s11 + $0x70] sm:$0xff] }
0x17e8   : > { %v3990_v20 = vpop.eup %3989 }
0x17e9   : > { %v2669_v21 = vsel %vm4410_vm4, %v3990_v20, 0.0  ;;  %v3478_v20 = vld [vmem:[%s5185_s11 + $0x78] sm:$0xff] }
0x17ea   : > { %v3992_v23 = vpop.eup %3991  ;;  %v2671_v24 = vsel %vm1010_vm2, %v2669_v21, 0.0 }
0x17eb   : > { %2672 = vadd.xlane.f32.xlu0 %v2671_v24  ;;  %v2670_v25 = vsel %vm4410_vm4, %v3992_v23, 0.0 }
0x17ec   : > { %v2674_v28 = vsel %vm1010_vm2, %v2670_v25, 0.0 }
0x17ed   : > { %2675 = vadd.xlane.f32.xlu1 %v2674_v28 }
0x1801   : > { %2684 = vrot.lane.b32.xlu0 %v4739_v12, %s5275_s0  ;;  %s3284_s0 = sshll.u32 %s5106_s7, 4  ;;  %s5124_s0 = int_to_ptr.vmem [resolvable:$true] %s3284_s0 }
0x1802   : > { %s4025_s29 = scalar_lea.vmem %s5124_s0, 256 }
0x1803   : > { %p4026_p11 = scmp.ne.s32.totalorder %s5124_s0, %s4025_s29 }
0x1805   : > { %p4027_p12 = pnand %p4026_p11, %p4270_p5 }
0x1807   : > { %p4028_p13 = pneg %p4027_p12 }
0x1817   : > { %v2593_v22 = vpop.f32.mrb[40].mxu0 }
0x1818   : > { %v2600_v34 = vadd.f32 %v2593_v22, %v4822_v14  ;;  %v3782_v35 = vpop.f32.mrb[41].mxu0 }
0x1819   : > { %v2596_v36 = vpop.f32.mrb[42].mxu0 }
0x181a   : > { %v2601_v59 = vadd.f32 %v2596_v36, %v4824_v13  ;;  %v3783_v12 = vpop.f32.mrb[43].mxu0 }
0x181b   : > { %v3514_v12 = vld [vmem:[%s5184_s10 + $0x1] ss:$0 sm:$0xff] }
0x1878   : > { %v2673_v37 = vpop.xlane.xlu0 %2672 }
0x1879   : > { %v2677_v38 = vmax.f32 %v2673_v37, 1e-20 }
0x187a   : > { %v2676_v2 = vpop.xlane.xlu1 %2675 }
0x187b   : > { %3993 = vrcp.f32 %v2677_v38  ;;  %v2678_v39 = vmax.f32 %v2676_v2, 1e-20 }
0x187c   : > { %v2685_v61 = vpop.permute.xlu0 %2684 }
0x187d   : > { %3995 = vrcp.f32 %v2678_v39  ;;  %3791 = vmatpush3.bf16.msra.mxu0 %v2685_v61  ;;  %v3480_v61 = vld [vmem:[%s5187_s13 + $0x80] sm:$0xff] }
0x187e   : > { %3802 = vmatprep.subr.bf16.mxu0 %v4090_v62 }
0x1885   : > { %v3994_v63 = vpop.eup %3993 }
0x1886   : > { %v2681_v42 = vmul.f32 %v3994_v63, %v2669_v21  ;;  %v2835_v21 = vpack.c.bf16 %v3478_v20, %v3477_v19  ;;  %v3481_v63 = vld [vmem:[%s5187_s13 + $0x88] sm:$0xff] }
0x1887   : > { %v3996_v1 = vpop.eup %3995 }
0x1888   : > { %v2682_v43 = vmul.f32 %v3996_v1, %v2670_v25  ;;  %v2905_v1 = vpack.c.bf16 %v3481_v63, %v3480_v61 }
0x188a   : > { %v2683_v14 = vpack.c.bf16 %v2682_v43, %v2681_v42  ;;  %v3482_v42 = vld [vmem:[%s5187_s13 + $0x90] sm:$0xff]  ;;  %v3483_v43 = vld [vmem:[%s5187_s13 + $0x98] sm:$0xff] }
0x188c   : > { %3793 = vmatmul.mubr.msk.bf16.vlgmr.msra.gmra.mrb[44].mxu0 %vm1010_vm2, %v2683_v14  ;;  %v2906_v14 = vpack.c.bf16 %v3483_v43, %v3482_v42 }
0x188d   : > { %3810 = vmatprep.mubr.msk.bf16.mxu0 %vm4091_vm1, %v4090_v62 }
0x195f   : > { %v2724_v13 = vpop.f32.mrb[44].mxu0 }
0x1960   : > { %v3794_v44 = vpop.f32.mrb[45].mxu0 }
0x1961   : > { %v2727_v45 = vpop.f32.mrb[46].mxu0  ;;  %v3485_v44 = vld [vmem:[%s5187_s13 + $0xa8] sm:$0xff] }
0x1962   : > { %v2731_v32 = vpack.c.bf16 %v2727_v45, %v2724_v13  ;;  %v3795_v33 = vpop.f32.mrb[47].mxu0  ;;  %v3484_v13 = vld [vmem:[%s5187_s13 + $0xa0] sm:$0xff] }
0x1963   : > { %v2907_v45 = vpack.c.bf16 %v3485_v44, %v3484_v13  ;;  %v3487_v33 = vld [vmem:[%s5187_s13 + $0xb8] sm:$0xff] }
0x1964   : > { %3799 = vmatmul.mubr.msk.bf16.vlgmr.msra.gmra.mrb[60].mxu1 %vm1010_vm2, %v2731_v32  ;;  %v3486_v32 = vld [vmem:[%s5187_s13 + $0xb0] sm:$0xff] }
0x1965   : > { %3830 = vmatprep.mubr.msk.bf16.mxu1 %vm4091_vm1, %v4090_v62  ;;  %3815 = vmatpush3.bf16.msra.mxu1 %v2905_v1 }
0x1966   : > { %3816 = vmatprep.subr.bf16.mxu1 %v4090_v62 }
0x1969   : > { %3817 = vmatpush3.bf16.msra.mxu1 %v2906_v14 }
0x196a   : > { %3818 = vmatprep.subr.bf16.mxu1 %v4090_v62 }
0x196d   : > { %3819 = vmatpush3.bf16.msra.mxu1 %v2907_v45 }
0x196e   : > { %3820 = vmatprep.subr.bf16.mxu1 %v4090_v62 }
0x1a37   : > { %v2770_v46 = vpop.f32.mrb[60].mxu1 }
0x1a38   : > { %v2777_v47 = vadd.f32 %v2770_v46, %v2600_v34  ;;  %v3800_v48 = vpop.f32.mrb[61].mxu1  ;;  %v3513_v34 = vld [vmem:[%s5270_s25 + $0x1] ss:$0 sm:$0xff] }
0x1a39   : > { %v2773_v49 = vpop.f32.mrb[62].mxu1  ;;  %v3488_v46 = vld [vmem:[%s5187_s13 + $0xc0] sm:$0xff]  ;;  %v3490_v48 = vld [vmem:[%s5187_s13 + $0xd0] sm:$0xff] }
0x1a3a   : > { %v2785_v50 = vadd.f32 %v3512_v41, %v2777_v47  ;;  %v2778_v40 = vadd.f32 %v2773_v49, %v2601_v59  ;;  %v3801_v51 = vpop.f32.mrb[63].mxu1  ;;  %v3489_v47 = vld [vmem:[%s5187_s13 + $0xc8] sm:$0xff] }
0x1a3b   : > { %v2909_v49 = vpack.c.bf16 %v3489_v47, %v3488_v46  ;;  %v3492_v51 = vld [vmem:[%s5187_s13 + $0xe0] sm:$0xff]  ;;  %v3007_v46 = vld [vmem:[%s5191_s17 + $0x18] sm:$0xff] }
0x1a3c   : > { %v2786_v52 = vadd.f32 %v3512_v41, %v2778_v40  ;;  %v2787_v53 = vadd.f32 %v2785_v50, %v4722_v26  ;;  %v2908_v41 = vpack.c.bf16 %v3487_v33, %v3486_v32  ;;  %v3491_v50 = vld [vmem:[%s5187_s13 + $0xd8] sm:$0xff]  ;;  %v3005_v32 = vld [vmem:[%s5191_s17 + $0x8] sm:$0xff] }
0x1a3d   : > { %v2910_v40 = vpack.c.bf16 %v3491_v50, %v3490_v48  ;;  %v3008_v48 = vld [vmem:[%s5191_s17 + $0x20] sm:$0xff] }
0x1a3e   : > { %v2789_v54 = vsel %vm840_vm0, %v2787_v53, 0.0  ;;  %v2788_v55 = vadd.f32 %v2786_v52, %v4724_v27  ;;  %v3471_v27 = vld [vmem:[%s5185_s11 + $0x40] sm:$0xff]  ;;  %3821 = vmatpush3.bf16.msra.mxu1 %v2908_v41  ;;  %v3493_v52 = vld [vmem:[%s5187_s13 + $0xe8] sm:$0xff]  ;;  %v3006_v41 = vld [vmem:[%s5191_s17 + $0x10] sm:$0xff] }
0x1a3f   : > { %2790 = vadd.xlane.f32.xlu1 %v2789_v54  ;;  %v2832_v9 = vpack.c.bf16 %v3472_v8, %v3471_v27  ;;  %3822 = vmatprep.subr.bf16.mxu1 %v4090_v62  ;;  %v3494_v54 = vld [vmem:[%s5187_s13 + $0xf0] sm:$0xff]  ;;  %v3014_v47 = vpack.c.bf16 %v3007_v46, %v3006_v41 }
0x1a40   : > { %v2792_v56 = vsel %vm840_vm0, %v2788_v55, 0.0 }
0x1a41   : > { %3803 = vmatpush3.bf16.msra.mxu0 %v2832_v9 }
0x1a42   : > { %3804 = vmatprep.subr.bf16.mxu0 %v4090_v62  ;;  %3823 = vmatpush3.bf16.msra.mxu1 %v2909_v49  ;;  %v3009_v49 = vld [vmem:[%s5191_s17 + $0x28] sm:$0xff] }
0x1a43   : > { %2793 = vadd.xlane.f32.xlu1 %v2792_v56  ;;  %3824 = vmatprep.subr.bf16.mxu1 %v4090_v62  ;;  %v3015_v50 = vpack.c.bf16 %v3009_v49, %v3008_v48  ;;  %v3137_v48 = vld [vmem:[%s5058_s4 + $0x38] sm:$0xff] }
0x1a45   : > { %3805 = vmatpush3.bf16.msra.mxu0 %v2833_v15 }
0x1a46   : > { %3806 = vmatprep.subr.bf16.mxu0 %v4090_v62  ;;  %3825 = vmatpush3.bf16.msra.mxu1 %v2910_v40  ;;  %v3010_v40 = vld [vmem:[%s5191_s17 + $0x30] sm:$0xff] }
0x1a47   : > { %3826 = vmatprep.subr.bf16.mxu1 %v4090_v62 }
0x1a49   : > { %3807 = vmatpush3.bf16.msra.mxu0 %v2834_v18 }
0x1a4a   : > { %3808 = vmatprep.subr.bf16.mxu0 %v4090_v62 }
0x1a4d   : > { %3809 = vmatpush3.bf16.msra.mxu0 %v2835_v21 }
0x1a4e   : > { %3834 = vmatprep.subr.bf16.mxu0 %v4090_v62 }
0x1acc   : > { %v2791_v60 = vpop.xlane.xlu1 %2790 }
0x1acd   : > { %v2795_v0 = vmul.f32 0.015625, %v2791_v60  ;;  %v3515_v60 = vld [vmem:[%s5186_s12 + $0x1] ss:$0 sm:$0xff] }
0x1acf   : > { %v2797_v3 = vsub.f32 %v2787_v53, %v2795_v0  ;;  %v2911_v53 = vpack.c.bf16 %v3493_v52, %v3492_v51  ;;  %v3011_v51 = vld [vmem:[%s5191_s17 + $0x38] sm:$0xff] }
0x1ad0   : > { %v2794_v4 = vpop.xlane.xlu1 %2793  ;;  %v3016_v52 = vpack.c.bf16 %v3011_v51, %v3010_v40  ;;  %v3138_v40 = vld [vmem:[%s5058_s4 + $0x40] sm:$0xff]  ;;  %v3139_v51 = vld [vmem:[%s5058_s4 + $0x48] sm:$0xff] }
0x1ad1   : > { %v2796_v57 = vmul.f32 0.015625, %v2794_v4  ;;  %v2799_v58 = vmul.f32 %v2797_v3, %v2797_v3  ;;  %3827 = vmatpush3.bf16.msra.mxu1 %v2911_v53 }
0x1ad2   : > { %3828 = vmatprep.subr.bf16.mxu1 %v4090_v62 }
0x1ad3   : > { %v2798_v5 = vsub.f32 %v2788_v55, %v2796_v57  ;;  %v2801_v6 = vsel %vm840_vm0, %v2799_v58, 0.0  ;;  %v3495_v55 = vld [vmem:[%s5187_s13 + $0xf8] sm:$0xff] }
0x1ad4   : > { %2802 = vadd.xlane.f32.xlu1 %v2801_v6  ;;  %v2912_v56 = vpack.c.bf16 %v3495_v55, %v3494_v54 }
0x1ad5   : > { %v2800_v7 = vmul.f32 %v2798_v5, %v2798_v5 }
0x1ad6   : > { %3829 = vmatpush3.bf16.msra.mxu1 %v2912_v56 }
0x1ad7   : > { %v2804_v26 = vsel %vm840_vm0, %v2800_v7, 0.0 }
0x1ad8   : > { %2805 = vadd.xlane.f32.xlu1 %v2804_v26 }
0x1b61   : > { %v2803_v23 = vpop.xlane.xlu1 %2802 }
0x1b62   : > { %v2807_v24 = vmul.f32 0.015625, %v2803_v23 }
0x1b64   : > { %v2809_v25 = vadd.f32 1e-05, %v2807_v24 }
0x1b65   : > { %v2806_v28 = vpop.xlane.xlu1 %2805 }
0x1b66   : > { %3997 = vrsqrt.f32 %v2809_v25  ;;  %v2808_v29 = vmul.f32 0.015625, %v2806_v28 }
0x1b68   : > { %v2810_v30 = vadd.f32 1e-05, %v2808_v29  ;;  %v3517_v29 = vld [vmem:[%s5188_s14 + $0x1] ss:$0 sm:$0xff] }
0x1b6a   : > { %3999 = vrsqrt.f32 %v2810_v30 }
0x1b70   : > { %v3998_v31 = vpop.eup %3997 }
0x1b71   : > { %v2813_v22 = vmul.f32 %v3998_v31, %v2797_v3 }
0x1b73   : > { %v2821_v36 = vmul.f32 %v3513_v34, %v2813_v22 }
0x1b74   : > { %v4000_v35 = vpop.eup %3999 }
0x1b75   : > { %v2814_v59 = vmul.f32 %v4000_v35, %v2798_v5  ;;  %v4936_v38 = vadd.f32 %v3514_v12, %v2821_v36 }
0x1b77   : > { %v2822_v37 = vmul.f32 %v3513_v34, %v2814_v59 }
0x1b79   : > { %v4938_v2 = vadd.f32 %v3514_v12, %v2822_v37 }
0x1b7b   : > { %v2831_v39 = vpack.c.bf16 %v4938_v2, %v4936_v38 }
0x1b7d   : > { %3811 = vmatmul.mubr.msk.bf16.vlgmr.msra.gmra.mrb[48].mxu0 %vm840_vm0, %v2831_v39 }
0x1b7e   : > { %3842 = vmatprep.mubr.msk.bf16.mxu0 %vm4091_vm1, %v4090_v62 }
0x1c50   : > { %v2879_v0 = vpop.f32.mrb[48].mxu0 }
0x1c51   : > { %v2880_v3 = vadd.f32 %v3515_v60, %v2879_v0  ;;  %v3812_v4 = vpop.f32.mrb[49].mxu0 }
0x1c52   : > { %v2882_v57 = vpop.f32.mrb[50].mxu0 }
0x1c53   : > { %v2888_v58 = vmul.f32 0.044715, %v2880_v3  ;;  %v2883_v5 = vadd.f32 %v3515_v60, %v2882_v57  ;;  %v3813_v6 = vpop.f32.mrb[51].mxu0  ;;  %v2886_v20 = vmul.f32 0.5, %v2880_v3  ;;  %v3518_v57 = vld [vmem:[%s5189_s15 + $0x1] ss:$0 sm:$0xff] }
0x1c55   : > { %v2890_v7 = vmul.f32 %v2888_v58, %v2880_v3  ;;  %v2889_v26 = vmul.f32 0.044715, %v2883_v5  ;;  %v2887_v21 = vmul.f32 0.5, %v2883_v5 }
0x1c57   : > { %v2892_v27 = vmul.f32 %v2890_v7, %v2880_v3  ;;  %v2891_v8 = vmul.f32 %v2889_v26, %v2883_v5  ;;  %v3519_v7 = vld [vmem:[%s5190_s16 + $0x1] ss:$0 sm:$0xff] }
0x1c59   : > { %v2894_v9 = vadd.f32 %v2892_v27, %v2880_v3  ;;  %v2893_v10 = vmul.f32 %v2891_v8, %v2883_v5 }
0x1c5b   : > { %v2896_v11 = vmul.f32 0.7978846, %v2894_v9  ;;  %v2895_v15 = vadd.f32 %v2893_v10, %v2883_v5  ;;  %v3520_v10 = vld [vmem:[%s5192_s18] ss:$0 sm:$0xff] }
0x1c5d   : > { %4001 = vtanh.f32 %v2896_v11  ;;  %v2897_v16 = vmul.f32 0.7978846, %v2895_v15 }
0x1c5f   : > { %4003 = vtanh.f32 %v2897_v16 }
0x1c67   : > { %v4002_v17 = vpop.eup %4001 }
0x1c68   : > { %v2900_v18 = vadd.f32 1.0, %v4002_v17 }
0x1c69   : > { %v4004_v19 = vpop.eup %4003 }
0x1c6a   : > { %v2901_v23 = vadd.f32 1.0, %v4004_v19  ;;  %v2902_v24 = vmul.f32 %v2900_v18, %v2886_v20 }
0x1c6c   : > { %v2903_v25 = vmul.f32 %v2901_v23, %v2887_v21 }
0x1c6e   : > { %v2904_v28 = vpack.c.bf16 %v2903_v25, %v2902_v24 }
0x1c70   : > { %3831 = vmatmul.mubr.bf16.vlgmr.msra.gmra.mrb[64].mxu1 %v2904_v28 }
0x1d43   : > { %v2953_v30 = vpop.f32.mrb[64].mxu1 }
0x1d44   : > { %v2954_v31 = vadd.f32 %v3517_v29, %v2953_v30  ;;  %v3832_v22 = vpop.f32.mrb[65].mxu1 }
0x1d45   : > { %v2956_v34 = vpop.f32.mrb[66].mxu1 }
0x1d46   : > { %v2957_v35 = vadd.f32 %v3517_v29, %v2956_v34  ;;  %v3833_v36 = vpop.f32.mrb[67].mxu1  ;;  %v2960_v59 = vadd.f32 %v2954_v31, %v4936_v38 }
0x1d48   : > { %v2962_v12 = vsel %vm840_vm0, %v2960_v59, 0.0  ;;  %v2961_v37 = vadd.f32 %v2957_v35, %v4938_v2  ;;  %v3004_v2 = vld [vmem:[%s5191_s17] sm:$0xff] }
0x1d49   : > { %2963 = vadd.xlane.f32.xlu1 %v2962_v12  ;;  %v3013_v33 = vpack.c.bf16 %v3005_v32, %v3004_v2  ;;  %v3134_v32 = vld [vmem:[%s5058_s4 + $0x20] sm:$0xff] }
0x1d4a   : > { %v2965_v39 = vsel %vm840_vm0, %v2961_v37, 0.0 }
0x1d4b   : > { %3835 = vmatpush3.bf16.msra.mxu0 %v3013_v33  ;;  %v3135_v33 = vld [vmem:[%s5058_s4 + $0x28] sm:$0xff] }
0x1d4c   : > { %3836 = vmatprep.subr.bf16.mxu0 %v4090_v62  ;;  %v3149_v41 = vpack.c.bf16 %v3135_v33, %v3134_v32  ;;  %v3252_v33 = vld [vmem:[%s824_s1] sm:$0xff] }
0x1d4d   : > { %2966 = vadd.xlane.f32.xlu1 %v2965_v39 }
0x1d4e   : > { %v3172_v46 = vsel %vm840_vm0, %v3149_v41, 0 }
0x1d4f   : > { %3837 = vmatpush3.bf16.msra.mxu0 %v3014_v47  ;;  %v3136_v47 = vld [vmem:[%s5058_s4 + $0x30] sm:$0xff] }
0x1d50   : > { %3838 = vmatprep.subr.bf16.mxu0 %v4090_v62  ;;  %v3150_v49 = vpack.c.bf16 %v3137_v48, %v3136_v47  ;;  %v3253_v47 = vld [vmem:[%s824_s1 + $0x8] sm:$0xff] }
0x1d53   : > { %3839 = vmatpush3.bf16.msra.mxu0 %v3015_v50  ;;  %v3175_v50 = vsel %vm840_vm0, %v3150_v49, 0 }
0x1d54   : > { %3840 = vmatprep.subr.bf16.mxu0 %v4090_v62 }
0x1d57   : > { %3841 = vmatpush3.bf16.msra.mxu0 %v3016_v52  ;;  %v3151_v52 = vpack.c.bf16 %v3139_v51, %v3138_v40 }
0x1d58   : > { %3846 = vmatprep.subr.bf16.mxu0 %v4090_v62 }
0x1dd6   : > { %v2964_v61 = vpop.xlane.xlu1 %2963 }
0x1dd7   : > { %v2968_v63 = vmul.f32 0.015625, %v2964_v61 }
0x1dd9   : > { %v2970_v1 = vsub.f32 %v2960_v59, %v2968_v63 }
0x1dda   : > { %v2967_v42 = vpop.xlane.xlu1 %2966 }
0x1ddb   : > { %v2969_v43 = vmul.f32 0.015625, %v2967_v42  ;;  %v2972_v14 = vmul.f32 %v2970_v1, %v2970_v1  ;;  %v3130_v42 = vld [vmem:[%s5058_s4] sm:$0xff] }
0x1ddd   : > { %v2971_v13 = vsub.f32 %v2961_v37, %v2969_v43  ;;  %v2974_v44 = vsel %vm840_vm0, %v2972_v14, 0.0  ;;  %v3131_v43 = vld [vmem:[%s5058_s4 + $0x8] sm:$0xff] }
0x1dde   : > { %2975 = vadd.xlane.f32.xlu0 %v2974_v44  ;;  %v3147_v14 = vpack.c.bf16 %v3131_v43, %v3130_v42  ;;  %v3133_v44 = vld [vmem:[%s5058_s4 + $0x18] sm:$0xff] }
0x1ddf   : > { %v2973_v45 = vmul.f32 %v2971_v13, %v2971_v13 }
0x1de1   : > { %v2977_v38 = vsel %vm840_vm0, %v2973_v45, 0.0  ;;  %v3166_v45 = vsel %vm840_vm0, %v3147_v14, 0 }
0x1de2   : > { %2978 = vadd.xlane.f32.xlu1 %v2977_v38 }
0x1e6b   : > { %v2976_v53 = vpop.xlane.xlu0 %2975 }
0x1e6c   : > { %v2980_v54 = vmul.f32 0.015625, %v2976_v53  ;;  %v3178_v53 = vsel %vm840_vm0, %v3151_v52, 0 }
0x1e6e   : > { %v2982_v55 = vadd.f32 1e-05, %v2980_v54 }
0x1e6f   : > { %v2979_v56 = vpop.xlane.xlu1 %2978 }
0x1e70   : > { %4005 = vrsqrt.f32 %v2982_v55  ;;  %v2981_v60 = vmul.f32 0.015625, %v2979_v56 }
0x1e72   : > { %v2983_v0 = vadd.f32 1e-05, %v2981_v60 }
0x1e74   : > { %4007 = vrsqrt.f32 %v2983_v0 }
0x1e7a   : > { %v4006_v3 = vpop.eup %4005 }
0x1e7b   : > { %v2986_v4 = vmul.f32 %v4006_v3, %v2970_v1 }
0x1e7d   : > { %v2994_v5 = vmul.f32 %v3518_v57, %v2986_v4 }
0x1e7e   : > { %v4008_v58 = vpop.eup %4007 }
0x1e7f   : > { %v2987_v6 = vmul.f32 %v4008_v58, %v2971_v13  ;;  %v3002_v27 = vadd.f32 %v3519_v7, %v2994_v5  ;;  %v3132_v13 = vld [vmem:[%s5058_s4 + $0x10] sm:$0xff] }
0x1e80   : > { %v3148_v38 = vpack.c.bf16 %v3133_v44, %v3132_v13 }
0x1e81   : > { %v2995_v26 = vmul.f32 %v3518_v57, %v2987_v6  ;;  %v3140_v6 = vld [vmem:[%s5058_s4 + $0x50] sm:$0xff] }
0x1e82   : > { %v3169_v2 = vsel %vm840_vm0, %v3148_v38, 0 }
0x1e83   : > { %v3003_v8 = vadd.f32 %v3519_v7, %v2995_v26  ;;  %v3141_v7 = vld [vmem:[%s5058_s4 + $0x58] sm:$0xff] }
0x1e84   : > { %v3152_v26 = vpack.c.bf16 %v3141_v7, %v3140_v6 }
0x1e85   : > { %v3012_v9 = vpack.c.bf16 %v3003_v8, %v3002_v27  ;;  %v3142_v8 = vld [vmem:[%s5058_s4 + $0x60] sm:$0xff] }
0x1e86   : > { %v3181_v27 = vsel %vm840_vm0, %v3152_v26, 0 }
0x1e87   : > { %3843 = vmatmul.mubr.msk.bf16.vlgmr.msra.gmra.mrb[52].mxu0 %vm840_vm0, %v3012_v9  ;;  %v3143_v9 = vld [vmem:[%s5058_s4 + $0x68] sm:$0xff] }
0x1e88   : > { %3862 = vmatprep.mubr.msk.bf16.mxu0 %vm4091_vm1, %v4090_v62  ;;  %3847 = vmatpush3.bf16.xpose.msra.mxu0 %v3166_v45 }
0x1e89   : > { %3848 = vmatprep.subr.bf16.mxu0 %v4090_v62 }
0x1e90   : > { %3849 = vmatpush3.bf16.xpose.msra.mxu0 %v3169_v2 }
0x1e91   : > { %3850 = vmatprep.subr.bf16.mxu0 %v4090_v62 }
0x1e98   : > { %3851 = vmatpush3.bf16.xpose.msra.mxu0 %v3172_v46 }
0x1e99   : > { %3852 = vmatprep.subr.bf16.mxu0 %v4090_v62 }
0x1ea0   : > { %3853 = vmatpush3.bf16.xpose.msra.mxu0 %v3175_v50 }
0x1ea1   : > { %3854 = vmatprep.subr.bf16.mxu0 %v4090_v62 }
0x1ea8   : > { %3855 = vmatpush3.bf16.xpose.msra.mxu0 %v3178_v53 }
0x1ea9   : > { %3856 = vmatprep.subr.bf16.mxu0 %v4090_v62 }
0x1eb0   : > { %3857 = vmatpush3.bf16.xpose.msra.mxu0 %v3181_v27 }
0x1eb1   : > { %3858 = vmatprep.subr.bf16.mxu0 %v4090_v62 }
0x1f5a   : > { %v3061_v11 = vpop.f32.mrb[52].mxu0 }
0x1f5b   : > { %v3062_v15 = vadd.f32 %v3520_v10, %v3061_v11  ;;  %v3844_v16 = vpop.f32.mrb[53].mxu0 }
0x1f5c   : > { %v3064_v17 = vpop.f32.mrb[54].mxu0  ;;  %v3145_v16 = vld [vmem:[%s5058_s4 + $0x78] sm:$0xff] }
0x1f5d   : > { %v3070_v18 = vmul.f32 0.044715, %v3062_v15  ;;  %v3065_v19 = vadd.f32 %v3520_v10, %v3064_v17  ;;  %v3845_v20 = vpop.f32.mrb[55].mxu0  ;;  %v3068_v35 = vmul.f32 0.5, %v3062_v15  ;;  %v3153_v10 = vpack.c.bf16 %v3143_v9, %v3142_v8 }
0x1f5f   : > { %v3071_v21 = vmul.f32 0.044715, %v3065_v19  ;;  %v3072_v23 = vmul.f32 %v3070_v18, %v3062_v15  ;;  %v3069_v37 = vmul.f32 0.5, %v3065_v19  ;;  %v3184_v11 = vsel %vm840_vm0, %v3153_v10, 0 }
0x1f60   : > { %3859 = vmatpush3.bf16.xpose.msra.mxu0 %v3184_v11 }
0x1f61   : > { %v3074_v24 = vmul.f32 %v3072_v23, %v3062_v15  ;;  %v3073_v25 = vmul.f32 %v3071_v21, %v3065_v19  ;;  %3860 = vmatprep.subr.bf16.mxu0 %v4090_v62  ;;  %v3522_v62 = vld [vmem:[%s5193_s19] ss:$0 sm:$0xff] }
0x1f63   : > { %v3076_v28 = vadd.f32 %v3074_v24, %v3062_v15  ;;  %v3075_v29 = vmul.f32 %v3073_v25, %v3065_v19  ;;  %v3144_v15 = vld [vmem:[%s5058_s4 + $0x70] sm:$0xff]  ;;  %s5282_s4 = sand.u32 1, %s4079_s2  }
0x1f64   : > { %v3154_v17 = vpack.c.bf16 %v3145_v16, %v3144_v15  ;;  %s5128_s9 = scalar_lea.sflag [#allocation3], %s5282_s4 }
0x1f65   : > { %v3078_v30 = vmul.f32 0.7978846, %v3076_v28  ;;  %v3077_v31 = vadd.f32 %v3075_v29, %v3065_v19 }
0x1f66   : > { %v3187_v18 = vsel %vm840_vm0, %v3154_v17, 0 }
0x1f67   : > { %4009 = vtanh.f32 %v3078_v30  ;;  %v3079_v22 = vmul.f32 0.7978846, %v3077_v31 }
0x1f68   : > { %3861 = vmatpush3.bf16.xpose.msra.mxu0 %v3187_v18 }
0x1f69   : > { %4011 = vtanh.f32 %v3079_v22 }
0x1f71   : > { %v4010_v34 = vpop.eup %4009 }
0x1f72   : > { %v3082_v36 = vadd.f32 1.0, %v4010_v34  ;;  %v3523_v34 = vld [vmem:[%s5194_s20] ss:$0 sm:$0xff] }
0x1f73   : > { %v4012_v59 = vpop.eup %4011 }
0x1f74   : > { %v3084_v12 = vmul.f32 %v3082_v36, %v3068_v35  ;;  %v3083_v39 = vadd.f32 1.0, %v4012_v59 }
0x1f76   : > { %v3088_v61 = vsel %vm840_vm0, %v3084_v12, 0.0  ;;  %v3085_v63 = vmul.f32 %v3083_v39, %v3069_v37  ;;  %v3524_v37 = vld [vmem:[%s5195_s21] ss:$0 sm:$0xff] }
0x1f77   : > { %3089 = vadd.xlane.f32.xlu1 %v3088_v61 }
0x1f78   : > { %v3091_v1 = vsel %vm840_vm0, %v3085_v63, 0.0 }
0x1f7b   : > { %3092 = vadd.xlane.f32.xlu1 %v3091_v1 }
0x2004   : > { %v3090_v54 = vpop.xlane.xlu1 %3089 }
0x2005   : > { %v3094_v55 = vmul.f32 0.015625, %v3090_v54 }
0x2007   : > { %v3096_v56 = vsub.f32 %v3084_v12, %v3094_v55 }
0x2008   : > { %v3093_v60 = vpop.xlane.xlu1 %3092 }
0x2009   : > { %v3095_v0 = vmul.f32 0.015625, %v3093_v60  ;;  %v3098_v3 = vmul.f32 %v3096_v56, %v3096_v56 }
0x200b   : > { %v3097_v4 = vsub.f32 %v3085_v63, %v3095_v0  ;;  %v3100_v57 = vsel %vm840_vm0, %v3098_v3, 0.0 }
0x200c   : > { %3101 = vadd.xlane.f32.xlu1 %v3100_v57 }
0x200d   : > { %v3099_v58 = vmul.f32 %v3097_v4, %v3097_v4 }
0x200f   : > { %v3103_v5 = vsel %vm840_vm0, %v3099_v58, 0.0 }
0x2010   : > { %3104 = vadd.xlane.f32.xlu1 %v3103_v5 }
0x2099   : > { %v3102_v19 = vpop.xlane.xlu1 %3101 }
0x209a   : > { %v3106_v20 = vmul.f32 0.015625, %v3102_v19 }
0x209c   : > { %v3108_v21 = vadd.f32 1e-05, %v3106_v20 }
0x209d   : > { %v3105_v23 = vpop.xlane.xlu1 %3104 }
0x209e   : > { %4013 = vrsqrt.f32 %v3108_v21  ;;  %v3107_v24 = vmul.f32 0.015625, %v3105_v23 }
0x20a0   : > { %v3109_v25 = vadd.f32 1e-05, %v3107_v24 }
0x20a2   : > { %4015 = vrsqrt.f32 %v3109_v25 }
0x20a8   : > { %v4014_v28 = vpop.eup %4013 }
0x20a9   : > { %v3112_v29 = vmul.f32 %v4014_v28, %v3096_v56 }
0x20ab   : > { %v3120_v31 = vmul.f32 %v3522_v62, %v3112_v29 }
0x20ac   : > { %v4016_v30 = vpop.eup %4015 }
0x20ad   : > { %v3113_v22 = vmul.f32 %v4016_v30, %v3097_v4  ;;  %v3128_v36 = vadd.f32 %v3523_v34, %v3120_v31 }
0x20af   : > { %v3121_v35 = vmul.f32 %v3522_v62, %v3113_v22 }
0x20b1   : > { %v3129_v59 = vadd.f32 %v3523_v34, %v3121_v35 }
0x20b3   : > { %v3146_v12 = vpack.c.bf16 %v3129_v59, %v3128_v36 }
0x20b5   : > { %3863 = vmatmul.mubr.msk.bf16.vlgmr.msra.gmra.mrb[56].mxu0 %vm840_vm0, %v3146_v12 }
0x2188   : > { %v3223_v39 = vpop.f32.mrb[56].mxu0 }
0x2189   : > { %v3224_v61 = vadd.f32 %v3524_v37, %v3223_v39  ;;  %v3864_v63 = vpop.f32.mrb[57].mxu0 }
0x218a   : > { %v3226_v1 = vpop.f32.mrb[58].mxu0 }
0x218b   : > { %3230 = vst [vmem:[%s5106_s7] sm:$0xff] %v3224_v61  ;;  %v3227_v42 = vadd.f32 %v3524_v37, %v3226_v1  ;;  %3232 = vmax.xlane.f32.xlu1 %v3224_v61  ;;  %v3865_v43 = vpop.f32.mrb[59].mxu0  ;;  %v3254_v41 = vmul.f32 %v3252_v33, %v3224_v61 }
0x218d   : > { %3231 = vst [vmem:[%s5106_s7 + $0x8] sm:$0xff] %v3227_v42  ;;  %v3255_v48 = vmul.f32 %v3253_v47, %v3227_v42  ;;  %s4029_s7 = sshll.u32 %s4099_s5, 4  ;;  %s4030_s7 = int_to_ptr.vmem [resolvable:$false] %s4029_s7 }
0x218e   : > { %s4031_s1 = scalar_lea.vmem %s4030_s7, 512  ;;  %p4032_p0 = scmp.lt.s32.totalorder %s5124_s0, %s4030_s7 }
0x218f   : > { %3234 = vmax.xlane.f32.xlu1 %v3227_v42  ;;  %p4033_p1 = scmp.lt.s32.totalorder %s4031_s1, %s4025_s29 }
0x2191   : > { %p4034_p2 = por %p4033_p1, %p4032_p0 }
0x2193   : > { %p4035_p3 = pnand %p4034_p2, %p4028_p13 }
0x2218   : > { %v3233_v14 = vpop.xlane.xlu1 %3232 }
0x2219   : > { %v3236_v13 = vsub.f32 %v3224_v61, %v3233_v14 }
0x221b   : > { %v3238_v44 = vmul.f32 1.442695, %v3236_v13 }
0x221c   : > { %v5110_v45 = vpop.xlane.xlu1 %3234 }
0x221d   : > { %4017 = vpow2.f32 %v3238_v44  ;;  %v3237_v38 = vsub.f32 %v3227_v42, %v5110_v45 }
0x221f   : > { %v3240_v2 = vmul.f32 1.442695, %v3237_v38 }
0x2221   : > { %4019 = vpow2.f32 %v3240_v2 }
0x2227   : > { %v4018_v32 = vpop.eup %4017 }
0x2228   : > { %3242 = vadd.xlane.f32.xlu0 %v4018_v32 }
0x222b   : > { %v4020_v46 = vpop.eup %4019 }
0x222c   : > { %3256 = vadd.xlane.f32.xlu0 %v3254_v41  ;;  %3244 = vadd.xlane.f32.xlu1 %v4020_v46 }
0x2230   : > { %3258 = vadd.xlane.f32.xlu1 %v3255_v48 }
0x2231   : > { %4038 = shalt.err (!%p4035_p3)
}
0x2232   : > { %s4039_s23 = scalar_lea.hbm %s5122_s8, 256  ;;  %s4043_s4 = scalar_lea.hbm %s5281_s3, 512 }
0x2233   : > { %p4040_p4 = scmp.ne.s32.totalorder %s5122_s8, %s4039_s23  ;;  %p4044_p9 = scmp.lt.u32.totalorder %s5122_s8, %s5281_s3 }
0x2234   : > { %p4045_p10 = scmp.lt.u32.totalorder %s4043_s4, %s4039_s23  ;;  %p4047_p12 = scmp.lt.u32.totalorder %s4039_s23, %s5122_s8 }
0x2235   : > { %p4041_p7 = pnand %p4040_p4, %p4270_p5 }
0x2236   : > { %p4046_p11 = por %p4045_p10, %p4044_p9 }
0x2237   : > { %p4042_p8 = pneg %p4041_p7 }
0x2238   : > { %p4048_p13 = por %p4047_p12, %p4046_p11 }
0x223a   : > { %p4049_p0 = pnand %p4048_p13, %p4042_p8 }
0x223c   : > { %4052 = shalt.err (!%p4049_p0)
}
0x223d   : > { %s4100_s29 = smov 128   ;;  %s4101_s1 = smov 8   ;;  %vm3262_vm5 = vcmask 7168  }
0x223e   : > { %3866 = dma.vmem_to_hbm [thread:$0]  (%p4270_p5), %s5124_s0, 256, %s5122_s8, %s5128_s9, %s4100_s29, %s4100_s29, %s4101_s1  }
0x223f   : > { %s5283_s28 = sld [smem:[#allocation26_spill]] }
0x2245   : > { %s829_s4 = scalar_lea.vmem %s5283_s28, %s5277_s24 }
0x22b5   : > { %v3243_v49 = vpop.xlane.xlu0 %3242 }
0x22b6   : > { %4021 = vlog2.f32 %v3243_v49 }
0x22b9   : > { %v3245_v50 = vpop.xlane.xlu1 %3244  ;;  %v3257_v54 = vpop.xlane.xlu0 %3256 }
0x22ba   : > { %4023 = vlog2.f32 %v3245_v50 }
0x22bd   : > { %v3259_v0 = vpop.xlane.xlu1 %3258 }
0x22c0   : > { %v4022_v40 = vpop.eup %4021 }
0x22c1   : > { %v3247_v51 = vmul.f32 0.6931472, %v4022_v40 }
0x22c3   : > { %v3250_v52 = vadd.f32 %v3247_v51, %v3233_v14 }
0x22c4   : > { %v4024_v53 = vpop.eup %4023 }
0x22c5   : > { %v3260_v55 = vsub.f32 %v3250_v52, %v3257_v54  ;;  %v3249_v56 = vmul.f32 0.6931472, %v4024_v53 }
0x22c7   : > { %3263 = vst.msk [vmem:[%s829_s4] sm:$0xff] %vm3262_vm5, %v3260_v55  ;;  %v3251_v60 = vadd.f32 %v3249_v56, %v5110_v45 }
0x22c9   : > { %v3261_v3 = vsub.f32 %v3251_v60, %v3259_v0 }
0x22cb   : > { %3264 = vst.msk [vmem:[%s829_s4 + $0x8] sm:$0xff] %vm3262_vm5, %v3261_v3 }
0x22cc PF: > { %s5284_s8 = sld [smem:[#allocation7_spill]]  ;;  %s5285_s30 = sld [smem:[#allocation5_spill]] }
0x22d2   : > { %p3872_p5 = scmp.ge.s32.totalorder %s5284_s8, 2  ;;  %s3302_s9 = sand.u32 1, %s5285_s30  }
0x22d3   : > { %s3303_s5 = scalar_lea.sflag [#allocation3], %s3302_s9 }
0x22d4   : > { %p3869_p1 = pnand %p3872_p5, %p4274_p6 }
0x22d6   : > { %4070 = dma.done.wait (!%p3869_p1), %s3303_s5, 256  }
0x22d7   : > { %4072 = vsyncadd (!%p3869_p1), %s3303_s5, 4294967040  ;;  %s5287_s30 = sld [smem:[#allocation9_spill]]  ;;  %s5288_s24 = sld [smem:[#allocation6_spill]] }
0x22d8   : > { %s5289_s6 = sld [smem:[#allocation10_spill]]  ;;  %s5290_s29 = smov %s4079_s2 }
0x22dd   : > { %p36_p2 = scmp.ge.s32.totalorder %s5287_s30, 4   ;;  %s5291_s2 = smov %s5288_s24 }
0x22df   :  { %38 = sbr.rel (!%p36_p2) target bundleno = 17 (0x11), region = 184 }
0x22e6   :  { %3316 = vsyncpa [#allocation3], 1 }
0x22e7   :  { %3318 = vsyncpa [#allocation3 + $0x1], 1 }

</bundles_post_ra>
